<compile_context>
chip_gen: v6e
topology: v6e:2x2x1
jax: 0.10.0
libtpu: 0.0.40
codegen_flags: <defaults>
</compile_context>

<pallas_src>
import functools

import jax
import jax.numpy as jnp
from jax.experimental import pallas as pl
from jax.experimental.pallas import tpu as pltpu


C_LANES = 128      # lane-dense working width inside the kernel
KT = KH = KW = 3   # 3x3x3 convolutions (r3d BasicBlock style)


# ---------------------------------------------------------------------------
# Fused kernel: stem conv -> BasicBlock(conv1, conv2 + residual) -> global pool
# ---------------------------------------------------------------------------
def fused_kernel(patch_ref, w0_ref, s0_ref, b0_ref,
                 w1_ref, s1_ref, b1_ref,
                 w2_ref, s2_ref, b2_ref,
                 o_ref,
                 p1_ref, p2_ref,
                 *, dims, bblk, c_real):
    D, H, W = dims
    B = bblk
    C = C_LANES
    R = D * H * W
    M = B * R

    # Lane masks for the kw packing.  Conv outputs have their c_real channels
    # replicated in lane blocks [0:c), [c:2c), [2c:3c) (weight columns are
    # replicated in the wrapper) and exact zeros above 3c, so packing needs only
    # sublane shifts + VPU selects - no cross-lane shuffles.
    lane = jax.lax.broadcasted_iota(jnp.int32, (1, C), 1)
    m_lo = lane < c_real            # lane block 0  <- A[w-1]
    m_hi = lane >= 2 * c_real       # lane block 2  <- A[w+1] (stays 0 above 3c)

    def zero_halo(p_ref):
        # Only the D/H halo slabs need zeros; the interior is fully rewritten
        # below.  Done every step (not once at program_id==0) so the kernel is
        # correct when the "parallel" grid axis is sharded across TensorCores.
        zd = jnp.zeros((B, H + 2, W, C), p_ref.dtype)
        zh = jnp.zeros((B, D, W, C), p_ref.dtype)
        p_ref[:, 0, :, :, :] = zd
        p_ref[:, D + 1, :, :, :] = zd
        p_ref[:, 1:D + 1, 0, :, :] = zh
        p_ref[:, 1:D + 1, H + 1, :, :] = zh

    def pack_kw(y_flat):
        # y_flat: (M, C) f32, channels replicated per lane block (see above).
        # Returns the packed conv input (B, D, H, W, C) bf16 with
        # lanes [0:c) = A[w-1], [c:2c) = A[w], [2c:3c) = A[w+1], rest 0.
        y = y_flat.reshape(B, D, H, W, C).astype(jnp.bfloat16)
        zrow = jnp.zeros((B, D, H, 1, C), jnp.bfloat16)
        a_wm1 = jnp.concatenate([zrow, y[:, :, :, :W - 1, :]], axis=3)  # A[w-1]
        a_wp1 = jnp.concatenate([y[:, :, :, 1:, :], zrow], axis=3)      # A[w+1]
        packed = jnp.where(m_lo, a_wm1, y)
        packed = jnp.where(m_hi, a_wp1, packed)
        return packed

    def conv9(p_ref, w_ref, s_ref, b_ref):
        # 9 tile-aligned (kt, kh) taps; kw lives in the lane dim of the packed
        # buffer.  Per-tap MXU matmuls accumulated in f32 -> no materialized
        # im2col operand and no misaligned sublane slices.
        acc = None
        for kt in range(KT):
            for kh in range(KH):
                tap = p_ref[:, kt:kt + D, kh:kh + H, :, :].reshape(M, C)
                part = jnp.dot(tap, w_ref[kt * KH + kh],
                               preferred_element_type=jnp.float32)
                acc = part if acc is None else acc + part
        return acc * s_ref[...] + b_ref[...]        # folded-BN epilogue, f32

    # ---- stem: one aligned (M,128)x(128,128) matmul on wrapper-built patches
    x = patch_ref[...].reshape(M, C)
    y0 = jnp.maximum(
        jnp.dot(x, w0_ref[...], preferred_element_type=jnp.float32)
        * s0_ref[...] + b0_ref[...], 0.0)                           # (M, C) f32

    # ---- BasicBlock conv1: conv + BN + ReLU
    zero_halo(p1_ref)
    p1_ref[:, 1:D + 1, 1:H + 1, :, :] = pack_kw(y0)
    y1 = jnp.maximum(conv9(p1_ref, w1_ref, s1_ref, b1_ref), 0.0)

    # ---- BasicBlock conv2: conv + BN + residual(stem out, f32) + ReLU
    zero_halo(p2_ref)
    p2_ref[:, 1:D + 1, 1:H + 1, :, :] = pack_kw(y1)
    y2 = jnp.maximum(conv9(p2_ref, w2_ref, s2_ref, b2_ref) + y0, 0.0)

    # ---- global average pool (AdaptiveAvgPool3d(1)), f32
    pooled = jnp.sum(y2.reshape(B, R, C), axis=1) * (1.0 / R)       # (B, C)
    if B < 8:   # pad to a dense (8,128) slab -> unmasked stores
        pooled = jnp.concatenate(
            [pooled, jnp.zeros((8 - B, C), jnp.float32)], axis=0)
    o_ref[0] = pooled


# ---------------------------------------------------------------------------
# Deterministic parameter construction (BN folded for eval mode)
# ---------------------------------------------------------------------------
def fold_bn(gamma, beta, mean, var, eps=1e-5):
    scale = gamma / jnp.sqrt(var + eps)
    return scale, beta - mean * scale


def init_params(key, cin=3, c0=32, num_classes=2):
    ks = jax.random.split(key, 8)

    def conv_w(k, ci, co):
        fan_in = KT * KH * KW * ci
        return jax.random.normal(k, (KT, KH, KW, ci, co), jnp.float32) / jnp.sqrt(fan_in)

    def bn(k, c):
        g = 1.0 + 0.1 * jax.random.normal(k, (c,), jnp.float32)
        return fold_bn(g, jnp.zeros((c,), jnp.float32),
                       jnp.zeros((c,), jnp.float32), jnp.ones((c,), jnp.float32))

    p = {}
    p["stem_w"] = conv_w(ks[0], cin, c0)
    p["stem_scale"], p["stem_bias"] = bn(ks[1], c0)
    p["b1_w"] = conv_w(ks[2], c0, c0)
    p["b1_scale"], p["b1_bias"] = bn(ks[3], c0)
    p["b2_w"] = conv_w(ks[4], c0, c0)
    p["b2_scale"], p["b2_bias"] = bn(ks[5], c0)
    p["fc_w"] = jax.random.normal(ks[6], (c0, num_classes), jnp.float32) / jnp.sqrt(c0)
    p["fc_b"] = 0.01 * jax.random.normal(ks[7], (num_classes,), jnp.float32)
    return p


# ---------------------------------------------------------------------------
# Forward pass wrapper: layout plumbing (XLA) + one fused pallas_call + fc
# ---------------------------------------------------------------------------
def base_model_forward(x_ncdhw, p, *, batch_block=2):
    """x_ncdhw: (N, C, T, H, W) like the PyTorch video backbone input."""
    N, cin, D, H, W = x_ncdhw.shape
    c0 = p["b1_w"].shape[-1]
    C = C_LANES
    R = D * H * W
    k_stem = KT * KH * KW * cin
    assert N % batch_block == 0, "batch must be divisible by batch_block"
    assert 3 * c0 <= C and k_stem <= C and W >= 2
    nsteps = N // batch_block

    # ---- stem im2col in XLA (real K = 27*cin, no 27*128 zero-padded K) -------
    x = jnp.transpose(x_ncdhw, (0, 2, 3, 4, 1)).astype(jnp.float32)
    xp = jnp.pad(x, ((0, 0), (1, 1), (1, 1), (1, 1), (0, 0)))
    cols = []
    for kt in range(KT):
        for kh in range(KH):
            for kw in range(KW):
                cols.append(xp[:, kt:kt + D, kh:kh + H, kw:kw + W, :].reshape(N, R, cin))
    patches = jnp.concatenate(cols, axis=-1)                       # (N, R, 27*cin)
    patches = jnp.pad(patches, ((0, 0), (0, 0), (0, C - k_stem))).astype(jnp.bfloat16)

    # ---- weight packing ------------------------------------------------------
    def rep_cols(w_kc):
        # (..., K, c0) -> (..., K, C): output columns replicated into 3 lane
        # blocks so the conv result is already laid out for the kw lane-packing.
        pad = jnp.zeros(w_kc.shape[:-1] + (C - 3 * c0,), jnp.float32)
        return jnp.concatenate([w_kc, w_kc, w_kc, pad], axis=-1)

    def rep_vec(v):
        pad = jnp.zeros((C - 3 * c0,), jnp.float32)
        return jnp.concatenate([v, v, v, pad])[None, :]             # (1, C)

    w0 = jnp.zeros((C, C), jnp.float32).at[:k_stem, :].set(
        rep_cols(p["stem_w"].reshape(k_stem, c0))).astype(jnp.bfloat16)

    def pack_block_w(w):
        # (3,3,3,c0,c0) -> (9, 128, 128); K rows = c0*kw + ci (kw folded into
        # the lanes of the packed activation), columns replicated x3.
        wk = rep_cols(w.reshape(KT, KH, KW * c0, c0))               # (3,3,3c0,C)
        wk = jnp.zeros((KT, KH, C, C), jnp.float32).at[:, :, :KW * c0, :].set(wk)
        return wk.reshape(KT * KH, C, C).astype(jnp.bfloat16)

    w1, w2 = pack_block_w(p["b1_w"]), pack_block_w(p["b2_w"])
    s0, b0 = rep_vec(p["stem_scale"]), rep_vec(p["stem_bias"])
    s1, b1 = rep_vec(p["b1_scale"]), rep_vec(p["b1_bias"])
    s2, b2 = rep_vec(p["b2_scale"]), rep_vec(p["b2_bias"])

    # ---- fused pallas_call ---------------------------------------------------
    kernel = functools.partial(
        fused_kernel, dims=(D, H, W), bblk=batch_block, c_real=c0)

    def const_spec(shape):
        zeros = (0,) * len(shape)
        return pl.BlockSpec(shape, lambda i: zeros)

    in_specs = [
        pl.BlockSpec((batch_block, R, C), lambda i: (i, 0, 0)),     # stem patches
        const_spec((C, C)), const_spec((1, C)), const_spec((1, C)),            # stem
        const_spec((KT * KH, C, C)), const_spec((1, C)), const_spec((1, C)),   # conv1
        const_spec((KT * KH, C, C)), const_spec((1, C)), const_spec((1, C)),   # conv2
    ]

    out = pl.pallas_call(
        kernel,
        out_shape=jax.ShapeDtypeStruct((nsteps, 8, C), jnp.float32),
        grid=(nsteps,),
        in_specs=in_specs,
        out_specs=pl.BlockSpec((1, 8, C), lambda i: (i, 0, 0)),
        scratch_shapes=[
            pltpu.VMEM((batch_block, D + 2, H + 2, W, C), jnp.bfloat16),  # packed y0
            pltpu.VMEM((batch_block, D + 2, H + 2, W, C), jnp.bfloat16),  # packed y1
        ],
        compiler_params=pltpu.CompilerParams(
            dimension_semantics=("parallel",)),
    )(patches, w0, s0, b0, w1, s1, b1, w2, s2, b2)

    # shallow fc head in XLA on the pooled features (f32, batched over N)
    feats = out[:, :batch_block, :].reshape(N, C)[:, :c0]
    return feats @ p["fc_w"] + p["fc_b"]


# ---------------------------------------------------------------------------
# Pure-JAX f32 reference (same scaled-down structure) for a tolerance check
# ---------------------------------------------------------------------------
def reference_forward(x_ncdhw, p):
    N, cin, D, H, W = x_ncdhw.shape
    hi = jax.lax.Precision.HIGHEST
    x = jnp.transpose(x_ncdhw, (0, 2, 3, 4, 1)).astype(jnp.float32)

    def conv3(a, w):
        ap = jnp.pad(a, ((0, 0), (1, 1), (1, 1), (1, 1), (0, 0)))
        out = 0.0
        for kt in range(KT):
            for kh in range(KH):
                for kw in range(KW):
                    out = out + jnp.einsum(
                        "ndhwc,cf->ndhwf",
                        ap[:, kt:kt + D, kh:kh + H, kw:kw + W, :],
                        w[kt, kh, kw], precision=hi)
        return out

    y0 = jax.nn.relu(conv3(x, p["stem_w"]) * p["stem_scale"] + p["stem_bias"])
    y1 = jax.nn.relu(conv3(y0, p["b1_w"]) * p["b1_scale"] + p["b1_bias"])
    y2 = jax.nn.relu(conv3(y1, p["b2_w"]) * p["b2_scale"] + p["b2_bias"] + y0)
    pooled = y2.mean(axis=(1, 2, 3))
    return pooled @ p["fc_w"] + p["fc_b"]


if __name__ == "__main__":
    key = jax.random.PRNGKey(0)
    k_x, k_p = jax.random.split(key)
    # small video clip: batch=2, channels=3, frames=4, 8x8 spatial (NCDHW)
    x = jax.random.normal(k_x, (2, 3, 4, 8, 8), jnp.float32)
    params = init_params(k_p, cin=3, c0=32, num_classes=2)

    fwd = jax.jit(functools.partial(base_model_forward, batch_block=2))
    out = jax.block_until_ready(fwd(x, params))
    assert out.shape == (2, 2), out.shape

    # bf16 MXU operands / f32 accumulation vs. the f32 reference: tolerance check
    ref = jax.block_until_ready(jax.jit(reference_forward)(x, params))
    assert float(jnp.max(jnp.abs(out - ref))) < 6e-2, (out, ref)

    print("KERNEL_OK")
</pallas_src>

<mosaic_0001>
module attributes {stable_mosaic.version = 11 : i64} {
  func.func @fused_kernel(%arg0: i32, %arg1: memref<2x256x128xbf16, #tpu.memory_space<vmem>>, %arg2: memref<128x128xbf16, #tpu.memory_space<vmem>>, %arg3: memref<1x128xf32, #tpu.memory_space<vmem>>, %arg4: memref<1x128xf32, #tpu.memory_space<vmem>>, %arg5: memref<9x128x128xbf16, #tpu.memory_space<vmem>>, %arg6: memref<1x128xf32, #tpu.memory_space<vmem>>, %arg7: memref<1x128xf32, #tpu.memory_space<vmem>>, %arg8: memref<9x128x128xbf16, #tpu.memory_space<vmem>>, %arg9: memref<1x128xf32, #tpu.memory_space<vmem>>, %arg10: memref<1x128xf32, #tpu.memory_space<vmem>>, %arg11: memref<1x8x128xf32, #tpu.memory_space<vmem>>, %arg12: memref<2x6x10x8x128xbf16, #tpu.memory_space<vmem>>, %arg13: memref<2x6x10x8x128xbf16, #tpu.memory_space<vmem>>) attributes {dimension_semantics = [#tpu.dimension_semantics<parallel>], iteration_bounds = array<i64: 1>, scalar_prefetch = 0 : i64, scratch_operands = 2 : i64, tpu.core_type = #tpu.core_type<tc>, window_params = [{transform_indices = @transform_0, window_bounds = array<i64: 2, 256, 128>}, {pipeline_mode = #tpu.pipeline_mode<synchronous>, transform_indices = @transform_1, window_bounds = array<i64: 128, 128>}, {pipeline_mode = #tpu.pipeline_mode<synchronous>, transform_indices = @transform_2, window_bounds = array<i64: 1, 128>}, {pipeline_mode = #tpu.pipeline_mode<synchronous>, transform_indices = @transform_3, window_bounds = array<i64: 1, 128>}, {pipeline_mode = #tpu.pipeline_mode<synchronous>, transform_indices = @transform_4, window_bounds = array<i64: 9, 128, 128>}, {pipeline_mode = #tpu.pipeline_mode<synchronous>, transform_indices = @transform_5, window_bounds = array<i64: 1, 128>}, {pipeline_mode = #tpu.pipeline_mode<synchronous>, transform_indices = @transform_6, window_bounds = array<i64: 1, 128>}, {pipeline_mode = #tpu.pipeline_mode<synchronous>, transform_indices = @transform_7, window_bounds = array<i64: 9, 128, 128>}, {pipeline_mode = #tpu.pipeline_mode<synchronous>, transform_indices = @transform_8, window_bounds = array<i64: 1, 128>}, {pipeline_mode = #tpu.pipeline_mode<synchronous>, transform_indices = @transform_9, window_bounds = array<i64: 1, 128>}, {transform_indices = @transform_10, window_bounds = array<i64: 1, 8, 128>}]} {
    %0 = tpu.iota {dimensions = array<i32: 1>} : vector<1x128xi32>
    %c32_i32 = arith.constant 32 : i32
    %1 = vector.broadcast %c32_i32 : i32 to vector<1x128xi32>
    %2 = arith.cmpi slt, %0, %1 : vector<1x128xi32>
    %c64_i32 = arith.constant 64 : i32
    %3 = vector.broadcast %c64_i32 : i32 to vector<1x128xi32>
    %4 = arith.cmpi sge, %0, %3 : vector<1x128xi32>
    %c0 = arith.constant 0 : index
    %c0_0 = arith.constant 0 : index
    %c0_1 = arith.constant 0 : index
    %5 = vector.load %arg1[%c0, %c0_0, %c0_1] : memref<2x256x128xbf16, #tpu.memory_space<vmem>>, vector<2x256x128xbf16>
    %6 = vector.shape_cast %5 : vector<2x256x128xbf16> to vector<512x128xbf16>
    %c0_2 = arith.constant 0 : index
    %c0_3 = arith.constant 0 : index
    %7 = vector.load %arg2[%c0_2, %c0_3] : memref<128x128xbf16, #tpu.memory_space<vmem>>, vector<128x128xbf16>
    %cst = arith.constant dense<0.000000e+00> : vector<512x128xf32>
    %8 = tpu.matmul %6, %7, %cst {dimension_numbers = #tpu.dot_dimension_numbers<[1], [0], [0], [1], [0, 0, 1, 1], [], []>} : vector<512x128xbf16>, vector<128x128xbf16>, vector<512x128xf32> -> vector<512x128xf32>
    %c0_4 = arith.constant 0 : index
    %c0_5 = arith.constant 0 : index
    %9 = vector.load %arg3[%c0_4, %c0_5] : memref<1x128xf32, #tpu.memory_space<vmem>>, vector<1x128xf32>
    %10 = vector.broadcast %9 : vector<1x128xf32> to vector<512x128xf32>
    %11 = arith.mulf %8, %10 : vector<512x128xf32>
    %c0_6 = arith.constant 0 : index
    %c0_7 = arith.constant 0 : index
    %12 = vector.load %arg4[%c0_6, %c0_7] : memref<1x128xf32, #tpu.memory_space<vmem>>, vector<1x128xf32>
    %13 = vector.broadcast %12 : vector<1x128xf32> to vector<512x128xf32>
    %14 = arith.addf %11, %13 : vector<512x128xf32>
    %cst_8 = arith.constant 0.000000e+00 : f32
    %15 = vector.broadcast %cst_8 : f32 to vector<512x128xf32>
    %16 = arith.maximumf %14, %15 : vector<512x128xf32>
    %cst_9 = arith.constant 0.000000e+00 : bf16
    %17 = vector.broadcast %cst_9 : bf16 to vector<2x10x8x128xbf16>
    %cst_10 = arith.constant 0.000000e+00 : bf16
    %18 = vector.broadcast %cst_10 : bf16 to vector<2x4x8x128xbf16>
    %c0_11 = arith.constant 0 : index
    %c0_12 = arith.constant 0 : index
    %c0_13 = arith.constant 0 : index
    %c0_14 = arith.constant 0 : index
    %c0_15 = arith.constant 0 : index
    %19 = vector.load %arg12[%c0_11, %c0_12, %c0_13, %c0_14, %c0_15] : memref<2x6x10x8x128xbf16, #tpu.memory_space<vmem>>, vector<2x1x10x8x128xbf16>
    %20 = vector.shape_cast %19 : vector<2x1x10x8x128xbf16> to vector<2x10x8x128xbf16>
    %21 = vector.shape_cast %17 : vector<2x10x8x128xbf16> to vector<2x1x10x8x128xbf16>
    tpu.vector_store %arg12[%c0_11, %c0_12, %c0_13, %c0_14, %c0_15], %21 {strides = array<i32>} : memref<2x6x10x8x128xbf16, #tpu.memory_space<vmem>>, vector<2x1x10x8x128xbf16>,
    %c0_16 = arith.constant 0 : index
    %c5 = arith.constant 5 : index
    %c0_17 = arith.constant 0 : index
    %c0_18 = arith.constant 0 : index
    %c0_19 = arith.constant 0 : index
    %22 = vector.load %arg12[%c0_16, %c5, %c0_17, %c0_18, %c0_19] : memref<2x6x10x8x128xbf16, #tpu.memory_space<vmem>>, vector<2x1x10x8x128xbf16>
    %23 = vector.shape_cast %22 : vector<2x1x10x8x128xbf16> to vector<2x10x8x128xbf16>
    %24 = vector.shape_cast %17 : vector<2x10x8x128xbf16> to vector<2x1x10x8x128xbf16>
    tpu.vector_store %arg12[%c0_16, %c5, %c0_17, %c0_18, %c0_19], %24 {strides = array<i32>} : memref<2x6x10x8x128xbf16, #tpu.memory_space<vmem>>, vector<2x1x10x8x128xbf16>,
    %c0_20 = arith.constant 0 : index
    %c1 = arith.constant 1 : index
    %c0_21 = arith.constant 0 : index
    %c0_22 = arith.constant 0 : index
    %c0_23 = arith.constant 0 : index
    %25 = vector.load %arg12[%c0_20, %c1, %c0_21, %c0_22, %c0_23] : memref<2x6x10x8x128xbf16, #tpu.memory_space<vmem>>, vector<2x4x1x8x128xbf16>
    %26 = vector.shape_cast %25 : vector<2x4x1x8x128xbf16> to vector<2x4x8x128xbf16>
    %27 = vector.shape_cast %18 : vector<2x4x8x128xbf16> to vector<2x4x1x8x128xbf16>
    tpu.vector_store %arg12[%c0_20, %c1, %c0_21, %c0_22, %c0_23], %27 {strides = array<i32>} : memref<2x6x10x8x128xbf16, #tpu.memory_space<vmem>>, vector<2x4x1x8x128xbf16>,
    %c0_24 = arith.constant 0 : index
    %c1_25 = arith.constant 1 : index
    %c9 = arith.constant 9 : index
    %c0_26 = arith.constant 0 : index
    %c0_27 = arith.constant 0 : index
    %28 = vector.load %arg12[%c0_24, %c1_25, %c9, %c0_26, %c0_27] : memref<2x6x10x8x128xbf16, #tpu.memory_space<vmem>>, vector<2x4x1x8x128xbf16>
    %29 = vector.shape_cast %28 : vector<2x4x1x8x128xbf16> to vector<2x4x8x128xbf16>
    %30 = vector.shape_cast %18 : vector<2x4x8x128xbf16> to vector<2x4x1x8x128xbf16>
    tpu.vector_store %arg12[%c0_24, %c1_25, %c9, %c0_26, %c0_27], %30 {strides = array<i32>} : memref<2x6x10x8x128xbf16, #tpu.memory_space<vmem>>, vector<2x4x1x8x128xbf16>,
    %31 = vector.shape_cast %16 : vector<512x128xf32> to vector<2x4x8x8x128xf32>
    %32 = arith.truncf %31 : vector<2x4x8x8x128xf32> to vector<2x4x8x8x128xbf16>
    %cst_28 = arith.constant 0.000000e+00 : bf16
    %33 = vector.broadcast %cst_28 : bf16 to vector<2x4x8x1x128xbf16>
    %34 = vector.extract_strided_slice %32 {offsets = [0, 0, 0, 0, 0], sizes = [2, 4, 8, 7, 128], strides = [1, 1, 1, 1, 1]} : vector<2x4x8x8x128xbf16> to vector<2x4x8x7x128xbf16>
    %35 = tpu.concatenate %33, %34 in 3 : vector<2x4x8x1x128xbf16>, vector<2x4x8x7x128xbf16> -> vector<2x4x8x8x128xbf16>
    %36 = vector.extract_strided_slice %32 {offsets = [0, 0, 0, 1, 0], sizes = [2, 4, 8, 7, 128], strides = [1, 1, 1, 1, 1]} : vector<2x4x8x8x128xbf16> to vector<2x4x8x7x128xbf16>
    %37 = tpu.concatenate %36, %33 in 3 : vector<2x4x8x7x128xbf16>, vector<2x4x8x1x128xbf16> -> vector<2x4x8x8x128xbf16>
    %38 = vector.shape_cast %2 : vector<1x128xi1> to vector<1x1x1x1x128xi1>
    %39 = vector.broadcast %38 : vector<1x1x1x1x128xi1> to vector<2x4x8x8x128xi1>
    %40 = arith.select %39, %35, %32 : vector<2x4x8x8x128xi1>, vector<2x4x8x8x128xbf16>
    %41 = vector.shape_cast %4 : vector<1x128xi1> to vector<1x1x1x1x128xi1>
    %42 = vector.broadcast %41 : vector<1x1x1x1x128xi1> to vector<2x4x8x8x128xi1>
    %43 = arith.select %42, %37, %40 : vector<2x4x8x8x128xi1>, vector<2x4x8x8x128xbf16>
    %c0_29 = arith.constant 0 : index
    %c1_30 = arith.constant 1 : index
    %c1_31 = arith.constant 1 : index
    %c0_32 = arith.constant 0 : index
    %c0_33 = arith.constant 0 : index
    %44 = vector.load %arg12[%c0_29, %c1_30, %c1_31, %c0_32, %c0_33] : memref<2x6x10x8x128xbf16, #tpu.memory_space<vmem>>, vector<2x4x8x8x128xbf16>
    tpu.vector_store %arg12[%c0_29, %c1_30, %c1_31, %c0_32, %c0_33], %43 {strides = array<i32>} : memref<2x6x10x8x128xbf16, #tpu.memory_space<vmem>>, vector<2x4x8x8x128xbf16>,
    %c0_34 = arith.constant 0 : index
    %c0_35 = arith.constant 0 : index
    %c0_36 = arith.constant 0 : index
    %c0_37 = arith.constant 0 : index
    %c0_38 = arith.constant 0 : index
    %45 = vector.load %arg12[%c0_34, %c0_35, %c0_36, %c0_37, %c0_38] : memref<2x6x10x8x128xbf16, #tpu.memory_space<vmem>>, vector<2x4x8x8x128xbf16>
    %46 = vector.shape_cast %45 : vector<2x4x8x8x128xbf16> to vector<512x128xbf16>
    %c0_39 = arith.constant 0 : index
    %c0_40 = arith.constant 0 : index
    %c0_41 = arith.constant 0 : index
    %47 = vector.load %arg5[%c0_39, %c0_40, %c0_41] : memref<9x128x128xbf16, #tpu.memory_space<vmem>>, vector<1x128x128xbf16>
    %48 = vector.shape_cast %47 : vector<1x128x128xbf16> to vector<128x128xbf16>
    %cst_42 = arith.constant dense<0.000000e+00> : vector<512x128xf32>
    %49 = tpu.matmul %46, %48, %cst_42 {dimension_numbers = #tpu.dot_dimension_numbers<[1], [0], [0], [1], [0, 0, 1, 1], [], []>} : vector<512x128xbf16>, vector<128x128xbf16>, vector<512x128xf32> -> vector<512x128xf32>
    %c0_43 = arith.constant 0 : index
    %c0_44 = arith.constant 0 : index
    %c1_45 = arith.constant 1 : index
    %c0_46 = arith.constant 0 : index
    %c0_47 = arith.constant 0 : index
    %50 = vector.load %arg12[%c0_43, %c0_44, %c1_45, %c0_46, %c0_47] : memref<2x6x10x8x128xbf16, #tpu.memory_space<vmem>>, vector<2x4x8x8x128xbf16>
    %51 = vector.shape_cast %50 : vector<2x4x8x8x128xbf16> to vector<512x128xbf16>
    %c1_48 = arith.constant 1 : index
    %c0_49 = arith.constant 0 : index
    %c0_50 = arith.constant 0 : index
    %52 = vector.load %arg5[%c1_48, %c0_49, %c0_50] : memref<9x128x128xbf16, #tpu.memory_space<vmem>>, vector<1x128x128xbf16>
    %53 = vector.shape_cast %52 : vector<1x128x128xbf16> to vector<128x128xbf16>
    %cst_51 = arith.constant dense<0.000000e+00> : vector<512x128xf32>
    %54 = tpu.matmul %51, %53, %cst_51 {dimension_numbers = #tpu.dot_dimension_numbers<[1], [0], [0], [1], [0, 0, 1, 1], [], []>} : vector<512x128xbf16>, vector<128x128xbf16>, vector<512x128xf32> -> vector<512x128xf32>
    %55 = arith.addf %49, %54 : vector<512x128xf32>
    %c0_52 = arith.constant 0 : index
    %c0_53 = arith.constant 0 : index
    %c2 = arith.constant 2 : index
    %c0_54 = arith.constant 0 : index
    %c0_55 = arith.constant 0 : index
    %56 = vector.load %arg12[%c0_52, %c0_53, %c2, %c0_54, %c0_55] : memref<2x6x10x8x128xbf16, #tpu.memory_space<vmem>>, vector<2x4x8x8x128xbf16>
    %57 = vector.shape_cast %56 : vector<2x4x8x8x128xbf16> to vector<512x128xbf16>
    %c2_56 = arith.constant 2 : index
    %c0_57 = arith.constant 0 : index
    %c0_58 = arith.constant 0 : index
    %58 = vector.load %arg5[%c2_56, %c0_57, %c0_58] : memref<9x128x128xbf16, #tpu.memory_space<vmem>>, vector<1x128x128xbf16>
    %59 = vector.shape_cast %58 : vector<1x128x128xbf16> to vector<128x128xbf16>
    %cst_59 = arith.constant dense<0.000000e+00> : vector<512x128xf32>
    %60 = tpu.matmul %57, %59, %cst_59 {dimension_numbers = #tpu.dot_dimension_numbers<[1], [0], [0], [1], [0, 0, 1, 1], [], []>} : vector<512x128xbf16>, vector<128x128xbf16>, vector<512x128xf32> -> vector<512x128xf32>
    %61 = arith.addf %55, %60 : vector<512x128xf32>
    %c0_60 = arith.constant 0 : index
    %c1_61 = arith.constant 1 : index
    %c0_62 = arith.constant 0 : index
    %c0_63 = arith.constant 0 : index
    %c0_64 = arith.constant 0 : index
    %62 = vector.load %arg12[%c0_60, %c1_61, %c0_62, %c0_63, %c0_64] : memref<2x6x10x8x128xbf16, #tpu.memory_space<vmem>>, vector<2x4x8x8x128xbf16>
    %63 = vector.shape_cast %62 : vector<2x4x8x8x128xbf16> to vector<512x128xbf16>
    %c3 = arith.constant 3 : index
    %c0_65 = arith.constant 0 : index
    %c0_66 = arith.constant 0 : index
    %64 = vector.load %arg5[%c3, %c0_65, %c0_66] : memref<9x128x128xbf16, #tpu.memory_space<vmem>>, vector<1x128x128xbf16>
    %65 = vector.shape_cast %64 : vector<1x128x128xbf16> to vector<128x128xbf16>
    %cst_67 = arith.constant dense<0.000000e+00> : vector<512x128xf32>
    %66 = tpu.matmul %63, %65, %cst_67 {dimension_numbers = #tpu.dot_dimension_numbers<[1], [0], [0], [1], [0, 0, 1, 1], [], []>} : vector<512x128xbf16>, vector<128x128xbf16>, vector<512x128xf32> -> vector<512x128xf32>
    %67 = arith.addf %61, %66 : vector<512x128xf32>
    %c0_68 = arith.constant 0 : index
    %c1_69 = arith.constant 1 : index
    %c1_70 = arith.constant 1 : index
    %c0_71 = arith.constant 0 : index
    %c0_72 = arith.constant 0 : index
    %68 = vector.load %arg12[%c0_68, %c1_69, %c1_70, %c0_71, %c0_72] : memref<2x6x10x8x128xbf16, #tpu.memory_space<vmem>>, vector<2x4x8x8x128xbf16>
    %69 = vector.shape_cast %68 : vector<2x4x8x8x128xbf16> to vector<512x128xbf16>
    %c4 = arith.constant 4 : index
    %c0_73 = arith.constant 0 : index
    %c0_74 = arith.constant 0 : index
    %70 = vector.load %arg5[%c4, %c0_73, %c0_74] : memref<9x128x128xbf16, #tpu.memory_space<vmem>>, vector<1x128x128xbf16>
    %71 = vector.shape_cast %70 : vector<1x128x128xbf16> to vector<128x128xbf16>
    %cst_75 = arith.constant dense<0.000000e+00> : vector<512x128xf32>
    %72 = tpu.matmul %69, %71, %cst_75 {dimension_numbers = #tpu.dot_dimension_numbers<[1], [0], [0], [1], [0, 0, 1, 1], [], []>} : vector<512x128xbf16>, vector<128x128xbf16>, vector<512x128xf32> -> vector<512x128xf32>
    %73 = arith.addf %67, %72 : vector<512x128xf32>
    %c0_76 = arith.constant 0 : index
    %c1_77 = arith.constant 1 : index
    %c2_78 = arith.constant 2 : index
    %c0_79 = arith.constant 0 : index
    %c0_80 = arith.constant 0 : index
    %74 = vector.load %arg12[%c0_76, %c1_77, %c2_78, %c0_79, %c0_80] : memref<2x6x10x8x128xbf16, #tpu.memory_space<vmem>>, vector<2x4x8x8x128xbf16>
    %75 = vector.shape_cast %74 : vector<2x4x8x8x128xbf16> to vector<512x128xbf16>
    %c5_81 = arith.constant 5 : index
    %c0_82 = arith.constant 0 : index
    %c0_83 = arith.constant 0 : index
    %76 = vector.load %arg5[%c5_81, %c0_82, %c0_83] : memref<9x128x128xbf16, #tpu.memory_space<vmem>>, vector<1x128x128xbf16>
    %77 = vector.shape_cast %76 : vector<1x128x128xbf16> to vector<128x128xbf16>
    %cst_84 = arith.constant dense<0.000000e+00> : vector<512x128xf32>
    %78 = tpu.matmul %75, %77, %cst_84 {dimension_numbers = #tpu.dot_dimension_numbers<[1], [0], [0], [1], [0, 0, 1, 1], [], []>} : vector<512x128xbf16>, vector<128x128xbf16>, vector<512x128xf32> -> vector<512x128xf32>
    %79 = arith.addf %73, %78 : vector<512x128xf32>
    %c0_85 = arith.constant 0 : index
    %c2_86 = arith.constant 2 : index
    %c0_87 = arith.constant 0 : index
    %c0_88 = arith.constant 0 : index
    %c0_89 = arith.constant 0 : index
    %80 = vector.load %arg12[%c0_85, %c2_86, %c0_87, %c0_88, %c0_89] : memref<2x6x10x8x128xbf16, #tpu.memory_space<vmem>>, vector<2x4x8x8x128xbf16>
    %81 = vector.shape_cast %80 : vector<2x4x8x8x128xbf16> to vector<512x128xbf16>
    %c6 = arith.constant 6 : index
    %c0_90 = arith.constant 0 : index
    %c0_91 = arith.constant 0 : index
    %82 = vector.load %arg5[%c6, %c0_90, %c0_91] : memref<9x128x128xbf16, #tpu.memory_space<vmem>>, vector<1x128x128xbf16>
    %83 = vector.shape_cast %82 : vector<1x128x128xbf16> to vector<128x128xbf16>
    %cst_92 = arith.constant dense<0.000000e+00> : vector<512x128xf32>
    %84 = tpu.matmul %81, %83, %cst_92 {dimension_numbers = #tpu.dot_dimension_numbers<[1], [0], [0], [1], [0, 0, 1, 1], [], []>} : vector<512x128xbf16>, vector<128x128xbf16>, vector<512x128xf32> -> vector<512x128xf32>
    %85 = arith.addf %79, %84 : vector<512x128xf32>
    %c0_93 = arith.constant 0 : index
    %c2_94 = arith.constant 2 : index
    %c1_95 = arith.constant 1 : index
    %c0_96 = arith.constant 0 : index
    %c0_97 = arith.constant 0 : index
    %86 = vector.load %arg12[%c0_93, %c2_94, %c1_95, %c0_96, %c0_97] : memref<2x6x10x8x128xbf16, #tpu.memory_space<vmem>>, vector<2x4x8x8x128xbf16>
    %87 = vector.shape_cast %86 : vector<2x4x8x8x128xbf16> to vector<512x128xbf16>
    %c7 = arith.constant 7 : index
    %c0_98 = arith.constant 0 : index
    %c0_99 = arith.constant 0 : index
    %88 = vector.load %arg5[%c7, %c0_98, %c0_99] : memref<9x128x128xbf16, #tpu.memory_space<vmem>>, vector<1x128x128xbf16>
    %89 = vector.shape_cast %88 : vector<1x128x128xbf16> to vector<128x128xbf16>
    %cst_100 = arith.constant dense<0.000000e+00> : vector<512x128xf32>
    %90 = tpu.matmul %87, %89, %cst_100 {dimension_numbers = #tpu.dot_dimension_numbers<[1], [0], [0], [1], [0, 0, 1, 1], [], []>} : vector<512x128xbf16>, vector<128x128xbf16>, vector<512x128xf32> -> vector<512x128xf32>
    %91 = arith.addf %85, %90 : vector<512x128xf32>
    %c0_101 = arith.constant 0 : index
    %c2_102 = arith.constant 2 : index
    %c2_103 = arith.constant 2 : index
    %c0_104 = arith.constant 0 : index
    %c0_105 = arith.constant 0 : index
    %92 = vector.load %arg12[%c0_101, %c2_102, %c2_103, %c0_104, %c0_105] : memref<2x6x10x8x128xbf16, #tpu.memory_space<vmem>>, vector<2x4x8x8x128xbf16>
    %93 = vector.shape_cast %92 : vector<2x4x8x8x128xbf16> to vector<512x128xbf16>
    %c8 = arith.constant 8 : index
    %c0_106 = arith.constant 0 : index
    %c0_107 = arith.constant 0 : index
    %94 = vector.load %arg5[%c8, %c0_106, %c0_107] : memref<9x128x128xbf16, #tpu.memory_space<vmem>>, vector<1x128x128xbf16>
    %95 = vector.shape_cast %94 : vector<1x128x128xbf16> to vector<128x128xbf16>
    %cst_108 = arith.constant dense<0.000000e+00> : vector<512x128xf32>
    %96 = tpu.matmul %93, %95, %cst_108 {dimension_numbers = #tpu.dot_dimension_numbers<[1], [0], [0], [1], [0, 0, 1, 1], [], []>} : vector<512x128xbf16>, vector<128x128xbf16>, vector<512x128xf32> -> vector<512x128xf32>
    %97 = arith.addf %91, %96 : vector<512x128xf32>
    %c0_109 = arith.constant 0 : index
    %c0_110 = arith.constant 0 : index
    %98 = vector.load %arg6[%c0_109, %c0_110] : memref<1x128xf32, #tpu.memory_space<vmem>>, vector<1x128xf32>
    %99 = vector.broadcast %98 : vector<1x128xf32> to vector<512x128xf32>
    %100 = arith.mulf %97, %99 : vector<512x128xf32>
    %c0_111 = arith.constant 0 : index
    %c0_112 = arith.constant 0 : index
    %101 = vector.load %arg7[%c0_111, %c0_112] : memref<1x128xf32, #tpu.memory_space<vmem>>, vector<1x128xf32>
    %102 = vector.broadcast %101 : vector<1x128xf32> to vector<512x128xf32>
    %103 = arith.addf %100, %102 : vector<512x128xf32>
    %cst_113 = arith.constant 0.000000e+00 : f32
    %104 = vector.broadcast %cst_113 : f32 to vector<512x128xf32>
    %105 = arith.maximumf %103, %104 : vector<512x128xf32>
    %cst_114 = arith.constant 0.000000e+00 : bf16
    %106 = vector.broadcast %cst_114 : bf16 to vector<2x10x8x128xbf16>
    %cst_115 = arith.constant 0.000000e+00 : bf16
    %107 = vector.broadcast %cst_115 : bf16 to vector<2x4x8x128xbf16>
    %c0_116 = arith.constant 0 : index
    %c0_117 = arith.constant 0 : index
    %c0_118 = arith.constant 0 : index
    %c0_119 = arith.constant 0 : index
    %c0_120 = arith.constant 0 : index
    %108 = vector.load %arg13[%c0_116, %c0_117, %c0_118, %c0_119, %c0_120] : memref<2x6x10x8x128xbf16, #tpu.memory_space<vmem>>, vector<2x1x10x8x128xbf16>
    %109 = vector.shape_cast %108 : vector<2x1x10x8x128xbf16> to vector<2x10x8x128xbf16>
    %110 = vector.shape_cast %106 : vector<2x10x8x128xbf16> to vector<2x1x10x8x128xbf16>
    tpu.vector_store %arg13[%c0_116, %c0_117, %c0_118, %c0_119, %c0_120], %110 {strides = array<i32>} : memref<2x6x10x8x128xbf16, #tpu.memory_space<vmem>>, vector<2x1x10x8x128xbf16>,
    %c0_121 = arith.constant 0 : index
    %c5_122 = arith.constant 5 : index
    %c0_123 = arith.constant 0 : index
    %c0_124 = arith.constant 0 : index
    %c0_125 = arith.constant 0 : index
    %111 = vector.load %arg13[%c0_121, %c5_122, %c0_123, %c0_124, %c0_125] : memref<2x6x10x8x128xbf16, #tpu.memory_space<vmem>>, vector<2x1x10x8x128xbf16>
    %112 = vector.shape_cast %111 : vector<2x1x10x8x128xbf16> to vector<2x10x8x128xbf16>
    %113 = vector.shape_cast %106 : vector<2x10x8x128xbf16> to vector<2x1x10x8x128xbf16>
    tpu.vector_store %arg13[%c0_121, %c5_122, %c0_123, %c0_124, %c0_125], %113 {strides = array<i32>} : memref<2x6x10x8x128xbf16, #tpu.memory_space<vmem>>, vector<2x1x10x8x128xbf16>,
    %c0_126 = arith.constant 0 : index
    %c1_127 = arith.constant 1 : index
    %c0_128 = arith.constant 0 : index
    %c0_129 = arith.constant 0 : index
    %c0_130 = arith.constant 0 : index
    %114 = vector.load %arg13[%c0_126, %c1_127, %c0_128, %c0_129, %c0_130] : memref<2x6x10x8x128xbf16, #tpu.memory_space<vmem>>, vector<2x4x1x8x128xbf16>
    %115 = vector.shape_cast %114 : vector<2x4x1x8x128xbf16> to vector<2x4x8x128xbf16>
    %116 = vector.shape_cast %107 : vector<2x4x8x128xbf16> to vector<2x4x1x8x128xbf16>
    tpu.vector_store %arg13[%c0_126, %c1_127, %c0_128, %c0_129, %c0_130], %116 {strides = array<i32>} : memref<2x6x10x8x128xbf16, #tpu.memory_space<vmem>>, vector<2x4x1x8x128xbf16>,
    %c0_131 = arith.constant 0 : index
    %c1_132 = arith.constant 1 : index
    %c9_133 = arith.constant 9 : index
    %c0_134 = arith.constant 0 : index
    %c0_135 = arith.constant 0 : index
    %117 = vector.load %arg13[%c0_131, %c1_132, %c9_133, %c0_134, %c0_135] : memref<2x6x10x8x128xbf16, #tpu.memory_space<vmem>>, vector<2x4x1x8x128xbf16>
    %118 = vector.shape_cast %117 : vector<2x4x1x8x128xbf16> to vector<2x4x8x128xbf16>
    %119 = vector.shape_cast %107 : vector<2x4x8x128xbf16> to vector<2x4x1x8x128xbf16>
    tpu.vector_store %arg13[%c0_131, %c1_132, %c9_133, %c0_134, %c0_135], %119 {strides = array<i32>} : memref<2x6x10x8x128xbf16, #tpu.memory_space<vmem>>, vector<2x4x1x8x128xbf16>,
    %120 = vector.shape_cast %105 : vector<512x128xf32> to vector<2x4x8x8x128xf32>
    %121 = arith.truncf %120 : vector<2x4x8x8x128xf32> to vector<2x4x8x8x128xbf16>
    %cst_136 = arith.constant 0.000000e+00 : bf16
    %122 = vector.broadcast %cst_136 : bf16 to vector<2x4x8x1x128xbf16>
    %123 = vector.extract_strided_slice %121 {offsets = [0, 0, 0, 0, 0], sizes = [2, 4, 8, 7, 128], strides = [1, 1, 1, 1, 1]} : vector<2x4x8x8x128xbf16> to vector<2x4x8x7x128xbf16>
    %124 = tpu.concatenate %122, %123 in 3 : vector<2x4x8x1x128xbf16>, vector<2x4x8x7x128xbf16> -> vector<2x4x8x8x128xbf16>
    %125 = vector.extract_strided_slice %121 {offsets = [0, 0, 0, 1, 0], sizes = [2, 4, 8, 7, 128], strides = [1, 1, 1, 1, 1]} : vector<2x4x8x8x128xbf16> to vector<2x4x8x7x128xbf16>
    %126 = tpu.concatenate %125, %122 in 3 : vector<2x4x8x7x128xbf16>, vector<2x4x8x1x128xbf16> -> vector<2x4x8x8x128xbf16>
    %127 = vector.shape_cast %2 : vector<1x128xi1> to vector<1x1x1x1x128xi1>
    %128 = vector.broadcast %127 : vector<1x1x1x1x128xi1> to vector<2x4x8x8x128xi1>
    %129 = arith.select %128, %124, %121 : vector<2x4x8x8x128xi1>, vector<2x4x8x8x128xbf16>
    %130 = vector.shape_cast %4 : vector<1x128xi1> to vector<1x1x1x1x128xi1>
    %131 = vector.broadcast %130 : vector<1x1x1x1x128xi1> to vector<2x4x8x8x128xi1>
    %132 = arith.select %131, %126, %129 : vector<2x4x8x8x128xi1>, vector<2x4x8x8x128xbf16>
    %c0_137 = arith.constant 0 : index
    %c1_138 = arith.constant 1 : index
    %c1_139 = arith.constant 1 : index
    %c0_140 = arith.constant 0 : index
    %c0_141 = arith.constant 0 : index
    %133 = vector.load %arg13[%c0_137, %c1_138, %c1_139, %c0_140, %c0_141] : memref<2x6x10x8x128xbf16, #tpu.memory_space<vmem>>, vector<2x4x8x8x128xbf16>
    tpu.vector_store %arg13[%c0_137, %c1_138, %c1_139, %c0_140, %c0_141], %132 {strides = array<i32>} : memref<2x6x10x8x128xbf16, #tpu.memory_space<vmem>>, vector<2x4x8x8x128xbf16>,
    %c0_142 = arith.constant 0 : index
    %c0_143 = arith.constant 0 : index
    %c0_144 = arith.constant 0 : index
    %c0_145 = arith.constant 0 : index
    %c0_146 = arith.constant 0 : index
    %134 = vector.load %arg13[%c0_142, %c0_143, %c0_144, %c0_145, %c0_146] : memref<2x6x10x8x128xbf16, #tpu.memory_space<vmem>>, vector<2x4x8x8x128xbf16>
    %135 = vector.shape_cast %134 : vector<2x4x8x8x128xbf16> to vector<512x128xbf16>
    %c0_147 = arith.constant 0 : index
    %c0_148 = arith.constant 0 : index
    %c0_149 = arith.constant 0 : index
    %136 = vector.load %arg8[%c0_147, %c0_148, %c0_149] : memref<9x128x128xbf16, #tpu.memory_space<vmem>>, vector<1x128x128xbf16>
    %137 = vector.shape_cast %136 : vector<1x128x128xbf16> to vector<128x128xbf16>
    %cst_150 = arith.constant dense<0.000000e+00> : vector<512x128xf32>
    %138 = tpu.matmul %135, %137, %cst_150 {dimension_numbers = #tpu.dot_dimension_numbers<[1], [0], [0], [1], [0, 0, 1, 1], [], []>} : vector<512x128xbf16>, vector<128x128xbf16>, vector<512x128xf32> -> vector<512x128xf32>
    %c0_151 = arith.constant 0 : index
    %c0_152 = arith.constant 0 : index
    %c1_153 = arith.constant 1 : index
    %c0_154 = arith.constant 0 : index
    %c0_155 = arith.constant 0 : index
    %139 = vector.load %arg13[%c0_151, %c0_152, %c1_153, %c0_154, %c0_155] : memref<2x6x10x8x128xbf16, #tpu.memory_space<vmem>>, vector<2x4x8x8x128xbf16>
    %140 = vector.shape_cast %139 : vector<2x4x8x8x128xbf16> to vector<512x128xbf16>
    %c1_156 = arith.constant 1 : index
    %c0_157 = arith.constant 0 : index
    %c0_158 = arith.constant 0 : index
    %141 = vector.load %arg8[%c1_156, %c0_157, %c0_158] : memref<9x128x128xbf16, #tpu.memory_space<vmem>>, vector<1x128x128xbf16>
    %142 = vector.shape_cast %141 : vector<1x128x128xbf16> to vector<128x128xbf16>
    %cst_159 = arith.constant dense<0.000000e+00> : vector<512x128xf32>
    %143 = tpu.matmul %140, %142, %cst_159 {dimension_numbers = #tpu.dot_dimension_numbers<[1], [0], [0], [1], [0, 0, 1, 1], [], []>} : vector<512x128xbf16>, vector<128x128xbf16>, vector<512x128xf32> -> vector<512x128xf32>
    %144 = arith.addf %138, %143 : vector<512x128xf32>
    %c0_160 = arith.constant 0 : index
    %c0_161 = arith.constant 0 : index
    %c2_162 = arith.constant 2 : index
    %c0_163 = arith.constant 0 : index
    %c0_164 = arith.constant 0 : index
    %145 = vector.load %arg13[%c0_160, %c0_161, %c2_162, %c0_163, %c0_164] : memref<2x6x10x8x128xbf16, #tpu.memory_space<vmem>>, vector<2x4x8x8x128xbf16>
    %146 = vector.shape_cast %145 : vector<2x4x8x8x128xbf16> to vector<512x128xbf16>
    %c2_165 = arith.constant 2 : index
    %c0_166 = arith.constant 0 : index
    %c0_167 = arith.constant 0 : index
    %147 = vector.load %arg8[%c2_165, %c0_166, %c0_167] : memref<9x128x128xbf16, #tpu.memory_space<vmem>>, vector<1x128x128xbf16>
    %148 = vector.shape_cast %147 : vector<1x128x128xbf16> to vector<128x128xbf16>
    %cst_168 = arith.constant dense<0.000000e+00> : vector<512x128xf32>
    %149 = tpu.matmul %146, %148, %cst_168 {dimension_numbers = #tpu.dot_dimension_numbers<[1], [0], [0], [1], [0, 0, 1, 1], [], []>} : vector<512x128xbf16>, vector<128x128xbf16>, vector<512x128xf32> -> vector<512x128xf32>
    %150 = arith.addf %144, %149 : vector<512x128xf32>
    %c0_169 = arith.constant 0 : index
    %c1_170 = arith.constant 1 : index
    %c0_171 = arith.constant 0 : index
    %c0_172 = arith.constant 0 : index
    %c0_173 = arith.constant 0 : index
    %151 = vector.load %arg13[%c0_169, %c1_170, %c0_171, %c0_172, %c0_173] : memref<2x6x10x8x128xbf16, #tpu.memory_space<vmem>>, vector<2x4x8x8x128xbf16>
    %152 = vector.shape_cast %151 : vector<2x4x8x8x128xbf16> to vector<512x128xbf16>
    %c3_174 = arith.constant 3 : index
    %c0_175 = arith.constant 0 : index
    %c0_176 = arith.constant 0 : index
    %153 = vector.load %arg8[%c3_174, %c0_175, %c0_176] : memref<9x128x128xbf16, #tpu.memory_space<vmem>>, vector<1x128x128xbf16>
    %154 = vector.shape_cast %153 : vector<1x128x128xbf16> to vector<128x128xbf16>
    %cst_177 = arith.constant dense<0.000000e+00> : vector<512x128xf32>
    %155 = tpu.matmul %152, %154, %cst_177 {dimension_numbers = #tpu.dot_dimension_numbers<[1], [0], [0], [1], [0, 0, 1, 1], [], []>} : vector<512x128xbf16>, vector<128x128xbf16>, vector<512x128xf32> -> vector<512x128xf32>
    %156 = arith.addf %150, %155 : vector<512x128xf32>
    %c0_178 = arith.constant 0 : index
    %c1_179 = arith.constant 1 : index
    %c1_180 = arith.constant 1 : index
    %c0_181 = arith.constant 0 : index
    %c0_182 = arith.constant 0 : index
    %157 = vector.load %arg13[%c0_178, %c1_179, %c1_180, %c0_181, %c0_182] : memref<2x6x10x8x128xbf16, #tpu.memory_space<vmem>>, vector<2x4x8x8x128xbf16>
    %158 = vector.shape_cast %157 : vector<2x4x8x8x128xbf16> to vector<512x128xbf16>
    %c4_183 = arith.constant 4 : index
    %c0_184 = arith.constant 0 : index
    %c0_185 = arith.constant 0 : index
    %159 = vector.load %arg8[%c4_183, %c0_184, %c0_185] : memref<9x128x128xbf16, #tpu.memory_space<vmem>>, vector<1x128x128xbf16>
    %160 = vector.shape_cast %159 : vector<1x128x128xbf16> to vector<128x128xbf16>
    %cst_186 = arith.constant dense<0.000000e+00> : vector<512x128xf32>
    %161 = tpu.matmul %158, %160, %cst_186 {dimension_numbers = #tpu.dot_dimension_numbers<[1], [0], [0], [1], [0, 0, 1, 1], [], []>} : vector<512x128xbf16>, vector<128x128xbf16>, vector<512x128xf32> -> vector<512x128xf32>
    %162 = arith.addf %156, %161 : vector<512x128xf32>
    %c0_187 = arith.constant 0 : index
    %c1_188 = arith.constant 1 : index
    %c2_189 = arith.constant 2 : index
    %c0_190 = arith.constant 0 : index
    %c0_191 = arith.constant 0 : index
    %163 = vector.load %arg13[%c0_187, %c1_188, %c2_189, %c0_190, %c0_191] : memref<2x6x10x8x128xbf16, #tpu.memory_space<vmem>>, vector<2x4x8x8x128xbf16>
    %164 = vector.shape_cast %163 : vector<2x4x8x8x128xbf16> to vector<512x128xbf16>
    %c5_192 = arith.constant 5 : index
    %c0_193 = arith.constant 0 : index
    %c0_194 = arith.constant 0 : index
    %165 = vector.load %arg8[%c5_192, %c0_193, %c0_194] : memref<9x128x128xbf16, #tpu.memory_space<vmem>>, vector<1x128x128xbf16>
    %166 = vector.shape_cast %165 : vector<1x128x128xbf16> to vector<128x128xbf16>
    %cst_195 = arith.constant dense<0.000000e+00> : vector<512x128xf32>
    %167 = tpu.matmul %164, %166, %cst_195 {dimension_numbers = #tpu.dot_dimension_numbers<[1], [0], [0], [1], [0, 0, 1, 1], [], []>} : vector<512x128xbf16>, vector<128x128xbf16>, vector<512x128xf32> -> vector<512x128xf32>
    %168 = arith.addf %162, %167 : vector<512x128xf32>
    %c0_196 = arith.constant 0 : index
    %c2_197 = arith.constant 2 : index
    %c0_198 = arith.constant 0 : index
    %c0_199 = arith.constant 0 : index
    %c0_200 = arith.constant 0 : index
    %169 = vector.load %arg13[%c0_196, %c2_197, %c0_198, %c0_199, %c0_200] : memref<2x6x10x8x128xbf16, #tpu.memory_space<vmem>>, vector<2x4x8x8x128xbf16>
    %170 = vector.shape_cast %169 : vector<2x4x8x8x128xbf16> to vector<512x128xbf16>
    %c6_201 = arith.constant 6 : index
    %c0_202 = arith.constant 0 : index
    %c0_203 = arith.constant 0 : index
    %171 = vector.load %arg8[%c6_201, %c0_202, %c0_203] : memref<9x128x128xbf16, #tpu.memory_space<vmem>>, vector<1x128x128xbf16>
    %172 = vector.shape_cast %171 : vector<1x128x128xbf16> to vector<128x128xbf16>
    %cst_204 = arith.constant dense<0.000000e+00> : vector<512x128xf32>
    %173 = tpu.matmul %170, %172, %cst_204 {dimension_numbers = #tpu.dot_dimension_numbers<[1], [0], [0], [1], [0, 0, 1, 1], [], []>} : vector<512x128xbf16>, vector<128x128xbf16>, vector<512x128xf32> -> vector<512x128xf32>
    %174 = arith.addf %168, %173 : vector<512x128xf32>
    %c0_205 = arith.constant 0 : index
    %c2_206 = arith.constant 2 : index
    %c1_207 = arith.constant 1 : index
    %c0_208 = arith.constant 0 : index
    %c0_209 = arith.constant 0 : index
    %175 = vector.load %arg13[%c0_205, %c2_206, %c1_207, %c0_208, %c0_209] : memref<2x6x10x8x128xbf16, #tpu.memory_space<vmem>>, vector<2x4x8x8x128xbf16>
    %176 = vector.shape_cast %175 : vector<2x4x8x8x128xbf16> to vector<512x128xbf16>
    %c7_210 = arith.constant 7 : index
    %c0_211 = arith.constant 0 : index
    %c0_212 = arith.constant 0 : index
    %177 = vector.load %arg8[%c7_210, %c0_211, %c0_212] : memref<9x128x128xbf16, #tpu.memory_space<vmem>>, vector<1x128x128xbf16>
    %178 = vector.shape_cast %177 : vector<1x128x128xbf16> to vector<128x128xbf16>
    %cst_213 = arith.constant dense<0.000000e+00> : vector<512x128xf32>
    %179 = tpu.matmul %176, %178, %cst_213 {dimension_numbers = #tpu.dot_dimension_numbers<[1], [0], [0], [1], [0, 0, 1, 1], [], []>} : vector<512x128xbf16>, vector<128x128xbf16>, vector<512x128xf32> -> vector<512x128xf32>
    %180 = arith.addf %174, %179 : vector<512x128xf32>
    %c0_214 = arith.constant 0 : index
    %c2_215 = arith.constant 2 : index
    %c2_216 = arith.constant 2 : index
    %c0_217 = arith.constant 0 : index
    %c0_218 = arith.constant 0 : index
    %181 = vector.load %arg13[%c0_214, %c2_215, %c2_216, %c0_217, %c0_218] : memref<2x6x10x8x128xbf16, #tpu.memory_space<vmem>>, vector<2x4x8x8x128xbf16>
    %182 = vector.shape_cast %181 : vector<2x4x8x8x128xbf16> to vector<512x128xbf16>
    %c8_219 = arith.constant 8 : index
    %c0_220 = arith.constant 0 : index
    %c0_221 = arith.constant 0 : index
    %183 = vector.load %arg8[%c8_219, %c0_220, %c0_221] : memref<9x128x128xbf16, #tpu.memory_space<vmem>>, vector<1x128x128xbf16>
    %184 = vector.shape_cast %183 : vector<1x128x128xbf16> to vector<128x128xbf16>
    %cst_222 = arith.constant dense<0.000000e+00> : vector<512x128xf32>
    %185 = tpu.matmul %182, %184, %cst_222 {dimension_numbers = #tpu.dot_dimension_numbers<[1], [0], [0], [1], [0, 0, 1, 1], [], []>} : vector<512x128xbf16>, vector<128x128xbf16>, vector<512x128xf32> -> vector<512x128xf32>
    %186 = arith.addf %180, %185 : vector<512x128xf32>
    %c0_223 = arith.constant 0 : index
    %c0_224 = arith.constant 0 : index
    %187 = vector.load %arg9[%c0_223, %c0_224] : memref<1x128xf32, #tpu.memory_space<vmem>>, vector<1x128xf32>
    %188 = vector.broadcast %187 : vector<1x128xf32> to vector<512x128xf32>
    %189 = arith.mulf %186, %188 : vector<512x128xf32>
    %c0_225 = arith.constant 0 : index
    %c0_226 = arith.constant 0 : index
    %190 = vector.load %arg10[%c0_225, %c0_226] : memref<1x128xf32, #tpu.memory_space<vmem>>, vector<1x128xf32>
    %191 = vector.broadcast %190 : vector<1x128xf32> to vector<512x128xf32>
    %192 = arith.addf %189, %191 : vector<512x128xf32>
    %193 = arith.addf %192, %16 : vector<512x128xf32>
    %cst_227 = arith.constant 0.000000e+00 : f32
    %194 = vector.broadcast %cst_227 : f32 to vector<512x128xf32>
    %195 = arith.maximumf %193, %194 : vector<512x128xf32>
    %196 = vector.shape_cast %195 : vector<512x128xf32> to vector<2x256x128xf32>
    %cst_228 = arith.constant dense<0.000000e+00> : vector<2x128xf32>
    %197 = vector.multi_reduction <add>, %196, %cst_228 [1] : vector<2x256x128xf32> to vector<2x128xf32>
    %cst_229 = arith.constant 3.906250e-03 : f32
    %198 = vector.broadcast %cst_229 : f32 to vector<2x128xf32>
    %199 = arith.mulf %197, %198 : vector<2x128xf32>
    %cst_230 = arith.constant 0.000000e+00 : f32
    %200 = vector.broadcast %cst_230 : f32 to vector<6x128xf32>
    %201 = tpu.concatenate %199, %200 in 0 : vector<2x128xf32>, vector<6x128xf32> -> vector<8x128xf32>
    %c0_231 = arith.constant 0 : index
    %c0_232 = arith.constant 0 : index
    %c0_233 = arith.constant 0 : index
    %202 = vector.load %arg11[%c0_231, %c0_232, %c0_233] : memref<1x8x128xf32, #tpu.memory_space<vmem>>, vector<1x8x128xf32>
    %203 = vector.shape_cast %202 : vector<1x8x128xf32> to vector<8x128xf32>
    %204 = vector.shape_cast %201 : vector<8x128xf32> to vector<1x8x128xf32>
    tpu.vector_store %arg11[%c0_231, %c0_232, %c0_233], %204 {strides = array<i32>} : memref<1x8x128xf32, #tpu.memory_space<vmem>>, vector<1x8x128xf32>,
    return
  }
  func.func @transform_0(%arg0: i32) -> (i32, i32, i32) {
    %c0_i32 = arith.constant 0 : i32
    %c0_i32_0 = arith.constant 0 : i32
    %c0_i32_1 = arith.constant 0 : i32
    return %arg0, %c0_i32, %c0_i32_0 : i32, i32, i32
  }
  func.func @transform_1(%arg0: i32) -> (i32, i32) {
    %c0_i32 = arith.constant 0 : i32
    %c0_i32_0 = arith.constant 0 : i32
    %c0_i32_1 = arith.constant 0 : i32
    return %c0_i32, %c0_i32_0 : i32, i32
  }
  func.func @transform_2(%arg0: i32) -> (i32, i32) {
    %c0_i32 = arith.constant 0 : i32
    %c0_i32_0 = arith.constant 0 : i32
    %c0_i32_1 = arith.constant 0 : i32
    return %c0_i32, %c0_i32_0 : i32, i32
  }
  func.func @transform_3(%arg0: i32) -> (i32, i32) {
    %c0_i32 = arith.constant 0 : i32
    %c0_i32_0 = arith.constant 0 : i32
    %c0_i32_1 = arith.constant 0 : i32
    return %c0_i32, %c0_i32_0 : i32, i32
  }
  func.func @transform_4(%arg0: i32) -> (i32, i32, i32) {
    %c0_i32 = arith.constant 0 : i32
    %c0_i32_0 = arith.constant 0 : i32
    %c0_i32_1 = arith.constant 0 : i32
    %c0_i32_2 = arith.constant 0 : i32
    return %c0_i32, %c0_i32_0, %c0_i32_1 : i32, i32, i32
  }
  func.func @transform_5(%arg0: i32) -> (i32, i32) {
    %c0_i32 = arith.constant 0 : i32
    %c0_i32_0 = arith.constant 0 : i32
    %c0_i32_1 = arith.constant 0 : i32
    return %c0_i32, %c0_i32_0 : i32, i32
  }
  func.func @transform_6(%arg0: i32) -> (i32, i32) {
    %c0_i32 = arith.constant 0 : i32
    %c0_i32_0 = arith.constant 0 : i32
    %c0_i32_1 = arith.constant 0 : i32
    return %c0_i32, %c0_i32_0 : i32, i32
  }
  func.func @transform_7(%arg0: i32) -> (i32, i32, i32) {
    %c0_i32 = arith.constant 0 : i32
    %c0_i32_0 = arith.constant 0 : i32
    %c0_i32_1 = arith.constant 0 : i32
    %c0_i32_2 = arith.constant 0 : i32
    return %c0_i32, %c0_i32_0, %c0_i32_1 : i32, i32, i32
  }
  func.func @transform_8(%arg0: i32) -> (i32, i32) {
    %c0_i32 = arith.constant 0 : i32
    %c0_i32_0 = arith.constant 0 : i32
    %c0_i32_1 = arith.constant 0 : i32
    return %c0_i32, %c0_i32_0 : i32, i32
  }
  func.func @transform_9(%arg0: i32) -> (i32, i32) {
    %c0_i32 = arith.constant 0 : i32
    %c0_i32_0 = arith.constant 0 : i32
    %c0_i32_1 = arith.constant 0 : i32
    return %c0_i32, %c0_i32_0 : i32, i32
  }
  func.func @transform_10(%arg0: i32) -> (i32, i32, i32) {
    %c0_i32 = arith.constant 0 : i32
    %c0_i32_0 = arith.constant 0 : i32
    %c0_i32_1 = arith.constant 0 : i32
    return %arg0, %c0_i32, %c0_i32_0 : i32, i32, i32
  }
}

</mosaic_0001>

<bundles_post_ra>
// kernel: base_model_forward.1
= control target key start
LH: loop header
LB: loop body
LE: loop exit
PB: predicated region body
PF: predicated region fallthrough
CT: control target
= control target key end

     0   :  { %v19702_v56 = vmov 0   ;;  %vm1490_vm2 = vcmask 1040384   ;;  %vm1491_vm3 = vsmask.f32 256  ;;  %vm1749_vm4 = vcmask 1043456   ;;  %s24710_s1 = inlined_call_operand.vmem [shape: bf16[128,128], index: 1, kind: input, shape index: {}]   ;;  %s24711_s0 = inlined_call_operand.vmem [shape: bf16[2,256,128], index: 0, kind: input, shape index: {}]   ;;  %s24712_s4 = inlined_call_operand.vmem [shape: bf16[9,128,128], index: 4, kind: input, shape index: {}]   ;;  %s24713_s2 = inlined_call_operand.vmem [shape: f32[1,128], index: 2, kind: input, shape index: {}]   ;;  %s24714_s3 = inlined_call_operand.vmem [shape: f32[1,128], index: 3, kind: input, shape index: {}]   ;;  %s24715_s7 = inlined_call_operand.vmem [shape: bf16[9,128,128], index: 7, kind: input, shape index: {}]   ;;  %s24716_s5 = inlined_call_operand.vmem [shape: f32[1,128], index: 5, kind: input, shape index: {}]   ;;  %s24717_s6 = inlined_call_operand.vmem [shape: f32[1,128], index: 6, kind: input, shape index: {}]   ;;  %s24718_s8 = inlined_call_operand.vmem [shape: f32[1,128], index: 8, kind: input, shape index: {}]   ;;  %s24719_s9 = inlined_call_operand.vmem [shape: f32[1,128], index: 9, kind: input, shape index: {}]   ;;  %s24720_s10 = inlined_call_operand.vmem [shape: f32[1,8,128], index: 10, kind: output, shape index: {}]  }
   0x1   :  { %v18932_v0 = vld [vmem:[%s24710_s1 + $0x38] sm:$0xff]   ;;  %v18933_v1 = vld [vmem:[%s24710_s1 + $0x30] sm:$0xff]   ;;  %v18934_v2 = vld [vmem:[%s24710_s1 + $0x28] sm:$0xff]   ;;  %856 = vst [vmem:[#allocation2 + $0x4] sm:$0xf] %v19702_v56  ;;  %vm15603_vm10 = vcmask 1041409  }
   0x2   :  { %17395 = vmatprep.subr.bf16.mxu0 %v18932_v0  ;;  %18915 = vmatprep.subr.bf16.mxu1 %v18932_v0  ;;  %v18935_v3 = vld [vmem:[%s24710_s1 + $0x20] sm:$0xff]   ;;  %v18936_v5 = vld [vmem:[%s24710_s1 + $0x18] sm:$0xff]   ;;  %v18937_v6 = vld [vmem:[%s24710_s1 + $0x10] sm:$0xff]   ;;  %857 = vst [vmem:[#allocation2 + $0x8] sm:$0xf] %v19702_v56  ;;  %vm15606_vm11 = vcmask 1041408  }
   0x3   :  { %17396 = vmatpush3.bf16.msra.mxu0 %v18932_v0  ;;  %18923 = vmatpush3.bf16.msra.mxu1 %v18932_v0  ;;  %v18940_v4 = vld [vmem:[%s24711_s0] sm:$0xff]   ;;  %v18938_v7 = vld [vmem:[%s24710_s1 + $0x8] sm:$0xff]   ;;  %v18942_v11 = vld [vmem:[%s24711_s0 + $0x10] sm:$0xff]   ;;  %855 = vst [vmem:[#allocation2] sm:$0xf] %v19702_v56 }
   0x4   :  { %17397 = vmatprep.subr.bf16.mxu0 %v18933_v1  ;;  %18916 = vmatprep.subr.bf16.mxu1 %v18933_v1  ;;  %v18952_v8 = vld [vmem:[%s24711_s0 + $0x80] sm:$0xff]   ;;  %v18941_v10 = vld [vmem:[%s24711_s0 + $0x8] sm:$0xff]   ;;  %v18954_v13 = vld [vmem:[%s24711_s0 + $0x90] sm:$0xff]   ;;  %858 = vst [vmem:[#allocation2 + $0xc] sm:$0xf] %v19702_v56 }
   0x5   :  { %17411 = vmatprep.mubr.bf16.mxu0 %v18940_v4  ;;  %17443 = vmatprep.mubr.bf16.mxu1 %v18952_v8  ;;  %v18939_v9 = vld [vmem:[%s24710_s1] sm:$0xff]   ;;  %v18953_v12 = vld [vmem:[%s24711_s0 + $0x88] sm:$0xff]   ;;  %v18964_v14 = vld [vmem:[%s24712_s4 + $0x78] sm:$0xff]   ;;  %859 = vst [vmem:[#allocation2 + $0x10] sm:$0xf] %v19702_v56  ;;  %v36_v4 = vlaneseq }
   0x6   :  { %v18965_v15 = vld [vmem:[%s24712_s4 + $0x70] sm:$0xff]   ;;  %v18943_v16 = vld [vmem:[%s24711_s0 + $0x18] sm:$0xff]   ;;  %v18944_v17 = vld [vmem:[%s24711_s0 + $0x20] sm:$0xff]   ;;  %860 = vst [vmem:[#allocation2 + $0x14] sm:$0xf] %v19702_v56 }
   0x7   :  { %17398 = vmatpush3.bf16.msra.mxu0 %v18933_v1  ;;  %18924 = vmatpush3.bf16.msra.mxu1 %v18933_v1  ;;  %v18955_v18 = vld [vmem:[%s24711_s0 + $0x98] sm:$0xff]   ;;  %v18956_v19 = vld [vmem:[%s24711_s0 + $0xa0] sm:$0xff]   ;;  %v18968_v20 = vld [vmem:[%s24712_s4 + $0x68] sm:$0xff]   ;;  %861 = vst [vmem:[#allocation2 + $0x18] sm:$0xf] %v19702_v56 }
   0x8   :  { %17399 = vmatprep.subr.bf16.mxu0 %v18934_v2  ;;  %18917 = vmatprep.subr.bf16.mxu1 %v18934_v2  ;;  %v18972_v21 = vld [vmem:[%s24712_s4 + $0x38] sm:$0xff]   ;;  %v18971_v22 = vld [vmem:[%s24712_s4 + $0x60] sm:$0xff]   ;;  %v18974_v23 = vld [vmem:[%s24712_s4 + $0x30] sm:$0xff]   ;;  %862 = vst [vmem:[#allocation2 + $0x1c] sm:$0xf] %v19702_v56 }
   0x9   :  { %v18945_v24 = vld [vmem:[%s24711_s0 + $0x28] sm:$0xff]   ;;  %v18946_v25 = vld [vmem:[%s24711_s0 + $0x30] sm:$0xff]   ;;  %v18976_v28 = vld [vmem:[%s24712_s4 + $0x58] sm:$0xff]   ;;  %863 = vst [vmem:[#allocation2 + $0x20] sm:$0xf] %v19702_v56 }
   0xa   :  { %v18957_v26 = vld [vmem:[%s24711_s0 + $0xa8] sm:$0xff]   ;;  %v18958_v27 = vld [vmem:[%s24711_s0 + $0xb0] sm:$0xff]   ;;  %v18979_v30 = vld [vmem:[%s24712_s4 + $0x20] sm:$0xff]   ;;  %864 = vst [vmem:[#allocation2 + $0x24] sm:$0xf] %v19702_v56 }
   0xb   :  { %17400 = vmatpush3.bf16.msra.mxu0 %v18934_v2  ;;  %18925 = vmatpush3.bf16.msra.mxu1 %v18934_v2  ;;  %v18977_v29 = vld [vmem:[%s24712_s4 + $0x28] sm:$0xff]   ;;  %v18981_v31 = vld [vmem:[%s24712_s4 + $0x50] sm:$0xff]   ;;  %v18947_v32 = vld [vmem:[%s24711_s0 + $0x38] sm:$0xff]   ;;  %865 = vst [vmem:[#allocation2 + $0xf0] sm:$0xf] %v19702_v56 }
   0xc   :  { %17401 = vmatprep.subr.bf16.mxu0 %v18935_v3  ;;  %18918 = vmatprep.subr.bf16.mxu1 %v18935_v3  ;;  %v18959_v33 = vld [vmem:[%s24711_s0 + $0xb8] sm:$0xff]   ;;  %v18948_v34 = vld [vmem:[%s24711_s0 + $0x40] sm:$0xff]   ;;  %v18949_v37 = vld [vmem:[%s24711_s0 + $0x48] sm:$0xff]   ;;  %866 = vst [vmem:[#allocation2 + $0xf4] sm:$0xf] %v19702_v56 }
   0xd   :  { %v18960_v35 = vld [vmem:[%s24711_s0 + $0xc0] sm:$0xff]   ;;  %v18982_v36 = vld [vmem:[%s24712_s4 + $0x18] sm:$0xff]   ;;  %v18961_v38 = vld [vmem:[%s24711_s0 + $0xc8] sm:$0xff]   ;;  %867 = vst [vmem:[#allocation2 + $0xf8] sm:$0xf] %v19702_v56 }
   0xe   :  { %v18950_v39 = vld [vmem:[%s24711_s0 + $0x50] sm:$0xff]   ;;  %v18951_v41 = vld [vmem:[%s24711_s0 + $0x58] sm:$0xff]   ;;  %v18966_v43 = vld [vmem:[%s24711_s0 + $0x60] sm:$0xff]   ;;  %868 = vst [vmem:[#allocation2 + $0xfc] sm:$0xf] %v19702_v56 }
   0xf   :  { %17402 = vmatpush3.bf16.msra.mxu0 %v18935_v3  ;;  %18926 = vmatpush3.bf16.msra.mxu1 %v18935_v3  ;;  %v18962_v40 = vld [vmem:[%s24711_s0 + $0xd0] sm:$0xff]   ;;  %v18963_v42 = vld [vmem:[%s24711_s0 + $0xd8] sm:$0xff]   ;;  %v18973_v44 = vld [vmem:[%s24711_s0 + $0xe0] sm:$0xff]   ;;  %869 = vst [vmem:[#allocation2 + $0x100] sm:$0xf] %v19702_v56 }
  0x10   :  { %17403 = vmatprep.subr.bf16.mxu0 %v18936_v5  ;;  %18919 = vmatprep.subr.bf16.mxu1 %v18936_v5  ;;  %v18967_v45 = vld [vmem:[%s24711_s0 + $0x68] sm:$0xff]   ;;  %v18969_v47 = vld [vmem:[%s24711_s0 + $0x70] sm:$0xff]   ;;  %v18970_v49 = vld [vmem:[%s24711_s0 + $0x78] sm:$0xff]   ;;  %870 = vst [vmem:[#allocation2 + $0x104] sm:$0xf] %v19702_v56 }
  0x11   :  { %v18975_v46 = vld [vmem:[%s24711_s0 + $0xe8] sm:$0xff]   ;;  %v18978_v48 = vld [vmem:[%s24711_s0 + $0xf0] sm:$0xff]   ;;  %v18980_v50 = vld [vmem:[%s24711_s0 + $0xf8] sm:$0xff]   ;;  %871 = vst [vmem:[#allocation2 + $0x108] sm:$0xf] %v19702_v56 }
  0x12   :  { %v18983_v51 = vld [vmem:[%s24712_s4 + $0x10] sm:$0xff]   ;;  %v18984_v52 = vld [vmem:[%s24712_s4 + $0x48] sm:$0xff]   ;;  %v19923_v54 = vld [vmem:[%s24712_s4 + $0x40] sm:$0xff]   ;;  %872 = vst [vmem:[#allocation2 + $0x10c] sm:$0xf] %v19702_v56 }
  0x13   :  { %17404 = vmatpush3.bf16.msra.mxu0 %v18936_v5  ;;  %18927 = vmatpush3.bf16.msra.mxu1 %v18936_v5  ;;  %v18985_v53 = vld [vmem:[%s24712_s4 + $0x8] sm:$0xff]   ;;  %v19928_v55 = vld [vmem:[%s24712_s4] sm:$0xff]   ;;  %873 = vst [vmem:[#allocation2 + $0x110] sm:$0xf] %v19702_v56  ;;  %874 = vst [vmem:[#allocation2 + $0x114] sm:$0xf] %v19702_v56 }
  0x14   :  { %17405 = vmatprep.subr.bf16.mxu0 %v18937_v6  ;;  %18920 = vmatprep.subr.bf16.mxu1 %v18937_v6  ;;  %876 = vst [vmem:[#allocation2 + $0xc8] sm:$0xf] %v19702_v56  ;;  %877 = vst [vmem:[#allocation2 + $0xcc] sm:$0xf] %v19702_v56  ;;  %v18988_v57 = vld [vmem:[#allocation2 + $0x4] sm:$0xff]   ;;  %v18990_v59 = vld [vmem:[#allocation2 + $0xc] sm:$0xff]  }
  0x15   :  { %878 = vst [vmem:[#allocation2 + $0xd0] sm:$0xf] %v19702_v56  ;;  %879 = vst [vmem:[#allocation2 + $0xd4] sm:$0xf] %v19702_v56  ;;  %v18989_v58 = vld [vmem:[#allocation2] sm:$0xff]   ;;  %v18991_v60 = vld [vmem:[#allocation2 + $0x8] sm:$0xff]  }
  0x16   :  { %880 = vst [vmem:[#allocation2 + $0xd8] sm:$0xf] %v19702_v56  ;;  %881 = vst [vmem:[#allocation2 + $0xdc] sm:$0xf] %v19702_v56  ;;  %v18993_v61 = vld [vmem:[#allocation2 + $0x14] sm:$0xff]   ;;  %v18995_v63 = vld [vmem:[#allocation2 + $0x1c] sm:$0xff]  }
  0x17   :  { %17406 = vmatpush3.bf16.msra.mxu0 %v18937_v6  ;;  %18928 = vmatpush3.bf16.msra.mxu1 %v18937_v6  ;;  %882 = vst [vmem:[#allocation2 + $0xe0] sm:$0xf] %v19702_v56  ;;  %883 = vst [vmem:[#allocation2 + $0xe4] sm:$0xf] %v19702_v56  ;;  %v18994_v62 = vld [vmem:[#allocation2 + $0x10] sm:$0xff]   ;;  %v18996_v0 = vld [vmem:[#allocation2 + $0x18] sm:$0xff]  }
  0x18   :  { %17407 = vmatprep.subr.bf16.mxu0 %v18938_v7  ;;  %18921 = vmatprep.subr.bf16.mxu1 %v18938_v7  ;;  %884 = vst [vmem:[#allocation2 + $0xe8] sm:$0xf] %v19702_v56  ;;  %885 = vst [vmem:[#allocation2 + $0xec] sm:$0xf] %v19702_v56  ;;  %v18992_v1 = vld [vmem:[%s24712_s4 + $0xb8] sm:$0xff]   ;;  %v19000_v2 = vld [vmem:[%s24712_s4 + $0xb0] sm:$0xff]  }
  0x19   :  { %886 = vst [vmem:[#allocation2 + $0x1b8] sm:$0xf] %v19702_v56  ;;  %887 = vst [vmem:[#allocation2 + $0x1bc] sm:$0xf] %v19702_v56  ;;  %v19009_v3 = vld [vmem:[%s24712_s4 + $0xa8] sm:$0xff]   ;;  %v20060_v6 = vand.u32 127, %v36_v4 }
  0x1a   :  { %888 = vst [vmem:[#allocation2 + $0x1c0] sm:$0xf] %v19702_v56  ;;  %889 = vst [vmem:[#allocation2 + $0x1c4] sm:$0xf] %v19702_v56  ;;  %v20058_v5 = vld [vmem:[%s24713_s2] ss:$0 sm:$0xff] }
  0x1b   :  { %17408 = vmatpush3.bf16.msra.mxu0 %v18938_v7  ;;  %18929 = vmatpush3.bf16.msra.mxu1 %v18938_v7  ;;  %890 = vst [vmem:[#allocation2 + $0x1c8] sm:$0xf] %v19702_v56  ;;  %891 = vst [vmem:[#allocation2 + $0x1cc] sm:$0xf] %v19702_v56  ;;  %v20065_v8 = vld [vmem:[%s24714_s3] ss:$0 sm:$0xff] }
  0x1c   :  { %17409 = vmatprep.subr.bf16.mxu0 %v18939_v9  ;;  %18922 = vmatprep.subr.bf16.mxu1 %v18939_v9  ;;  %892 = vst [vmem:[#allocation2 + $0x1d0] sm:$0xf] %v19702_v56  ;;  %893 = vst [vmem:[#allocation2 + $0x1d4] sm:$0xf] %v19702_v56  ;;  %vm38_vm0 = vcmp.lt.s32.totalorder %v20060_v6, 32  ;;  %vm39_vm1 = vcmp.ge.s32.totalorder %v20060_v6, 64 }
  0x1d   :  { %894 = vst [vmem:[#allocation2 + $0x1d8] sm:$0xf] %v19702_v56  ;;  %895 = vst [vmem:[#allocation2 + $0x1dc] sm:$0xf] %v19702_v56  ;;  %vm1750_vm5 = vsmask.f32 3328 }
  0x1e   :  { %897 = vst [vmem:[#allocation2 + $0x28] sm:$0xf] %v19702_v56  ;;  %898 = vst [vmem:[#allocation2 + $0x50] sm:$0xf] %v19702_v56 }
  0x1f   :  { %17410 = vmatpush3.bf16.msra.mxu0 %v18939_v9  ;;  %18930 = vmatpush3.bf16.msra.mxu1 %v18939_v9  ;;  %899 = vst [vmem:[#allocation2 + $0x78] sm:$0xf] %v19702_v56  ;;  %900 = vst [vmem:[#allocation2 + $0xa0] sm:$0xf] %v19702_v56 }
  0x20   :  { %17475 = vmatprep.subr.bf16.mxu1 %v18964_v14  ;;  %17555 = vmatprep.subr.bf16.mxu0 %v18972_v21  ;;  %901 = vst [vmem:[#allocation2 + $0x118] sm:$0xf] %v19702_v56  ;;  %902 = vst [vmem:[#allocation2 + $0x140] sm:$0xf] %v19702_v56 }
  0x21   :  { %903 = vst [vmem:[#allocation2 + $0x168] sm:$0xf] %v19702_v56  ;;  %904 = vst [vmem:[#allocation2 + $0x190] sm:$0xf] %v19702_v56 }
  0x22   :  { %17412 = vmatmul.mubr.bf16.vlgmr.msra.gmra.mxu0 %v18941_v10  ;;  %17444 = vmatmul.mubr.bf16.vlgmr.msra.gmra.mxu1 %v18953_v12  ;;  %906 = vst [vmem:[#allocation2 + $0x4c] sm:$0xf] %v19702_v56  ;;  %907 = vst [vmem:[#allocation2 + $0x74] sm:$0xf] %v19702_v56 }
  0x23   :  { %17415 = vmatprep.mubr.bf16.mxu0 %v18942_v11  ;;  %17447 = vmatprep.mubr.bf16.mxu1 %v18954_v13  ;;  %908 = vst [vmem:[#allocation2 + $0x9c] sm:$0xf] %v19702_v56  ;;  %909 = vst [vmem:[#allocation2 + $0xc4] sm:$0xf] %v19702_v56 }
  0x24   :  { %17476 = vmatpush3.bf16.msra.mxu1 %v18964_v14  ;;  %17556 = vmatpush3.bf16.msra.mxu0 %v18972_v21  ;;  %910 = vst [vmem:[#allocation2 + $0x13c] sm:$0xf] %v19702_v56  ;;  %911 = vst [vmem:[#allocation2 + $0x164] sm:$0xf] %v19702_v56 }
  0x25   :  { %17477 = vmatprep.subr.bf16.mxu1 %v18965_v15  ;;  %17557 = vmatprep.subr.bf16.mxu0 %v18974_v23  ;;  %912 = vst [vmem:[#allocation2 + $0x18c] sm:$0xf] %v19702_v56  ;;  %913 = vst [vmem:[#allocation2 + $0x1b4] sm:$0xf] %v19702_v56 }
  0x26   :  { %8164 = vst [vmem:[#allocation3] sm:$0xf] %v19702_v56  ;;  %8165 = vst [vmem:[#allocation3 + $0x4] sm:$0xf] %v19702_v56 }
  0x27   :  { %8166 = vst [vmem:[#allocation3 + $0x8] sm:$0xf] %v19702_v56  ;;  %8167 = vst [vmem:[#allocation3 + $0xc] sm:$0xf] %v19702_v56 }
  0x28   :  { %17478 = vmatpush3.bf16.msra.mxu1 %v18965_v15  ;;  %17558 = vmatpush3.bf16.msra.mxu0 %v18974_v23  ;;  %8168 = vst [vmem:[#allocation3 + $0x10] sm:$0xf] %v19702_v56  ;;  %8169 = vst [vmem:[#allocation3 + $0x14] sm:$0xf] %v19702_v56 }
  0x29   :  { %17479 = vmatprep.subr.bf16.mxu1 %v18968_v20  ;;  %17559 = vmatprep.subr.bf16.mxu0 %v18977_v29  ;;  %8170 = vst [vmem:[#allocation3 + $0x18] sm:$0xf] %v19702_v56  ;;  %8171 = vst [vmem:[#allocation3 + $0x1c] sm:$0xf] %v19702_v56 }
  0x2a   :  { %17416 = vmatmul.mubr.bf16.gmra.mxu0 %v18943_v16  ;;  %17448 = vmatmul.mubr.bf16.gmra.mxu1 %v18955_v18  ;;  %8172 = vst [vmem:[#allocation3 + $0x20] sm:$0xf] %v19702_v56  ;;  %8173 = vst [vmem:[#allocation3 + $0x24] sm:$0xf] %v19702_v56 }
  0x2b   :  { %17419 = vmatprep.mubr.bf16.mxu0 %v18944_v17  ;;  %17451 = vmatprep.mubr.bf16.mxu1 %v18956_v19  ;;  %8174 = vst [vmem:[#allocation3 + $0xf0] sm:$0xf] %v19702_v56  ;;  %8175 = vst [vmem:[#allocation3 + $0xf4] sm:$0xf] %v19702_v56 }
  0x2c   :  { %17480 = vmatpush3.bf16.msra.mxu1 %v18968_v20  ;;  %17560 = vmatpush3.bf16.msra.mxu0 %v18977_v29  ;;  %8176 = vst [vmem:[#allocation3 + $0xf8] sm:$0xf] %v19702_v56  ;;  %8177 = vst [vmem:[#allocation3 + $0xfc] sm:$0xf] %v19702_v56 }
  0x2d   :  { %17481 = vmatprep.subr.bf16.mxu1 %v18971_v22  ;;  %17561 = vmatprep.subr.bf16.mxu0 %v18979_v30  ;;  %8178 = vst [vmem:[#allocation3 + $0x100] sm:$0xf] %v19702_v56  ;;  %8179 = vst [vmem:[#allocation3 + $0x104] sm:$0xf] %v19702_v56 }
  0x2e   :  { %8180 = vst [vmem:[#allocation3 + $0x108] sm:$0xf] %v19702_v56  ;;  %8181 = vst [vmem:[#allocation3 + $0x10c] sm:$0xf] %v19702_v56 }
  0x2f   :  { %8182 = vst [vmem:[#allocation3 + $0x110] sm:$0xf] %v19702_v56  ;;  %8183 = vst [vmem:[#allocation3 + $0x114] sm:$0xf] %v19702_v56 }
  0x30   :  { %17482 = vmatpush3.bf16.msra.mxu1 %v18971_v22  ;;  %17562 = vmatpush3.bf16.msra.mxu0 %v18979_v30  ;;  %8185 = vst [vmem:[#allocation3 + $0xc8] sm:$0xf] %v19702_v56  ;;  %8186 = vst [vmem:[#allocation3 + $0xcc] sm:$0xf] %v19702_v56 }
  0x31   :  { %17483 = vmatprep.subr.bf16.mxu1 %v18976_v28  ;;  %17563 = vmatprep.subr.bf16.mxu0 %v18982_v36  ;;  %8187 = vst [vmem:[#allocation3 + $0xd0] sm:$0xf] %v19702_v56  ;;  %8188 = vst [vmem:[#allocation3 + $0xd4] sm:$0xf] %v19702_v56 }
  0x32   :  { %17420 = vmatmul.mubr.bf16.gmra.mxu0 %v18945_v24  ;;  %17452 = vmatmul.mubr.bf16.gmra.mxu1 %v18957_v26  ;;  %8189 = vst [vmem:[#allocation3 + $0xd8] sm:$0xf] %v19702_v56  ;;  %8190 = vst [vmem:[#allocation3 + $0xdc] sm:$0xf] %v19702_v56  ;;  %v19018_v24 = vld [vmem:[%s24712_s4 + $0xa0] sm:$0xff]  }
  0x33   :  { %17423 = vmatprep.mubr.bf16.mxu0 %v18946_v25  ;;  %17455 = vmatprep.mubr.bf16.mxu1 %v18958_v27  ;;  %8191 = vst [vmem:[#allocation3 + $0xe0] sm:$0xf] %v19702_v56  ;;  %8192 = vst [vmem:[#allocation3 + $0xe4] sm:$0xf] %v19702_v56 }
  0x34   :  { %17484 = vmatpush3.bf16.msra.mxu1 %v18976_v28  ;;  %17564 = vmatpush3.bf16.msra.mxu0 %v18982_v36  ;;  %8193 = vst [vmem:[#allocation3 + $0xe8] sm:$0xf] %v19702_v56  ;;  %8194 = vst [vmem:[#allocation3 + $0xec] sm:$0xf] %v19702_v56 }
  0x35   :  { %17485 = vmatprep.subr.bf16.mxu1 %v18981_v31  ;;  %17565 = vmatprep.subr.bf16.mxu0 %v18983_v51  ;;  %8195 = vst [vmem:[#allocation3 + $0x1b8] sm:$0xf] %v19702_v56  ;;  %8196 = vst [vmem:[#allocation3 + $0x1bc] sm:$0xf] %v19702_v56 }
  0x36   :  { %8197 = vst [vmem:[#allocation3 + $0x1c0] sm:$0xf] %v19702_v56  ;;  %8198 = vst [vmem:[#allocation3 + $0x1c4] sm:$0xf] %v19702_v56 }
  0x37   :  { %8199 = vst [vmem:[#allocation3 + $0x1c8] sm:$0xf] %v19702_v56  ;;  %8200 = vst [vmem:[#allocation3 + $0x1cc] sm:$0xf] %v19702_v56 }
  0x38   :  { %17486 = vmatpush3.bf16.msra.mxu1 %v18981_v31  ;;  %17566 = vmatpush3.bf16.msra.mxu0 %v18983_v51  ;;  %8201 = vst [vmem:[#allocation3 + $0x1d0] sm:$0xf] %v19702_v56  ;;  %8202 = vst [vmem:[#allocation3 + $0x1d4] sm:$0xf] %v19702_v56 }
  0x39   :  { %17487 = vmatprep.subr.bf16.mxu1 %v18984_v52  ;;  %17567 = vmatprep.subr.bf16.mxu0 %v18985_v53  ;;  %8203 = vst [vmem:[#allocation3 + $0x1d8] sm:$0xf] %v19702_v56  ;;  %8204 = vst [vmem:[#allocation3 + $0x1dc] sm:$0xf] %v19702_v56 }
  0x3a   :  { %17424 = vmatmul.mubr.bf16.gmra.mxu0 %v18947_v32  ;;  %17456 = vmatmul.mubr.bf16.gmra.mxu1 %v18959_v33  ;;  %8206 = vst [vmem:[#allocation3 + $0x28] sm:$0xf] %v19702_v56  ;;  %8207 = vst [vmem:[#allocation3 + $0x50] sm:$0xf] %v19702_v56 }
  0x3b   :  { %17427 = vmatprep.mubr.bf16.mxu0 %v18948_v34  ;;  %17459 = vmatprep.mubr.bf16.mxu1 %v18960_v35  ;;  %8208 = vst [vmem:[#allocation3 + $0x78] sm:$0xf] %v19702_v56  ;;  %8209 = vst [vmem:[#allocation3 + $0xa0] sm:$0xf] %v19702_v56 }
  0x3c   :  { %17488 = vmatpush3.bf16.msra.mxu1 %v18984_v52  ;;  %17568 = vmatpush3.bf16.msra.mxu0 %v18985_v53  ;;  %8210 = vst [vmem:[#allocation3 + $0x118] sm:$0xf] %v19702_v56  ;;  %8211 = vst [vmem:[#allocation3 + $0x140] sm:$0xf] %v19702_v56  ;;  %v24801_v52 = vmov 0 }
  0x3d   :  { %8212 = vst [vmem:[#allocation3 + $0x168] sm:$0xf] %v19702_v56  ;;  %8213 = vst [vmem:[#allocation3 + $0x190] sm:$0xf] %v19702_v56  ;;  %17489 = vmatprep.subr.bf16.mxu1 %v19923_v54  ;;  %17569 = vmatprep.subr.bf16.mxu0 %v19928_v55 }
  0x3e   :  { %8215 = vst [vmem:[#allocation3 + $0x4c] sm:$0xf] %v19702_v56  ;;  %8216 = vst [vmem:[#allocation3 + $0x74] sm:$0xf] %v19702_v56 }
  0x3f   :  { %8217 = vst [vmem:[#allocation3 + $0x9c] sm:$0xf] %v19702_v56  ;;  %8218 = vst [vmem:[#allocation3 + $0xc4] sm:$0xf] %v19702_v56 }
  0x40   :  { %8219 = vst [vmem:[#allocation3 + $0x13c] sm:$0xf] %v19702_v56  ;;  %8220 = vst [vmem:[#allocation3 + $0x164] sm:$0xf] %v19702_v56  ;;  %17490 = vmatpush3.bf16.msra.mxu1 %v19923_v54  ;;  %17570 = vmatpush3.bf16.msra.mxu0 %v19928_v55 }
  0x41   :  { %8221 = vst [vmem:[#allocation3 + $0x18c] sm:$0xf] %v19702_v56  ;;  %8222 = vst [vmem:[#allocation3 + $0x1b4] sm:$0xf] %v19702_v56  ;;  %17635 = vmatprep.subr.bf16.mxu1 %v18992_v1 }
  0x42   :  { %17428 = vmatmul.mubr.bf16.gmra.mxu0 %v18949_v37  ;;  %17460 = vmatmul.mubr.bf16.gmra.mxu1 %v18961_v38  ;;  %vm20114_vm6 = vmand %vm1490_vm2, %vm1491_vm3 }
  0x43   :  { %17431 = vmatprep.mubr.bf16.mxu0 %v18950_v39  ;;  %17463 = vmatprep.mubr.bf16.mxu1 %v18962_v40  ;;  %vm20120_vm7 = vmand %vm1749_vm4, %vm1750_vm5 }
  0x44   :  { %v24802_v52 = vsel %vm20120_vm7, 4294967295, %v24801_v52  ;;  %vm20133_vm8 = vmpackc.low %vm38_vm0, %vm38_vm0 }
  0x45   :  { %24803 = vst [vmem:[#allocation10_spill] sm:$0xff] %v24802_v52  ;;  %vm20140_vm9 = vmpackc.low %vm39_vm1, %vm39_vm1 }
  0x4a   :  { %17432 = vmatmul.mubr.bf16.gmra.mxu0 %v18951_v41  ;;  %17464 = vmatmul.mubr.bf16.gmra.mxu1 %v18963_v42 }
  0x4b   :  { %17435 = vmatprep.mubr.bf16.mxu0 %v18966_v43  ;;  %17467 = vmatprep.mubr.bf16.mxu1 %v18973_v44 }
  0x52   :  { %17436 = vmatmul.mubr.bf16.gmra.mxu0 %v18967_v45  ;;  %17468 = vmatmul.mubr.bf16.gmra.mxu1 %v18975_v46 }
  0x53   :  { %17439 = vmatprep.mubr.bf16.mxu0 %v18969_v47  ;;  %17471 = vmatprep.mubr.bf16.mxu1 %v18978_v48  ;;  %v24798_v48 = vmov 0 }
  0x54   :  { %v24799_v48 = vsel %vm20114_vm6, 4294967295, %v24798_v48 }
  0x55   :  { %24800 = vst [vmem:[#allocation9_spill] sm:$0xff] %v24799_v48 }
  0x5a   :  { %17440 = vmatmul.mubr.bf16.gmra.mxu0 %v18970_v49  ;;  %17472 = vmatmul.mubr.bf16.gmra.mxu1 %v18980_v50 }
  0x5b   :  { %17491 = vmatprep.mubr.bf16.mxu1 %v18988_v57  ;;  %17571 = vmatprep.mubr.bf16.mxu0 %v18989_v58 }
  0x62   :  { %17492 = vmatmul.mubr.bf16.vlgmr.msra.gmra.mxu1 %v18990_v59  ;;  %17572 = vmatmul.mubr.bf16.vlgmr.msra.gmra.mxu0 %v18991_v60  ;;  %v24805_v60 = vmov 0 }
  0x63   :  { %17495 = vmatprep.mubr.bf16.mxu1 %v18993_v61  ;;  %17575 = vmatprep.mubr.bf16.mxu0 %v18994_v62  ;;  %v24806_v60 = vsel %vm20133_vm8, 4294967295, %v24805_v60 }
  0x64   :  { %17636 = vmatpush3.bf16.msra.mxu1 %v18992_v1  ;;  %24807 = vst [vmem:[#allocation12_spill] sm:$0xff] %v24806_v60 }
  0x65   :  { %17637 = vmatprep.subr.bf16.mxu1 %v19000_v2 }
  0x68   :  { %17638 = vmatpush3.bf16.msra.mxu1 %v19000_v2 }
  0x69   :  { %17639 = vmatprep.subr.bf16.mxu1 %v19009_v3 }
  0x6a   :  { %17496 = vmatmul.mubr.bf16.gmra.mxu1 %v18995_v63  ;;  %17576 = vmatmul.mubr.bf16.gmra.mxu0 %v18996_v0  ;;  %v24808_v63 = vmov 0 }
  0x6b   :  { %v24809_v63 = vsel %vm20140_vm9, 4294967295, %v24808_v63 }
  0x6c   :  { %17640 = vmatpush3.bf16.msra.mxu1 %v19009_v3  ;;  %24810 = vst [vmem:[#allocation13_spill] sm:$0xff] %v24809_v63 }
  0x6d   :  { %17641 = vmatprep.subr.bf16.mxu1 %v19018_v24 }
  0x70   :  { %17642 = vmatpush3.bf16.msra.mxu1 %v19018_v24 }
  0xe2   :  { %v17413_v7 = vpop.f32.mrf.mxu0  ;;  %v17445_v9 = vpop.f32.mrf.mxu1 }
  0xe3   :  { %v658_v10 = vmul.f32 %v17413_v7, %v20058_v5  ;;  %v690_v11 = vmul.f32 %v17445_v9, %v20058_v5 }
  0xe4   :  { %v394_v12 = vpop.f32.mrf.mxu0  ;;  %v522_v13 = vpop.f32.mrf.mxu1 }
  0xe5   :  { %v729_v14 = vadd.f32 %v20065_v8, %v658_v10  ;;  %v656_v15 = vmul.f32 %v20058_v5, %v394_v12  ;;  %v761_v16 = vadd.f32 %v20065_v8, %v690_v11  ;;  %v688_v17 = vmul.f32 %v20058_v5, %v522_v13 }
  0xe6   :  { %v17414_v18 = vpop.f32.mrf.mxu0  ;;  %v17446_v19 = vpop.f32.mrf.mxu1 }
  0xe7   :  { %v20075_v20 = vmax.f32 %v729_v14, 0.0  ;;  %v727_v21 = vadd.f32 %v20065_v8, %v656_v15  ;;  %v659_v22 = vmul.f32 %v17414_v18, %v20058_v5  ;;  %v20079_v23 = vmax.f32 %v761_v16, 0.0 }
  0xe8   :  { %v397_v25 = vpop.f32.mrf.mxu0  ;;  %v759_v26 = vadd.f32 %v20065_v8, %v688_v17  ;;  %v691_v27 = vmul.f32 %v17446_v19, %v20058_v5  ;;  %v525_v32 = vpop.f32.mrf.mxu1 }
  0xe9   :  { %24793 = vst [vmem:[#allocation4_spill] sm:$0xff] %v20075_v20  ;;  %24794 = vst [vmem:[#allocation5_spill] sm:$0xff] %v20079_v23  ;;  %v916_v28 = vpack.c.bf16 %v20075_v20, %v20075_v20  ;;  %v20088_v29 = vmax.f32 %v727_v21, 0.0  ;;  %v730_v30 = vadd.f32 %v20065_v8, %v659_v22  ;;  %v657_v31 = vmul.f32 %v20058_v5, %v397_v25 }
  0xea   :  { %v17417_v33 = vpop.f32.mrf.mxu0  ;;  %v20094_v34 = vpack.c.bf16 %v20079_v23, %v20079_v23  ;;  %v20096_v35 = vmax.f32 %v759_v26, 0.0  ;;  %v20099_v36 = vadd.f32 %v20065_v8, %v691_v27  ;;  %v20102_v37 = vmul.f32 %v20058_v5, %v525_v32 }
  0xeb   :  { %24795 = vst [vmem:[#allocation6_spill] sm:$0xff] %v20088_v29  ;;  %v993_v38 = vshrl.u32 %v916_v28, 16  ;;  %v996_v39 = vshll.u32 %v916_v28, 16  ;;  %v914_v40 = vpack.c.bf16 %v20088_v29, %v20088_v29  ;;  %v20106_v41 = vmax.f32 %v730_v30, 0.0 }
  0xec   :  { %24796 = vst [vmem:[#allocation7_spill] sm:$0xff] %v20096_v35  ;;  %v728_v42 = vadd.f32 %v20065_v8, %v657_v31  ;;  %v662_v43 = vmul.f32 %v17417_v33, %v20058_v5  ;;  %v410_v44 = vpop.f32.mrf.mxu0  ;;  %v20556_v23 = vmax.f32 %v20099_v36, 0.0 }
  0xed   :  { %24797 = vst [vmem:[#allocation8_spill] sm:$0xff] %v20106_v41  ;;  %v995_v47 = vrot.slane %v993_v38, 7  ;;  %v1561_v49 = vrot.slane %v996_v39, 1  ;;  %v979_v50 = vshrl.u32 %v914_v40, 16  ;;  %v982_v51 = vshll.u32 %v914_v40, 16 }
  0xee   :  { %v917_v53 = vpack.c.bf16 %v20106_v41, %v20106_v41  ;;  %v20126_v54 = vmax.f32 %v728_v42, 0.0  ;;  %v733_v55 = vadd.f32 %v20065_v8, %v662_v43  ;;  %v660_v56 = vmul.f32 %v20058_v5, %v410_v44  ;;  %v17418_v57 = vpop.f32.mrf.mxu0  ;;  %24835 = vst [vmem:[#allocation34_spill] sm:$0xff] %v20556_v23 }
  0xef   :  { %v998_v58 = vor.u32 %v996_v39, %v995_v47  ;;  %v1562_v59 = vor.u32 %v1561_v49, %v993_v38  ;;  %v981_v61 = vrot.slane %v979_v50, 7  ;;  %v1557_v62 = vrot.slane %v982_v51, 1 }
  0xf0   :  { %24804 = vst [vmem:[#allocation11_spill] sm:$0xff] %v20126_v54  ;;  %v1000_v0 = vshrl.u32 %v917_v53, 16  ;;  %v1003_v1 = vshll.u32 %v917_v53, 16  ;;  %v915_v2 = vpack.c.bf16 %v20126_v54, %v20126_v54  ;;  %v20146_v3 = vmax.f32 %v733_v55, 0.0  ;;  %v413_v4 = vpop.f32.mrf.mxu0 }
  0xf1   :  { %v1495_v7 = vsel %vm20114_vm6, 0, %v998_v58  ;;  %v1754_v9 = vsel %vm20120_vm7, %v1562_v59, 0  ;;  %v984_v6 = vor.u32 %v982_v51, %v981_v61  ;;  %v1558_v10 = vor.u32 %v1557_v62, %v979_v50 }
  0xf2   :  { %24811 = vst [vmem:[#allocation14_spill] sm:$0xff] %v20146_v3  ;;  %v1821_v11 = vsel %vm20133_vm8, %v1495_v7, %v916_v28  ;;  %v1002_v12 = vrot.slane %v1000_v0, 7  ;;  %v1563_v13 = vrot.slane %v1003_v1, 1  ;;  %v986_v14 = vshrl.u32 %v915_v2, 16  ;;  %v17421_v15 = vpop.f32.mrf.mxu0 }
  0xf3   :  { %v1888_v16 = vsel %vm20140_vm9, %v1754_v9, %v1821_v11  ;;  %v1493_v17 = vsel %vm20114_vm6, 0, %v984_v6  ;;  %v1752_v18 = vsel %vm20120_vm7, %v1558_v10, 0  ;;  %v989_v19 = vshll.u32 %v915_v2, 16 }
  0xf4   :  { %1953 = vst [vmem:[#allocation2 + $0x34] sm:$0xf] %v1888_v16  ;;  %v1819_v21 = vsel %vm20133_vm8, %v1493_v17, %v914_v40  ;;  %v1005_v22 = vor.u32 %v1003_v1, %v1002_v12  ;;  %v1564_v24 = vor.u32 %v1563_v13, %v1000_v0  ;;  %v988_v25 = vrot.slane %v986_v14, 7  ;;  %v426_v26 = vpop.f32.mrf.mxu0 }
  0xf5   :  { %v1886_v27 = vsel %vm20140_vm9, %v1752_v18, %v1819_v21  ;;  %v1559_v28 = vrot.slane %v989_v19, 1  ;;  %v920_v30 = vpack.c.bf16 %v20146_v3, %v20146_v3  ;;  %v731_v31 = vadd.f32 %v20065_v8, %v660_v56 }
  0xf6   :  { %1951 = vst [vmem:[#allocation2 + $0x2c] sm:$0xf] %v1886_v27  ;;  %v1496_v32 = vsel %vm20114_vm6, 0, %v1005_v22  ;;  %v1755_v33 = vsel %vm20120_vm7, %v1564_v24, 0  ;;  %v991_v38 = vor.u32 %v989_v19, %v988_v25  ;;  %v663_v39 = vmul.f32 %v17418_v57, %v20058_v5  ;;  %v17422_v40 = vpop.f32.mrf.mxu0  ;;  %v19027_v19 = vld [vmem:[%s24712_s4 + $0x98] sm:$0xff]  }
  0xf7   :  { %v1822_v42 = vsel %vm20133_vm8, %v1496_v32, %v917_v53  ;;  %v1560_v43 = vor.u32 %v1559_v28, %v986_v14  ;;  %v1021_v44 = vshrl.u32 %v920_v30, 16  ;;  %v1024_v47 = vshll.u32 %v920_v30, 16  ;;  %17643 = vmatprep.subr.bf16.mxu1 %v19027_v19 }
  0xf8   :  { %v1889_v49 = vsel %vm20140_vm9, %v1755_v33, %v1822_v42  ;;  %v1494_v50 = vsel %vm20114_vm6, 0, %v991_v38  ;;  %v20178_v51 = vmax.f32 %v731_v31, 0.0  ;;  %v734_v55 = vadd.f32 %v20065_v8, %v663_v39  ;;  %v20181_v56 = vpop.f32.mrf.mxu0  ;;  %17644 = vmatpush3.bf16.msra.mxu1 %v19027_v19 }
  0xf9   :  { %1954 = vst [vmem:[#allocation2 + $0x38] sm:$0xf] %v1889_v49  ;;  %v1753_v57 = vsel %vm20120_vm7, %v1560_v43, 0  ;;  %v1820_v53 = vsel %vm20133_vm8, %v1494_v50, %v915_v2  ;;  %v1023_v58 = vrot.slane %v1021_v44, 7  ;;  %v1569_v59 = vrot.slane %v1024_v47, 1 }
  0xfa   :  { %24812 = vst [vmem:[#allocation15_spill] sm:$0xff] %v20178_v51  ;;  %v1887_v61 = vsel %vm20140_vm9, %v1753_v57, %v1820_v53  ;;  %v918_v62 = vpack.c.bf16 %v20178_v51, %v20178_v51  ;;  %v20191_v0 = vmax.f32 %v734_v55, 0.0  ;;  %v661_v1 = vmul.f32 %v20058_v5, %v413_v4  ;;  %v20196_v2 = vpop.f32.mrf.mxu0 }
  0xfb   :  { %1952 = vst [vmem:[#allocation2 + $0x30] sm:$0xf] %v1887_v61  ;;  %v1026_v7 = vor.u32 %v1024_v47, %v1023_v58  ;;  %v1570_v9 = vor.u32 %v1569_v59, %v1021_v44  ;;  %v666_v6 = vmul.f32 %v17421_v15, %v20058_v5  ;;  %v664_v10 = vmul.f32 %v20058_v5, %v426_v26 }
  0xfc   :  { %24813 = vst [vmem:[#allocation16_spill] sm:$0xff] %v20191_v0  ;;  %v1007_v11 = vshrl.u32 %v918_v62, 16  ;;  %v1010_v12 = vshll.u32 %v918_v62, 16  ;;  %v921_v13 = vpack.c.bf16 %v20191_v0, %v20191_v0  ;;  %v732_v14 = vadd.f32 %v20065_v8, %v661_v1  ;;  %v20218_v32 = vpop.f32.mrf.mxu0 }
  0xfd   :  { %v1499_v16 = vsel %vm20114_vm6, 0, %v1026_v7  ;;  %v1758_v4 = vsel %vm20120_vm7, %v1570_v9, 0  ;;  %v737_v17 = vadd.f32 %v20065_v8, %v666_v6  ;;  %v735_v15 = vadd.f32 %v20065_v8, %v664_v10  ;;  %v18997_v18 = vld [vmem:[#allocation2 + $0x28] sm:$0xff]  }
  0xfe   :  { %v1825_v21 = vsel %vm20133_vm8, %v1499_v16, %v920_v30  ;;  %v1009_v22 = vrot.slane %v1007_v11, 7  ;;  %v1565_v24 = vrot.slane %v1010_v12, 1  ;;  %v1028_v25 = vshrl.u32 %v921_v13, 16  ;;  %17579 = vmatprep.mubr.bf16.mxu0 %v18997_v18 }
  0xff   :  { %v1892_v26 = vsel %vm20140_vm9, %v1758_v4, %v1825_v21  ;;  %v1031_v27 = vshll.u32 %v921_v13, 16  ;;  %v20214_v28 = vmax.f32 %v732_v14, 0.0  ;;  %v20216_v31 = vmax.f32 %v737_v17, 0.0 }
 0x100   :  { %1957 = vst [vmem:[#allocation2 + $0x44] sm:$0xf] %v1892_v26  ;;  %v1012_v33 = vor.u32 %v1010_v12, %v1009_v22  ;;  %v1566_v38 = vor.u32 %v1565_v24, %v1007_v11  ;;  %v1030_v39 = vrot.slane %v1028_v25, 7  ;;  %v20220_v30 = vmax.f32 %v735_v15, 0.0  ;;  %v19001_v49 = vld [vmem:[#allocation2 + $0x34] sm:$0xff]  }
 0x101   :  { %24814 = vst [vmem:[#allocation17_spill] sm:$0xff] %v20214_v28  ;;  %24815 = vst [vmem:[#allocation18_spill] sm:$0xff] %v20216_v31  ;;  %v1571_v42 = vrot.slane %v1031_v27, 1  ;;  %v919_v43 = vpack.c.bf16 %v20214_v28, %v20214_v28  ;;  %v924_v44 = vpack.c.bf16 %v20216_v31, %v20216_v31  ;;  %v667_v47 = vmul.f32 %v17422_v40, %v20058_v5  ;;  %v17426_v40 = vpop.f32.mrf.mxu0 }
 0x102   :  { %24816 = vst [vmem:[#allocation19_spill] sm:$0xff] %v20220_v30  ;;  %v1497_v50 = vsel %vm20114_vm6, 0, %v1012_v33  ;;  %v1756_v55 = vsel %vm20120_vm7, %v1566_v38, 0  ;;  %v1033_v57 = vor.u32 %v1031_v27, %v1030_v39  ;;  %v922_v53 = vpack.c.bf16 %v20220_v30, %v20220_v30  ;;  %v18998_v58 = vld [vmem:[#allocation2 + $0x2c] sm:$0xff]  }
 0x103   :  { %v18999_v59 = vld [vmem:[#allocation2 + $0x30] sm:$0xff]   ;;  %v1823_v61 = vsel %vm20133_vm8, %v1497_v50, %v918_v62  ;;  %v1572_v1 = vor.u32 %v1571_v42, %v1028_v25  ;;  %v1014_v7 = vshrl.u32 %v919_v43, 16  ;;  %v1017_v9 = vshll.u32 %v919_v43, 16  ;;  %17499 = vmatprep.mubr.bf16.mxu1 %v18998_v58  ;;  %v445_v26 = vpop.f32.mrf.mxu0 }
 0x104   :  { %v1890_v6 = vsel %vm20140_vm9, %v1756_v55, %v1823_v61  ;;  %v1500_v10 = vsel %vm20114_vm6, 0, %v1033_v57  ;;  %v1049_v11 = vshrl.u32 %v924_v44, 16  ;;  %v1052_v12 = vshll.u32 %v924_v44, 16  ;;  %17580 = vmatmul.mubr.bf16.gmra.mxu0 %v18999_v59  ;;  %17500 = vmatmul.mubr.bf16.gmra.mxu1 %v19001_v49  ;;  %v19147_v63 = vld [vmem:[#allocation2 + $0x30] sm:$0xff]  }
 0x105   :  { %1955 = vst [vmem:[#allocation2 + $0x3c] sm:$0xf] %v1890_v6  ;;  %v1759_v14 = vsel %vm20120_vm7, %v1572_v1, 0  ;;  %v1826_v62 = vsel %vm20133_vm8, %v1500_v10, %v921_v13  ;;  %v1016_v16 = vrot.slane %v1014_v7, 7  ;;  %v1567_v4 = vrot.slane %v1017_v9, 1 }
 0x106   :  { %v1893_v17 = vsel %vm20140_vm9, %v1759_v14, %v1826_v62  ;;  %v1051_v15 = vrot.slane %v1049_v11, 7  ;;  %v1577_v18 = vrot.slane %v1052_v12, 1  ;;  %v1035_v19 = vshrl.u32 %v922_v53, 16 }
 0x107   :  { %1958 = vst [vmem:[#allocation2 + $0x48] sm:$0xf] %v1893_v17  ;;  %v1019_v21 = vor.u32 %v1017_v9, %v1016_v16  ;;  %v1568_v22 = vor.u32 %v1567_v4, %v1014_v7  ;;  %v1038_v24 = vshll.u32 %v922_v53, 16  ;;  %v738_v25 = vadd.f32 %v20065_v8, %v667_v47  ;;  %v17429_v7 = vpop.f32.mrf.mxu0 }
 0x108   :  { %v1054_v27 = vor.u32 %v1052_v12, %v1051_v15  ;;  %v1578_v33 = vor.u32 %v1577_v18, %v1049_v11  ;;  %v1037_v38 = vrot.slane %v1035_v19, 7  ;;  %v665_v13 = vmul.f32 %v20058_v5, %v20181_v56 }
 0x109   :  { %v1498_v39 = vsel %vm20114_vm6, 0, %v1019_v21  ;;  %v1757_v42 = vsel %vm20120_vm7, %v1568_v22, 0  ;;  %v1573_v49 = vrot.slane %v1038_v24, 1  ;;  %v20252_v50 = vmax.f32 %v738_v25, 0.0  ;;  %v20286_v21 = vpop.f32.mrf.mxu0 }
 0x10a   :  { %v1824_v55 = vsel %vm20133_vm8, %v1498_v39, %v919_v43  ;;  %v1503_v47 = vsel %vm20114_vm6, 0, %v1054_v27  ;;  %v1762_v57 = vsel %vm20120_vm7, %v1578_v33, 0  ;;  %v1040_v58 = vor.u32 %v1038_v24, %v1037_v38 }
 0x10b   :  { %24817 = vst [vmem:[#allocation20_spill] sm:$0xff] %v20252_v50  ;;  %v1891_v56 = vsel %vm20140_vm9, %v1757_v42, %v1824_v55  ;;  %v1829_v59 = vsel %vm20133_vm8, %v1503_v47, %v924_v44  ;;  %v1574_v61 = vor.u32 %v1573_v49, %v1035_v19  ;;  %v925_v1 = vpack.c.bf16 %v20252_v50, %v20252_v50 }
 0x10c   :  { %1956 = vst [vmem:[#allocation2 + $0x40] sm:$0xf] %v1891_v56  ;;  %v1896_v43 = vsel %vm20140_vm9, %v1762_v57, %v1829_v59  ;;  %v1501_v9 = vsel %vm20114_vm6, 0, %v1040_v58  ;;  %v736_v6 = vadd.f32 %v20065_v8, %v665_v13  ;;  %v670_v10 = vmul.f32 %v20196_v2, %v20058_v5  ;;  %v19002_v11 = vld [vmem:[#allocation2 + $0x38] sm:$0xff]   ;;  %v20313_v56 = vpop.f32.mrf.mxu0 }
 0x10d   :  { %1961 = vst [vmem:[#allocation2 + $0x5c] sm:$0xf] %v1896_v43  ;;  %v1760_v44 = vsel %vm20120_vm7, %v1574_v61, 0  ;;  %v1827_v12 = vsel %vm20133_vm8, %v1501_v9, %v922_v53  ;;  %v1056_v14 = vshrl.u32 %v925_v1, 16  ;;  %v1059_v62 = vshll.u32 %v925_v1, 16  ;;  %17583 = vmatprep.mubr.bf16.mxu0 %v19002_v11  ;;  %v19150_v48 = vld [vmem:[#allocation2 + $0x38] sm:$0xff]  }
 0x10e   :  { %v1894_v16 = vsel %vm20140_vm9, %v1760_v44, %v1827_v12  ;;  %v20279_v4 = vmax.f32 %v736_v6, 0.0  ;;  %v741_v17 = vadd.f32 %v20065_v8, %v670_v10  ;;  %v668_v2 = vmul.f32 %v20058_v5, %v20218_v32  ;;  %v19046_v32 = vld [vmem:[%s24712_s4 + $0xf8] sm:$0xff]   ;;  %v19005_v59 = vld [vmem:[#allocation2 + $0x44] sm:$0xff]  }
 0x10f   :  { %1959 = vst [vmem:[#allocation2 + $0x54] sm:$0xf] %v1894_v16  ;;  %v1058_v15 = vrot.slane %v1056_v14, 7  ;;  %v1579_v18 = vrot.slane %v1059_v62, 1  ;;  %v671_v19 = vmul.f32 %v17426_v40, %v20058_v5  ;;  %v669_v53 = vmul.f32 %v20058_v5, %v445_v26  ;;  %17715 = vmatprep.subr.bf16.mxu0 %v19046_v32 }
 0x110   :  { %24818 = vst [vmem:[#allocation21_spill] sm:$0xff] %v20279_v4  ;;  %v923_v22 = vpack.c.bf16 %v20279_v4, %v20279_v4  ;;  %v20290_v24 = vmax.f32 %v741_v17, 0.0  ;;  %v739_v25 = vadd.f32 %v20065_v8, %v668_v2  ;;  %v20294_v27 = vmul.f32 %v17429_v7, %v20058_v5  ;;  %17716 = vmatpush3.bf16.msra.mxu0 %v19046_v32  ;;  %v19036_v32 = vld [vmem:[%s24712_s4 + $0x90] sm:$0xff]  }
 0x111   :  { %v1061_v33 = vor.u32 %v1059_v62, %v1058_v15  ;;  %v1580_v40 = vor.u32 %v1579_v18, %v1056_v14  ;;  %v742_v26 = vadd.f32 %v20065_v8, %v671_v19  ;;  %v740_v38 = vadd.f32 %v20065_v8, %v669_v53  ;;  %17645 = vmatprep.subr.bf16.mxu1 %v19036_v32 }
 0x112   :  { %24819 = vst [vmem:[#allocation22_spill] sm:$0xff] %v20290_v24  ;;  %v1042_v13 = vshrl.u32 %v923_v22, 16  ;;  %v1045_v39 = vshll.u32 %v923_v22, 16  ;;  %v928_v42 = vpack.c.bf16 %v20290_v24, %v20290_v24  ;;  %v20303_v49 = vmax.f32 %v739_v25, 0.0  ;;  %v20330_v25 = vpop.f32.mrf.mxu0  ;;  %17646 = vmatpush3.bf16.msra.mxu1 %v19036_v32 }
 0x113   :  { %v1504_v55 = vsel %vm20114_vm6, 0, %v1061_v33  ;;  %v1763_v47 = vsel %vm20120_vm7, %v1580_v40, 0  ;;  %v20309_v57 = vmax.f32 %v742_v26, 0.0  ;;  %v20311_v58 = vmax.f32 %v740_v38, 0.0  ;;  %v19003_v6 = vld [vmem:[#allocation2 + $0x3c] sm:$0xff]   ;;  %v19045_v33 = vld [vmem:[%s24712_s4 + $0x88] sm:$0xff]  }
 0x114   :  { %24820 = vst [vmem:[#allocation23_spill] sm:$0xff] %v20303_v49  ;;  %v1830_v61 = vsel %vm20133_vm8, %v1504_v55, %v925_v1  ;;  %v1044_v7 = vrot.slane %v1042_v13, 7  ;;  %v1575_v43 = vrot.slane %v1045_v39, 1  ;;  %v1077_v9 = vshrl.u32 %v928_v42, 16  ;;  %v19004_v14 = vld [vmem:[#allocation2 + $0x40] sm:$0xff]   ;;  %17503 = vmatprep.mubr.bf16.mxu1 %v19003_v6  ;;  %v19052_v55 = vld [vmem:[%s24712_s4 + $0xe8] sm:$0xff]   ;;  %17647 = vmatprep.subr.bf16.mxu1 %v19045_v33 }
 0x115   :  { %24821 = vst [vmem:[#allocation24_spill] sm:$0xff] %v20309_v57  ;;  %24822 = vst [vmem:[#allocation25_spill] sm:$0xff] %v20311_v58  ;;  %v1897_v10 = vsel %vm20140_vm9, %v1763_v47, %v1830_v61  ;;  %v1080_v11 = vshll.u32 %v928_v42, 16  ;;  %v926_v44 = vpack.c.bf16 %v20303_v49, %v20303_v49  ;;  %v20323_v12 = vpack.c.bf16 %v20309_v57, %v20309_v57 }
 0x116   :  { %1962 = vst [vmem:[#allocation2 + $0x60] sm:$0xf] %v1897_v10  ;;  %v1047_v62 = vor.u32 %v1045_v39, %v1044_v7  ;;  %v1576_v16 = vor.u32 %v1575_v43, %v1042_v13  ;;  %v1079_v1 = vrot.slane %v1077_v9, 7  ;;  %v20327_v17 = vpack.c.bf16 %v20311_v58, %v20311_v58  ;;  %v19006_v2 = vld [vmem:[#allocation2 + $0x50] sm:$0xff]   ;;  %17584 = vmatmul.mubr.bf16.gmra.mxu0 %v19004_v14 }
 0x117   :  { %v1585_v15 = vrot.slane %v1080_v11, 1  ;;  %v1063_v18 = vshrl.u32 %v926_v44, 16  ;;  %v1066_v19 = vshll.u32 %v926_v44, 16  ;;  %v1084_v53 = vshrl.u32 %v20323_v12, 16  ;;  %17504 = vmatmul.mubr.bf16.gmra.mxu1 %v19005_v59  ;;  %17587 = vmatprep.mubr.bf16.mxu0 %v19006_v2  ;;  %v19050_v39 = vld [vmem:[%s24712_s4 + $0xf0] sm:$0xff]  }
 0x118   :  { %v1502_v40 = vsel %vm20114_vm6, 0, %v1047_v62  ;;  %v1761_v26 = vsel %vm20120_vm7, %v1576_v16, 0  ;;  %v1082_v38 = vor.u32 %v1080_v11, %v1079_v1  ;;  %v1087_v13 = vshll.u32 %v20323_v12, 16  ;;  %17717 = vmatprep.subr.bf16.mxu0 %v19050_v39  ;;  %v17433_v16 = vpop.f32.mrf.mxu0  ;;  %v19058_v1 = vld [vmem:[%s24712_s4 + $0x80] sm:$0xff]   ;;  %17648 = vmatpush3.bf16.msra.mxu1 %v19045_v33 }
 0x119   :  { %v1828_v47 = vsel %vm20133_vm8, %v1502_v40, %v923_v22  ;;  %v1586_v59 = vor.u32 %v1585_v15, %v1077_v9  ;;  %v1065_v61 = vrot.slane %v1063_v18, 7  ;;  %v1581_v7 = vrot.slane %v1066_v19, 1  ;;  %17718 = vmatpush3.bf16.msra.mxu0 %v19050_v39  ;;  %17649 = vmatprep.subr.bf16.mxu1 %v19058_v1 }
 0x11a   :  { %v1895_v43 = vsel %vm20140_vm9, %v1761_v26, %v1828_v47  ;;  %v1507_v6 = vsel %vm20114_vm6, 0, %v1082_v38  ;;  %v1086_v10 = vrot.slane %v1084_v53, 7  ;;  %v1587_v11 = vrot.slane %v1087_v13, 1  ;;  %17719 = vmatprep.subr.bf16.mxu0 %v19052_v55 }
 0x11b   :  { %1960 = vst [vmem:[#allocation2 + $0x58] sm:$0xf] %v1895_v43  ;;  %v1766_v14 = vsel %vm20120_vm7, %v1586_v59, 0  ;;  %v1833_v22 = vsel %vm20133_vm8, %v1507_v6, %v928_v42  ;;  %v1068_v9 = vor.u32 %v1066_v19, %v1065_v61  ;;  %v1582_v62 = vor.u32 %v1581_v7, %v1063_v18  ;;  %v19056_v42 = vld [vmem:[%s24712_s4 + $0xe0] sm:$0xff]   ;;  %v474_v43 = vpop.f32.mrf.mxu0 }
 0x11c   :  { %v1900_v2 = vsel %vm20140_vm9, %v1766_v14, %v1833_v22  ;;  %v1089_v15 = vor.u32 %v1087_v13, %v1086_v10  ;;  %v1588_v32 = vor.u32 %v1587_v11, %v1084_v53  ;;  %v1070_v40 = vshrl.u32 %v20327_v17, 16  ;;  %17650 = vmatpush3.bf16.msra.mxu1 %v19058_v1 }
 0x11d   :  { %1965 = vst [vmem:[#allocation2 + $0x6c] sm:$0xf] %v1900_v2  ;;  %v1505_v18 = vsel %vm20114_vm6, 0, %v1068_v9  ;;  %v1764_v19 = vsel %vm20120_vm7, %v1582_v62, 0  ;;  %v1073_v26 = vshll.u32 %v20327_v17, 16  ;;  %v745_v38 = vadd.f32 %v20065_v8, %v20294_v27  ;;  %17720 = vmatpush3.bf16.msra.mxu0 %v19052_v55  ;;  %v19010_v9 = vld [vmem:[#allocation2 + $0x5c] sm:$0xff]  }
 0x11e   :  { %v1831_v53 = vsel %vm20133_vm8, %v1505_v18, %v926_v44  ;;  %v1508_v13 = vsel %vm20114_vm6, 0, %v1089_v15  ;;  %v1767_v39 = vsel %vm20120_vm7, %v1588_v32, 0  ;;  %v1072_v47 = vrot.slane %v1070_v40, 7  ;;  %17721 = vmatprep.subr.bf16.mxu0 %v19056_v42  ;;  %v19063_v32 = vld [vmem:[%s24712_s4 + $0xd0] sm:$0xff]  }
 0x11f   :  { %v1898_v59 = vsel %vm20140_vm9, %v1764_v19, %v1831_v53  ;;  %v1834_v61 = vsel %vm20133_vm8, %v1508_v13, %v20323_v12  ;;  %v1583_v7 = vrot.slane %v1073_v26, 1  ;;  %v20386_v27 = vmax.f32 %v745_v38, 0.0  ;;  %v19059_v12 = vld [vmem:[%s24712_s4 + $0xd8] sm:$0xff]   ;;  %v17434_v19 = vpop.f32.mrf.mxu0 }
 0x120   :  { %1963 = vst [vmem:[#allocation2 + $0x64] sm:$0xf] %v1898_v59  ;;  %v1901_v44 = vsel %vm20140_vm9, %v1767_v39, %v1834_v61  ;;  %v1075_v6 = vor.u32 %v1073_v26, %v1072_v47  ;;  %v672_v33 = vmul.f32 %v20058_v5, %v20286_v21  ;;  %v675_v10 = vmul.f32 %v20313_v56, %v20058_v5 }
 0x121   :  { %24823 = vst [vmem:[#allocation26_spill] sm:$0xff] %v20386_v27  ;;  %1966 = vst [vmem:[#allocation2 + $0x70] sm:$0xf] %v1901_v44  ;;  %v1584_v11 = vor.u32 %v1583_v7, %v1070_v40  ;;  %v932_v55 = vpack.c.bf16 %v20386_v27, %v20386_v27  ;;  %v673_v14 = vmul.f32 %v20058_v5, %v20330_v25  ;;  %17722 = vmatpush3.bf16.msra.mxu0 %v19056_v42  ;;  %v19071_v44 = vld [vmem:[%s24712_s4 + $0x138] sm:$0xff]  }
 0x122   :  { %v678_v22 = vmul.f32 %v17433_v16, %v20058_v5  ;;  %v1506_v21 = vsel %vm20114_vm6, 0, %v1075_v6  ;;  %v743_v56 = vadd.f32 %v20065_v8, %v672_v33  ;;  %v746_v62 = vadd.f32 %v20065_v8, %v675_v10  ;;  %v19007_v15 = vld [vmem:[#allocation2 + $0x54] sm:$0xff]   ;;  %17723 = vmatprep.subr.bf16.mxu0 %v19059_v12  ;;  %17795 = vmatprep.subr.bf16.mxu1 %v19071_v44 }
 0x123   :  { %v676_v2 = vmul.f32 %v20058_v5, %v474_v43  ;;  %v1765_v25 = vsel %vm20120_vm7, %v1584_v11, 0  ;;  %v1832_v16 = vsel %vm20133_vm8, %v1506_v21, %v20327_v17  ;;  %v1105_v40 = vshrl.u32 %v932_v55, 16  ;;  %v19008_v26 = vld [vmem:[#allocation2 + $0x58] sm:$0xff]   ;;  %17507 = vmatprep.mubr.bf16.mxu1 %v19007_v15 }
 0x124   :  { %v1108_v18 = vshll.u32 %v932_v55, 16  ;;  %v1899_v38 = vsel %vm20140_vm9, %v1765_v25, %v1832_v16  ;;  %v20417_v1 = vmax.f32 %v743_v56, 0.0  ;;  %v20419_v53 = vmax.f32 %v746_v62, 0.0  ;;  %17588 = vmatmul.mubr.bf16.gmra.mxu0 %v19008_v26  ;;  %17508 = vmatmul.mubr.bf16.gmra.mxu1 %v19010_v9 }
 0x125   :  { %v744_v13 = vadd.f32 %v20065_v8, %v673_v14  ;;  %1964 = vst [vmem:[#allocation2 + $0x68] sm:$0xf] %v1899_v38  ;;  %v1107_v39 = vrot.slane %v1105_v40, 7  ;;  %v749_v17 = vadd.f32 %v20065_v8, %v678_v22  ;;  %v747_v59 = vadd.f32 %v20065_v8, %v676_v2  ;;  %17724 = vmatpush3.bf16.msra.mxu0 %v19059_v12  ;;  %v19065_v22 = vld [vmem:[%s24712_s4 + $0xc8] sm:$0xff]  }
 0x126   :  { %24824 = vst [vmem:[#allocation27_spill] sm:$0xff] %v20417_v1  ;;  %24825 = vst [vmem:[#allocation28_spill] sm:$0xff] %v20419_v53  ;;  %v1593_v47 = vrot.slane %v1108_v18, 1  ;;  %v930_v42 = vpack.c.bf16 %v20417_v1, %v20417_v1  ;;  %v933_v61 = vpack.c.bf16 %v20419_v53, %v20419_v53  ;;  %v20431_v43 = vmul.f32 %v17434_v19, %v20058_v5 }
 0x127   :  { %v20428_v7 = vmax.f32 %v744_v13, 0.0  ;;  %v1110_v6 = vor.u32 %v1108_v18, %v1107_v39  ;;  %v20436_v10 = vmax.f32 %v749_v17, 0.0  ;;  %v20438_v11 = vmax.f32 %v747_v59, 0.0  ;;  %v19011_v14 = vld [vmem:[#allocation2 + $0x60] sm:$0xff]   ;;  %17725 = vmatprep.subr.bf16.mxu0 %v19063_v32  ;;  %v20455_v39 = vpop.f32.mrf.mxu1 }
 0x128   :  { %v1594_v33 = vor.u32 %v1593_v47, %v1105_v40  ;;  %v1091_v9 = vshrl.u32 %v930_v42, 16  ;;  %v1094_v21 = vshll.u32 %v930_v42, 16  ;;  %v1112_v5 = vshrl.u32 %v933_v61, 16  ;;  %17591 = vmatprep.mubr.bf16.mxu0 %v19011_v14  ;;  %v19014_v47 = vld [vmem:[#allocation2 + $0x6c] sm:$0xff]   ;;  %v19068_v17 = vld [vmem:[%s24712_s4 + $0xc0] sm:$0xff]  }
 0x129   :  { %24826 = vst [vmem:[#allocation29_spill] sm:$0xff] %v20428_v7  ;;  %24827 = vst [vmem:[#allocation30_spill] sm:$0xff] %v20436_v10  ;;  %v1115_v56 = vshll.u32 %v933_v61, 16  ;;  %v1511_v62 = vsel %vm20114_vm6, 0, %v1110_v6  ;;  %v931_v15 = vpack.c.bf16 %v20428_v7, %v20428_v7  ;;  %v936_v12 = vpack.c.bf16 %v20436_v10, %v20436_v10  ;;  %17726 = vmatpush3.bf16.msra.mxu0 %v19063_v32 }
 0x12a   :  { %24828 = vst [vmem:[#allocation31_spill] sm:$0xff] %v20438_v11  ;;  %v1770_v2 = vsel %vm20120_vm7, %v1594_v33, 0  ;;  %v1837_v25 = vsel %vm20133_vm8, %v1511_v62, %v932_v55  ;;  %v1093_v16 = vrot.slane %v1091_v9, 7  ;;  %v1589_v40 = vrot.slane %v1094_v21, 1  ;;  %17727 = vmatprep.subr.bf16.mxu0 %v19065_v22 }
 0x12b   :  { %v1114_v18 = vrot.slane %v1112_v5, 7  ;;  %v1904_v19 = vsel %vm20140_vm9, %v1770_v2, %v1837_v25  ;;  %v1595_v26 = vrot.slane %v1115_v56, 1  ;;  %v1098_v38 = vshrl.u32 %v931_v15, 16 }
 0x12c   :  { %v1101_v13 = vshll.u32 %v931_v15, 16  ;;  %1969 = vst [vmem:[#allocation2 + $0x84] sm:$0xf] %v1904_v19  ;;  %v1096_v59 = vor.u32 %v1094_v21, %v1093_v16  ;;  %v1590_v55 = vor.u32 %v1589_v40, %v1091_v9  ;;  %v1133_v6 = vshrl.u32 %v936_v12, 16  ;;  %v19012_v33 = vld [vmem:[#allocation2 + $0x64] sm:$0xff]   ;;  %v477_v40 = vpop.f32.mrf.mxu0 }
 0x12d   :  { %v1117_v44 = vor.u32 %v1115_v56, %v1114_v18  ;;  %v1596_v14 = vor.u32 %v1595_v26, %v1112_v5  ;;  %v1100_v62 = vrot.slane %v1098_v38, 7  ;;  %v1136_v25 = vshll.u32 %v936_v12, 16  ;;  %v19013_v46 = vld [vmem:[#allocation2 + $0x68] sm:$0xff]   ;;  %17511 = vmatprep.mubr.bf16.mxu1 %v19012_v33  ;;  %v20472_v18 = vpop.f32.mrf.mxu1  ;;  %17728 = vmatpush3.bf16.msra.mxu0 %v19065_v22 }
 0x12e   :  { %v1591_v2 = vrot.slane %v1101_v13, 1  ;;  %v1509_v45 = vsel %vm20114_vm6, 0, %v1096_v59  ;;  %v1768_v32 = vsel %vm20120_vm7, %v1590_v55, 0  ;;  %v1135_v21 = vrot.slane %v1133_v6, 7  ;;  %17592 = vmatmul.mubr.bf16.gmra.mxu0 %v19013_v46  ;;  %17512 = vmatmul.mubr.bf16.gmra.mxu1 %v19014_v47 }
 0x12f   :  { %v1512_v19 = vsel %vm20114_vm6, 0, %v1117_v44  ;;  %v1835_v9 = vsel %vm20133_vm8, %v1509_v45, %v930_v42  ;;  %v1771_v5 = vsel %vm20120_vm7, %v1596_v14, 0  ;;  %v1103_v16 = vor.u32 %v1101_v13, %v1100_v62  ;;  %17729 = vmatprep.subr.bf16.mxu0 %v19068_v17  ;;  %v20493_v44 = vld [vmem:[%s24713_s2] ss:$0 sm:$0xff] }
 0x130   :  { %v1838_v56 = vsel %vm20133_vm8, %v1512_v19, %v933_v61  ;;  %v1902_v26 = vsel %vm20140_vm9, %v1768_v32, %v1835_v9  ;;  %v1592_v55 = vor.u32 %v1591_v2, %v1098_v38  ;;  %v1138_v45 = vor.u32 %v1136_v25, %v1135_v21  ;;  %v20500_v2 = vpop.f32.mrf.mxu1  ;;  %v20507_v32 = vld [vmem:[%s24714_s3] ss:$0 sm:$0xff] }
 0x131   :  { %v1905_v59 = vsel %vm20140_vm9, %v1771_v5, %v1838_v56  ;;  %1967 = vst [vmem:[#allocation2 + $0x7c] sm:$0xf] %v1902_v26  ;;  %v1510_v42 = vsel %vm20114_vm6, 0, %v1103_v16  ;;  %v1601_v61 = vrot.slane %v1136_v25, 1  ;;  %v934_v13 = vpack.c.bf16 %v20438_v11, %v20438_v11  ;;  %17730 = vmatpush3.bf16.msra.mxu0 %v19068_v17 }
 0x132   :  { %1970 = vst [vmem:[#allocation2 + $0x88] sm:$0xf] %v1905_v59  ;;  %v750_v46 = vadd.f32 %v20065_v8, %v20431_v43  ;;  %v1769_v47 = vsel %vm20120_vm7, %v1592_v55, 0  ;;  %v1836_v38 = vsel %vm20133_vm8, %v1510_v42, %v931_v15  ;;  %v1515_v22 = vsel %vm20114_vm6, 0, %v1138_v45 }
 0x133   :  { %v677_v33 = vmul.f32 %v20493_v44, %v477_v40  ;;  %v1903_v8 = vsel %vm20140_vm9, %v1769_v47, %v1836_v38  ;;  %v1602_v43 = vor.u32 %v1601_v61, %v1133_v6  ;;  %v1841_v14 = vsel %vm20133_vm8, %v1515_v22, %v936_v12  ;;  %v20531_v38 = vpop.f32.mrf.mxu1 }
 0x134   :  { %v1119_v62 = vshrl.u32 %v934_v13, 16  ;;  %1968 = vst [vmem:[#allocation2 + $0x80] sm:$0xf] %v1903_v8  ;;  %v1122_v15 = vshll.u32 %v934_v13, 16  ;;  %v20502_v25 = vmax.f32 %v750_v46, 0.0  ;;  %v24830_v21 = vshrl.u32 %v20094_v34, 16 }
 0x135   :  { %v748_v19 = vadd.f32 %v20507_v32, %v677_v33  ;;  %v1774_v12 = vsel %vm20120_vm7, %v1602_v43, 0  ;;  %v24831_v5 = vshll.u32 %v20094_v34, 16  ;;  %v20518_v16 = vpack.c.bf16 %v20096_v35, %v20096_v35 }
 0x136   :  { %24829 = vst [vmem:[#allocation32_spill] sm:$0xff] %v20502_v25  ;;  %v1219_v6 = vrot.slane %v24830_v21, 7  ;;  %v1121_v9 = vrot.slane %v1119_v62, 7  ;;  %v1908_v40 = vsel %vm20140_vm9, %v1774_v12, %v1841_v14  ;;  %v1597_v26 = vrot.slane %v1122_v15, 1 }
 0x137   :  { %v1625_v56 = vrot.slane %v24831_v5, 1  ;;  %v937_v59 = vpack.c.bf16 %v20502_v25, %v20502_v25  ;;  %v20524_v55 = vmax.f32 %v748_v19, 0.0  ;;  %1973 = vst [vmem:[#allocation2 + $0x94] sm:$0xf] %v1908_v40  ;;  %v24833_v45 = vmov %v24831_v5  ;;  %v19028_v25 = vld [vmem:[#allocation2 + $0xfc] sm:$0xff]  }
 0x138   :  { %v1124_v17 = vor.u32 %v1122_v15, %v1121_v9  ;;  %v1222_v42 = vor.u32 %v24833_v45, %v1219_v6  ;;  %v24834_v61 = vmov %v24830_v21  ;;  %v1203_v47 = vshrl.u32 %v20518_v16, 16  ;;  %v19015_v14 = vld [vmem:[#allocation2 + $0x78] sm:$0xff]   ;;  %v20550_v45 = vpop.f32.mrf.mxu1 }
 0x139   :  { %24832 = vst [vmem:[#allocation33_spill] sm:$0xff] %v20524_v55  ;;  %v1626_v46 = vor.u32 %v1625_v56, %v24834_v61  ;;  %v1598_v22 = vor.u32 %v1597_v26, %v1119_v62  ;;  %v1140_v33 = vshrl.u32 %v937_v59, 16  ;;  %v1143_v8 = vshll.u32 %v937_v59, 16  ;;  %17595 = vmatprep.mubr.bf16.mxu0 %v19015_v14 }
 0x13a   :  { %v935_v43 = vpack.c.bf16 %v20524_v55, %v20524_v55  ;;  %v1513_v15 = vsel %vm20114_vm6, 0, %v1124_v17  ;;  %v1527_v19 = vsel %vm20114_vm6, 0, %v1222_v42  ;;  %v1205_v6 = vrot.slane %v1203_v47, 7 }
 0x13b   :  { %v1786_v21 = vsel %vm20120_vm7, %v1626_v46, 0  ;;  %v1772_v12 = vsel %vm20120_vm7, %v1598_v22, 0  ;;  %v1839_v62 = vsel %vm20133_vm8, %v1513_v15, %v934_v13  ;;  %v1142_v9 = vrot.slane %v1140_v33, 7  ;;  %v19016_v42 = vld [vmem:[#allocation2 + $0x7c] sm:$0xff]   ;;  %v19019_v15 = vld [vmem:[#allocation2 + $0x84] sm:$0xff]  }
 0x13c   :  { %v1603_v5 = vrot.slane %v1143_v8, 1  ;;  %v1906_v56 = vsel %vm20140_vm9, %v1772_v12, %v1839_v62  ;;  %v1126_v40 = vshrl.u32 %v935_v43, 16  ;;  %v1129_v26 = vshll.u32 %v935_v43, 16  ;;  %v19017_v61 = vld [vmem:[#allocation2 + $0x80] sm:$0xff]   ;;  %17515 = vmatprep.mubr.bf16.mxu1 %v19016_v42 }
 0x13d   :  { %v1853_v17 = vsel %vm20133_vm8, %v1527_v19, %v20094_v34  ;;  %1971 = vst [vmem:[#allocation2 + $0x8c] sm:$0xf] %v1906_v56  ;;  %v1145_v46 = vor.u32 %v1143_v8, %v1142_v9  ;;  %v1206_v14 = vshll.u32 %v20518_v16, 16  ;;  %v760_v34 = vadd.f32 %v20507_v32, %v20102_v37  ;;  %17596 = vmatmul.mubr.bf16.gmra.mxu0 %v19017_v61  ;;  %v20568_v37 = vpop.f32.mrf.mxu1 }
 0x13e   :  { %v1604_v22 = vor.u32 %v1603_v5, %v1140_v33  ;;  %v1920_v13 = vsel %vm20140_vm9, %v1786_v21, %v1853_v17  ;;  %v1128_v12 = vrot.slane %v1126_v40, 7  ;;  %v1599_v62 = vrot.slane %v1129_v26, 1  ;;  %17516 = vmatmul.mubr.bf16.gmra.mxu1 %v19019_v15 }
 0x13f   :  { %1985 = vst [vmem:[#allocation2 + $0x124] sm:$0xf] %v1920_v13  ;;  %v1516_v33 = vsel %vm20114_vm6, 0, %v1145_v46  ;;  %v1208_v19 = vor.u32 %v1206_v14, %v1205_v6  ;;  %v1621_v21 = vrot.slane %v1206_v14, 1  ;;  %v949_v56 = vpack.c.bf16 %v20556_v23, %v20556_v23 }
 0x140   :  { %v1775_v8 = vsel %vm20120_vm7, %v1604_v22, 0  ;;  %v1842_v9 = vsel %vm20133_vm8, %v1516_v33, %v937_v59  ;;  %v1131_v5 = vor.u32 %v1129_v26, %v1128_v12  ;;  %v1600_v36 = vor.u32 %v1599_v62, %v1126_v40 }
 0x141   :  { %v1909_v17 = vsel %vm20140_vm9, %v1775_v8, %v1842_v9  ;;  %v1525_v42 = vsel %vm20114_vm6, 0, %v1208_v19  ;;  %v1622_v61 = vor.u32 %v1621_v21, %v1203_v47  ;;  %v20574_v6 = vmax.f32 %v760_v34, 0.0  ;;  %v20595_v34 = vpop.f32.mrf.mxu1 }
 0x142   :  { %1974 = vst [vmem:[#allocation2 + $0x98] sm:$0xf] %v1909_v17  ;;  %v1514_v59 = vsel %vm20114_vm6, 0, %v1131_v5  ;;  %v1773_v40 = vsel %vm20120_vm7, %v1600_v36, 0  ;;  %v1851_v26 = vsel %vm20133_vm8, %v1525_v42, %v20518_v16  ;;  %v1224_v46 = vshrl.u32 %v949_v56, 16 }
 0x143   :  { %24836 = vst [vmem:[#allocation35_spill] sm:$0xff] %v20574_v6  ;;  %v1840_v22 = vsel %vm20133_vm8, %v1514_v59, %v935_v43  ;;  %v1784_v47 = vsel %vm20120_vm7, %v1622_v61, 0  ;;  %v1227_v13 = vshll.u32 %v949_v56, 16  ;;  %v947_v14 = vpack.c.bf16 %v20574_v6, %v20574_v6 }
 0x144   :  { %v1907_v15 = vsel %vm20140_vm9, %v1773_v40, %v1840_v22  ;;  %v1918_v12 = vsel %vm20140_vm9, %v1784_v47, %v1851_v26  ;;  %v1226_v62 = vrot.slane %v1224_v46, 7  ;;  %v694_v16 = vmul.f32 %v20493_v44, %v20455_v39  ;;  %v19020_v43 = vld [vmem:[#allocation2 + $0x88] sm:$0xff]   ;;  %v20611_v47 = vpop.f32.mrf.mxu1 }
 0x145   :  { %1972 = vst [vmem:[#allocation2 + $0x90] sm:$0xf] %v1907_v15  ;;  %1983 = vst [vmem:[#allocation2 + $0x11c] sm:$0xf] %v1918_v12  ;;  %v1627_v33 = vrot.slane %v1227_v13, 1  ;;  %v1210_v8 = vshrl.u32 %v947_v14, 16  ;;  %v692_v21 = vmul.f32 %v20493_v44, %v20472_v18  ;;  %v695_v36 = vmul.f32 %v20493_v44, %v20500_v2  ;;  %17599 = vmatprep.mubr.bf16.mxu0 %v19020_v43 }
 0x146   :  { %v1213_v19 = vshll.u32 %v947_v14, 16  ;;  %v1229_v9 = vor.u32 %v1227_v13, %v1226_v62  ;;  %v765_v5 = vadd.f32 %v20507_v32, %v694_v16  ;;  %v693_v39 = vmul.f32 %v20493_v44, %v20531_v38  ;;  %v19024_v43 = vld [vmem:[#allocation2 + $0xf0] sm:$0xff]  }
 0x147   :  { %v1628_v17 = vor.u32 %v1627_v33, %v1224_v46  ;;  %v1212_v42 = vrot.slane %v1210_v8, 7  ;;  %v763_v59 = vadd.f32 %v20507_v32, %v692_v21  ;;  %v766_v18 = vadd.f32 %v20507_v32, %v695_v36  ;;  %v19025_v21 = vld [vmem:[#allocation2 + $0xf4] sm:$0xff]  }
 0x148   :  { %v1623_v61 = vrot.slane %v1213_v19, 1  ;;  %v1528_v40 = vsel %vm20114_vm6, 0, %v1229_v9  ;;  %v20607_v26 = vmax.f32 %v765_v5, 0.0  ;;  %v764_v22 = vadd.f32 %v20507_v32, %v693_v39 }
 0x149   :  { %v1787_v2 = vsel %vm20120_vm7, %v1628_v17, 0  ;;  %v1854_v38 = vsel %vm20133_vm8, %v1528_v40, %v949_v56  ;;  %v1215_v46 = vor.u32 %v1213_v19, %v1212_v42  ;;  %v20621_v62 = vmax.f32 %v763_v59, 0.0  ;;  %v20637_v17 = vpop.f32.mrf.mxu1 }
 0x14a   :  { %24837 = vst [vmem:[#allocation36_spill] sm:$0xff] %v20607_v26  ;;  %v1624_v13 = vor.u32 %v1623_v61, %v1210_v8  ;;  %v1921_v15 = vsel %vm20140_vm9, %v1787_v2, %v1854_v38  ;;  %v952_v12 = vpack.c.bf16 %v20607_v26, %v20607_v26  ;;  %v20623_v16 = vmax.f32 %v766_v18, 0.0  ;;  %v19023_v18 = vld [vmem:[#allocation2 + $0x94] sm:$0xff]  }
 0x14b   :  { %24838 = vst [vmem:[#allocation37_spill] sm:$0xff] %v20621_v62  ;;  %1986 = vst [vmem:[#allocation2 + $0x128] sm:$0xf] %v1921_v15  ;;  %v1526_v33 = vsel %vm20114_vm6, 0, %v1215_v46  ;;  %v20629_v19 = vmax.f32 %v764_v22, 0.0  ;;  %v698_v8 = vmul.f32 %v20493_v44, %v20550_v45  ;;  %v950_v39 = vpack.c.bf16 %v20621_v62, %v20621_v62  ;;  %v570_v62 = vpop.f32.mrf.mxu1 }
 0x14c   :  { %24839 = vst [vmem:[#allocation38_spill] sm:$0xff] %v20623_v16  ;;  %v1785_v56 = vsel %vm20120_vm7, %v1624_v13, 0  ;;  %v1852_v9 = vsel %vm20133_vm8, %v1526_v33, %v947_v14  ;;  %v1245_v5 = vshrl.u32 %v952_v12, 16  ;;  %v1248_v36 = vshll.u32 %v952_v12, 16  ;;  %v19021_v42 = vld [vmem:[#allocation2 + $0x8c] sm:$0xff]  }
 0x14d   :  { %24840 = vst [vmem:[#allocation39_spill] sm:$0xff] %v20629_v19  ;;  %v19022_v61 = vld [vmem:[#allocation2 + $0x90] sm:$0xff]   ;;  %v1919_v59 = vsel %vm20140_vm9, %v1785_v56, %v1852_v9  ;;  %v953_v40 = vpack.c.bf16 %v20623_v16, %v20623_v16  ;;  %v951_v45 = vpack.c.bf16 %v20629_v19, %v20629_v19  ;;  %v769_v14 = vadd.f32 %v20507_v32, %v698_v8  ;;  %v19026_v8 = vld [vmem:[#allocation2 + $0xf8] sm:$0xff]  }
 0x14e   :  { %1984 = vst [vmem:[#allocation2 + $0x120] sm:$0xf] %v1919_v59  ;;  %v1247_v22 = vrot.slane %v1245_v5, 7  ;;  %v1633_v2 = vrot.slane %v1248_v36, 1  ;;  %v1231_v38 = vshrl.u32 %v950_v39, 16  ;;  %v1234_v46 = vshll.u32 %v950_v39, 16  ;;  %17519 = vmatprep.mubr.bf16.mxu1 %v19021_v42  ;;  %17600 = vmatmul.mubr.bf16.gmra.mxu0 %v19022_v61 }
 0x14f   :  { %v1252_v13 = vshrl.u32 %v953_v40, 16  ;;  %v1255_v15 = vshll.u32 %v953_v40, 16  ;;  %v1238_v33 = vshrl.u32 %v951_v45, 16  ;;  %v1241_v56 = vshll.u32 %v951_v45, 16  ;;  %17520 = vmatmul.mubr.bf16.gmra.mxu1 %v19023_v18  ;;  %17603 = vmatprep.mubr.bf16.mxu0 %v19024_v43 }
 0x150   :  { %v1250_v9 = vor.u32 %v1248_v36, %v1247_v22  ;;  %v1634_v16 = vor.u32 %v1633_v2, %v1245_v5  ;;  %v1233_v26 = vrot.slane %v1231_v38, 7  ;;  %v1629_v19 = vrot.slane %v1234_v46, 1  ;;  %17523 = vmatprep.mubr.bf16.mxu1 %v19025_v21  ;;  %v19029_v36 = vld [vmem:[#allocation2 + $0x100] sm:$0xff]  }
 0x151   :  { %v1254_v59 = vrot.slane %v1252_v13, 7  ;;  %v1635_v23 = vrot.slane %v1255_v15, 1  ;;  %v1240_v6 = vrot.slane %v1238_v33, 7  ;;  %v1631_v35 = vrot.slane %v1241_v56, 1  ;;  %v19030_v5 = vld [vmem:[#allocation2 + $0x104] sm:$0xff]  }
 0x152   :  { %v1531_v42 = vsel %vm20114_vm6, 0, %v1250_v9  ;;  %v1790_v61 = vsel %vm20120_vm7, %v1634_v16, 0  ;;  %v1236_v18 = vor.u32 %v1234_v46, %v1233_v26  ;;  %v1630_v43 = vor.u32 %v1629_v19, %v1231_v38  ;;  %v17458_v26 = vpop.f32.mrf.mxu1 }
 0x153   :  { %v1857_v22 = vsel %vm20133_vm8, %v1531_v42, %v952_v12  ;;  %v1257_v21 = vor.u32 %v1255_v15, %v1254_v59  ;;  %v1636_v2 = vor.u32 %v1635_v23, %v1252_v13  ;;  %v1243_v55 = vor.u32 %v1241_v56, %v1240_v6  ;;  %v19031_v56 = vld [vmem:[#allocation2 + $0x108] sm:$0xff]  }
 0x154   :  { %v1924_v10 = vsel %vm20140_vm9, %v1790_v61, %v1857_v22  ;;  %v1529_v11 = vsel %vm20114_vm6, 0, %v1236_v18  ;;  %v1788_v9 = vsel %vm20120_vm7, %v1630_v43, 0  ;;  %v1632_v16 = vor.u32 %v1631_v35, %v1238_v33 }
 0x155   :  { %1989 = vst [vmem:[#allocation2 + $0x134] sm:$0xf] %v1924_v10  ;;  %v1855_v19 = vsel %vm20133_vm8, %v1529_v11, %v950_v39  ;;  %v1532_v12 = vsel %vm20114_vm6, 0, %v1257_v21  ;;  %v1791_v23 = vsel %vm20120_vm7, %v1636_v2, 0  ;;  %v1530_v6 = vsel %vm20114_vm6, 0, %v1243_v55 }
 0x156   :  { %v1922_v38 = vsel %vm20140_vm9, %v1788_v9, %v1855_v19  ;;  %v1858_v35 = vsel %vm20133_vm8, %v1532_v12, %v953_v40  ;;  %v1789_v10 = vsel %vm20120_vm7, %v1632_v16, 0  ;;  %v1856_v11 = vsel %vm20133_vm8, %v1530_v6, %v951_v45  ;;  %17604 = vmatmul.mubr.bf16.gmra.mxu0 %v19026_v8  ;;  %v19033_v12 = vld [vmem:[#allocation2 + $0x118] sm:$0xff]  }
 0x157   :  { %1987 = vst [vmem:[#allocation2 + $0x12c] sm:$0xf] %v1922_v38  ;;  %v1925_v39 = vsel %vm20140_vm9, %v1791_v23, %v1858_v35  ;;  %v1923_v55 = vsel %vm20140_vm9, %v1789_v10, %v1856_v11  ;;  %v20678_v46 = vmax.f32 %v769_v14, 0.0  ;;  %v696_v13 = vmul.f32 %v20493_v44, %v20568_v37  ;;  %17524 = vmatmul.mubr.bf16.gmra.mxu1 %v19028_v25  ;;  %v573_v14 = vpop.f32.mrf.mxu1  ;;  %v19034_v10 = vld [vmem:[#allocation2 + $0x11c] sm:$0xff]  }
 0x158   :  { %17607 = vmatprep.mubr.bf16.mxu0 %v19029_v36  ;;  %1990 = vst [vmem:[#allocation2 + $0x138] sm:$0xf] %v1925_v39  ;;  %1988 = vst [vmem:[#allocation2 + $0x130] sm:$0xf] %v1923_v55  ;;  %v699_v40 = vmul.f32 %v20493_v44, %v20595_v34  ;;  %v697_v45 = vmul.f32 %v20493_v44, %v20611_v47  ;;  %v702_v15 = vmul.f32 %v20493_v44, %v20637_v17  ;;  %v19032_v36 = vld [vmem:[#allocation2 + $0x10c] sm:$0xff]  }
 0x159   :  { %24841 = vst [vmem:[#allocation40_spill] sm:$0xff] %v20678_v46  ;;  %v700_v33 = vmul.f32 %v20493_v44, %v570_v62  ;;  %17527 = vmatprep.mubr.bf16.mxu1 %v19030_v5  ;;  %v956_v25 = vpack.c.bf16 %v20678_v46, %v20678_v46  ;;  %v767_v37 = vadd.f32 %v20507_v32, %v696_v13 }
 0x15a   :  { %v703_v8 = vmul.f32 %v20493_v44, %v17458_v26  ;;  %v20694_v34 = vmul.f32 %v20493_v44, %v573_v14  ;;  %v770_v47 = vadd.f32 %v20507_v32, %v699_v40  ;;  %v768_v59 = vadd.f32 %v20507_v32, %v697_v45 }
 0x15b   :  { %v773_v17 = vadd.f32 %v20507_v32, %v702_v15  ;;  %v771_v62 = vadd.f32 %v20507_v32, %v700_v33  ;;  %v1273_v42 = vshrl.u32 %v956_v25, 16  ;;  %v1276_v61 = vshll.u32 %v956_v25, 16 }
 0x15c   :  { %v20700_v18 = vmax.f32 %v767_v37, 0.0  ;;  %v774_v43 = vadd.f32 %v20507_v32, %v703_v8  ;;  %v20703_v5 = vmax.f32 %v770_v47, 0.0  ;;  %v20705_v22 = vmax.f32 %v768_v59, 0.0 }
 0x15d   :  { %v20707_v21 = vmax.f32 %v773_v17, 0.0  ;;  %v20709_v2 = vmax.f32 %v771_v62, 0.0  ;;  %v1275_v9 = vrot.slane %v1273_v42, 7  ;;  %v1641_v16 = vrot.slane %v1276_v61, 1 }
 0x15e   :  { %24842 = vst [vmem:[#allocation41_spill] sm:$0xff] %v20700_v18  ;;  %24843 = vst [vmem:[#allocation42_spill] sm:$0xff] %v20703_v5  ;;  %v954_v26 = vpack.c.bf16 %v20700_v18, %v20700_v18  ;;  %v20713_v19 = vmax.f32 %v774_v43, 0.0  ;;  %v957_v23 = vpack.c.bf16 %v20703_v5, %v20703_v5  ;;  %v955_v6 = vpack.c.bf16 %v20705_v22, %v20705_v22 }
 0x15f   :  { %24844 = vst [vmem:[#allocation43_spill] sm:$0xff] %v20705_v22  ;;  %24845 = vst [vmem:[#allocation44_spill] sm:$0xff] %v20707_v21  ;;  %v20721_v38 = vpack.c.bf16 %v20707_v21, %v20707_v21  ;;  %v20725_v35 = vpack.c.bf16 %v20709_v2, %v20709_v2  ;;  %17608 = vmatmul.mubr.bf16.gmra.mxu0 %v19031_v56  ;;  %v1278_v11 = vor.u32 %v1276_v61, %v1275_v9  ;;  %v19035_v21 = vld [vmem:[#allocation2 + $0x120] sm:$0xff]  }
 0x160   :  { %24846 = vst [vmem:[#allocation45_spill] sm:$0xff] %v20709_v2  ;;  %24847 = vst [vmem:[#allocation46_spill] sm:$0xff] %v20713_v19  ;;  %v1642_v39 = vor.u32 %v1641_v16, %v1273_v42  ;;  %v1259_v55 = vshrl.u32 %v954_v26, 16  ;;  %v1262_v13 = vshll.u32 %v954_v26, 16  ;;  %17528 = vmatmul.mubr.bf16.gmra.mxu1 %v19032_v36  ;;  %17611 = vmatprep.mubr.bf16.mxu0 %v19033_v12  ;;  %v1280_v40 = vshrl.u32 %v957_v23, 16  ;;  %v17461_v42 = vpop.f32.mrf.mxu1  ;;  %v19037_v16 = vld [vmem:[#allocation2 + $0x124] sm:$0xff]  }
 0x161   :  { %v1283_v45 = vshll.u32 %v957_v23, 16  ;;  %v1266_v15 = vshrl.u32 %v955_v6, 16  ;;  %v1269_v33 = vshll.u32 %v955_v6, 16  ;;  %17531 = vmatprep.mubr.bf16.mxu1 %v19034_v10  ;;  %v1535_v14 = vsel %vm20114_vm6, 0, %v1278_v11 }
 0x162   :  { %v1794_v37 = vsel %vm20120_vm7, %v1642_v39, 0  ;;  %v1261_v8 = vrot.slane %v1259_v55, 7  ;;  %v1637_v56 = vrot.slane %v1262_v13, 1  ;;  %v1861_v47 = vsel %vm20133_vm8, %v1535_v14, %v956_v25 }
 0x163   :  { %v1282_v59 = vrot.slane %v1280_v40, 7  ;;  %v1643_v17 = vrot.slane %v1283_v45, 1  ;;  %v1268_v62 = vrot.slane %v1266_v15, 7  ;;  %v1928_v61 = vsel %vm20140_vm9, %v1794_v37, %v1861_v47 }
 0x164   :  { %v1264_v43 = vor.u32 %v1262_v13, %v1261_v8  ;;  %v1638_v36 = vor.u32 %v1637_v56, %v1259_v55  ;;  %v1639_v9 = vrot.slane %v1269_v33, 1  ;;  %1993 = vst [vmem:[#allocation2 + $0x14c] sm:$0xf] %v1928_v61  ;;  %v1301_v39 = vshrl.u32 %v20721_v38, 16  ;;  %v19038_v13 = vld [vmem:[#allocation2 + $0x128] sm:$0xff]   ;;  %v586_v8 = vpop.f32.mrf.mxu1 }
 0x165   :  { %v1285_v12 = vor.u32 %v1283_v45, %v1282_v59  ;;  %v1644_v10 = vor.u32 %v1643_v17, %v1280_v40  ;;  %v1271_v11 = vor.u32 %v1269_v33, %v1268_v62  ;;  %v1304_v37 = vshll.u32 %v20721_v38, 16  ;;  %v19039_v56 = vld [vmem:[#allocation2 + $0x12c] sm:$0xff]  }
 0x166   :  { %v1533_v25 = vsel %vm20114_vm6, 0, %v1264_v43  ;;  %v1792_v14 = vsel %vm20120_vm7, %v1638_v36, 0  ;;  %v1640_v2 = vor.u32 %v1639_v9, %v1266_v15  ;;  %v1303_v62 = vrot.slane %v1301_v39, 7 }
 0x167   :  { %v1859_v55 = vsel %vm20133_vm8, %v1533_v25, %v954_v26  ;;  %v1536_v40 = vsel %vm20114_vm6, 0, %v1285_v12  ;;  %v1795_v45 = vsel %vm20120_vm7, %v1644_v10, 0  ;;  %v1534_v33 = vsel %vm20114_vm6, 0, %v1271_v11  ;;  %17612 = vmatmul.mubr.bf16.gmra.mxu0 %v19035_v21  ;;  %v17462_v10 = vpop.f32.mrf.mxu1 }
 0x168   :  { %v1926_v15 = vsel %vm20140_vm9, %v1792_v14, %v1859_v55  ;;  %v1862_v47 = vsel %vm20133_vm8, %v1536_v40, %v957_v23  ;;  %v1793_v26 = vsel %vm20120_vm7, %v1640_v2, 0  ;;  %v1860_v59 = vsel %vm20133_vm8, %v1534_v33, %v955_v6  ;;  %17532 = vmatmul.mubr.bf16.gmra.mxu1 %v19037_v16  ;;  %17615 = vmatprep.mubr.bf16.mxu0 %v19038_v13 }
 0x169   :  { %1991 = vst [vmem:[#allocation2 + $0x144] sm:$0xf] %v1926_v15  ;;  %v1929_v17 = vsel %vm20140_vm9, %v1795_v45, %v1862_v47  ;;  %v1927_v21 = vsel %vm20140_vm9, %v1793_v26, %v1860_v59  ;;  %v1649_v61 = vrot.slane %v1304_v37, 1  ;;  %17535 = vmatprep.mubr.bf16.mxu1 %v19039_v56  ;;  %v1287_v23 = vshrl.u32 %v20725_v35, 16  ;;  %v19041_v56 = vld [vmem:[#allocation2 + $0x134] sm:$0xff]  }
 0x16a   :  { %1994 = vst [vmem:[#allocation2 + $0x150] sm:$0xf] %v1929_v17  ;;  %1992 = vst [vmem:[#allocation2 + $0x148] sm:$0xf] %v1927_v21  ;;  %v1290_v2 = vshll.u32 %v20725_v35, 16  ;;  %v961_v6 = vpack.c.bf16 %v20713_v19, %v20713_v19  ;;  %v772_v43 = vadd.f32 %v20507_v32, %v20694_v34  ;;  %v1306_v36 = vor.u32 %v1304_v37, %v1303_v62  ;;  %v589_v17 = vpop.f32.mrf.mxu1 }
 0x16b   :  { %v1650_v9 = vor.u32 %v1649_v61, %v1301_v39  ;;  %v706_v16 = vmul.f32 %v20493_v44, %v17461_v42  ;;  %v704_v12 = vmul.f32 %v20493_v44, %v586_v8  ;;  %v1289_v11 = vrot.slane %v1287_v23, 7  ;;  %v19040_v39 = vld [vmem:[#allocation2 + $0x130] sm:$0xff]  }
 0x16c   :  { %v1645_v25 = vrot.slane %v1290_v2, 1  ;;  %v1308_v14 = vshrl.u32 %v961_v6, 16  ;;  %v1311_v13 = vshll.u32 %v961_v6, 16  ;;  %v1539_v55 = vsel %vm20114_vm6, 0, %v1306_v36 }
 0x16d   :  { %v1798_v40 = vsel %vm20120_vm7, %v1650_v9, 0  ;;  %v20773_v45 = vmax.f32 %v772_v43, 0.0  ;;  %v777_v34 = vadd.f32 %v20507_v32, %v706_v16  ;;  %v1865_v42 = vsel %vm20133_vm8, %v1539_v55, %v20721_v38 }
 0x16e   :  { %v1292_v37 = vor.u32 %v1290_v2, %v1289_v11  ;;  %v1646_v33 = vor.u32 %v1645_v25, %v1287_v23  ;;  %v1310_v8 = vrot.slane %v1308_v14, 7  ;;  %v1932_v15 = vsel %vm20140_vm9, %v1798_v40, %v1865_v42 }
 0x16f   :  { %24848 = vst [vmem:[#allocation47_spill] sm:$0xff] %v20773_v45  ;;  %v1651_v47 = vrot.slane %v1311_v13, 1  ;;  %v959_v26 = vpack.c.bf16 %v20773_v45, %v20773_v45  ;;  %v20783_v59 = vmax.f32 %v777_v34, 0.0  ;;  %17616 = vmatmul.mubr.bf16.gmra.mxu0 %v19040_v39  ;;  %1997 = vst [vmem:[#allocation2 + $0x15c] sm:$0xf] %v1932_v15  ;;  %v775_v61 = vadd.f32 %v20507_v32, %v704_v12  ;;  %v17465_v34 = vpop.f32.mrf.mxu1 }
 0x170   :  { %v1537_v21 = vsel %vm20114_vm6, 0, %v1292_v37  ;;  %v1796_v38 = vsel %vm20120_vm7, %v1646_v33, 0  ;;  %v1313_v62 = vor.u32 %v1311_v13, %v1310_v8  ;;  %17536 = vmatmul.mubr.bf16.gmra.mxu1 %v19041_v56  ;;  %v19042_v23 = vld [vmem:[#allocation2 + $0x140] sm:$0xff]   ;;  %v707_v15 = vmul.f32 %v20493_v44, %v17462_v10 }
 0x171   :  { %24849 = vst [vmem:[#allocation48_spill] sm:$0xff] %v20783_v59  ;;  %v1863_v2 = vsel %vm20133_vm8, %v1537_v21, %v20725_v35  ;;  %v1652_v43 = vor.u32 %v1651_v47, %v1308_v14  ;;  %v1294_v36 = vshrl.u32 %v959_v26, 16  ;;  %v1297_v9 = vshll.u32 %v959_v26, 16  ;;  %17619 = vmatprep.mubr.bf16.mxu0 %v19042_v23  ;;  %v19043_v12 = vld [vmem:[#allocation2 + $0x144] sm:$0xff]   ;;  %v19047_v21 = vld [vmem:[#allocation2 + $0x14c] sm:$0xff]  }
 0x172   :  { %v1930_v16 = vsel %vm20140_vm9, %v1796_v38, %v1863_v2  ;;  %v1540_v11 = vsel %vm20114_vm6, 0, %v1313_v62  ;;  %v964_v25 = vpack.c.bf16 %v20783_v59, %v20783_v59  ;;  %v20799_v13 = vmax.f32 %v775_v61, 0.0  ;;  %17539 = vmatprep.mubr.bf16.mxu1 %v19043_v12 }
 0x173   :  { %1995 = vst [vmem:[#allocation2 + $0x154] sm:$0xf] %v1930_v16  ;;  %v1799_v35 = vsel %vm20120_vm7, %v1652_v43, 0  ;;  %v1866_v14 = vsel %vm20133_vm8, %v1540_v11, %v961_v6  ;;  %v1296_v55 = vrot.slane %v1294_v36, 7  ;;  %v1647_v40 = vrot.slane %v1297_v9, 1  ;;  %v19044_v6 = vld [vmem:[#allocation2 + $0x148] sm:$0xff]  }
 0x174   :  { %24850 = vst [vmem:[#allocation49_spill] sm:$0xff] %v20799_v13  ;;  %v1933_v39 = vsel %vm20140_vm9, %v1799_v35, %v1866_v14  ;;  %v1329_v42 = vshrl.u32 %v964_v25, 16  ;;  %v1332_v37 = vshll.u32 %v964_v25, 16  ;;  %v962_v33 = vpack.c.bf16 %v20799_v13, %v20799_v13 }
 0x175   :  { %1998 = vst [vmem:[#allocation2 + $0x160] sm:$0xf] %v1933_v39  ;;  %v1299_v8 = vor.u32 %v1297_v9, %v1296_v55  ;;  %v1648_v56 = vor.u32 %v1647_v40, %v1294_v36  ;;  %v705_v47 = vmul.f32 %v20493_v44, %v589_v17  ;;  %v778_v16 = vadd.f32 %v20507_v32, %v707_v15  ;;  %v602_v9 = vpop.f32.mrf.mxu1 }
 0x176   :  { %v1331_v38 = vrot.slane %v1329_v42, 7  ;;  %v1657_v62 = vrot.slane %v1332_v37, 1  ;;  %v1315_v61 = vshrl.u32 %v962_v33, 16  ;;  %v1318_v23 = vshll.u32 %v962_v33, 16 }
 0x177   :  { %v1538_v2 = vsel %vm20114_vm6, 0, %v1299_v8  ;;  %v1797_v43 = vsel %vm20120_vm7, %v1648_v56, 0  ;;  %v776_v36 = vadd.f32 %v20507_v32, %v705_v47  ;;  %17620 = vmatmul.mubr.bf16.gmra.mxu0 %v19044_v6  ;;  %v20821_v55 = vmax.f32 %v778_v16, 0.0  ;;  %v17466_v39 = vpop.f32.mrf.mxu1 }
 0x178   :  { %v1864_v10 = vsel %vm20133_vm8, %v1538_v2, %v959_v26  ;;  %v1334_v17 = vor.u32 %v1332_v37, %v1331_v38  ;;  %v1658_v11 = vor.u32 %v1657_v62, %v1329_v42  ;;  %v1317_v12 = vrot.slane %v1315_v61, 7  ;;  %17540 = vmatmul.mubr.bf16.gmra.mxu1 %v19047_v21 }
 0x179   :  { %v1931_v35 = vsel %vm20140_vm9, %v1797_v43, %v1864_v10  ;;  %v1653_v14 = vrot.slane %v1318_v23, 1  ;;  %24851 = vst [vmem:[#allocation50_spill] sm:$0xff] %v20821_v55  ;;  %v20823_v40 = vmax.f32 %v776_v36, 0.0  ;;  %v710_v42 = vmul.f32 %v20493_v44, %v17465_v34  ;;  %v605_v16 = vpop.f32.mrf.mxu1 }
 0x17a   :  { %1996 = vst [vmem:[#allocation2 + $0x158] sm:$0xf] %v1931_v35  ;;  %v1543_v8 = vsel %vm20114_vm6, 0, %v1334_v17  ;;  %v1802_v26 = vsel %vm20120_vm7, %v1658_v11, 0  ;;  %v1320_v37 = vor.u32 %v1318_v23, %v1317_v12  ;;  %v19048_v56 = vld [vmem:[#allocation2 + $0x150] sm:$0xff]   ;;  %v965_v6 = vpack.c.bf16 %v20821_v55, %v20821_v55 }
 0x17b   :  { %24852 = vst [vmem:[#allocation51_spill] sm:$0xff] %v20823_v40  ;;  %v1869_v15 = vsel %vm20133_vm8, %v1543_v8, %v964_v25  ;;  %v1654_v47 = vor.u32 %v1653_v14, %v1315_v61  ;;  %v963_v21 = vpack.c.bf16 %v20823_v40, %v20823_v40  ;;  %v781_v23 = vadd.f32 %v20507_v32, %v710_v42 }
 0x17c   :  { %v1936_v38 = vsel %vm20140_vm9, %v1802_v26, %v1869_v15  ;;  %v1541_v62 = vsel %vm20114_vm6, 0, %v1320_v37  ;;  %v708_v34 = vmul.f32 %v20493_v44, %v602_v9  ;;  %17623 = vmatprep.mubr.bf16.mxu0 %v19048_v56  ;;  %v1336_v2 = vshrl.u32 %v965_v6, 16  ;;  %v20857_v37 = vld [vmem:[%s24713_s2] ss:$0 sm:$0xff]  ;;  %v17437_v56 = vpop.f32.mrf.mxu0 }
 0x17d   :  { %2001 = vst [vmem:[#allocation2 + $0x174] sm:$0xf] %v1936_v38  ;;  %v1800_v25 = vsel %vm20120_vm7, %v1654_v47, 0  ;;  %v1867_v61 = vsel %vm20133_vm8, %v1541_v62, %v962_v33  ;;  %v1339_v43 = vshll.u32 %v965_v6, 16  ;;  %v1322_v10 = vshrl.u32 %v963_v21, 16 }
 0x17e   :  { %v1934_v36 = vsel %vm20140_vm9, %v1800_v25, %v1867_v61  ;;  %v1325_v17 = vshll.u32 %v963_v21, 16  ;;  %v20848_v11 = vmax.f32 %v781_v23, 0.0  ;;  %v1338_v9 = vrot.slane %v1336_v2, 7 }
 0x17f   :  { %1999 = vst [vmem:[#allocation2 + $0x16c] sm:$0xf] %v1934_v36  ;;  %v1659_v12 = vrot.slane %v1339_v43, 1  ;;  %v779_v35 = vadd.f32 %v20507_v32, %v708_v34  ;;  %v711_v14 = vmul.f32 %v20493_v44, %v17466_v39  ;;  %v1324_v8 = vrot.slane %v1322_v10, 7  ;;  %v19053_v36 = vld [vmem:[#allocation2 + $0x15c] sm:$0xff]  }
 0x180   :  { %24853 = vst [vmem:[#allocation52_spill] sm:$0xff] %v20848_v11  ;;  %v1655_v26 = vrot.slane %v1325_v17, 1  ;;  %v968_v33 = vpack.c.bf16 %v20848_v11, %v20848_v11  ;;  %v709_v42 = vmul.f32 %v20857_v37, %v605_v16  ;;  %v1341_v15 = vor.u32 %v1339_v43, %v1338_v9 }
 0x181   :  { %v1660_v47 = vor.u32 %v1659_v12, %v1336_v2  ;;  %v20860_v38 = vmax.f32 %v779_v35, 0.0  ;;  %v782_v62 = vadd.f32 %v20507_v32, %v711_v14  ;;  %v19049_v44 = vld [vmem:[#allocation2 + $0x154] sm:$0xff]   ;;  %v1327_v39 = vor.u32 %v1325_v17, %v1324_v8  ;;  %v490_v12 = vpop.f32.mrf.mxu0 }
 0x182   :  { %v1656_v23 = vor.u32 %v1655_v26, %v1322_v10  ;;  %v1357_v34 = vshrl.u32 %v968_v33, 16  ;;  %v1360_v25 = vshll.u32 %v968_v33, 16  ;;  %v19051_v61 = vld [vmem:[#allocation2 + $0x158] sm:$0xff]   ;;  %v1544_v11 = vsel %vm20114_vm6, 0, %v1341_v15  ;;  %17543 = vmatprep.mubr.bf16.mxu1 %v19049_v44 }
 0x183   :  { %24854 = vst [vmem:[#allocation53_spill] sm:$0xff] %v20860_v38  ;;  %v1803_v16 = vsel %vm20120_vm7, %v1660_v47, 0  ;;  %v966_v2 = vpack.c.bf16 %v20860_v38, %v20860_v38  ;;  %v20869_v43 = vmax.f32 %v782_v62, 0.0  ;;  %v1870_v32 = vsel %vm20133_vm8, %v1544_v11, %v965_v6  ;;  %17624 = vmatmul.mubr.bf16.gmra.mxu0 %v19051_v61  ;;  %17544 = vmatmul.mubr.bf16.gmra.mxu1 %v19053_v36 }
 0x184   :  { %v1542_v10 = vsel %vm20114_vm6, 0, %v1327_v39  ;;  %v1801_v17 = vsel %vm20120_vm7, %v1656_v23, 0  ;;  %v1359_v9 = vrot.slane %v1357_v34, 7  ;;  %v1937_v35 = vsel %vm20140_vm9, %v1803_v16, %v1870_v32  ;;  %v20888_v23 = vld [vmem:[%s24714_s3] ss:$0 sm:$0xff] }
 0x185   :  { %24855 = vst [vmem:[#allocation54_spill] sm:$0xff] %v20869_v43  ;;  %v1868_v14 = vsel %vm20133_vm8, %v1542_v10, %v963_v21  ;;  %v1665_v8 = vrot.slane %v1360_v25, 1  ;;  %v1343_v26 = vshrl.u32 %v966_v2, 16  ;;  %2002 = vst [vmem:[#allocation2 + $0x178] sm:$0xf] %v1937_v35  ;;  %v1346_v15 = vshll.u32 %v966_v2, 16  ;;  %v17438_v10 = vpop.f32.mrf.mxu0 }
 0x186   :  { %v1935_v6 = vsel %vm20140_vm9, %v1801_v17, %v1868_v14  ;;  %v1362_v11 = vor.u32 %v1360_v25, %v1359_v9  ;;  %v969_v47 = vpack.c.bf16 %v20869_v43, %v20869_v43  ;;  %v19054_v62 = vld [vmem:[#allocation2 + $0x168] sm:$0xff]   ;;  %v780_v21 = vadd.f32 %v20888_v23, %v709_v42 }
 0x187   :  { %2000 = vst [vmem:[#allocation2 + $0x170] sm:$0xf] %v1935_v6  ;;  %v1666_v44 = vor.u32 %v1665_v8, %v1357_v34  ;;  %v1345_v39 = vrot.slane %v1343_v26, 7  ;;  %v682_v61 = vmul.f32 %v20857_v37, %v17437_v56  ;;  %v1661_v36 = vrot.slane %v1346_v15, 1  ;;  %17627 = vmatprep.mubr.bf16.mxu0 %v19054_v62  ;;  %v20897_v34 = vld [vmem:[%s24712_s4 + $0x178] sm:$0xff]  }
 0x188   :  { %v1547_v25 = vsel %vm20114_vm6, 0, %v1362_v11  ;;  %v1364_v16 = vshrl.u32 %v969_v47, 16  ;;  %v1367_v32 = vshll.u32 %v969_v47, 16  ;;  %v20903_v9 = vmax.f32 %v780_v21, 0.0  ;;  %17875 = vmatprep.subr.bf16.mxu0 %v20897_v34 }
 0x189   :  { %v1806_v17 = vsel %vm20120_vm7, %v1666_v44, 0  ;;  %v1873_v42 = vsel %vm20133_vm8, %v1547_v25, %v968_v33  ;;  %v1348_v56 = vor.u32 %v1346_v15, %v1345_v39  ;;  %v1662_v14 = vor.u32 %v1661_v36, %v1343_v26  ;;  %v493_v25 = vpop.f32.mrf.mxu0 }
 0x18a   :  { %24856 = vst [vmem:[#allocation55_spill] sm:$0xff] %v20903_v9  ;;  %v1940_v35 = vsel %vm20140_vm9, %v1806_v17, %v1873_v42  ;;  %v1366_v8 = vrot.slane %v1364_v16, 7  ;;  %v1667_v6 = vrot.slane %v1367_v32, 1  ;;  %v967_v62 = vpack.c.bf16 %v20903_v9, %v20903_v9 }
 0x18b   :  { %2005 = vst [vmem:[#allocation2 + $0x184] sm:$0xf] %v1940_v35  ;;  %v1545_v11 = vsel %vm20114_vm6, 0, %v1348_v56  ;;  %v753_v33 = vadd.f32 %v20888_v23, %v682_v61  ;;  %v680_v15 = vmul.f32 %v20857_v37, %v490_v12  ;;  %v1804_v44 = vsel %vm20120_vm7, %v1662_v14, 0  ;;  %v20922_v61 = vpop.f32.mrf.mxu1 }
 0x18c   :  { %v1871_v26 = vsel %vm20133_vm8, %v1545_v11, %v966_v2  ;;  %v1369_v39 = vor.u32 %v1367_v32, %v1366_v8  ;;  %v1668_v21 = vor.u32 %v1667_v6, %v1364_v16  ;;  %v1350_v17 = vshrl.u32 %v967_v62, 16  ;;  %v19060_v56 = vld [vmem:[#allocation2 + $0x174] sm:$0xff]  }
 0x18d   :  { %v1938_v36 = vsel %vm20140_vm9, %v1804_v44, %v1871_v26  ;;  %v1353_v42 = vshll.u32 %v967_v62, 16  ;;  %v20920_v35 = vmax.f32 %v753_v33, 0.0  ;;  %v751_v14 = vadd.f32 %v20888_v23, %v680_v15  ;;  %v20940_v9 = vpop.f32.mrf.mxu1 }
 0x18e   :  { %2003 = vst [vmem:[#allocation2 + $0x17c] sm:$0xf] %v1938_v36  ;;  %v1548_v12 = vsel %vm20114_vm6, 0, %v1369_v39  ;;  %v1807_v2 = vsel %vm20120_vm7, %v1668_v21, 0  ;;  %v19055_v32 = vld [vmem:[#allocation2 + $0x16c] sm:$0xff]   ;;  %v683_v8 = vmul.f32 %v20857_v37, %v17438_v10  ;;  %v1352_v11 = vrot.slane %v1350_v17, 7  ;;  %v17441_v10 = vpop.f32.mrf.mxu0 }
 0x18f   :  { %24857 = vst [vmem:[#allocation56_spill] sm:$0xff] %v20920_v35  ;;  %v19057_v16 = vld [vmem:[#allocation2 + $0x170] sm:$0xff]   ;;  %v1874_v6 = vsel %vm20133_vm8, %v1548_v12, %v969_v47  ;;  %v1663_v33 = vrot.slane %v1353_v42, 1  ;;  %v940_v44 = vpack.c.bf16 %v20920_v35, %v20920_v35  ;;  %17547 = vmatprep.mubr.bf16.mxu1 %v19055_v32  ;;  %v20936_v39 = vmax.f32 %v751_v14, 0.0 }
 0x190   :  { %v1941_v26 = vsel %vm20140_vm9, %v1807_v2, %v1874_v6  ;;  %17628 = vmatmul.mubr.bf16.gmra.mxu0 %v19057_v16  ;;  %v754_v21 = vadd.f32 %v20888_v23, %v683_v8  ;;  %v681_v15 = vmul.f32 %v20857_v37, %v493_v25  ;;  %v1355_v36 = vor.u32 %v1353_v42, %v1352_v11 }
 0x191   :  { %24858 = vst [vmem:[#allocation57_spill] sm:$0xff] %v20936_v39  ;;  %2006 = vst [vmem:[#allocation2 + $0x188] sm:$0xf] %v1941_v26  ;;  %v1664_v47 = vor.u32 %v1663_v33, %v1350_v17  ;;  %17548 = vmatmul.mubr.bf16.gmra.mxu1 %v19060_v56  ;;  %v1161_v12 = vshrl.u32 %v940_v44, 16  ;;  %v1164_v43 = vshll.u32 %v940_v44, 16  ;;  %v938_v2 = vpack.c.bf16 %v20936_v39, %v20936_v39  ;;  %v506_v26 = vpop.f32.mrf.mxu0 }
 0x192   :  { %v20944_v32 = vmax.f32 %v754_v21, 0.0  ;;  %v752_v16 = vadd.f32 %v20888_v23, %v681_v15  ;;  %v686_v14 = vmul.f32 %v20857_v37, %v17441_v10  ;;  %v1546_v25 = vsel %vm20114_vm6, 0, %v1355_v36 }
 0x193   :  { %v1805_v17 = vsel %vm20120_vm7, %v1664_v47, 0  ;;  %v1163_v42 = vrot.slane %v1161_v12, 7  ;;  %v1609_v56 = vrot.slane %v1164_v43, 1  ;;  %v1872_v8 = vsel %vm20133_vm8, %v1546_v25, %v967_v62  ;;  %v20960_v47 = vpop.f32.mrf.mxu1 }
 0x194   :  { %24859 = vst [vmem:[#allocation58_spill] sm:$0xff] %v20944_v32  ;;  %v1147_v6 = vshrl.u32 %v938_v2, 16  ;;  %v1150_v11 = vshll.u32 %v938_v2, 16  ;;  %v941_v33 = vpack.c.bf16 %v20944_v32, %v20944_v32  ;;  %v1939_v21 = vsel %vm20140_vm9, %v1805_v17, %v1872_v8  ;;  %v17442_v8 = vpop.f32.mrf.mxu0 }
 0x195   :  { %v19061_v15 = vld [vmem:[#allocation2 + $0x178] sm:$0xff]   ;;  %v1166_v10 = vor.u32 %v1164_v43, %v1163_v42  ;;  %v1610_v36 = vor.u32 %v1609_v56, %v1161_v12  ;;  %v20958_v38 = vmax.f32 %v752_v16, 0.0  ;;  %2004 = vst [vmem:[#allocation2 + $0x180] sm:$0xf] %v1939_v21  ;;  %v757_v12 = vadd.f32 %v20888_v23, %v686_v14  ;;  %v20973_v45 = vpop.f32.mrf.mxu1 }
 0x196   :  { %v1149_v55 = vrot.slane %v1147_v6, 7  ;;  %v1605_v40 = vrot.slane %v1150_v11, 1  ;;  %v1168_v62 = vshrl.u32 %v941_v33, 16  ;;  %v1171_v25 = vshll.u32 %v941_v33, 16  ;;  %17631 = vmatprep.mubr.bf16.mxu0 %v19061_v15  ;;  %v19140_v3 = vld [vmem:[#allocation2 + $0x178] sm:$0xff]  }
 0x197   :  { %24860 = vst [vmem:[#allocation59_spill] sm:$0xff] %v20958_v38  ;;  %v1519_v59 = vsel %vm20114_vm6, 0, %v1166_v10  ;;  %v1778_v13 = vsel %vm20120_vm7, %v1610_v36, 0  ;;  %v939_v43 = vpack.c.bf16 %v20958_v38, %v20958_v38 }
 0x198   :  { %v1845_v16 = vsel %vm20133_vm8, %v1519_v59, %v940_v44  ;;  %v1152_v17 = vor.u32 %v1150_v11, %v1149_v55  ;;  %v1606_v42 = vor.u32 %v1605_v40, %v1147_v6  ;;  %v1170_v56 = vrot.slane %v1168_v62, 7  ;;  %v19069_v11 = vld [vmem:[#allocation2 + $0x8] sm:$0xff]  }
 0x199   :  { %v1912_v21 = vsel %vm20140_vm9, %v1778_v13, %v1845_v16  ;;  %v1611_v15 = vrot.slane %v1171_v25, 1  ;;  %v1154_v10 = vshrl.u32 %v939_v43, 16  ;;  %v1157_v19 = vshll.u32 %v939_v43, 16 }
 0x19a   :  { %1977 = vst [vmem:[#allocation2 + $0xac] sm:$0xf] %v1912_v21  ;;  %v1517_v36 = vsel %vm20114_vm6, 0, %v1152_v17  ;;  %v1776_v14 = vsel %vm20120_vm7, %v1606_v42, 0  ;;  %v1173_v59 = vor.u32 %v1171_v25, %v1170_v56  ;;  %v20979_v55 = vmax.f32 %v757_v12, 0.0  ;;  %v509_v12 = vpop.f32.mrf.mxu0 }
 0x19b   :  { %v1843_v40 = vsel %vm20133_vm8, %v1517_v36, %v938_v2  ;;  %v1612_v44 = vor.u32 %v1611_v15, %v1168_v62  ;;  %v1156_v13 = vrot.slane %v1154_v10, 7  ;;  %v1607_v6 = vrot.slane %v1157_v19, 1  ;;  %v20994_v36 = vpop.f32.mrf.mxu1 }
 0x19c   :  { %24861 = vst [vmem:[#allocation60_spill] sm:$0xff] %v20979_v55  ;;  %v1910_v16 = vsel %vm20140_vm9, %v1776_v14, %v1843_v40  ;;  %v1520_v21 = vsel %vm20114_vm6, 0, %v1173_v59  ;;  %v944_v17 = vpack.c.bf16 %v20979_v55, %v20979_v55  ;;  %v684_v25 = vmul.f32 %v20857_v37, %v506_v26  ;;  %v19062_v42 = vld [vmem:[#allocation2 + $0x17c] sm:$0xff]   ;;  %v19066_v59 = vld [vmem:[#allocation2 + $0x184] sm:$0xff]  }
 0x19d   :  { %1975 = vst [vmem:[#allocation2 + $0xa4] sm:$0xf] %v1910_v16  ;;  %v1779_v2 = vsel %vm20120_vm7, %v1612_v44, 0  ;;  %v1846_v62 = vsel %vm20133_vm8, %v1520_v21, %v941_v33  ;;  %v1159_v56 = vor.u32 %v1157_v19, %v1156_v13  ;;  %v1608_v15 = vor.u32 %v1607_v6, %v1154_v10  ;;  %v19064_v14 = vld [vmem:[#allocation2 + $0x180] sm:$0xff]   ;;  %17551 = vmatprep.mubr.bf16.mxu1 %v19062_v42  ;;  %v19067_v16 = vld [vmem:[#allocation2 + $0x28] sm:$0xff]  }
 0x19e   :  { %v1913_v40 = vsel %vm20140_vm9, %v1779_v2, %v1846_v62  ;;  %v1189_v5 = vshrl.u32 %v944_v17, 16  ;;  %v1192_v26 = vshll.u32 %v944_v17, 16  ;;  %v755_v22 = vadd.f32 %v20888_v23, %v684_v25  ;;  %17632 = vmatmul.mubr.bf16.gmra.mxu0 %v19064_v14  ;;  %17552 = vmatmul.mubr.bf16.gmra.mxu1 %v19066_v59  ;;  %v21013_v62 = vpop.f32.mrf.mxu1 }
 0x19f   :  { %1978 = vst [vmem:[#allocation2 + $0xb0] sm:$0xf] %v1913_v40  ;;  %v1518_v44 = vsel %vm20114_vm6, 0, %v1159_v56  ;;  %v1777_v19 = vsel %vm20120_vm7, %v1608_v15, 0  ;;  %v687_v33 = vmul.f32 %v20857_v37, %v17442_v8  ;;  %v685_v10 = vmul.f32 %v20857_v37, %v509_v12  ;;  %17731 = vmatprep.mubr.bf16.mxu0 %v19067_v16  ;;  %17651 = vmatprep.mubr.bf16.mxu1 %v19069_v11  ;;  %v19072_v15 = vld [vmem:[#allocation2 + $0x10] sm:$0xff]   ;;  %v19074_v16 = vld [vmem:[#allocation2 + $0x18] sm:$0xff]  }
 0x1a0   :  { %v1844_v13 = vsel %vm20133_vm8, %v1518_v44, %v939_v43  ;;  %v1191_v6 = vrot.slane %v1189_v5, 7  ;;  %v1617_v21 = vrot.slane %v1192_v26, 1  ;;  %v21007_v25 = vmax.f32 %v755_v22, 0.0 }
 0x1a1   :  { %v1911_v42 = vsel %vm20140_vm9, %v1777_v19, %v1844_v13  ;;  %v758_v2 = vadd.f32 %v20888_v23, %v687_v33  ;;  %v756_v8 = vadd.f32 %v20888_v23, %v685_v10  ;;  %v714_v22 = vmul.f32 %v20857_v37, %v20922_v61  ;;  %v19073_v10 = vld [vmem:[#allocation2 + $0x38] sm:$0xff]  }
 0x1a2   :  { %24862 = vst [vmem:[#allocation61_spill] sm:$0xff] %v21007_v25  ;;  %1976 = vst [vmem:[#allocation2 + $0xa8] sm:$0xf] %v1911_v42  ;;  %v1194_v12 = vor.u32 %v1192_v26, %v1191_v6  ;;  %v1618_v56 = vor.u32 %v1617_v21, %v1189_v5  ;;  %v942_v43 = vpack.c.bf16 %v21007_v25, %v21007_v25  ;;  %v21029_v26 = vpop.f32.mrf.mxu1  ;;  %v19070_v5 = vld [vmem:[#allocation2 + $0x30] sm:$0xff]  }
 0x1a3   :  { %v21019_v11 = vmax.f32 %v758_v2, 0.0  ;;  %v21021_v14 = vmax.f32 %v756_v8, 0.0  ;;  %v712_v59 = vmul.f32 %v20857_v37, %v20940_v9  ;;  %v21027_v40 = vmul.f32 %v20857_v37, %v20960_v47  ;;  %v19080_v9 = vld [vmem:[%s24712_s4 + $0x130] sm:$0xff]  }
 0x1a4   :  { %v1523_v44 = vsel %vm20114_vm6, 0, %v1194_v12  ;;  %v1782_v61 = vsel %vm20120_vm7, %v1618_v56, 0  ;;  %v1175_v19 = vshrl.u32 %v942_v43, 16  ;;  %v1178_v33 = vshll.u32 %v942_v43, 16 }
 0x1a5   :  { %24863 = vst [vmem:[#allocation62_spill] sm:$0xff] %v21019_v11  ;;  %24864 = vst [vmem:[#allocation63_spill] sm:$0xff] %v21021_v14  ;;  %v1849_v47 = vsel %vm20133_vm8, %v1523_v44, %v944_v17  ;;  %v945_v13 = vpack.c.bf16 %v21019_v11, %v21019_v11  ;;  %v943_v6 = vpack.c.bf16 %v21021_v14, %v21021_v14  ;;  %v21048_v44 = vpop.f32.mrf.mxu1 }
 0x1a6   :  { %v785_v21 = vadd.f32 %v20888_v23, %v714_v22  ;;  %v1916_v42 = vsel %vm20140_vm9, %v1782_v61, %v1849_v47  ;;  %v1177_v2 = vrot.slane %v1175_v19, 7  ;;  %v1613_v8 = vrot.slane %v1178_v33, 1  ;;  %17732 = vmatmul.mubr.bf16.vlgmr.msra.gmra.mxu0 %v19070_v5  ;;  %17652 = vmatmul.mubr.bf16.vlgmr.msra.gmra.mxu1 %v19072_v15  ;;  %v21054_v61 = vpop.f32.mrf.mxu0  ;;  %v19696_v47 = vld [vmem:[%s24712_s4 + $0x138] sm:$0xff]  }
 0x1a7   :  { %v783_v12 = vadd.f32 %v20888_v23, %v712_v59  ;;  %1981 = vst [vmem:[#allocation2 + $0xbc] sm:$0xf] %v1916_v42  ;;  %v1196_v56 = vshrl.u32 %v945_v13, 16  ;;  %v1199_v46 = vshll.u32 %v945_v13, 16  ;;  %v1182_v18 = vshrl.u32 %v943_v6, 16  ;;  %v19130_v59 = vld [vmem:[%s24712_s4 + $0x170] sm:$0xff]   ;;  %17735 = vmatprep.mubr.bf16.mxu0 %v19073_v10  ;;  %17796 = vmatpush3.bf16.msra.mxu1 %v19696_v47 }
 0x1a8   :  { %v1185_v17 = vshll.u32 %v943_v6, 16  ;;  %v1180_v11 = vor.u32 %v1178_v33, %v1177_v2  ;;  %v1614_v55 = vor.u32 %v1613_v8, %v1175_v19  ;;  %v21050_v14 = vmax.f32 %v785_v21, 0.0  ;;  %v21062_v21 = vpop.f32.mrf.mxu1  ;;  %17655 = vmatprep.mubr.bf16.mxu1 %v19074_v16  ;;  %v19076_v42 = vld [vmem:[#allocation2 + $0x20] sm:$0xff]   ;;  %17797 = vmatprep.subr.bf16.mxu1 %v19080_v9  ;;  %v21082_v53 = vpop.f32.mrf.mxu0 }
 0x1a9   :  { %v21052_v22 = vmax.f32 %v783_v12, 0.0  ;;  %v1198_v5 = vrot.slane %v1196_v56, 7  ;;  %v1619_v15 = vrot.slane %v1199_v46, 1  ;;  %v1184_v33 = vrot.slane %v1182_v18, 7  ;;  %v19089_v12 = vld [vmem:[%s24712_s4 + $0x128] sm:$0xff]   ;;  %17876 = vmatpush3.bf16.msra.mxu0 %v20897_v34 }
 0x1aa   :  { %24865 = vst [vmem:[#allocation64_spill] sm:$0xff] %v21050_v14  ;;  %v1615_v19 = vrot.slane %v1185_v17, 1  ;;  %v1521_v2 = vsel %vm20114_vm6, 0, %v1180_v11  ;;  %v1780_v10 = vsel %vm20120_vm7, %v1614_v55, 0  ;;  %v972_v8 = vpack.c.bf16 %v21050_v14, %v21050_v14  ;;  %v19075_v55 = vld [vmem:[#allocation2 + $0x40] sm:$0xff]   ;;  %17877 = vmatprep.subr.bf16.mxu0 %v19130_v59 }
 0x1ab   :  { %24866 = vst [vmem:[#allocation65_spill] sm:$0xff] %v21052_v22  ;;  %v21075_v47 = vpack.c.bf16 %v21052_v22, %v21052_v22  ;;  %v1847_v16 = vsel %vm20133_vm8, %v1521_v2, %v942_v43  ;;  %v1201_v25 = vor.u32 %v1199_v46, %v1198_v5  ;;  %v1620_v32 = vor.u32 %v1619_v15, %v1196_v56  ;;  %v19132_v22 = vld [vmem:[%s24712_s4 + $0x168] sm:$0xff]   ;;  %v19077_v43 = vld [vmem:[#allocation2 + $0x50] sm:$0xff]   ;;  %v19098_v5 = vld [vmem:[%s24712_s4 + $0x120] sm:$0xff]   ;;  %v21097_v15 = vpop.f32.mrf.mxu1 }
 0x1ac   :  { %v1187_v11 = vor.u32 %v1185_v17, %v1184_v33  ;;  %v1914_v14 = vsel %vm20140_vm9, %v1780_v10, %v1847_v16  ;;  %v1616_v35 = vor.u32 %v1615_v19, %v1182_v18  ;;  %v1385_v38 = vshrl.u32 %v972_v8, 16  ;;  %v19078_v46 = vld [vmem:[#allocation2 + $0x30] sm:$0xff]   ;;  %17798 = vmatpush3.bf16.msra.mxu1 %v19080_v9 }
 0x1ad   :  { %v1388_v39 = vshll.u32 %v972_v8, 16  ;;  %1979 = vst [vmem:[#allocation2 + $0xb4] sm:$0xf] %v1914_v14  ;;  %v1524_v34 = vsel %vm20114_vm6, 0, %v1201_v25  ;;  %v1783_v56 = vsel %vm20120_vm7, %v1620_v32, 0  ;;  %v1371_v17 = vshrl.u32 %v21075_v47, 16  ;;  %17799 = vmatprep.subr.bf16.mxu1 %v19089_v12  ;;  %17878 = vmatpush3.bf16.msra.mxu0 %v19130_v59 }
 0x1ae   :  { %v1522_v18 = vsel %vm20114_vm6, 0, %v1187_v11  ;;  %v1850_v14 = vsel %vm20133_vm8, %v1524_v34, %v945_v13  ;;  %v1781_v25 = vsel %vm20120_vm7, %v1616_v35, 0  ;;  %v1387_v9 = vrot.slane %v1385_v38, 7  ;;  %17736 = vmatmul.mubr.bf16.gmra.mxu0 %v19075_v55  ;;  %17656 = vmatmul.mubr.bf16.gmra.mxu1 %v19076_v42  ;;  %v21114_v11 = vpop.f32.mrf.mxu0  ;;  %v19136_v34 = vld [vmem:[%s24712_s4 + $0x160] sm:$0xff]   ;;  %v21123_v55 = vpop.f32.mrf.mxu1 }
 0x1af   :  { %v1848_v32 = vsel %vm20133_vm8, %v1522_v18, %v943_v6  ;;  %v1917_v33 = vsel %vm20140_vm9, %v1783_v56, %v1850_v14  ;;  %v1673_v2 = vrot.slane %v1388_v39, 1  ;;  %v1373_v10 = vrot.slane %v1371_v17, 7  ;;  %17739 = vmatprep.mubr.bf16.mxu0 %v19077_v43  ;;  %17659 = vmatprep.mubr.bf16.mxu1 %v19078_v46  ;;  %v19079_v46 = vld [vmem:[#allocation2 + $0x58] sm:$0xff]  }
 0x1b0   :  { %v1915_v19 = vsel %vm20140_vm9, %v1781_v25, %v1848_v32  ;;  %1982 = vst [vmem:[#allocation2 + $0xc0] sm:$0xf] %v1917_v33  ;;  %v1390_v13 = vor.u32 %v1388_v39, %v1387_v9  ;;  %v1374_v35 = vshll.u32 %v21075_v47, 16  ;;  %v786_v6 = vadd.f32 %v20888_v23, %v21027_v40  ;;  %17800 = vmatpush3.bf16.msra.mxu1 %v19089_v12  ;;  %v19107_v12 = vld [vmem:[%s24712_s4 + $0x118] sm:$0xff]   ;;  %v21146_v33 = vpop.f32.mrf.mxu0 }
 0x1b1   :  { %1980 = vst [vmem:[#allocation2 + $0xb8] sm:$0xf] %v1915_v19  ;;  %v713_v16 = vmul.f32 %v20857_v37, %v20973_v45  ;;  %v1674_v59 = vor.u32 %v1673_v2, %v1385_v38  ;;  %v718_v39 = vmul.f32 %v20857_v37, %v20994_v36  ;;  %v716_v42 = vmul.f32 %v20857_v37, %v21013_v62  ;;  %v19081_v14 = vld [vmem:[#allocation2 + $0x38] sm:$0xff]   ;;  %v19082_v19 = vld [vmem:[#allocation2 + $0x60] sm:$0xff]  }
 0x1b2   :  { %v1551_v45 = vsel %vm20114_vm6, 0, %v1390_v13  ;;  %v1376_v40 = vor.u32 %v1374_v35, %v1373_v10  ;;  %v1669_v56 = vrot.slane %v1374_v35, 1  ;;  %v21127_v18 = vmax.f32 %v786_v6, 0.0  ;;  %17879 = vmatprep.subr.bf16.mxu0 %v19132_v22  ;;  %17801 = vmatprep.subr.bf16.mxu1 %v19098_v5  ;;  %v19083_v2 = vld [vmem:[#allocation2 + $0x40] sm:$0xff]   ;;  %v21156_v35 = vpop.f32.mrf.mxu1 }
 0x1b3   :  { %v1810_v38 = vsel %vm20120_vm7, %v1674_v59, 0  ;;  %v1877_v36 = vsel %vm20133_vm8, %v1551_v45, %v972_v8  ;;  %v784_v43 = vadd.f32 %v20888_v23, %v713_v16  ;;  %v789_v62 = vadd.f32 %v20888_v23, %v718_v39  ;;  %17880 = vmatpush3.bf16.msra.mxu0 %v19132_v22 }
 0x1b4   :  { %24867 = vst [vmem:[#allocation66_spill] sm:$0xff] %v21127_v18  ;;  %v1944_v25 = vsel %vm20140_vm9, %v1810_v38, %v1877_v36  ;;  %v1549_v32 = vsel %vm20114_vm6, 0, %v1376_v40  ;;  %v1670_v9 = vor.u32 %v1669_v56, %v1371_v17  ;;  %v21144_v8 = vpack.c.bf16 %v21127_v18, %v21127_v18  ;;  %17881 = vmatprep.subr.bf16.mxu0 %v19136_v34  ;;  %v19087_v18 = vld [vmem:[#allocation2 + $0x58] sm:$0xff]  }
 0x1b5   :  { %2009 = vst [vmem:[#allocation2 + $0x19c] sm:$0xf] %v1944_v25  ;;  %v1875_v22 = vsel %vm20133_vm8, %v1549_v32, %v21075_v47  ;;  %v21151_v10 = vmax.f32 %v784_v43, 0.0  ;;  %v21153_v13 = vmax.f32 %v789_v62, 0.0  ;;  %v787_v17 = vadd.f32 %v20888_v23, %v716_v42  ;;  %17802 = vmatpush3.bf16.msra.mxu1 %v19098_v5  ;;  %v19139_v47 = vld [vmem:[%s24712_s4 + $0x158] sm:$0xff]   ;;  %v21187_v62 = vpop.f32.mrf.mxu0  ;;  %v19143_v25 = vld [vmem:[%s24712_s4 + $0x150] sm:$0xff]  }
 0x1b6   :  { %v1808_v6 = vsel %vm20120_vm7, %v1670_v9, 0  ;;  %v1392_v16 = vshrl.u32 %v21144_v8, 16  ;;  %v1395_v59 = vshll.u32 %v21144_v8, 16  ;;  %v719_v39 = vmul.f32 %v20857_v37, %v21029_v26  ;;  %17803 = vmatprep.subr.bf16.mxu1 %v19107_v12  ;;  %v19116_v26 = vld [vmem:[%s24712_s4 + $0x110] sm:$0xff]   ;;  %17740 = vmatmul.mubr.bf16.gmra.mxu0 %v19079_v46  ;;  %v21196_v9 = vpop.f32.mrf.mxu1 }
 0x1b7   :  { %24868 = vst [vmem:[#allocation67_spill] sm:$0xff] %v21151_v10  ;;  %24869 = vst [vmem:[#allocation68_spill] sm:$0xff] %v21153_v13  ;;  %v1942_v42 = vsel %vm20140_vm9, %v1808_v6, %v1875_v22  ;;  %v21171_v45 = vpack.c.bf16 %v21151_v10, %v21151_v10  ;;  %v21175_v40 = vpack.c.bf16 %v21153_v13, %v21153_v13  ;;  %v21177_v56 = vmax.f32 %v787_v17, 0.0  ;;  %v21213_v13 = vpop.f32.mrf.mxu0 }
 0x1b8   :  { %17882 = vmatpush3.bf16.msra.mxu0 %v19136_v34  ;;  %17660 = vmatmul.mubr.bf16.gmra.mxu1 %v19081_v14  ;;  %2007 = vst [vmem:[#allocation2 + $0x194] sm:$0xf] %v1942_v42  ;;  %v1394_v5 = vrot.slane %v1392_v16, 7  ;;  %v1675_v38 = vrot.slane %v1395_v59, 1  ;;  %v790_v36 = vadd.f32 %v20888_v23, %v719_v39  ;;  %v21185_v43 = vmul.f32 %v20857_v37, %v21048_v44  ;;  %v21221_v27 = vpop.f32.mrf.mxu1 }
 0x1b9   :  { %24870 = vst [vmem:[#allocation69_spill] sm:$0xff] %v21177_v56  ;;  %17743 = vmatprep.mubr.bf16.mxu0 %v19082_v19  ;;  %17663 = vmatprep.mubr.bf16.mxu1 %v19083_v2  ;;  %v1378_v34 = vshrl.u32 %v21171_v45, 16  ;;  %v1381_v46 = vshll.u32 %v21171_v45, 16  ;;  %v1413_v14 = vshrl.u32 %v21175_v40, 16  ;;  %v1416_v32 = vshll.u32 %v21175_v40, 16  ;;  %v19125_v19 = vld [vmem:[%s24712_s4 + $0x108] sm:$0xff]  }
 0x1ba   :  { %v1397_v37 = vor.u32 %v1395_v59, %v1394_v5  ;;  %v1676_v44 = vor.u32 %v1675_v38, %v1392_v16  ;;  %v21200_v22 = vpack.c.bf16 %v21177_v56, %v21177_v56  ;;  %v21202_v17 = vmax.f32 %v790_v36, 0.0  ;;  %17804 = vmatpush3.bf16.msra.mxu1 %v19107_v12  ;;  %17883 = vmatprep.subr.bf16.mxu0 %v19139_v47  ;;  %v19084_v59 = vld [vmem:[#allocation2 + $0x68] sm:$0xff]  }
 0x1bb   :  { %v1380_v2 = vrot.slane %v1378_v34, 7  ;;  %v1671_v6 = vrot.slane %v1381_v46, 1  ;;  %v1415_v39 = vrot.slane %v1413_v14, 7  ;;  %v1681_v42 = vrot.slane %v1416_v32, 1  ;;  %17805 = vmatprep.subr.bf16.mxu1 %v19116_v26  ;;  %v19085_v16 = vld [vmem:[#allocation2 + $0x48] sm:$0xff]  }
 0x1bc   :  { %24871 = vst [vmem:[#allocation70_spill] sm:$0xff] %v21202_v17  ;;  %17884 = vmatpush3.bf16.msra.mxu0 %v19139_v47  ;;  %v1552_v5 = vsel %vm20114_vm6, 0, %v1397_v37  ;;  %v1811_v38 = vsel %vm20120_vm7, %v1676_v44, 0  ;;  %v1399_v12 = vshrl.u32 %v21200_v22, 16  ;;  %v1402_v36 = vshll.u32 %v21200_v22, 16  ;;  %v19145_v56 = vld [vmem:[%s24712_s4 + $0x148] sm:$0xff]  }
 0x1bd   :  { %17885 = vmatprep.subr.bf16.mxu0 %v19143_v25  ;;  %v19086_v47 = vld [vmem:[#allocation2 + $0x78] sm:$0xff]   ;;  %v1878_v37 = vsel %vm20133_vm8, %v1552_v5, %v21144_v8  ;;  %v1383_v10 = vor.u32 %v1381_v46, %v1380_v2  ;;  %v1672_v7 = vor.u32 %v1671_v6, %v1378_v34  ;;  %v1418_v44 = vor.u32 %v1416_v32, %v1415_v39  ;;  %v19138_v46 = vld [vmem:[%s24712_s4 + $0x100] sm:$0xff]   ;;  %v21253_v2 = vpop.f32.mrf.mxu1 }
 0x1be   :  { %v1945_v1 = vsel %vm20140_vm9, %v1811_v38, %v1878_v37  ;;  %v1682_v57 = vor.u32 %v1681_v42, %v1413_v14  ;;  %v1401_v58 = vrot.slane %v1399_v12, 7  ;;  %v1677_v24 = vrot.slane %v1402_v36, 1  ;;  %17806 = vmatpush3.bf16.msra.mxu1 %v19116_v26  ;;  %17744 = vmatmul.mubr.bf16.gmra.mxu0 %v19084_v59  ;;  %v21244_v14 = vpop.f32.mrf.mxu0  ;;  %v19088_v42 = vld [vmem:[#allocation2 + $0x80] sm:$0xff]  }
 0x1bf   :  { %2010 = vst [vmem:[#allocation2 + $0x1a0] sm:$0xf] %v1945_v1  ;;  %v1550_v49 = vsel %vm20114_vm6, 0, %v1383_v10  ;;  %v1809_v50 = vsel %vm20120_vm7, %v1672_v7, 0  ;;  %v1555_v8 = vsel %vm20114_vm6, 0, %v1418_v44  ;;  %v977_v34 = vpack.c.bf16 %v21202_v17, %v21202_v17  ;;  %17807 = vmatprep.subr.bf16.mxu1 %v19125_v19  ;;  %17747 = vmatprep.mubr.bf16.mxu0 %v19086_v47  ;;  %v19090_v59 = vld [vmem:[#allocation2 + $0x60] sm:$0xff]  }
 0x1c0   :  { %17886 = vmatpush3.bf16.msra.mxu0 %v19143_v25  ;;  %17664 = vmatmul.mubr.bf16.gmra.mxu1 %v19085_v16  ;;  %v1876_v1 = vsel %vm20133_vm8, %v1550_v49, %v21171_v45  ;;  %v1814_v7 = vsel %vm20120_vm7, %v1682_v57, 0  ;;  %v1881_v10 = vsel %vm20133_vm8, %v1555_v8, %v21175_v40  ;;  %v1404_v26 = vor.u32 %v1402_v36, %v1401_v58  ;;  %v19149_v25 = vld [vmem:[%s24712_s4 + $0x140] sm:$0xff]   ;;  %v21258_v58 = vld [vmem:[%s24712_s4 + $0x1b8] sm:$0xff]   ;;  %v19091_v36 = vld [vmem:[#allocation2 + $0x88] sm:$0xff]  }
 0x1c1   :  { %17667 = vmatprep.mubr.bf16.mxu1 %v19087_v18  ;;  %v1943_v32 = vsel %vm20140_vm9, %v1809_v50, %v1876_v1  ;;  %v1948_v49 = vsel %vm20140_vm9, %v1814_v7, %v1881_v10  ;;  %v1678_v57 = vor.u32 %v1677_v24, %v1399_v12  ;;  %v1420_v45 = vshrl.u32 %v977_v34, 16  ;;  %17887 = vmatprep.subr.bf16.mxu0 %v19145_v56  ;;  %v19092_v47 = vld [vmem:[#allocation2 + $0x68] sm:$0xff]  }
 0x1c2   :  { %2008 = vst [vmem:[#allocation2 + $0x198] sm:$0xf] %v1943_v32  ;;  %2013 = vst [vmem:[#allocation2 + $0x1ac] sm:$0xf] %v1948_v49  ;;  %v1553_v18 = vsel %vm20114_vm6, 0, %v1404_v26  ;;  %v1423_v40 = vshll.u32 %v977_v34, 16  ;;  %v788_v50 = vadd.f32 %v20888_v23, %v21185_v43  ;;  %17808 = vmatpush3.bf16.msra.mxu1 %v19125_v19  ;;  %v21273_v23 = vpop.f32.mrf.mxu0  ;;  %v21275_v19 = vpop.f32.mrf.mxu1 }
 0x1c3   :  { %v1812_v24 = vsel %vm20120_vm7, %v1678_v57, 0  ;;  %v1879_v6 = vsel %vm20133_vm8, %v1553_v18, %v21200_v22  ;;  %v1422_v39 = vrot.slane %v1420_v45, 7  ;;  %17809 = vmatprep.subr.bf16.mxu1 %v19138_v46  ;;  %v19123_v17 = vld [vmem:[#allocation2 + $0x148] sm:$0xff]  }
 0x1c4   :  { %17888 = vmatpush3.bf16.msra.mxu0 %v19145_v56  ;;  %v1946_v16 = vsel %vm20140_vm9, %v1812_v24, %v1879_v6  ;;  %v1683_v5 = vrot.slane %v1423_v40, 1  ;;  %v21271_v38 = vmax.f32 %v788_v50, 0.0  ;;  %v17581_v56 = vpop.f32.mrf.mxu0  ;;  %v17501_v44 = vpop.f32.mrf.mxu1  ;;  %v19094_v50 = vld [vmem:[#allocation2 + $0x70] sm:$0xff]  }
 0x1c5   :  { %17889 = vmatprep.subr.bf16.mxu0 %v19149_v25  ;;  %2011 = vst [vmem:[#allocation2 + $0x1a4] sm:$0xf] %v1946_v16  ;;  %v1425_v43 = vor.u32 %v1423_v40, %v1422_v39  ;;  %v21288_v32 = vadd.f32 %v17581_v56, %v17501_v44  ;;  %v19093_v39 = vld [vmem:[#allocation2 + $0x90] sm:$0xff]   ;;  %v19097_v56 = vld [vmem:[#allocation2 + $0xa8] sm:$0xff]  }
 0x1c6   :  { %24872 = vst [vmem:[#allocation71_spill] sm:$0xff] %v21271_v38  ;;  %v1684_v12 = vor.u32 %v1683_v5, %v1420_v45  ;;  %v975_v22 = vpack.c.bf16 %v21271_v38, %v21271_v38  ;;  %17810 = vmatpush3.bf16.msra.mxu1 %v19138_v46  ;;  %17748 = vmatmul.mubr.bf16.gmra.mxu0 %v19088_v42  ;;  %v3012_v46 = vpop.f32.mrf.mxu0  ;;  %v19096_v42 = vld [vmem:[#allocation2 + $0xa0] sm:$0xff]   ;;  %v19099_v44 = vld [vmem:[#allocation2 + $0x88] sm:$0xff]  }
 0x1c7   :  { %v1556_v37 = vsel %vm20114_vm6, 0, %v1425_v43  ;;  %17955 = vmatprep.subr.bf16.mxu1 %v21258_v58  ;;  %17751 = vmatprep.mubr.bf16.mxu0 %v19091_v36  ;;  %v19095_v5 = vld [vmem:[#allocation2 + $0x80] sm:$0xff]   ;;  %v19101_v36 = vld [vmem:[#allocation2 + $0xb0] sm:$0xff]  }
 0x1c8   :  { %17890 = vmatpush3.bf16.msra.mxu0 %v19149_v25  ;;  %17668 = vmatmul.mubr.bf16.gmra.mxu1 %v19090_v59  ;;  %v1815_v8 = vsel %vm20120_vm7, %v1684_v12, 0  ;;  %v1882_v1 = vsel %vm20133_vm8, %v1556_v37, %v977_v34  ;;  %v1406_v7 = vshrl.u32 %v975_v22, 16  ;;  %v1409_v10 = vshll.u32 %v975_v22, 16  ;;  %v2483_v25 = vpop.f32.mrf.mxu1  ;;  %v17582_v18 = vpop.f32.mrf.mxu0 }
 0x1c9   :  { %17671 = vmatprep.mubr.bf16.mxu1 %v19092_v47  ;;  %v1949_v26 = vsel %vm20140_vm9, %v1815_v8, %v1882_v1  ;;  %v21290_v45 = vadd.f32 %v3012_v46, %v2483_v25  ;;  %v19100_v8 = vld [vmem:[#allocation2 + $0x90] sm:$0xff]   ;;  %v19137_v28 = vld [vmem:[#allocation2 + $0x198] sm:$0xff]  }
 0x1ca   :  { %2014 = vst [vmem:[#allocation2 + $0x1b0] sm:$0xf] %v1949_v26  ;;  %v1408_v49 = vrot.slane %v1406_v7, 7  ;;  %v1679_v57 = vrot.slane %v1409_v10, 1  ;;  %v17502_v40 = vpop.f32.mrf.mxu1  ;;  %v21302_v47 = vpop.f32.mrf.mxu0  ;;  %v19102_v26 = vld [vmem:[#allocation2 + $0xb8] sm:$0xff]  }
 0x1cb   :  { %v21292_v6 = vadd.f32 %v17582_v18, %v17502_v40  ;;  %v19103_v40 = vld [vmem:[#allocation2 + $0x98] sm:$0xff]  }
 0x1cc   :  { %v1411_v34 = vor.u32 %v1409_v10, %v1408_v49  ;;  %v1680_v24 = vor.u32 %v1679_v57, %v1406_v7  ;;  %v21304_v37 = vpop.f32.mrf.mxu1  ;;  %v19105_v49 = vld [vmem:[#allocation2 + $0xf8] sm:$0xff]   ;;  %v19141_v41 = vld [vmem:[#allocation2 + $0x1a0] sm:$0xff]  }
 0x1ce   :  { %v1554_v59 = vsel %vm20114_vm6, 0, %v1411_v34  ;;  %v1813_v16 = vsel %vm20120_vm7, %v1680_v24, 0  ;;  %17752 = vmatmul.mubr.bf16.gmra.mxu0 %v19093_v39  ;;  %v19104_v34 = vld [vmem:[#allocation2 + $0x118] sm:$0xff]  }
 0x1cf   :  { %v1880_v43 = vsel %vm20133_vm8, %v1554_v59, %v975_v22  ;;  %17755 = vmatprep.mubr.bf16.mxu0 %v19096_v42  ;;  %v19108_v59 = vld [vmem:[#allocation2 + $0x100] sm:$0xff]  }
 0x1d0   :  { %17672 = vmatmul.mubr.bf16.gmra.mxu1 %v19094_v50  ;;  %v1947_v12 = vsel %vm20140_vm9, %v1813_v16, %v1880_v43  ;;  %v19110_v16 = vld [vmem:[#allocation2 + $0x108] sm:$0xff]  }
 0x1d1   :  { %17675 = vmatprep.mubr.bf16.mxu1 %v19095_v5  ;;  %2012 = vst [vmem:[#allocation2 + $0x1a8] sm:$0xf] %v1947_v12  ;;  %v19106_v5 = vld [vmem:[#allocation2 + $0x120] sm:$0xff]   ;;  %v19109_v43 = vld [vmem:[#allocation2 + $0x128] sm:$0xff]  }
 0x1d6   :  { %17756 = vmatmul.mubr.bf16.gmra.mxu0 %v19097_v56  ;;  %v17585_v22 = vpop.f32.mrf.mxu0 }
 0x1d7   :  { %17759 = vmatprep.mubr.bf16.mxu0 %v19101_v36  ;;  %v17505_v1 = vpop.f32.mrf.mxu1 }
 0x1d8   :  { %17676 = vmatmul.mubr.bf16.gmra.mxu1 %v19099_v44  ;;  %v21306_v7 = vadd.f32 %v17585_v22, %v17505_v1  ;;  %v3028_v10 = vpop.f32.mrf.mxu0  ;;  %v19144_v29 = vld [vmem:[#allocation2 + $0x1a8] sm:$0xff]  }
 0x1d9   :  { %17679 = vmatprep.mubr.bf16.mxu1 %v19100_v8  ;;  %v2499_v46 = vpop.f32.mrf.mxu1 }
 0x1da   :  { %v21308_v25 = vadd.f32 %v3028_v10, %v2499_v46  ;;  %v17586_v57 = vpop.f32.mrf.mxu0  ;;  %v19112_v46 = vld [vmem:[#allocation2 + $0x110] sm:$0xff]  }
 0x1db   :  { %v17506_v18 = vpop.f32.mrf.mxu1 }
 0x1dc   :  { %v21310_v50 = vadd.f32 %v17586_v57, %v17506_v18  ;;  %v3031_v24 = vpop.f32.mrf.mxu0  ;;  %v19111_v18 = vld [vmem:[#allocation2 + $0x130] sm:$0xff]  }
 0x1dd   :  { %v2502_v39 = vpop.f32.mrf.mxu1 }
 0x1de   :  { %17760 = vmatmul.mubr.bf16.gmra.mxu0 %v19102_v26  ;;  %v21312_v42 = vadd.f32 %v3031_v24, %v2502_v39  ;;  %v19113_v24 = vld [vmem:[#allocation2 + $0x140] sm:$0xff]  }
 0x1df   :  { %17763 = vmatprep.mubr.bf16.mxu0 %v19104_v34 }
 0x1e0   :  { %17680 = vmatmul.mubr.bf16.gmra.mxu1 %v19103_v40  ;;  %v19114_v40 = vld [vmem:[#allocation2 + $0x120] sm:$0xff]  }
 0x1e1   :  { %17683 = vmatprep.mubr.bf16.mxu1 %v19105_v49 }
 0x1e4   :  { %v17589_v12 = vpop.f32.mrf.mxu0  ;;  %v17509_v56 = vpop.f32.mrf.mxu1 }
 0x1e5   :  { %v21314_v36 = vadd.f32 %v17589_v12, %v17509_v56  ;;  %v19115_v12 = vld [vmem:[#allocation2 + $0x148] sm:$0xff]  }
 0x1e6   :  { %17764 = vmatmul.mubr.bf16.gmra.mxu0 %v19106_v5  ;;  %v3044_v44 = vpop.f32.mrf.mxu0  ;;  %v2515_v8 = vpop.f32.mrf.mxu1  ;;  %v19117_v56 = vld [vmem:[#allocation2 + $0x128] sm:$0xff]  }
 0x1e7   :  { %17767 = vmatprep.mubr.bf16.mxu0 %v19109_v43  ;;  %v21316_v22 = vadd.f32 %v3044_v44, %v2515_v8 }
 0x1e8   :  { %17684 = vmatmul.mubr.bf16.gmra.mxu1 %v19108_v59  ;;  %v17590_v1 = vpop.f32.mrf.mxu0  ;;  %v17510_v10 = vpop.f32.mrf.mxu1 }
 0x1e9   :  { %17687 = vmatprep.mubr.bf16.mxu1 %v19110_v16  ;;  %v21318_v26 = vadd.f32 %v17590_v1, %v17510_v10 }
 0x1ea   :  { %v3047_v49 = vpop.f32.mrf.mxu0  ;;  %v2518_v57 = vpop.f32.mrf.mxu1 }
 0x1eb   :  { %v21320_v34 = vadd.f32 %v3047_v49, %v2518_v57  ;;  %v19118_v49 = vld [vmem:[#allocation2 + $0x150] sm:$0xff]  }
 0x1ec   :  { %v19119_v57 = vld [vmem:[#allocation2 + $0x130] sm:$0xff]  }
 0x1ee   :  { %17768 = vmatmul.mubr.bf16.gmra.mxu0 %v19111_v18  ;;  %v17593_v39 = vpop.f32.mrf.mxu0  ;;  %v17513_v59 = vpop.f32.mrf.mxu1 }
 0x1ef   :  { %17771 = vmatprep.mubr.bf16.mxu0 %v19113_v24  ;;  %v21322_v16 = vadd.f32 %v17593_v39, %v17513_v59  ;;  %v19121_v24 = vld [vmem:[#allocation2 + $0x138] sm:$0xff]   ;;  %v19122_v59 = vld [vmem:[#allocation2 + $0x168] sm:$0xff]  }
 0x1f0   :  { %17688 = vmatmul.mubr.bf16.gmra.mxu1 %v19112_v46  ;;  %v3060_v5 = vpop.f32.mrf.mxu0  ;;  %v2531_v43 = vpop.f32.mrf.mxu1  ;;  %v19120_v39 = vld [vmem:[#allocation2 + $0x158] sm:$0xff]  }
 0x1f1   :  { %17691 = vmatprep.mubr.bf16.mxu1 %v19114_v40  ;;  %v21324_v44 = vadd.f32 %v3060_v5, %v2531_v43 }
 0x1f2   :  { %v17594_v8 = vpop.f32.mrf.mxu0  ;;  %v17514_v1 = vpop.f32.mrf.mxu1 }
 0x1f3   :  { %v21326_v10 = vadd.f32 %v17594_v8, %v17514_v1 }
 0x1f4   :  { %v3063_v18 = vpop.f32.mrf.mxu0  ;;  %v2534_v46 = vpop.f32.mrf.mxu1 }
 0x1f5   :  { %v21328_v40 = vadd.f32 %v3063_v18, %v2534_v46  ;;  %v19124_v18 = vld [vmem:[#allocation2 + $0x170] sm:$0xff]   ;;  %v19129_v46 = vld [vmem:[#allocation2 + $0x158] sm:$0xff]  }
 0x1f6   :  { %17772 = vmatmul.mubr.bf16.gmra.mxu0 %v19115_v12 }
 0x1f7   :  { %17775 = vmatprep.mubr.bf16.mxu0 %v19118_v49  ;;  %v19127_v49 = vld [vmem:[#allocation2 + $0x150] sm:$0xff]  }
 0x1f8   :  { %17692 = vmatmul.mubr.bf16.gmra.mxu1 %v19117_v56 }
 0x1f9   :  { %17695 = vmatprep.mubr.bf16.mxu1 %v19119_v57 }
 0x1fd   :  { %v17597_v5 = vpop.f32.mrf.mxu0 }
 0x1fe   :  { %17776 = vmatmul.mubr.bf16.gmra.mxu0 %v19120_v39  ;;  %v17517_v43 = vpop.f32.mrf.mxu1  ;;  %v19128_v39 = vld [vmem:[#allocation2 + $0x178] sm:$0xff]  }
 0x1ff   :  { %17779 = vmatprep.mubr.bf16.mxu0 %v19122_v59  ;;  %v21330_v8 = vadd.f32 %v17597_v5, %v17517_v43  ;;  %v3076_v1 = vpop.f32.mrf.mxu0  ;;  %v19135_v59 = vld [vmem:[#allocation2 + $0x170] sm:$0xff]   ;;  %v19131_v5 = vld [vmem:[#allocation2 + $0x180] sm:$0xff]  }
 0x200   :  { %17696 = vmatmul.mubr.bf16.gmra.mxu1 %v19121_v24  ;;  %v2547_v38 = vpop.f32.mrf.mxu1  ;;  %v19134_v43 = vld [vmem:[#allocation2 + $0x190] sm:$0xff]  }
 0x201   :  { %17699 = vmatprep.mubr.bf16.mxu1 %v19123_v17  ;;  %v21332_v12 = vadd.f32 %v3076_v1, %v2547_v38  ;;  %v17598_v56 = vpop.f32.mrf.mxu0  ;;  %v21341_v17 = vld [vmem:[%s24712_s4 + $0x1f8] sm:$0xff]   ;;  %v19133_v38 = vld [vmem:[#allocation2 + $0x160] sm:$0xff]  }
 0x202   :  { %v17518_v57 = vpop.f32.mrf.mxu1  ;;  %18035 = vmatprep.subr.bf16.mxu0 %v21341_v17 }
 0x203   :  { %v21334_v4 = vadd.f32 %v17598_v56, %v17518_v57  ;;  %v3079_v31 = vpop.f32.mrf.mxu0 }
 0x204   :  { %v2550_v30 = vpop.f32.mrf.mxu1 }
 0x205   :  { %v21336_v24 = vadd.f32 %v3079_v31, %v2550_v30 }
 0x206   :  { %17780 = vmatmul.mubr.bf16.gmra.mxu0 %v19124_v18 }
 0x207   :  { %17783 = vmatprep.mubr.bf16.mxu0 %v19128_v39 }
 0x208   :  { %17700 = vmatmul.mubr.bf16.gmra.mxu1 %v19127_v49 }
 0x209   :  { %17703 = vmatprep.mubr.bf16.mxu1 %v19129_v46 }
 0x20e   :  { %v17601_v1 = vpop.f32.mrf.mxu0  ;;  %17784 = vmatmul.mubr.bf16.gmra.mxu0 %v19131_v5  ;;  %v19142_v5 = vld [vmem:[#allocation2 + $0x180] sm:$0xff]  }
 0x20f   :  { %v17521_v31 = vpop.f32.mrf.mxu1  ;;  %17787 = vmatprep.mubr.bf16.mxu0 %v19134_v43 }
 0x210   :  { %17704 = vmatmul.mubr.bf16.gmra.mxu1 %v19133_v38  ;;  %v21344_v30 = vadd.f32 %v17601_v1, %v17521_v31  ;;  %v3092_v56 = vpop.f32.mrf.mxu0 }
 0x211   :  { %17707 = vmatprep.mubr.bf16.mxu1 %v19135_v59  ;;  %v2563_v18 = vpop.f32.mrf.mxu1 }
 0x212   :  { %v21346_v49 = vadd.f32 %v3092_v56, %v2563_v18  ;;  %v17602_v57 = vpop.f32.mrf.mxu0 }
 0x213   :  { %v17522_v46 = vpop.f32.mrf.mxu1 }
 0x214   :  { %v21348_v39 = vadd.f32 %v17602_v57, %v17522_v46  ;;  %v3095_v0 = vpop.f32.mrf.mxu0 }
 0x215   :  { %v2566_v51 = vpop.f32.mrf.mxu1 }
 0x216   :  { %v21350_v38 = vadd.f32 %v3095_v0, %v2566_v51  ;;  %v17605_v43 = vpop.f32.mrf.mxu0  ;;  %17788 = vmatmul.mubr.bf16.gmra.mxu0 %v19137_v28  ;;  %v19146_v51 = vld [vmem:[#allocation2 + $0x188] sm:$0xff]  }
 0x217   :  { %v17525_v59 = vpop.f32.mrf.mxu1  ;;  %17791 = vmatprep.mubr.bf16.mxu0 %v19141_v41  ;;  %v19148_v28 = vld [vmem:[#allocation2 + $0x2c] sm:$0xff]  }
 0x218   :  { %17708 = vmatmul.mubr.bf16.gmra.mxu1 %v19140_v3  ;;  %v21352_v1 = vadd.f32 %v17605_v43, %v17525_v59  ;;  %v3108_v31 = vpop.f32.mrf.mxu0 }
 0x219   :  { %17711 = vmatprep.mubr.bf16.mxu1 %v19142_v5  ;;  %v2579_v56 = vpop.f32.mrf.mxu1 }
 0x21a   :  { %v21354_v18 = vadd.f32 %v3108_v31, %v2579_v56  ;;  %v17606_v57 = vpop.f32.mrf.mxu0 }
 0x21b   :  { %v17526_v46 = vpop.f32.mrf.mxu1 }
 0x21c   :  { %v21356_v54 = vadd.f32 %v17606_v57, %v17526_v46  ;;  %v3111_v20 = vpop.f32.mrf.mxu0 }
 0x21d   :  { %v2582_v0 = vpop.f32.mrf.mxu1 }
 0x21e   :  { %v21358_v3 = vadd.f32 %v3111_v20, %v2582_v0  ;;  %17792 = vmatmul.mubr.bf16.gmra.mxu0 %v19144_v29  ;;  %v19152_v20 = vld [vmem:[#allocation2 + $0x34] sm:$0xff]  }
 0x21f   :  { %v17609_v41 = vpop.f32.mrf.mxu0  ;;  %17891 = vmatprep.mubr.bf16.mxu0 %v19147_v63  ;;  %v19160_v29 = vld [vmem:[%s24712_s4 + $0x1b0] sm:$0xff]   ;;  %v19153_v63 = vld [vmem:[#allocation2 + $0x40] sm:$0xff]  }
 0x220   :  { %17712 = vmatmul.mubr.bf16.gmra.mxu1 %v19146_v51  ;;  %v17529_v5 = vpop.f32.mrf.mxu1 }
 0x221   :  { %17811 = vmatprep.mubr.bf16.mxu1 %v19148_v28  ;;  %v21360_v43 = vadd.f32 %v17609_v41, %v17529_v5  ;;  %v3124_v59 = vpop.f32.mrf.mxu0  ;;  %v19154_v41 = vld [vmem:[#allocation2 + $0x3c] sm:$0xff]  }
 0x222   :  { %v2595_v31 = vpop.f32.mrf.mxu1 }
 0x223   :  { %v21362_v56 = vadd.f32 %v3124_v59, %v2595_v31  ;;  %v17610_v57 = vpop.f32.mrf.mxu0  ;;  %v19210_v59 = vld [vmem:[%s24712_s4 + $0x1f0] sm:$0xff]  }
 0x224   :  { %v17530_v46 = vpop.f32.mrf.mxu1 }
 0x225   :  { %24873 = vst [vmem:[#allocation72_spill] sm:$0xff] %v21362_v56  ;;  %v21364_v60 = vadd.f32 %v17610_v57, %v17530_v46  ;;  %v3127_v52 = vpop.f32.mrf.mxu0  ;;  %v19175_v56 = vld [vmem:[#allocation2 + $0xa8] sm:$0xff]  }
 0x226   :  { %v2598_v0 = vpop.f32.mrf.mxu1  ;;  %17892 = vmatmul.mubr.bf16.vlgmr.msra.gmra.mxu0 %v19150_v48  ;;  %v19169_v48 = vld [vmem:[%s24712_s4 + $0x1a8] sm:$0xff]  }
 0x227   :  { %24874 = vst [vmem:[#allocation73_spill] sm:$0xff] %v21364_v60  ;;  %v21369_v51 = vadd.f32 %v3127_v52, %v2598_v0  ;;  %v17613_v28 = vpop.f32.mrf.mxu0  ;;  %17895 = vmatprep.mubr.bf16.mxu0 %v19153_v63  ;;  %18036 = vmatpush3.bf16.msra.mxu0 %v21341_v17  ;;  %v19178_v17 = vld [vmem:[%s24712_s4 + $0x1a0] sm:$0xff]   ;;  %v19174_v60 = vld [vmem:[#allocation2 + $0x94] sm:$0xff]  }
 0x228   :  { %17812 = vmatmul.mubr.bf16.vlgmr.msra.gmra.mxu1 %v19152_v20  ;;  %v17533_v5 = vpop.f32.mrf.mxu1  ;;  %18037 = vmatprep.subr.bf16.mxu0 %v19210_v59 }
 0x229   :  { %24875 = vst [vmem:[#allocation74_spill] sm:$0xff] %v21369_v51  ;;  %17956 = vmatpush3.bf16.msra.mxu1 %v21258_v58  ;;  %v21375_v31 = vadd.f32 %v17613_v28, %v17533_v5  ;;  %v3140_v57 = vpop.f32.mrf.mxu0  ;;  %17815 = vmatprep.mubr.bf16.mxu1 %v19154_v41  ;;  %v19155_v28 = vld [vmem:[#allocation2 + $0x48] sm:$0xff]   ;;  %v19157_v51 = vld [vmem:[#allocation2 + $0x58] sm:$0xff]  }
 0x22a   :  { %17957 = vmatprep.subr.bf16.mxu1 %v19160_v29  ;;  %v2611_v46 = vpop.f32.mrf.mxu1  ;;  %v19156_v5 = vld [vmem:[#allocation2 + $0x44] sm:$0xff]  }
 0x22b   :  { %24876 = vst [vmem:[#allocation75_spill] sm:$0xff] %v21375_v31  ;;  %v21380_v52 = vadd.f32 %v3140_v57, %v2611_v46  ;;  %v17614_v20 = vpop.f32.mrf.mxu0  ;;  %v19212_v31 = vld [vmem:[%s24712_s4 + $0x1e8] sm:$0xff]   ;;  %v19158_v57 = vld [vmem:[#allocation2 + $0x54] sm:$0xff]   ;;  %18038 = vmatpush3.bf16.msra.mxu0 %v19210_v59 }
 0x22c   :  { %v17534_v0 = vpop.f32.mrf.mxu1  ;;  %18039 = vmatprep.subr.bf16.mxu0 %v19212_v31  ;;  %v19187_v59 = vld [vmem:[%s24712_s4 + $0x198] sm:$0xff]  }
 0x22d   :  { %24877 = vst [vmem:[#allocation76_spill] sm:$0xff] %v21380_v52  ;;  %17958 = vmatpush3.bf16.msra.mxu1 %v19160_v29  ;;  %v21383_v63 = vadd.f32 %v17614_v20, %v17534_v0  ;;  %v3143_v58 = vpop.f32.mrf.mxu0  ;;  %v19216_v20 = vld [vmem:[%s24712_s4 + $0x1e0] sm:$0xff]  }
 0x22e   :  { %v2614_v41 = vpop.f32.mrf.mxu1  ;;  %17959 = vmatprep.subr.bf16.mxu1 %v19169_v48  ;;  %17896 = vmatmul.mubr.bf16.gmra.mxu0 %v19155_v28 }
 0x22f   :  { %24878 = vst [vmem:[#allocation77_spill] sm:$0xff] %v21383_v63  ;;  %v21388_v46 = vadd.f32 %v3143_v58, %v2614_v41  ;;  %v17617_v52 = vpop.f32.mrf.mxu0  ;;  %17899 = vmatprep.mubr.bf16.mxu0 %v19157_v51  ;;  %18040 = vmatpush3.bf16.msra.mxu0 %v19212_v31  ;;  %v19196_v31 = vld [vmem:[%s24712_s4 + $0x190] sm:$0xff]  }
 0x230   :  { %17816 = vmatmul.mubr.bf16.gmra.mxu1 %v19156_v5  ;;  %v17537_v29 = vpop.f32.mrf.mxu1  ;;  %18041 = vmatprep.subr.bf16.mxu0 %v19216_v20 }
 0x231   :  { %24879 = vst [vmem:[#allocation78_spill] sm:$0xff] %v21388_v46  ;;  %17819 = vmatprep.mubr.bf16.mxu1 %v19158_v57  ;;  %v21396_v0 = vadd.f32 %v17617_v52, %v17537_v29  ;;  %v3156_v63 = vpop.f32.mrf.mxu0  ;;  %17960 = vmatpush3.bf16.msra.mxu1 %v19169_v48  ;;  %v19159_v52 = vld [vmem:[#allocation2 + $0x60] sm:$0xff]   ;;  %v19219_v48 = vld [vmem:[%s24712_s4 + $0x1d8] sm:$0xff]  }
 0x232   :  { %v2627_v58 = vpop.f32.mrf.mxu1  ;;  %17961 = vmatprep.subr.bf16.mxu1 %v19178_v17  ;;  %v19161_v57 = vld [vmem:[#allocation2 + $0x5c] sm:$0xff]  }
 0x233   :  { %24880 = vst [vmem:[#allocation79_spill] sm:$0xff] %v21396_v0  ;;  %v21398_v41 = vadd.f32 %v3156_v63, %v2627_v58  ;;  %v17618_v46 = vpop.f32.mrf.mxu0  ;;  %v19162_v63 = vld [vmem:[#allocation2 + $0x68] sm:$0xff]   ;;  %18042 = vmatpush3.bf16.msra.mxu0 %v19216_v20 }
 0x234   :  { %v17538_v28 = vpop.f32.mrf.mxu1  ;;  %v19163_v58 = vld [vmem:[#allocation2 + $0x64] sm:$0xff]   ;;  %18043 = vmatprep.subr.bf16.mxu0 %v19219_v48 }
 0x235   :  { %24881 = vst [vmem:[#allocation80_spill] sm:$0xff] %v21398_v41  ;;  %v21403_v5 = vadd.f32 %v17618_v46, %v17538_v28  ;;  %v3159_v51 = vpop.f32.mrf.mxu0  ;;  %17962 = vmatpush3.bf16.msra.mxu1 %v19178_v17  ;;  %v19223_v17 = vld [vmem:[%s24712_s4 + $0x1d0] sm:$0xff]   ;;  %v19205_v20 = vld [vmem:[%s24712_s4 + $0x188] sm:$0xff]  }
 0x236   :  { %v2630_v29 = vpop.f32.mrf.mxu1  ;;  %17963 = vmatprep.subr.bf16.mxu1 %v19187_v59  ;;  %17900 = vmatmul.mubr.bf16.gmra.mxu0 %v19159_v52 }
 0x237   :  { %24882 = vst [vmem:[#allocation81_spill] sm:$0xff] %v21403_v5  ;;  %v21408_v41 = vadd.f32 %v3159_v51, %v2630_v29  ;;  %v17621_v0 = vpop.f32.mrf.mxu0  ;;  %17903 = vmatprep.mubr.bf16.mxu0 %v19162_v63  ;;  %18044 = vmatpush3.bf16.msra.mxu0 %v19219_v48  ;;  %v19218_v48 = vld [vmem:[%s24712_s4 + $0x180] sm:$0xff]  }
 0x238   :  { %17820 = vmatmul.mubr.bf16.gmra.mxu1 %v19161_v57  ;;  %v17541_v46 = vpop.f32.mrf.mxu1  ;;  %18045 = vmatprep.subr.bf16.mxu0 %v19223_v17 }
 0x239   :  { %24883 = vst [vmem:[#allocation82_spill] sm:$0xff] %v21408_v41  ;;  %17823 = vmatprep.mubr.bf16.mxu1 %v19163_v58  ;;  %v21416_v28 = vadd.f32 %v17621_v0, %v17541_v46  ;;  %v3172_v51 = vpop.f32.mrf.mxu0  ;;  %17964 = vmatpush3.bf16.msra.mxu1 %v19187_v59  ;;  %v19164_v0 = vld [vmem:[#allocation2 + $0x70] sm:$0xff]   ;;  %v19225_v59 = vld [vmem:[%s24712_s4 + $0x1c8] sm:$0xff]  }
 0x23a   :  { %v2643_v29 = vpop.f32.mrf.mxu1  ;;  %17965 = vmatprep.subr.bf16.mxu1 %v19196_v31  ;;  %v19165_v58 = vld [vmem:[#allocation2 + $0x6c] sm:$0xff]  }
 0x23b   :  { %24884 = vst [vmem:[#allocation83_spill] sm:$0xff] %v21416_v28  ;;  %v21418_v41 = vadd.f32 %v3172_v51, %v2643_v29  ;;  %v17622_v5 = vpop.f32.mrf.mxu0  ;;  %v19166_v51 = vld [vmem:[#allocation2 + $0x80] sm:$0xff]   ;;  %18046 = vmatpush3.bf16.msra.mxu0 %v19223_v17 }
 0x23c   :  { %v17542_v52 = vpop.f32.mrf.mxu1  ;;  %v19167_v29 = vld [vmem:[#allocation2 + $0x7c] sm:$0xff]   ;;  %18047 = vmatprep.subr.bf16.mxu0 %v19225_v59 }
 0x23d   :  { %24885 = vst [vmem:[#allocation84_spill] sm:$0xff] %v21418_v41  ;;  %v21423_v57 = vadd.f32 %v17622_v5, %v17542_v52  ;;  %v3175_v63 = vpop.f32.mrf.mxu0  ;;  %17966 = vmatpush3.bf16.msra.mxu1 %v19196_v31  ;;  %v19229_v5 = vld [vmem:[%s24712_s4 + $0x1c0] sm:$0xff]   ;;  %v21439_v31 = vld [vmem:[%s24712_s4 + $0x238] sm:$0xff]  }
 0x23e   :  { %v2646_v46 = vpop.f32.mrf.mxu1  ;;  %17967 = vmatprep.subr.bf16.mxu1 %v19205_v20  ;;  %17904 = vmatmul.mubr.bf16.gmra.mxu0 %v19164_v0  ;;  %v19168_v0 = vld [vmem:[#allocation2 + $0x88] sm:$0xff]  }
 0x23f   :  { %24886 = vst [vmem:[#allocation85_spill] sm:$0xff] %v21423_v57  ;;  %v21428_v41 = vadd.f32 %v3175_v63, %v2646_v46  ;;  %17907 = vmatprep.mubr.bf16.mxu0 %v19166_v51  ;;  %18048 = vmatpush3.bf16.msra.mxu0 %v19225_v59  ;;  %v19171_v51 = vld [vmem:[#allocation2 + $0x90] sm:$0xff]  }
 0x240   :  { %17824 = vmatmul.mubr.bf16.gmra.mxu1 %v19165_v58  ;;  %18049 = vmatprep.subr.bf16.mxu0 %v19229_v5  ;;  %v19170_v58 = vld [vmem:[#allocation2 + $0x84] sm:$0xff]  }
 0x241   :  { %24887 = vst [vmem:[#allocation86_spill] sm:$0xff] %v21428_v41  ;;  %17827 = vmatprep.mubr.bf16.mxu1 %v19167_v29  ;;  %17968 = vmatpush3.bf16.msra.mxu1 %v19205_v20  ;;  %v19172_v20 = vld [vmem:[#allocation2 + $0x8c] sm:$0xff]  }
 0x242   :  { %17969 = vmatprep.subr.bf16.mxu1 %v19218_v48 }
 0x243   :  { %v17625_v52 = vpop.f32.mrf.mxu0  ;;  %v17545_v63 = vpop.f32.mrf.mxu1  ;;  %18050 = vmatpush3.bf16.msra.mxu0 %v19229_v5 }
 0x244   :  { %v21441_v17 = vadd.f32 %v17625_v52, %v17545_v63 }
 0x245   :  { %v3188_v46 = vpop.f32.mrf.mxu0  ;;  %v2659_v41 = vpop.f32.mrf.mxu1  ;;  %17970 = vmatpush3.bf16.msra.mxu1 %v19218_v48  ;;  %v19173_v48 = vld [vmem:[#allocation2 + $0x98] sm:$0xff]  }
 0x246   :  { %24888 = vst [vmem:[#allocation87_spill] sm:$0xff] %v21441_v17  ;;  %v21443_v29 = vadd.f32 %v3188_v46, %v2659_v41  ;;  %18115 = vmatprep.subr.bf16.mxu1 %v21439_v31  ;;  %17908 = vmatmul.mubr.bf16.gmra.mxu0 %v19168_v0  ;;  %v19176_v41 = vld [vmem:[#allocation2 + $0xa4] sm:$0xff]  }
 0x247   :  { %v17626_v59 = vpop.f32.mrf.mxu0  ;;  %v17546_v57 = vpop.f32.mrf.mxu1  ;;  %17911 = vmatprep.mubr.bf16.mxu0 %v19171_v51 }
 0x248   :  { %24889 = vst [vmem:[#allocation88_spill] sm:$0xff] %v21443_v29  ;;  %17828 = vmatmul.mubr.bf16.gmra.mxu1 %v19170_v58  ;;  %v21446_v52 = vadd.f32 %v17626_v59, %v17546_v57  ;;  %v19180_v29 = vld [vmem:[#allocation2 + $0xb8] sm:$0xff]  }
 0x249   :  { %17831 = vmatprep.mubr.bf16.mxu1 %v19172_v20  ;;  %v3191_v63 = vpop.f32.mrf.mxu0  ;;  %v2662_v17 = vpop.f32.mrf.mxu1 }
 0x24a   :  { %24890 = vst [vmem:[#allocation89_spill] sm:$0xff] %v21446_v52  ;;  %v21448_v28 = vadd.f32 %v3191_v63, %v2662_v17  ;;  %v19177_v17 = vld [vmem:[#allocation2 + $0xb0] sm:$0xff]  }
 0x24b   :  { %v19179_v63 = vld [vmem:[#allocation2 + $0xac] sm:$0xff]  }
 0x24c   :  { %24891 = vst [vmem:[#allocation90_spill] sm:$0xff] %v21448_v28 }
 0x24e   :  { %17912 = vmatmul.mubr.bf16.gmra.mxu0 %v19173_v48  ;;  %v19181_v48 = vld [vmem:[#allocation2 + $0xb4] sm:$0xff]  }
 0x24f   :  { %17915 = vmatprep.mubr.bf16.mxu0 %v19175_v56 }
 0x250   :  { %17832 = vmatmul.mubr.bf16.gmra.mxu1 %v19174_v60  ;;  %v17629_v5 = vpop.f32.mrf.mxu0 }
 0x251   :  { %17835 = vmatprep.mubr.bf16.mxu1 %v19176_v41  ;;  %v17549_v0 = vpop.f32.mrf.mxu1  ;;  %v19182_v41 = vld [vmem:[#allocation2 + $0xc0] sm:$0xff]  }
 0x252   :  { %v21450_v58 = vadd.f32 %v17629_v5, %v17549_v0  ;;  %v3204_v46 = vpop.f32.mrf.mxu0  ;;  %v19183_v5 = vld [vmem:[#allocation2 + $0xbc] sm:$0xff]  }
 0x253   :  { %v2675_v51 = vpop.f32.mrf.mxu1  ;;  %v19184_v0 = vld [vmem:[#allocation2 + $0x120] sm:$0xff]  }
 0x254   :  { %24892 = vst [vmem:[#allocation91_spill] sm:$0xff] %v21450_v58  ;;  %v21452_v57 = vadd.f32 %v3204_v46, %v2675_v51  ;;  %v17630_v20 = vpop.f32.mrf.mxu0  ;;  %v19185_v46 = vld [vmem:[#allocation2 + $0x11c] sm:$0xff]   ;;  %v19188_v58 = vld [vmem:[#allocation2 + $0x124] sm:$0xff]  }
 0x255   :  { %v17550_v59 = vpop.f32.mrf.mxu1 }
 0x256   :  { %24893 = vst [vmem:[#allocation92_spill] sm:$0xff] %v21452_v57  ;;  %v21454_v28 = vadd.f32 %v17630_v20, %v17550_v59  ;;  %v3207_v52 = vpop.f32.mrf.mxu0  ;;  %17916 = vmatmul.mubr.bf16.gmra.mxu0 %v19177_v17 }
 0x257   :  { %v2678_v60 = vpop.f32.mrf.mxu1  ;;  %17919 = vmatprep.mubr.bf16.mxu0 %v19180_v29 }
 0x258   :  { %24894 = vst [vmem:[#allocation93_spill] sm:$0xff] %v21454_v28  ;;  %17836 = vmatmul.mubr.bf16.gmra.mxu1 %v19179_v63  ;;  %v21456_v56 = vadd.f32 %v3207_v52, %v2678_v60 }
 0x259   :  { %17839 = vmatprep.mubr.bf16.mxu1 %v19181_v48 }
 0x25a   :  { %24895 = vst [vmem:[#allocation94_spill] sm:$0xff] %v21456_v56  ;;  %v19186_v56 = vld [vmem:[#allocation2 + $0x128] sm:$0xff]  }
 0x25e   :  { %v17633_v51 = vpop.f32.mrf.mxu0  ;;  %17920 = vmatmul.mubr.bf16.gmra.mxu0 %v19182_v41  ;;  %v17553_v57 = vpop.f32.mrf.mxu1  ;;  %v2989_v41 = vadd.f32 %v21054_v61, %v21062_v21 }
 0x25f   :  { %v21458_v20 = vadd.f32 %v17633_v51, %v17553_v57  ;;  %17923 = vmatprep.mubr.bf16.mxu0 %v19184_v0  ;;  %v19189_v57 = vld [vmem:[#allocation2 + $0x130] sm:$0xff]  }
 0x260   :  { %17840 = vmatmul.mubr.bf16.gmra.mxu1 %v19183_v5  ;;  %v3220_v59 = vpop.f32.mrf.mxu0  ;;  %v2691_v28 = vpop.f32.mrf.mxu1  ;;  %v19190_v0 = vld [vmem:[#allocation2 + $0x12c] sm:$0xff]  }
 0x261   :  { %17843 = vmatprep.mubr.bf16.mxu1 %v19185_v46  ;;  %v21460_v17 = vadd.f32 %v3220_v59, %v2691_v28  ;;  %v2981_v28 = vadd.f32 %v21082_v53, %v21097_v15 }
 0x262   :  { %v17634_v52 = vpop.f32.mrf.mxu0  ;;  %v17554_v63 = vpop.f32.mrf.mxu1 }
 0x263   :  { %v21462_v29 = vadd.f32 %v17634_v52, %v17554_v63 }
 0x264   :  { %v3223_v48 = vpop.f32.mrf.mxu0  ;;  %v2694_v60 = vpop.f32.mrf.mxu1 }
 0x265   :  { %24896 = vst [vmem:[#allocation95_spill] sm:$0xff] %v21462_v29  ;;  %v21466_v5 = vadd.f32 %v3223_v48, %v2694_v60  ;;  %v2992_v29 = vadd.f32 %v21114_v11, %v21123_v55  ;;  %v19193_v11 = vld [vmem:[#allocation2 + $0x148] sm:$0xff]  }
 0x266   :  { %v17733_v46 = vpop.f32.mrf.mxu0  ;;  %17924 = vmatmul.mubr.bf16.gmra.mxu0 %v19186_v56  ;;  %v17653_v51 = vpop.f32.mrf.mxu1  ;;  %v2984_v56 = vadd.f32 %v21146_v33, %v21156_v35  ;;  %v19194_v55 = vld [vmem:[#allocation2 + $0x144] sm:$0xff]   ;;  %v2997_v33 = vadd.f32 %v21213_v13, %v21221_v27 }
 0x267   :  { %24897 = vst [vmem:[#allocation96_spill] sm:$0xff] %v21466_v5  ;;  %v3848_v59 = vadd.f32 %v17653_v51, %v2989_v41  ;;  %17927 = vmatprep.mubr.bf16.mxu0 %v19189_v57  ;;  %v19191_v41 = vld [vmem:[#allocation2 + $0x138] sm:$0xff]  }
 0x268   :  { %17844 = vmatmul.mubr.bf16.gmra.mxu1 %v19188_v58  ;;  %v4265_v52 = vpop.f32.mrf.mxu0  ;;  %v3591_v63 = vpop.f32.mrf.mxu1  ;;  %v19192_v57 = vld [vmem:[#allocation2 + $0x134] sm:$0xff]  }
 0x269   :  { %17847 = vmatprep.mubr.bf16.mxu1 %v19190_v0  ;;  %v3846_v61 = vadd.f32 %v3591_v63, %v2981_v28  ;;  %v21472_v21 = vadd.f32 %v17733_v46, %v3848_v59  ;;  %v3005_v0 = vadd.f32 %v21187_v62, %v21196_v9  ;;  %v3008_v62 = vadd.f32 %v21244_v14, %v21253_v2 }
 0x26a   :  { %v17734_v48 = vpop.f32.mrf.mxu0  ;;  %v17654_v60 = vpop.f32.mrf.mxu1 }
 0x26b   :  { %v3849_v58 = vadd.f32 %v17654_v60, %v2992_v29  ;;  %v21476_v5 = vadd.f32 %v4265_v52, %v3846_v61 }
 0x26c   :  { %v4268_v53 = vpop.f32.mrf.mxu0  ;;  %v3594_v15 = vpop.f32.mrf.mxu1 }
 0x26d   :  { %v3847_v51 = vadd.f32 %v3594_v15, %v2984_v56  ;;  %v21480_v46 = vadd.f32 %v17734_v48, %v3849_v58  ;;  %v3000_v56 = vadd.f32 %v21273_v23, %v21275_v19 }
 0x26e   :  { %v17737_v28 = vpop.f32.mrf.mxu0  ;;  %17928 = vmatmul.mubr.bf16.gmra.mxu0 %v19191_v41  ;;  %v17657_v59 = vpop.f32.mrf.mxu1  ;;  %v19197_v41 = vld [vmem:[#allocation2 + $0x14c] sm:$0xff]  }
 0x26f   :  { %v3852_v35 = vadd.f32 %v17657_v59, %v3005_v0  ;;  %17931 = vmatprep.mubr.bf16.mxu0 %v19193_v11  ;;  %v21484_v29 = vadd.f32 %v4268_v53, %v3847_v51  ;;  %v19195_v53 = vld [vmem:[#allocation2 + $0x150] sm:$0xff]   ;;  %v19198_v0 = vld [vmem:[#allocation2 + $0x158] sm:$0xff]  }
 0x270   :  { %17848 = vmatmul.mubr.bf16.gmra.mxu1 %v19192_v57  ;;  %v4281_v52 = vpop.f32.mrf.mxu0  ;;  %v3607_v63 = vpop.f32.mrf.mxu1  ;;  %v19199_v51 = vld [vmem:[#allocation2 + $0x154] sm:$0xff]  }
 0x271   :  { %17851 = vmatprep.mubr.bf16.mxu1 %v19194_v55  ;;  %v3850_v9 = vadd.f32 %v3607_v63, %v2997_v33  ;;  %v21488_v61 = vadd.f32 %v17737_v28, %v3852_v35  ;;  %v3016_v63 = vadd.f32 %v21302_v47, %v21304_v37 }
 0x272   :  { %v17738_v48 = vpop.f32.mrf.mxu0  ;;  %v17658_v60 = vpop.f32.mrf.mxu1 }
 0x273   :  { %v3853_v58 = vadd.f32 %v17658_v60, %v3008_v62  ;;  %v21492_v27 = vadd.f32 %v4281_v52, %v3850_v9  ;;  %v19200_v60 = vld [vmem:[#allocation2 + $0x160] sm:$0xff]  }
 0x274   :  { %v4284_v13 = vpop.f32.mrf.mxu0  ;;  %v3610_v15 = vpop.f32.mrf.mxu1 }
 0x275   :  { %v3851_v57 = vadd.f32 %v3610_v15, %v3000_v56  ;;  %v21494_v11 = vadd.f32 %v17738_v48, %v3853_v58  ;;  %v19201_v56 = vld [vmem:[#allocation2 + $0x15c] sm:$0xff]   ;;  %v19203_v15 = vld [vmem:[#allocation2 + $0x16c] sm:$0xff]  }
 0x276   :  { %v17741_v14 = vpop.f32.mrf.mxu0  ;;  %17932 = vmatmul.mubr.bf16.gmra.mxu0 %v19195_v53 }
 0x277   :  { %17935 = vmatprep.mubr.bf16.mxu0 %v19198_v0  ;;  %v21497_v23 = vadd.f32 %v4284_v13, %v3851_v57  ;;  %v19202_v13 = vld [vmem:[#allocation2 + $0x170] sm:$0xff]  }
 0x278   :  { %v17661_v2 = vpop.f32.mrf.mxu1  ;;  %17852 = vmatmul.mubr.bf16.gmra.mxu1 %v19197_v41  ;;  %v4297_v19 = vpop.f32.mrf.mxu0 }
 0x279   :  { %v3856_v55 = vadd.f32 %v17661_v2, %v21288_v32  ;;  %17855 = vmatprep.mubr.bf16.mxu1 %v19199_v51 }
 0x27a   :  { %v3623_v28 = vpop.f32.mrf.mxu1  ;;  %v17742_v35 = vpop.f32.mrf.mxu0 }
 0x27b   :  { %v3854_v59 = vadd.f32 %v3623_v28, %v21290_v45  ;;  %v21500_v33 = vadd.f32 %v17741_v14, %v3856_v55 }
 0x27c   :  { %v17662_v52 = vpop.f32.mrf.mxu1  ;;  %v4300_v32 = vpop.f32.mrf.mxu0 }
 0x27d   :  { %v3857_v62 = vadd.f32 %v17662_v52, %v21292_v6  ;;  %v21505_v9 = vadd.f32 %v4297_v19, %v3854_v59 }
 0x27e   :  { %v3626_v48 = vpop.f32.mrf.mxu1  ;;  %v17745_v45 = vpop.f32.mrf.mxu0  ;;  %17936 = vmatmul.mubr.bf16.gmra.mxu0 %v19200_v60 }
 0x27f   :  { %v3855_v58 = vadd.f32 %v3626_v48, %v3016_v63  ;;  %v21507_v53 = vadd.f32 %v17742_v35, %v3857_v62  ;;  %17939 = vmatprep.mubr.bf16.mxu0 %v19202_v13  ;;  %v19204_v35 = vld [vmem:[#allocation2 + $0x178] sm:$0xff]   ;;  %v19208_v63 = vld [vmem:[#allocation2 + $0x180] sm:$0xff]  }
 0x280   :  { %v17665_v41 = vpop.f32.mrf.mxu1  ;;  %17856 = vmatmul.mubr.bf16.gmra.mxu1 %v19201_v56  ;;  %v4313_v47 = vpop.f32.mrf.mxu0  ;;  %v19209_v62 = vld [vmem:[#allocation2 + $0x17c] sm:$0xff]  }
 0x281   :  { %v3860_v57 = vadd.f32 %v17665_v41, %v21306_v7  ;;  %17859 = vmatprep.mubr.bf16.mxu1 %v19203_v15  ;;  %v21510_v6 = vadd.f32 %v4300_v32, %v3855_v58  ;;  %v19207_v7 = vld [vmem:[#allocation2 + $0x174] sm:$0xff]  }
 0x282   :  { %v3639_v37 = vpop.f32.mrf.mxu1  ;;  %v17746_v14 = vpop.f32.mrf.mxu0 }
 0x283   :  { %v3858_v0 = vadd.f32 %v3639_v37, %v21308_v25  ;;  %v21513_v51 = vadd.f32 %v17745_v45, %v3860_v57 }
 0x284   :  { %v17666_v2 = vpop.f32.mrf.mxu1  ;;  %v4316_v28 = vpop.f32.mrf.mxu0 }
 0x285   :  { %v3861_v55 = vadd.f32 %v17666_v2, %v21310_v50  ;;  %v21516_v19 = vadd.f32 %v4313_v47, %v3858_v0  ;;  %v19211_v0 = vld [vmem:[#allocation2 + $0x188] sm:$0xff]   ;;  %v19214_v2 = vld [vmem:[#allocation2 + $0x198] sm:$0xff]  }
 0x286   :  { %v3642_v59 = vpop.f32.mrf.mxu1  ;;  %v17749_v48 = vpop.f32.mrf.mxu0  ;;  %17940 = vmatmul.mubr.bf16.gmra.mxu0 %v19204_v35 }
 0x287   :  { %v3859_v52 = vadd.f32 %v3642_v59, %v21312_v42  ;;  %v21519_v32 = vadd.f32 %v17746_v14, %v3861_v55  ;;  %17943 = vmatprep.mubr.bf16.mxu0 %v19208_v63  ;;  %v19215_v55 = vld [vmem:[#allocation2 + $0x194] sm:$0xff]  }
 0x288   :  { %v17669_v25 = vpop.f32.mrf.mxu1  ;;  %17860 = vmatmul.mubr.bf16.gmra.mxu1 %v19207_v7  ;;  %v4329_v56 = vpop.f32.mrf.mxu0 }
 0x289   :  { %v3864_v60 = vadd.f32 %v17669_v25, %v21314_v36  ;;  %17863 = vmatprep.mubr.bf16.mxu1 %v19209_v62  ;;  %v21522_v50 = vadd.f32 %v4316_v28, %v3859_v52  ;;  %v19213_v36 = vld [vmem:[#allocation2 + $0x184] sm:$0xff]  }
 0x28a   :  { %v3655_v58 = vpop.f32.mrf.mxu1  ;;  %v17750_v42 = vpop.f32.mrf.mxu0 }
 0x28b   :  { %v3862_v13 = vadd.f32 %v3655_v58, %v21316_v22  ;;  %v21525_v15 = vadd.f32 %v17749_v48, %v3864_v60 }
 0x28c   :  { %v17670_v45 = vpop.f32.mrf.mxu1  ;;  %v4332_v47 = vpop.f32.mrf.mxu0 }
 0x28d   :  { %v3865_v41 = vadd.f32 %v17670_v45, %v21318_v26  ;;  %v21528_v57 = vadd.f32 %v4329_v56, %v3862_v13  ;;  %v19217_v13 = vld [vmem:[#allocation2 + $0x1a0] sm:$0xff]   ;;  %v19221_v45 = vld [vmem:[#allocation2 + $0x1a8] sm:$0xff]  }
 0x28e   :  { %v3658_v37 = vpop.f32.mrf.mxu1  ;;  %v17753_v59 = vpop.f32.mrf.mxu0  ;;  %17944 = vmatmul.mubr.bf16.gmra.mxu0 %v19211_v0 }
 0x28f   :  { %v3863_v14 = vadd.f32 %v3658_v37, %v21320_v34  ;;  %v21531_v28 = vadd.f32 %v17750_v42, %v3865_v41  ;;  %17947 = vmatprep.mubr.bf16.mxu0 %v19214_v2  ;;  %v19222_v41 = vld [vmem:[#allocation2 + $0x1a4] sm:$0xff]  }
 0x290   :  { %v17673_v22 = vpop.f32.mrf.mxu1  ;;  %17864 = vmatmul.mubr.bf16.gmra.mxu1 %v19213_v36  ;;  %v4345_v7 = vpop.f32.mrf.mxu0 }
 0x291   :  { %v3868_v35 = vadd.f32 %v17673_v22, %v21322_v16  ;;  %17867 = vmatprep.mubr.bf16.mxu1 %v19215_v55  ;;  %v21534_v26 = vadd.f32 %v4332_v47, %v3863_v14  ;;  %v19220_v16 = vld [vmem:[#allocation2 + $0x19c] sm:$0xff]  }
 0x292   :  { %v3671_v52 = vpop.f32.mrf.mxu1  ;;  %v17754_v34 = vpop.f32.mrf.mxu0 }
 0x293   :  { %v3866_v63 = vadd.f32 %v3671_v52, %v21324_v44  ;;  %v21537_v62 = vadd.f32 %v17753_v59, %v3868_v35 }
 0x294   :  { %v17674_v48 = vpop.f32.mrf.mxu1  ;;  %v4348_v56 = vpop.f32.mrf.mxu0 }
 0x295   :  { %v3869_v25 = vadd.f32 %v17674_v48, %v21326_v10  ;;  %v21540_v60 = vadd.f32 %v4345_v7, %v3866_v63  ;;  %v19224_v63 = vld [vmem:[#allocation2 + $0x1b0] sm:$0xff]  }
 0x296   :  { %v3674_v58 = vpop.f32.mrf.mxu1  ;;  %v17757_v37 = vpop.f32.mrf.mxu0  ;;  %17948 = vmatmul.mubr.bf16.gmra.mxu0 %v19217_v13  ;;  %v19227_v48 = vld [vmem:[#allocation2 + $0x54] sm:$0xff]  }
 0x297   :  { %v3867_v42 = vadd.f32 %v3674_v58, %v21328_v40  ;;  %v21543_v47 = vadd.f32 %v17754_v34, %v3869_v25  ;;  %17951 = vmatprep.mubr.bf16.mxu0 %v19221_v45  ;;  %v19228_v25 = vld [vmem:[#allocation2 + $0x50] sm:$0xff]  }
 0x298   :  { %v17677_v44 = vpop.f32.mrf.mxu1  ;;  %17868 = vmatmul.mubr.bf16.gmra.mxu1 %v19220_v16  ;;  %v4361_v36 = vpop.f32.mrf.mxu0 }
 0x299   :  { %v3872_v0 = vadd.f32 %v17677_v44, %v21330_v8  ;;  %17871 = vmatprep.mubr.bf16.mxu1 %v19222_v41  ;;  %v21546_v10 = vadd.f32 %v4348_v56, %v3867_v42  ;;  %v19226_v8 = vld [vmem:[#allocation2 + $0x1ac] sm:$0xff]  }
 0x29a   :  { %v3687_v14 = vpop.f32.mrf.mxu1  ;;  %v17758_v40 = vpop.f32.mrf.mxu0 }
 0x29b   :  { %v3870_v2 = vadd.f32 %v3687_v14, %v21332_v12  ;;  %v21549_v55 = vadd.f32 %v17757_v37, %v3872_v0 }
 0x29c   :  { %v17678_v59 = vpop.f32.mrf.mxu1  ;;  %v4364_v7 = vpop.f32.mrf.mxu0 }
 0x29d   :  { %v3873_v22 = vadd.f32 %v17678_v59, %v21334_v4  ;;  %v21552_v35 = vadd.f32 %v4361_v36, %v3870_v2  ;;  %v19230_v2 = vld [vmem:[#allocation2 + $0x5c] sm:$0xff]  }
 0x29e   :  { %v3690_v52 = vpop.f32.mrf.mxu1  ;;  %v17761_v58 = vpop.f32.mrf.mxu0  ;;  %17952 = vmatmul.mubr.bf16.gmra.mxu0 %v19224_v63 }
 0x29f   :  { %v3871_v34 = vadd.f32 %v3690_v52, %v21336_v24  ;;  %v21555_v56 = vadd.f32 %v17758_v40, %v3873_v22  ;;  %18051 = vmatprep.mubr.bf16.mxu0 %v19227_v48  ;;  %v19240_v40 = vld [vmem:[%s24712_s4 + $0x230] sm:$0xff]   ;;  %v19233_v22 = vld [vmem:[#allocation2 + $0x64] sm:$0xff]  }
 0x2a0   :  { %v17681_v12 = vpop.f32.mrf.mxu1  ;;  %17872 = vmatmul.mubr.bf16.gmra.mxu1 %v19226_v8  ;;  %v4377_v16 = vpop.f32.mrf.mxu0 }
 0x2a1   :  { %v3876_v13 = vadd.f32 %v17681_v12, %v21344_v30  ;;  %17971 = vmatprep.mubr.bf16.mxu1 %v19228_v25  ;;  %v21558_v4 = vadd.f32 %v4364_v7, %v3871_v34  ;;  %v19232_v30 = vld [vmem:[#allocation2 + $0x58] sm:$0xff]  }
 0x2a2   :  { %v3703_v42 = vpop.f32.mrf.mxu1  ;;  %v17762_v24 = vpop.f32.mrf.mxu0 }
 0x2a3   :  { %v3874_v45 = vadd.f32 %v3703_v42, %v21346_v49  ;;  %v21561_v41 = vadd.f32 %v17761_v58, %v3876_v13 }
 0x2a4   :  { %v17682_v37 = vpop.f32.mrf.mxu1  ;;  %v4380_v36 = vpop.f32.mrf.mxu0 }
 0x2a5   :  { %v3877_v44 = vadd.f32 %v17682_v37, %v21348_v39  ;;  %v21564_v0 = vadd.f32 %v4377_v16, %v3874_v45  ;;  %v19234_v39 = vld [vmem:[#allocation2 + $0x60] sm:$0xff]   ;;  %v19235_v45 = vld [vmem:[#allocation2 + $0x6c] sm:$0xff]  }
 0x2a6   :  { %v3706_v14 = vpop.f32.mrf.mxu1  ;;  %v17765_v7 = vpop.f32.mrf.mxu0  ;;  %18052 = vmatmul.mubr.bf16.vlgmr.msra.gmra.mxu0 %v19230_v2 }
 0x2a7   :  { %v3875_v59 = vadd.f32 %v3706_v14, %v21350_v38  ;;  %v21570_v49 = vadd.f32 %v17762_v24, %v3877_v44  ;;  %18055 = vmatprep.mubr.bf16.mxu0 %v19233_v22  ;;  %v19249_v38 = vld [vmem:[%s24712_s4 + $0x228] sm:$0xff]   ;;  %v19237_v44 = vld [vmem:[#allocation2 + $0x7c] sm:$0xff]  }
 0x2a8   :  { %v17685_v52 = vpop.f32.mrf.mxu1  ;;  %17972 = vmatmul.mubr.bf16.vlgmr.msra.gmra.mxu1 %v19232_v30  ;;  %v4393_v34 = vpop.f32.mrf.mxu0  ;;  %v19236_v24 = vld [vmem:[#allocation2 + $0x68] sm:$0xff]   ;;  %v24898_v22 = vld [vmem:[#allocation72_spill] sm:$0xff] }
 0x2a9   :  { %v3880_v63 = vadd.f32 %v17685_v52, %v21352_v1  ;;  %18116 = vmatpush3.bf16.msra.mxu1 %v21439_v31  ;;  %v21574_v8 = vadd.f32 %v4380_v36, %v3875_v59  ;;  %17975 = vmatprep.mubr.bf16.mxu1 %v19234_v39  ;;  %v19238_v36 = vld [vmem:[#allocation2 + $0x78] sm:$0xff]  }
 0x2aa   :  { %v3719_v48 = vpop.f32.mrf.mxu1  ;;  %18117 = vmatprep.subr.bf16.mxu1 %v19240_v40  ;;  %v17766_v12 = vpop.f32.mrf.mxu0  ;;  %v19267_v52 = vld [vmem:[%s24712_s4 + $0x218] sm:$0xff]  }
 0x2ab   :  { %v3878_v25 = vadd.f32 %v3719_v48, %v21354_v18  ;;  %v21580_v58 = vadd.f32 %v17765_v7, %v3880_v63  ;;  %v19258_v18 = vld [vmem:[%s24712_s4 + $0x220] sm:$0xff]   ;;  %v24899_v48 = vld [vmem:[#allocation73_spill] sm:$0xff] }
 0x2ac   :  { %v17686_v13 = vpop.f32.mrf.mxu1  ;;  %v4396_v16 = vpop.f32.mrf.mxu0 }
 0x2ad   :  { %v3881_v1 = vadd.f32 %v17686_v13, %v21356_v54  ;;  %18118 = vmatpush3.bf16.msra.mxu1 %v19240_v40  ;;  %v21583_v31 = vadd.f32 %v4393_v34, %v3878_v25 }
 0x2ae   :  { %v3722_v42 = vpop.f32.mrf.mxu1  ;;  %18119 = vmatprep.subr.bf16.mxu1 %v19249_v38  ;;  %v17769_v2 = vpop.f32.mrf.mxu0  ;;  %18056 = vmatmul.mubr.bf16.gmra.mxu0 %v19235_v45  ;;  %v19242_v45 = vld [vmem:[#allocation2 + $0x8c] sm:$0xff]  }
 0x2af   :  { %v3879_v37 = vadd.f32 %v3722_v42, %v21358_v3  ;;  %v21589_v14 = vadd.f32 %v17766_v12, %v3881_v1  ;;  %18059 = vmatprep.mubr.bf16.mxu0 %v19237_v44  ;;  %v19239_v1 = vld [vmem:[#allocation2 + $0x84] sm:$0xff]  }
 0x2b0   :  { %v17689_v54 = vpop.f32.mrf.mxu1  ;;  %17976 = vmatmul.mubr.bf16.gmra.mxu1 %v19236_v24  ;;  %v4409_v59 = vpop.f32.mrf.mxu0  ;;  %v19243_v24 = vld [vmem:[#allocation2 + $0x88] sm:$0xff]  }
 0x2b1   :  { %v3884_v30 = vadd.f32 %v17689_v54, %v21360_v43  ;;  %17979 = vmatprep.mubr.bf16.mxu1 %v19238_v36  ;;  %v21592_v40 = vadd.f32 %v4396_v16, %v3879_v37  ;;  %18120 = vmatpush3.bf16.msra.mxu1 %v19249_v38  ;;  %v19241_v16 = vld [vmem:[#allocation2 + $0x80] sm:$0xff]   ;;  %v24900_v38 = vld [vmem:[#allocation74_spill] sm:$0xff]  ;;  %v24901_v54 = vld [vmem:[#allocation75_spill] sm:$0xff] }
 0x2b2   :  { %v3735_v3 = vpop.f32.mrf.mxu1  ;;  %18121 = vmatprep.subr.bf16.mxu1 %v19258_v18  ;;  %v17770_v63 = vpop.f32.mrf.mxu0  ;;  %v19276_v37 = vld [vmem:[%s24712_s4 + $0x210] sm:$0xff]  }
 0x2b3   :  { %v3882_v7 = vadd.f32 %v3735_v3, %v24898_v22  ;;  %v21598_v39 = vadd.f32 %v17769_v2, %v3884_v30  ;;  %v24903_v22 = vld [vmem:[#allocation76_spill] sm:$0xff] }
 0x2b4   :  { %v17690_v34 = vpop.f32.mrf.mxu1  ;;  %v4412_v12 = vpop.f32.mrf.mxu0 }
 0x2b5   :  { %v3885_v43 = vadd.f32 %v17690_v34, %v24899_v48  ;;  %v21601_v25 = vadd.f32 %v4409_v59, %v3882_v7  ;;  %18122 = vmatpush3.bf16.msra.mxu1 %v19258_v18 }
 0x2b6   :  { %v3738_v13 = vpop.f32.mrf.mxu1  ;;  %18123 = vmatprep.subr.bf16.mxu1 %v19267_v52  ;;  %v17773_v36 = vpop.f32.mrf.mxu0  ;;  %18060 = vmatmul.mubr.bf16.gmra.mxu0 %v19239_v1 }
 0x2b7   :  { %v3883_v42 = vadd.f32 %v3738_v13, %v24900_v38  ;;  %v21607_v44 = vadd.f32 %v17770_v63, %v3885_v43  ;;  %18063 = vmatprep.mubr.bf16.mxu0 %v19242_v45  ;;  %v19285_v63 = vld [vmem:[%s24712_s4 + $0x208] sm:$0xff]   ;;  %v19245_v45 = vld [vmem:[#allocation2 + $0x90] sm:$0xff]  }
 0x2b8   :  { %v17693_v2 = vpop.f32.mrf.mxu1  ;;  %17980 = vmatmul.mubr.bf16.gmra.mxu1 %v19241_v16  ;;  %v4425_v59 = vpop.f32.mrf.mxu0  ;;  %v24905_v13 = vld [vmem:[#allocation77_spill] sm:$0xff] }
 0x2b9   :  { %v3888_v30 = vadd.f32 %v17693_v2, %v24901_v54  ;;  %17983 = vmatprep.mubr.bf16.mxu1 %v19243_v24  ;;  %v21610_v18 = vadd.f32 %v4412_v12, %v3883_v42  ;;  %18124 = vmatpush3.bf16.msra.mxu1 %v19267_v52  ;;  %v19244_v42 = vld [vmem:[#allocation2 + $0x94] sm:$0xff]   ;;  %v19246_v2 = vld [vmem:[#allocation2 + $0xa4] sm:$0xff]  }
 0x2ba   :  { %v3751_v3 = vpop.f32.mrf.mxu1  ;;  %18125 = vmatprep.subr.bf16.mxu1 %v19276_v37  ;;  %v17774_v48 = vpop.f32.mrf.mxu0  ;;  %v24907_v52 = vld [vmem:[#allocation78_spill] sm:$0xff]  ;;  %v19247_v54 = vld [vmem:[#allocation2 + $0xa0] sm:$0xff]  }
 0x2bb   :  { %24902 = vst [vmem:[#allocation72_spill] sm:$0xff] %v21610_v18  ;;  %v3886_v7 = vadd.f32 %v3751_v3, %v24903_v22  ;;  %v21616_v34 = vadd.f32 %v17773_v36, %v3888_v30  ;;  %v19292_v36 = vld [vmem:[%s24712_s4 + $0x200] sm:$0xff]   ;;  %v24909_v22 = vld [vmem:[#allocation79_spill] sm:$0xff] }
 0x2bc   :  { %v17694_v43 = vpop.f32.mrf.mxu1  ;;  %v4428_v12 = vpop.f32.mrf.mxu0 }
 0x2bd   :  { %24904 = vst [vmem:[#allocation73_spill] sm:$0xff] %v21616_v34  ;;  %v3889_v1 = vadd.f32 %v17694_v43, %v24905_v13  ;;  %v21619_v16 = vadd.f32 %v4425_v59, %v3886_v7  ;;  %18126 = vmatpush3.bf16.msra.mxu1 %v19276_v37 }
 0x2be   :  { %v3754_v38 = vpop.f32.mrf.mxu1  ;;  %18127 = vmatprep.subr.bf16.mxu1 %v19285_v63  ;;  %v17777_v3 = vpop.f32.mrf.mxu0  ;;  %18064 = vmatmul.mubr.bf16.gmra.mxu0 %v19244_v42 }
 0x2bf   :  { %24906 = vst [vmem:[#allocation74_spill] sm:$0xff] %v21619_v16  ;;  %v3887_v24 = vadd.f32 %v3754_v38, %v24907_v52  ;;  %v21625_v30 = vadd.f32 %v17774_v48, %v3889_v1  ;;  %18067 = vmatprep.mubr.bf16.mxu0 %v19246_v2  ;;  %v24911_v38 = vld [vmem:[#allocation80_spill] sm:$0xff]  ;;  %v19248_v2 = vld [vmem:[#allocation2 + $0xac] sm:$0xff]  }
 0x2c0   :  { %v17697_v59 = vpop.f32.mrf.mxu1  ;;  %17984 = vmatmul.mubr.bf16.gmra.mxu1 %v19245_v45  ;;  %v4441_v43 = vpop.f32.mrf.mxu0 }
 0x2c1   :  { %24908 = vst [vmem:[#allocation75_spill] sm:$0xff] %v21625_v30  ;;  %v3892_v7 = vadd.f32 %v17697_v59, %v24909_v22  ;;  %17987 = vmatprep.mubr.bf16.mxu1 %v19247_v54  ;;  %v21628_v37 = vadd.f32 %v4428_v12, %v3887_v24  ;;  %18128 = vmatpush3.bf16.msra.mxu1 %v19285_v63  ;;  %v24913_v30 = vld [vmem:[#allocation81_spill] sm:$0xff]  ;;  %v24915_v12 = vld [vmem:[#allocation82_spill] sm:$0xff] }
 0x2c2   :  { %v3767_v13 = vpop.f32.mrf.mxu1  ;;  %18129 = vmatprep.subr.bf16.mxu1 %v19292_v36  ;;  %v17778_v48 = vpop.f32.mrf.mxu0  ;;  %v19250_v54 = vld [vmem:[#allocation2 + $0xa8] sm:$0xff]   ;;  %v19251_v22 = vld [vmem:[#allocation2 + $0xb4] sm:$0xff]  }
 0x2c3   :  { %24910 = vst [vmem:[#allocation76_spill] sm:$0xff] %v21628_v37  ;;  %v3890_v52 = vadd.f32 %v3767_v13, %v24911_v38  ;;  %v21631_v16 = vadd.f32 %v17777_v3, %v3892_v7  ;;  %v19252_v63 = vld [vmem:[#allocation2 + $0xb0] sm:$0xff]   ;;  %v24917_v7 = vld [vmem:[#allocation83_spill] sm:$0xff] }
 0x2c4   :  { %v17698_v1 = vpop.f32.mrf.mxu1  ;;  %v4444_v45 = vpop.f32.mrf.mxu0 }
 0x2c5   :  { %24912 = vst [vmem:[#allocation77_spill] sm:$0xff] %v21631_v16  ;;  %v3893_v42 = vadd.f32 %v17698_v1, %v24913_v30  ;;  %v21634_v34 = vadd.f32 %v4441_v43, %v3890_v52  ;;  %18130 = vmatpush3.bf16.msra.mxu1 %v19292_v36  ;;  %v24919_v1 = vld [vmem:[#allocation84_spill] sm:$0xff] }
 0x2c6   :  { %v3770_v59 = vpop.f32.mrf.mxu1  ;;  %v17781_v13 = vpop.f32.mrf.mxu0  ;;  %18068 = vmatmul.mubr.bf16.gmra.mxu0 %v19248_v2  ;;  %v19256_v2 = vld [vmem:[#allocation2 + $0xc8] sm:$0xff]  }
 0x2c7   :  { %24914 = vst [vmem:[#allocation78_spill] sm:$0xff] %v21634_v34  ;;  %v3891_v24 = vadd.f32 %v3770_v59, %v24915_v12  ;;  %v21637_v37 = vadd.f32 %v17778_v48, %v3893_v42  ;;  %18071 = vmatprep.mubr.bf16.mxu0 %v19251_v22  ;;  %v24921_v48 = vld [vmem:[#allocation85_spill] sm:$0xff]  ;;  %v19253_v22 = vld [vmem:[#allocation2 + $0xbc] sm:$0xff]  }
 0x2c8   :  { %v17701_v3 = vpop.f32.mrf.mxu1  ;;  %17988 = vmatmul.mubr.bf16.gmra.mxu1 %v19250_v54  ;;  %v4457_v43 = vpop.f32.mrf.mxu0 }
 0x2c9   :  { %24916 = vst [vmem:[#allocation79_spill] sm:$0xff] %v21637_v37  ;;  %v3896_v38 = vadd.f32 %v17701_v3, %v24917_v7  ;;  %17991 = vmatprep.mubr.bf16.mxu1 %v19252_v63  ;;  %v21640_v30 = vadd.f32 %v4444_v45, %v3891_v24  ;;  %v19255_v37 = vld [vmem:[#allocation2 + $0xcc] sm:$0xff]   ;;  %v19254_v63 = vld [vmem:[#allocation2 + $0xb8] sm:$0xff]  }
 0x2ca   :  { %v3783_v52 = vpop.f32.mrf.mxu1  ;;  %v17782_v59 = vpop.f32.mrf.mxu0  ;;  %v24923_v45 = vld [vmem:[#allocation86_spill] sm:$0xff] }
 0x2cb   :  { %24918 = vst [vmem:[#allocation80_spill] sm:$0xff] %v21640_v30  ;;  %v3894_v36 = vadd.f32 %v3783_v52, %v24919_v1  ;;  %v21643_v34 = vadd.f32 %v17781_v13, %v3896_v38  ;;  %v24925_v38 = vld [vmem:[#allocation87_spill] sm:$0xff] }
 0x2cc   :  { %v17702_v12 = vpop.f32.mrf.mxu1  ;;  %v4460_v54 = vpop.f32.mrf.mxu0 }
 0x2cd   :  { %24920 = vst [vmem:[#allocation81_spill] sm:$0xff] %v21643_v34  ;;  %v3897_v42 = vadd.f32 %v17702_v12, %v24921_v48  ;;  %v21646_v16 = vadd.f32 %v4457_v43, %v3894_v36  ;;  %v24926_v12 = vld [vmem:[#allocation88_spill] sm:$0xff] }
 0x2ce   :  { %v3786_v3 = vpop.f32.mrf.mxu1  ;;  %v17785_v30 = vpop.f32.mrf.mxu0  ;;  %18072 = vmatmul.mubr.bf16.gmra.mxu0 %v19253_v22 }
 0x2cf   :  { %24922 = vst [vmem:[#allocation82_spill] sm:$0xff] %v21646_v16  ;;  %v3895_v24 = vadd.f32 %v3786_v3, %v24923_v45  ;;  %v21649_v7 = vadd.f32 %v17782_v59, %v3897_v42  ;;  %18075 = vmatprep.mubr.bf16.mxu0 %v19255_v37  ;;  %v19257_v59 = vld [vmem:[#allocation2 + $0xd4] sm:$0xff]   ;;  %v24928_v45 = vld [vmem:[#allocation89_spill] sm:$0xff] }
 0x2d0   :  { %v17705_v13 = vpop.f32.mrf.mxu1  ;;  %17992 = vmatmul.mubr.bf16.gmra.mxu1 %v19254_v63  ;;  %v4473_v43 = vpop.f32.mrf.mxu0  ;;  %v19259_v42 = vld [vmem:[#allocation2 + $0xd0] sm:$0xff]   ;;  %v19261_v63 = vld [vmem:[#allocation2 + $0xd8] sm:$0xff]  }
 0x2d1   :  { %24924 = vst [vmem:[#allocation83_spill] sm:$0xff] %v21649_v7  ;;  %v3900_v52 = vadd.f32 %v17705_v13, %v24925_v38  ;;  %17995 = vmatprep.mubr.bf16.mxu1 %v19256_v2  ;;  %v21652_v1 = vadd.f32 %v4460_v54, %v3895_v24  ;;  %v19260_v7 = vld [vmem:[#allocation2 + $0xdc] sm:$0xff]   ;;  %v24930_v54 = vld [vmem:[#allocation90_spill] sm:$0xff] }
 0x2d2   :  { %v3799_v36 = vpop.f32.mrf.mxu1  ;;  %v17786_v34 = vpop.f32.mrf.mxu0 }
 0x2d3   :  { %v3898_v48 = vadd.f32 %v3799_v36, %v24926_v12  ;;  %v21655_v16 = vadd.f32 %v17785_v30, %v3900_v52  ;;  %v24932_v52 = vld [vmem:[#allocation91_spill] sm:$0xff] }
 0x2d4   :  { %v17706_v3 = vpop.f32.mrf.mxu1  ;;  %v4476_v37 = vpop.f32.mrf.mxu0 }
 0x2d5   :  { %24927 = vst [vmem:[#allocation84_spill] sm:$0xff] %v21655_v16  ;;  %v3901_v22 = vadd.f32 %v17706_v3, %v24928_v45  ;;  %v21658_v18 = vadd.f32 %v4473_v43, %v3898_v48  ;;  %v24934_v43 = vld [vmem:[#allocation92_spill] sm:$0xff] }
 0x2d6   :  { %v3802_v2 = vpop.f32.mrf.mxu1  ;;  %v17789_v38 = vpop.f32.mrf.mxu0  ;;  %18076 = vmatmul.mubr.bf16.gmra.mxu0 %v19257_v59 }
 0x2d7   :  { %24929 = vst [vmem:[#allocation85_spill] sm:$0xff] %v21658_v18  ;;  %v3899_v24 = vadd.f32 %v3802_v2, %v24930_v54  ;;  %v21661_v13 = vadd.f32 %v17786_v34, %v3901_v22  ;;  %18079 = vmatprep.mubr.bf16.mxu0 %v19260_v7  ;;  %v19262_v34 = vld [vmem:[#allocation2 + $0xe4] sm:$0xff]   ;;  %v24936_v7 = vld [vmem:[#allocation94_spill] sm:$0xff] }
 0x2d8   :  { %v17709_v30 = vpop.f32.mrf.mxu1  ;;  %17996 = vmatmul.mubr.bf16.gmra.mxu1 %v19259_v42  ;;  %v4489_v3 = vpop.f32.mrf.mxu0  ;;  %v19263_v22 = vld [vmem:[#allocation2 + $0xe0] sm:$0xff]   ;;  %v24935_v54 = vld [vmem:[#allocation93_spill] sm:$0xff] }
 0x2d9   :  { %24931 = vst [vmem:[#allocation86_spill] sm:$0xff] %v21661_v13  ;;  %v3904_v36 = vadd.f32 %v17709_v30, %v24932_v52  ;;  %17999 = vmatprep.mubr.bf16.mxu1 %v19261_v63  ;;  %v21664_v12 = vadd.f32 %v4476_v37, %v3899_v24  ;;  %v19264_v37 = vld [vmem:[#allocation2 + $0x144] sm:$0xff]  }
 0x2da   :  { %v3815_v45 = vpop.f32.mrf.mxu1  ;;  %v17790_v16 = vpop.f32.mrf.mxu0  ;;  %v19265_v24 = vld [vmem:[#allocation2 + $0x140] sm:$0xff]  }
 0x2db   :  { %24933 = vst [vmem:[#allocation87_spill] sm:$0xff] %v21664_v12  ;;  %v3902_v48 = vadd.f32 %v3815_v45, %v24934_v43  ;;  %v21667_v18 = vadd.f32 %v17789_v38, %v3904_v36 }
 0x2dc   :  { %v17710_v2 = vpop.f32.mrf.mxu1  ;;  %v4492_v42 = vpop.f32.mrf.mxu0 }
 0x2dd   :  { %v3905_v59 = vadd.f32 %v17710_v2, %v24935_v54  ;;  %v21670_v13 = vadd.f32 %v4489_v3, %v3902_v48 }
 0x2de   :  { %v3818_v30 = vpop.f32.mrf.mxu1  ;;  %v17793_v12 = vpop.f32.mrf.mxu0  ;;  %18080 = vmatmul.mubr.bf16.gmra.mxu0 %v19262_v34 }
 0x2df   :  { %v3903_v63 = vadd.f32 %v3818_v30, %v24936_v7  ;;  %v21673_v52 = vadd.f32 %v17790_v16, %v3905_v59  ;;  %18083 = vmatprep.mubr.bf16.mxu0 %v19264_v37  ;;  %v24939_v16 = vld [vmem:[#allocation95_spill] sm:$0xff]  ;;  %v24940_v37 = vld [vmem:[#allocation96_spill] sm:$0xff] }
 0x2e0   :  { %v17713_v38 = vpop.f32.mrf.mxu1  ;;  %18000 = vmatmul.mubr.bf16.gmra.mxu1 %v19263_v22  ;;  %v4505_v3 = vpop.f32.mrf.mxu0 }
 0x2e1   :  { %24937 = vst [vmem:[#allocation88_spill] sm:$0xff] %v21673_v52  ;;  %v3908_v36 = vadd.f32 %v17713_v38, %v21458_v20  ;;  %18003 = vmatprep.mubr.bf16.mxu1 %v19265_v24  ;;  %v21676_v45 = vadd.f32 %v4492_v42, %v3903_v63  ;;  %v19266_v52 = vld [vmem:[#allocation2 + $0x14c] sm:$0xff]   ;;  %v19269_v42 = vld [vmem:[#allocation2 + $0x154] sm:$0xff]  }
 0x2e2   :  { %v3831_v43 = vpop.f32.mrf.mxu1  ;;  %v17794_v54 = vpop.f32.mrf.mxu0  ;;  %v19268_v20 = vld [vmem:[#allocation2 + $0x148] sm:$0xff]   ;;  %v19270_v63 = vld [vmem:[#allocation2 + $0x150] sm:$0xff]  }
 0x2e3   :  { %24938 = vst [vmem:[#allocation89_spill] sm:$0xff] %v21676_v45  ;;  %v3906_v48 = vadd.f32 %v3831_v43, %v21460_v17  ;;  %v21679_v2 = vadd.f32 %v17793_v12, %v3908_v36 }
 0x2e4   :  { %v17714_v30 = vpop.f32.mrf.mxu1  ;;  %v4508_v34 = vpop.f32.mrf.mxu0 }
 0x2e5   :  { %v3909_v59 = vadd.f32 %v17714_v30, %v24939_v16  ;;  %v21682_v7 = vadd.f32 %v4505_v3, %v3906_v48 }
 0x2e6   :  { %v3834_v22 = vpop.f32.mrf.mxu1  ;;  %v17893_v45 = vpop.f32.mrf.mxu0  ;;  %18084 = vmatmul.mubr.bf16.gmra.mxu0 %v19266_v52 }
 0x2e7   :  { %v3907_v24 = vadd.f32 %v3834_v22, %v24940_v37  ;;  %v21685_v38 = vadd.f32 %v17794_v54, %v3909_v59  ;;  %18087 = vmatprep.mubr.bf16.mxu0 %v19269_v42  ;;  %v19271_v37 = vld [vmem:[#allocation2 + $0x15c] sm:$0xff]  }
 0x2e8   :  { %v17813_v17 = vpop.f32.mrf.mxu1  ;;  %18004 = vmatmul.mubr.bf16.gmra.mxu1 %v19268_v20  ;;  %v5614_v3 = vpop.f32.mrf.mxu0 }
 0x2e9   :  { %v5196_v12 = vadd.f32 %v17813_v17, %v21472_v21  ;;  %18007 = vmatprep.mubr.bf16.mxu1 %v19270_v63  ;;  %v21688_v36 = vadd.f32 %v4508_v34, %v3907_v24  ;;  %v19272_v21 = vld [vmem:[#allocation2 + $0x158] sm:$0xff]   ;;  %v19273_v34 = vld [vmem:[#allocation2 + $0x16c] sm:$0xff]  }
 0x2ea   :  { %v4939_v43 = vpop.f32.mrf.mxu1  ;;  %v17894_v16 = vpop.f32.mrf.mxu0  ;;  %v19274_v24 = vld [vmem:[#allocation2 + $0x168] sm:$0xff]  }
 0x2eb   :  { %v5194_v48 = vadd.f32 %v4939_v43, %v21476_v5  ;;  %v21691_v30 = vadd.f32 %v17893_v45, %v5196_v12 }
 0x2ec   :  { %v17814_v22 = vpop.f32.mrf.mxu1  ;;  %v5617_v52 = vpop.f32.mrf.mxu0 }
 0x2ed   :  { %v5197_v54 = vadd.f32 %v17814_v22, %v21480_v46  ;;  %v21694_v59 = vadd.f32 %v5614_v3, %v5194_v48 }
 0x2ee   :  { %v4942_v20 = vpop.f32.mrf.mxu1  ;;  %v17897_v17 = vpop.f32.mrf.mxu0  ;;  %18088 = vmatmul.mubr.bf16.gmra.mxu0 %v19271_v37 }
 0x2ef   :  { %v5195_v42 = vadd.f32 %v4942_v20, %v21484_v29  ;;  %v21697_v63 = vadd.f32 %v17894_v16, %v5197_v54  ;;  %18091 = vmatprep.mubr.bf16.mxu0 %v19273_v34 }
 0x2f0   :  { %v17817_v5 = vpop.f32.mrf.mxu1  ;;  %18008 = vmatmul.mubr.bf16.gmra.mxu1 %v19272_v21  ;;  %v5630_v12 = vpop.f32.mrf.mxu0  ;;  %v19275_v21 = vld [vmem:[#allocation2 + $0x174] sm:$0xff]  }
 0x2f1   :  { %v5200_v45 = vadd.f32 %v17817_v5, %v21488_v61  ;;  %18011 = vmatprep.mubr.bf16.mxu1 %v19274_v24  ;;  %v21700_v46 = vadd.f32 %v5617_v52, %v5195_v42  ;;  %v19277_v61 = vld [vmem:[#allocation2 + $0x170] sm:$0xff]   ;;  %v19278_v52 = vld [vmem:[#allocation2 + $0x17c] sm:$0xff]  }
 0x2f2   :  { %v4955_v3 = vpop.f32.mrf.mxu1  ;;  %v17898_v29 = vpop.f32.mrf.mxu0  ;;  %v19279_v42 = vld [vmem:[#allocation2 + $0x178] sm:$0xff]  }
 0x2f3   :  { %v5198_v43 = vadd.f32 %v4955_v3, %v21492_v27  ;;  %v21703_v48 = vadd.f32 %v17897_v17, %v5200_v45 }
 0x2f4   :  { %v17818_v22 = vpop.f32.mrf.mxu1  ;;  %v5633_v20 = vpop.f32.mrf.mxu0 }
 0x2f5   :  { %v5201_v16 = vadd.f32 %v17818_v22, %v21494_v11  ;;  %v21706_v54 = vadd.f32 %v5630_v12, %v5198_v43 }
 0x2f6   :  { %v4958_v37 = vpop.f32.mrf.mxu1  ;;  %v17901_v5 = vpop.f32.mrf.mxu0  ;;  %18092 = vmatmul.mubr.bf16.gmra.mxu0 %v19275_v21  ;;  %v19282_v21 = vld [vmem:[#allocation2 + $0x194] sm:$0xff]  }
 0x2f7   :  { %v5199_v34 = vadd.f32 %v4958_v37, %v21497_v23  ;;  %v21709_v24 = vadd.f32 %v17898_v29, %v5201_v16  ;;  %18095 = vmatprep.mubr.bf16.mxu0 %v19278_v52  ;;  %v19280_v29 = vld [vmem:[#allocation2 + $0x184] sm:$0xff]  }
 0x2f8   :  { %v17821_v27 = vpop.f32.mrf.mxu1  ;;  %18012 = vmatmul.mubr.bf16.gmra.mxu1 %v19277_v61  ;;  %v5646_v45 = vpop.f32.mrf.mxu0  ;;  %v19281_v37 = vld [vmem:[#allocation2 + $0x180] sm:$0xff]   ;;  %v19283_v61 = vld [vmem:[#allocation2 + $0x190] sm:$0xff]  }
 0x2f9   :  { %24941 = vst [vmem:[#allocation90_spill] sm:$0xff] %v21709_v24  ;;  %v5204_v17 = vadd.f32 %v17821_v27, %v21500_v33  ;;  %18015 = vmatprep.mubr.bf16.mxu1 %v19279_v42  ;;  %v21712_v11 = vadd.f32 %v5633_v20, %v5199_v34  ;;  %v19323_v20 = vld [vmem:[%s24715_s7 + $0x78] sm:$0xff]  }
 0x2fa   :  { %v4971_v12 = vpop.f32.mrf.mxu1  ;;  %v17902_v23 = vpop.f32.mrf.mxu0  ;;  %18195 = vmatprep.subr.bf16.mxu0 %v19323_v20 }
 0x2fb   :  { %v5202_v3 = vadd.f32 %v4971_v12, %v21505_v9  ;;  %v21715_v43 = vadd.f32 %v17901_v5, %v5204_v17  ;;  %18196 = vmatpush3.bf16.msra.mxu0 %v19323_v20 }
 0x2fc   :  { %v17822_v22 = vpop.f32.mrf.mxu1  ;;  %v5649_v33 = vpop.f32.mrf.mxu0 }
 0x2fd   :  { %v5205_v16 = vadd.f32 %v17822_v22, %v21507_v53  ;;  %v21718_v24 = vadd.f32 %v5646_v45, %v5202_v3  ;;  %v19284_v22 = vld [vmem:[#allocation2 + $0x19c] sm:$0xff]  }
 0x2fe   :  { %v4974_v52 = vpop.f32.mrf.mxu1  ;;  %v17905_v42 = vpop.f32.mrf.mxu0  ;;  %18096 = vmatmul.mubr.bf16.gmra.mxu0 %v19280_v29  ;;  %v19286_v29 = vld [vmem:[#allocation2 + $0x198] sm:$0xff]  }
 0x2ff   :  { %v5203_v9 = vadd.f32 %v4974_v52, %v21510_v6  ;;  %v21724_v34 = vadd.f32 %v17902_v23, %v5205_v16  ;;  %18099 = vmatprep.mubr.bf16.mxu0 %v19282_v21 }
 0x300   :  { %v17825_v5 = vpop.f32.mrf.mxu1  ;;  %18016 = vmatmul.mubr.bf16.gmra.mxu1 %v19281_v37  ;;  %v5662_v17 = vpop.f32.mrf.mxu0  ;;  %v19287_v37 = vld [vmem:[#allocation2 + $0x1a4] sm:$0xff]  }
 0x301   :  { %v5208_v53 = vadd.f32 %v17825_v5, %v21513_v51  ;;  %18019 = vmatprep.mubr.bf16.mxu1 %v19283_v61  ;;  %v21727_v27 = vadd.f32 %v5649_v33, %v5203_v9  ;;  %v19288_v51 = vld [vmem:[#allocation2 + $0x1a0] sm:$0xff]  }
 0x302   :  { %v4987_v45 = vpop.f32.mrf.mxu1  ;;  %v17906_v6 = vpop.f32.mrf.mxu0 }
 0x303   :  { %v5206_v12 = vadd.f32 %v4987_v45, %v21516_v19  ;;  %v21730_v3 = vadd.f32 %v17905_v42, %v5208_v53  ;;  %v19291_v45 = vld [vmem:[#allocation2 + $0x1b8] sm:$0xff]  }
 0x304   :  { %v17826_v23 = vpop.f32.mrf.mxu1  ;;  %v5665_v61 = vpop.f32.mrf.mxu0 }
 0x305   :  { %v5209_v16 = vadd.f32 %v17826_v23, %v21519_v32  ;;  %v21733_v21 = vadd.f32 %v5662_v17, %v5206_v12  ;;  %v19294_v12 = vld [vmem:[#allocation2 + $0x1bc] sm:$0xff]  }
 0x306   :  { %v4990_v33 = vpop.f32.mrf.mxu1  ;;  %v17909_v19 = vpop.f32.mrf.mxu0  ;;  %18100 = vmatmul.mubr.bf16.gmra.mxu0 %v19284_v22  ;;  %v19290_v22 = vld [vmem:[#allocation2 + $0x1a8] sm:$0xff]  }
 0x307   :  { %v5207_v52 = vadd.f32 %v4990_v33, %v21522_v50  ;;  %v21736_v9 = vadd.f32 %v17906_v6, %v5209_v16  ;;  %18103 = vmatprep.mubr.bf16.mxu0 %v19287_v37  ;;  %v19289_v16 = vld [vmem:[#allocation2 + $0x1ac] sm:$0xff]  }
 0x308   :  { %v17829_v20 = vpop.f32.mrf.mxu1  ;;  %18020 = vmatmul.mubr.bf16.gmra.mxu1 %v19286_v29  ;;  %v5678_v32 = vpop.f32.mrf.mxu0 }
 0x309   :  { %v5212_v42 = vadd.f32 %v17829_v20, %v21525_v15  ;;  %18023 = vmatprep.mubr.bf16.mxu1 %v19288_v51  ;;  %v21739_v5 = vadd.f32 %v5665_v61, %v5207_v52  ;;  %v19328_v15 = vld [vmem:[%s24715_s7 + $0x70] sm:$0xff]  }
 0x30a   :  { %v5003_v53 = vpop.f32.mrf.mxu1  ;;  %v17910_v50 = vpop.f32.mrf.mxu0  ;;  %18197 = vmatprep.subr.bf16.mxu0 %v19328_v15 }
 0x30b   :  { %v5210_v17 = vadd.f32 %v5003_v53, %v21528_v57  ;;  %v21742_v23 = vadd.f32 %v17909_v19, %v5212_v42  ;;  %v19295_v53 = vld [vmem:[#allocation2 + $0x1c4] sm:$0xff]   ;;  %18198 = vmatpush3.bf16.msra.mxu0 %v19328_v15 }
 0x30c   :  { %v17830_v6 = vpop.f32.mrf.mxu1  ;;  %v21750_v37 = vpop.f32.mrf.mxu0 }
 0x30d   :  { %v5213_v29 = vadd.f32 %v17830_v6, %v21531_v28  ;;  %v21745_v33 = vadd.f32 %v5678_v32, %v5210_v17  ;;  %v19293_v32 = vld [vmem:[#allocation2 + $0x1c0] sm:$0xff]   ;;  %v19298_v6 = vld [vmem:[#allocation2 + $0x1cc] sm:$0xff]  }
 0x30e   :  { %v5006_v51 = vpop.f32.mrf.mxu1  ;;  %v17913_v52 = vpop.f32.mrf.mxu0  ;;  %18104 = vmatmul.mubr.bf16.gmra.mxu0 %v19289_v16 }
 0x30f   :  { %v21753_v57 = vadd.f32 %v5006_v51, %v21534_v26  ;;  %v21755_v61 = vadd.f32 %v17910_v50, %v5213_v29  ;;  %18107 = vmatprep.mubr.bf16.mxu0 %v19294_v12  ;;  %v19296_v26 = vld [vmem:[#allocation2 + $0x1c8] sm:$0xff]  }
 0x310   :  { %v17833_v19 = vpop.f32.mrf.mxu1  ;;  %18024 = vmatmul.mubr.bf16.gmra.mxu1 %v19290_v22  ;;  %v5694_v20 = vpop.f32.mrf.mxu0 }
 0x311   :  { %v5216_v28 = vadd.f32 %v17833_v19, %v21537_v62  ;;  %18027 = vmatprep.mubr.bf16.mxu1 %v19291_v45 }
 0x312   :  { %v5019_v42 = vpop.f32.mrf.mxu1  ;;  %v17914_v29 = vpop.f32.mrf.mxu0 }
 0x313   :  { %v5214_v17 = vadd.f32 %v5019_v42, %v21540_v60  ;;  %v21759_v50 = vadd.f32 %v17913_v52, %v5216_v28  ;;  %v19300_v42 = vld [vmem:[#allocation2 + $0x1d4] sm:$0xff]  }
 0x314   :  { %v17834_v51 = vpop.f32.mrf.mxu1  ;;  %v21764_v62 = vpop.f32.mrf.mxu0 }
 0x315   :  { %v5217_v16 = vadd.f32 %v17834_v51, %v21543_v47  ;;  %v21762_v22 = vadd.f32 %v5694_v20, %v5214_v17  ;;  %24942 = vst [vmem:[#allocation91_spill] sm:$0xff] %v21764_v62  ;;  %v19297_v20 = vld [vmem:[#allocation2 + $0x1d0] sm:$0xff]  }
 0x316   :  { %v5022_v45 = vpop.f32.mrf.mxu1  ;;  %v17917_v15 = vpop.f32.mrf.mxu0  ;;  %18108 = vmatmul.mubr.bf16.gmra.mxu0 %v19295_v53 }
 0x317   :  { %v21767_v12 = vadd.f32 %v5022_v45, %v21546_v10  ;;  %v21769_v19 = vadd.f32 %v17914_v29, %v5217_v16  ;;  %18111 = vmatprep.mubr.bf16.mxu0 %v19298_v6  ;;  %v19299_v16 = vld [vmem:[#allocation2 + $0x58] sm:$0xff]  }
 0x318   :  { %v17837_v60 = vpop.f32.mrf.mxu1  ;;  %18028 = vmatmul.mubr.bf16.gmra.mxu1 %v19293_v32  ;;  %v5710_v28 = vpop.f32.mrf.mxu0 }
 0x319   :  { %v5220_v52 = vadd.f32 %v17837_v60, %v21549_v55  ;;  %18031 = vmatprep.mubr.bf16.mxu1 %v19296_v26  ;;  %v19332_v55 = vld [vmem:[%s24715_s7 + $0x68] sm:$0xff]  }
 0x31a   :  { %v5035_v47 = vpop.f32.mrf.mxu1  ;;  %v17918_v10 = vpop.f32.mrf.mxu0  ;;  %18199 = vmatprep.subr.bf16.mxu0 %v19332_v55 }
 0x31b   :  { %v5218_v17 = vadd.f32 %v5035_v47, %v21552_v35  ;;  %v21773_v51 = vadd.f32 %v17917_v15, %v5220_v52  ;;  %18200 = vmatpush3.bf16.msra.mxu0 %v19332_v55 }
 0x31c   :  { %v17838_v45 = vpop.f32.mrf.mxu1  ;;  %v21781_v32 = vpop.f32.mrf.mxu0 }
 0x31d   :  { %v5221_v29 = vadd.f32 %v17838_v45, %v21555_v56  ;;  %v21776_v62 = vadd.f32 %v5710_v28, %v5218_v17  ;;  %24943 = vst [vmem:[#allocation92_spill] sm:$0xff] %v21781_v32  ;;  %v19301_v45 = vld [vmem:[#allocation2 + $0x60] sm:$0xff]  }
 0x31e   :  { %v5038_v53 = vpop.f32.mrf.mxu1  ;;  %v17921_v6 = vpop.f32.mrf.mxu0  ;;  %18112 = vmatmul.mubr.bf16.gmra.mxu0 %v19300_v42 }
 0x31f   :  { %v21784_v26 = vadd.f32 %v5038_v53, %v21558_v4  ;;  %v21786_v35 = vadd.f32 %v17918_v10, %v5221_v29  ;;  %v19302_v29 = vld [vmem:[#allocation2 + $0x68] sm:$0xff]  }
 0x320   :  { %v17841_v15 = vpop.f32.mrf.mxu1  ;;  %18032 = vmatmul.mubr.bf16.gmra.mxu1 %v19297_v20  ;;  %v5726_v60 = vpop.f32.mrf.mxu0 }
 0x321   :  { %24944 = vst [vmem:[#allocation93_spill] sm:$0xff] %v21784_v26  ;;  %v5224_v56 = vadd.f32 %v17841_v15, %v21561_v41  ;;  %18131 = vmatprep.mubr.bf16.mxu1 %v19299_v16 }
 0x322   :  { %v5051_v52 = vpop.f32.mrf.mxu1  ;;  %v17922_v17 = vpop.f32.mrf.mxu0 }
 0x323   :  { %v5222_v28 = vadd.f32 %v5051_v52, %v21564_v0  ;;  %v21790_v47 = vadd.f32 %v17921_v6, %v5224_v56 }
 0x324   :  { %v17842_v4 = vpop.f32.mrf.mxu1  ;;  %v21795_v20 = vpop.f32.mrf.mxu0 }
 0x325   :  { %v5225_v10 = vadd.f32 %v17842_v4, %v21570_v49  ;;  %v21793_v53 = vadd.f32 %v5726_v60, %v5222_v28  ;;  %24945 = vst [vmem:[#allocation94_spill] sm:$0xff] %v21795_v20  ;;  %v19303_v4 = vld [vmem:[#allocation2 + $0x70] sm:$0xff]  }
 0x326   :  { %v5054_v42 = vpop.f32.mrf.mxu1  ;;  %v17925_v55 = vpop.f32.mrf.mxu0 }
 0x327   :  { %v21798_v41 = vadd.f32 %v5054_v42, %v21574_v8  ;;  %v21800_v16 = vadd.f32 %v17922_v17, %v5225_v10  ;;  %v19304_v42 = vld [vmem:[#allocation2 + $0x80] sm:$0xff]  }
 0x328   :  { %v17845_v0 = vpop.f32.mrf.mxu1  ;;  %18132 = vmatmul.mubr.bf16.vlgmr.msra.gmra.mxu1 %v19301_v45  ;;  %v5742_v15 = vpop.f32.mrf.mxu0  ;;  %v19335_v45 = vld [vmem:[%s24715_s7 + $0x60] sm:$0xff]  }
 0x329   :  { %24946 = vst [vmem:[#allocation95_spill] sm:$0xff] %v21798_v41  ;;  %v5228_v6 = vadd.f32 %v17845_v0, %v21580_v58  ;;  %18135 = vmatprep.mubr.bf16.mxu1 %v19302_v29  ;;  %18201 = vmatprep.subr.bf16.mxu0 %v19335_v45  ;;  %v24954_v41 = vld [vmem:[#allocation75_spill] sm:$0xff] }
 0x32a   :  { %v5067_v56 = vpop.f32.mrf.mxu1  ;;  %v17926_v52 = vpop.f32.mrf.mxu0  ;;  %18202 = vmatpush3.bf16.msra.mxu0 %v19335_v45  ;;  %v24950_v45 = vld [vmem:[#allocation72_spill] sm:$0xff] }
 0x32b   :  { %v5226_v49 = vadd.f32 %v5067_v56, %v21583_v31  ;;  %v21804_v60 = vadd.f32 %v17925_v55, %v5228_v6 }
 0x32c   :  { %v17846_v28 = vpop.f32.mrf.mxu1  ;;  %v21812_v58 = vpop.f32.mrf.mxu0 }
 0x32d   :  { %v5229_v8 = vadd.f32 %v17846_v28, %v21589_v14  ;;  %v21807_v17 = vadd.f32 %v5742_v15, %v5226_v49  ;;  %24947 = vst [vmem:[#allocation96_spill] sm:$0xff] %v21812_v58 }
 0x32e   :  { %v5070_v10 = vpop.f32.mrf.mxu1  ;;  %v17929_v55 = vpop.f32.mrf.mxu0 }
 0x32f   :  { %v21815_v29 = vadd.f32 %v5070_v10, %v21592_v40  ;;  %v21817_v31 = vadd.f32 %v17926_v52, %v5229_v8 }
 0x330   :  { %v17849_v0 = vpop.f32.mrf.mxu1  ;;  %18136 = vmatmul.mubr.bf16.gmra.mxu1 %v19303_v4  ;;  %v5758_v6 = vpop.f32.mrf.mxu0  ;;  %v19305_v4 = vld [vmem:[#allocation2 + $0x88] sm:$0xff]  }
 0x331   :  { %24948 = vst [vmem:[#allocation97_spill] sm:$0xff] %v21815_v29  ;;  %v5232_v14 = vadd.f32 %v17849_v0, %v21598_v39  ;;  %18139 = vmatprep.mubr.bf16.mxu1 %v19304_v42  ;;  %v19306_v39 = vld [vmem:[#allocation2 + $0x90] sm:$0xff]  }
 0x332   :  { %v5083_v15 = vpop.f32.mrf.mxu1  ;;  %v17930_v28 = vpop.f32.mrf.mxu0 }
 0x333   :  { %v5230_v56 = vadd.f32 %v5083_v15, %v21601_v25  ;;  %v21821_v49 = vadd.f32 %v17929_v55, %v5232_v14  ;;  %v24952_v55 = vld [vmem:[#allocation73_spill] sm:$0xff] }
 0x334   :  { %v17850_v58 = vpop.f32.mrf.mxu1  ;;  %v21826_v8 = vpop.f32.mrf.mxu0 }
 0x335   :  { %v5233_v40 = vadd.f32 %v17850_v58, %v21607_v44  ;;  %v21824_v52 = vadd.f32 %v5758_v6, %v5230_v56  ;;  %24949 = vst [vmem:[#allocation98_spill] sm:$0xff] %v21826_v8  ;;  %v24953_v58 = vld [vmem:[#allocation74_spill] sm:$0xff] }
 0x336   :  { %v5086_v10 = vpop.f32.mrf.mxu1  ;;  %v17933_v0 = vpop.f32.mrf.mxu0 }
 0x337   :  { %v21829_v29 = vadd.f32 %v5086_v10, %v24950_v45  ;;  %v21831_v42 = vadd.f32 %v17930_v28, %v5233_v40  ;;  %v19336_v28 = vld [vmem:[%s24715_s7 + $0x58] sm:$0xff]  }
 0x338   :  { %v17853_v25 = vpop.f32.mrf.mxu1  ;;  %18140 = vmatmul.mubr.bf16.gmra.mxu1 %v19305_v4  ;;  %v5774_v15 = vpop.f32.mrf.mxu0  ;;  %18203 = vmatprep.subr.bf16.mxu0 %v19336_v28 }
 0x339   :  { %24951 = vst [vmem:[#allocation72_spill] sm:$0xff] %v21829_v29  ;;  %v5236_v14 = vadd.f32 %v17853_v25, %v24952_v55  ;;  %18143 = vmatprep.mubr.bf16.mxu1 %v19306_v39  ;;  %v19307_v39 = vld [vmem:[#allocation2 + $0x98] sm:$0xff]   ;;  %v24957_v25 = vld [vmem:[#allocation76_spill] sm:$0xff]  ;;  %18204 = vmatpush3.bf16.msra.mxu0 %v19336_v28  ;;  %v24961_v29 = vld [vmem:[#allocation78_spill] sm:$0xff] }
 0x33a   :  { %v5099_v44 = vpop.f32.mrf.mxu1  ;;  %v17934_v8 = vpop.f32.mrf.mxu0  ;;  %v24966_v28 = vld [vmem:[#allocation80_spill] sm:$0xff] }
 0x33b   :  { %v5234_v6 = vadd.f32 %v5099_v44, %v24953_v58  ;;  %v21835_v56 = vadd.f32 %v17933_v0, %v5236_v14  ;;  %v19308_v44 = vld [vmem:[#allocation2 + $0xa8] sm:$0xff]  }
 0x33c   :  { %v17854_v20 = vpop.f32.mrf.mxu1  ;;  %v21843_v40 = vpop.f32.mrf.mxu0 }
 0x33d   :  { %v5237_v10 = vadd.f32 %v17854_v20, %v24954_v41  ;;  %v21838_v45 = vadd.f32 %v5774_v15, %v5234_v6  ;;  %24956 = vst [vmem:[#allocation74_spill] sm:$0xff] %v21843_v40  ;;  %v24960_v20 = vld [vmem:[#allocation77_spill] sm:$0xff] }
 0x33e   :  { %v5102_v4 = vpop.f32.mrf.mxu1  ;;  %v17937_v14 = vpop.f32.mrf.mxu0 }
 0x33f   :  { %24955 = vst [vmem:[#allocation73_spill] sm:$0xff] %v21838_v45  ;;  %v21846_v55 = vadd.f32 %v5102_v4, %v24957_v25  ;;  %v21848_v0 = vadd.f32 %v17934_v8, %v5237_v10  ;;  %v24963_v25 = vld [vmem:[#allocation79_spill] sm:$0xff] }
 0x340   :  { %v17857_v58 = vpop.f32.mrf.mxu1  ;;  %18144 = vmatmul.mubr.bf16.gmra.mxu1 %v19307_v39  ;;  %v5790_v15 = vpop.f32.mrf.mxu0  ;;  %v19309_v39 = vld [vmem:[#allocation2 + $0xb0] sm:$0xff]  }
 0x341   :  { %24958 = vst [vmem:[#allocation75_spill] sm:$0xff] %v21846_v55  ;;  %24959 = vst [vmem:[#allocation76_spill] sm:$0xff] %v21848_v0  ;;  %v5240_v41 = vadd.f32 %v17857_v58, %v24960_v20  ;;  %18147 = vmatprep.mubr.bf16.mxu1 %v19308_v44  ;;  %v19310_v44 = vld [vmem:[#allocation2 + $0xb8] sm:$0xff]  }
 0x342   :  { %v5115_v6 = vpop.f32.mrf.mxu1  ;;  %v17938_v26 = vpop.f32.mrf.mxu0 }
 0x343   :  { %v5238_v40 = vadd.f32 %v5115_v6, %v24961_v29  ;;  %v21852_v32 = vadd.f32 %v17937_v14, %v5240_v41  ;;  %v24968_v14 = vld [vmem:[#allocation81_spill] sm:$0xff] }
 0x344   :  { %v17858_v4 = vpop.f32.mrf.mxu1  ;;  %v21857_v10 = vpop.f32.mrf.mxu0 }
 0x345   :  { %24962 = vst [vmem:[#allocation77_spill] sm:$0xff] %v21852_v32  ;;  %v5241_v55 = vadd.f32 %v17858_v4, %v24963_v25  ;;  %v21855_v8 = vadd.f32 %v5790_v15, %v5238_v40  ;;  %24965 = vst [vmem:[#allocation79_spill] sm:$0xff] %v21857_v10  ;;  %v24969_v40 = vld [vmem:[#allocation82_spill] sm:$0xff]  ;;  %v24971_v32 = vld [vmem:[#allocation83_spill] sm:$0xff] }
 0x346   :  { %v5118_v0 = vpop.f32.mrf.mxu1  ;;  %v17941_v20 = vpop.f32.mrf.mxu0 }
 0x347   :  { %24964 = vst [vmem:[#allocation78_spill] sm:$0xff] %v21855_v8  ;;  %v21860_v45 = vadd.f32 %v5118_v0, %v24966_v28  ;;  %v21862_v58 = vadd.f32 %v17938_v26, %v5241_v55  ;;  %v19312_v28 = vld [vmem:[#allocation2 + $0xd0] sm:$0xff]  }
 0x348   :  { %v17861_v29 = vpop.f32.mrf.mxu1  ;;  %18148 = vmatmul.mubr.bf16.gmra.mxu1 %v19309_v39  ;;  %v5806_v6 = vpop.f32.mrf.mxu0  ;;  %v19337_v26 = vld [vmem:[%s24715_s7 + $0x50] sm:$0xff]  }
 0x349   :  { %24967 = vst [vmem:[#allocation80_spill] sm:$0xff] %v21860_v45  ;;  %v5244_v41 = vadd.f32 %v17861_v29, %v24968_v14  ;;  %18151 = vmatprep.mubr.bf16.mxu1 %v19310_v44  ;;  %v19311_v44 = vld [vmem:[#allocation2 + $0xc0] sm:$0xff]   ;;  %18205 = vmatprep.subr.bf16.mxu0 %v19337_v26 }
 0x34a   :  { %v5131_v4 = vpop.f32.mrf.mxu1  ;;  %v17942_v10 = vpop.f32.mrf.mxu0  ;;  %18206 = vmatpush3.bf16.msra.mxu0 %v19337_v26 }
 0x34b   :  { %v5242_v15 = vadd.f32 %v5131_v4, %v24969_v40  ;;  %v21866_v25 = vadd.f32 %v17941_v20, %v5244_v41  ;;  %v24977_v40 = vld [vmem:[#allocation85_spill] sm:$0xff] }
 0x34c   :  { %v17862_v8 = vpop.f32.mrf.mxu1  ;;  %v21874_v55 = vpop.f32.mrf.mxu0 }
 0x34d   :  { %24970 = vst [vmem:[#allocation81_spill] sm:$0xff] %v21866_v25  ;;  %v5245_v0 = vadd.f32 %v17862_v8, %v24971_v32  ;;  %v21869_v45 = vadd.f32 %v5806_v6, %v5242_v15  ;;  %24973 = vst [vmem:[#allocation83_spill] sm:$0xff] %v21874_v55  ;;  %v24976_v32 = vld [vmem:[#allocation84_spill] sm:$0xff] }
 0x34e   :  { %v5134_v39 = vpop.f32.mrf.mxu1  ;;  %v17945_v14 = vpop.f32.mrf.mxu0 }
 0x34f   :  { %24972 = vst [vmem:[#allocation82_spill] sm:$0xff] %v21869_v45  ;;  %v21877_v29 = vadd.f32 %v5134_v39, %v21652_v1  ;;  %v21879_v20 = vadd.f32 %v17942_v10, %v5245_v0  ;;  %v19313_v1 = vld [vmem:[#allocation2 + $0xd8] sm:$0xff]   ;;  %v24978_v39 = vld [vmem:[#allocation86_spill] sm:$0xff]  ;;  %v19314_v0 = vld [vmem:[#allocation2 + $0xe0] sm:$0xff]  }
 0x350   :  { %v17865_v41 = vpop.f32.mrf.mxu1  ;;  %18152 = vmatmul.mubr.bf16.gmra.mxu1 %v19311_v44  ;;  %v5822_v6 = vpop.f32.mrf.mxu0  ;;  %v24980_v44 = vld [vmem:[#allocation87_spill] sm:$0xff] }
 0x351   :  { %24974 = vst [vmem:[#allocation99_spill] sm:$0xff] %v21877_v29  ;;  %24975 = vst [vmem:[#allocation100_spill] sm:$0xff] %v21879_v20  ;;  %v5248_v8 = vadd.f32 %v17865_v41, %v24976_v32  ;;  %18155 = vmatprep.mubr.bf16.mxu1 %v19312_v28 }
 0x352   :  { %v5147_v4 = vpop.f32.mrf.mxu1  ;;  %v17946_v45 = vpop.f32.mrf.mxu0 }
 0x353   :  { %v5246_v15 = vadd.f32 %v5147_v4, %v24977_v40  ;;  %v21883_v55 = vadd.f32 %v17945_v14, %v5248_v8  ;;  %v19338_v14 = vld [vmem:[%s24715_s7 + $0x38] sm:$0xff]  }
 0x354   :  { %v17866_v25 = vpop.f32.mrf.mxu1  ;;  %v21888_v20 = vpop.f32.mrf.mxu0  ;;  %18275 = vmatprep.subr.bf16.mxu1 %v19338_v14 }
 0x355   :  { %v5249_v10 = vadd.f32 %v17866_v25, %v24978_v39  ;;  %v21886_v29 = vadd.f32 %v5822_v6, %v5246_v15  ;;  %24979 = vst [vmem:[#allocation84_spill] sm:$0xff] %v21888_v20  ;;  %18276 = vmatpush3.bf16.msra.mxu1 %v19338_v14  ;;  %v24983_v14 = vld [vmem:[#allocation89_spill] sm:$0xff] }
 0x356   :  { %v5150_v26 = vpop.f32.mrf.mxu1  ;;  %v17949_v32 = vpop.f32.mrf.mxu0 }
 0x357   :  { %v21891_v41 = vadd.f32 %v5150_v26, %v24980_v44  ;;  %v21893_v28 = vadd.f32 %v17946_v45, %v5249_v10  ;;  %v19339_v45 = vld [vmem:[%s24715_s7 + $0x30] sm:$0xff]   ;;  %v19315_v26 = vld [vmem:[#allocation2 + $0xe8] sm:$0xff]   ;;  %v24981_v44 = vld [vmem:[#allocation88_spill] sm:$0xff] }
 0x358   :  { %v17869_v8 = vpop.f32.mrf.mxu1  ;;  %18156 = vmatmul.mubr.bf16.gmra.mxu1 %v19313_v1  ;;  %v5838_v6 = vpop.f32.mrf.mxu0  ;;  %18277 = vmatprep.subr.bf16.mxu1 %v19339_v45 }
 0x359   :  { %v5252_v25 = vadd.f32 %v17869_v8, %v21667_v18  ;;  %18159 = vmatprep.mubr.bf16.mxu1 %v19314_v0  ;;  %v19340_v18 = vld [vmem:[%s24715_s7 + $0x48] sm:$0xff]   ;;  %18278 = vmatpush3.bf16.msra.mxu1 %v19339_v45 }
 0x35a   :  { %v5163_v4 = vpop.f32.mrf.mxu1  ;;  %v17950_v39 = vpop.f32.mrf.mxu0  ;;  %v19316_v8 = vld [vmem:[#allocation2 + $0x148] sm:$0xff]   ;;  %18207 = vmatprep.subr.bf16.mxu0 %v19340_v18 }
 0x35b   :  { %v5250_v40 = vadd.f32 %v5163_v4, %v21670_v13  ;;  %v21900_v15 = vadd.f32 %v17949_v32, %v5252_v25  ;;  %18208 = vmatpush3.bf16.msra.mxu0 %v19340_v18 }
 0x35c   :  { %v17870_v10 = vpop.f32.mrf.mxu1  ;;  %v21911_v0 = vpop.f32.mrf.mxu0 }
 0x35d   :  { %v5253_v1 = vadd.f32 %v17870_v10, %v24981_v44  ;;  %v21906_v20 = vadd.f32 %v5838_v6, %v5250_v40  ;;  %24982 = vst [vmem:[#allocation85_spill] sm:$0xff] %v21911_v0  ;;  %v19341_v6 = vld [vmem:[%s24715_s7 + $0x28] sm:$0xff]  }
 0x35e   :  { %v5166_v13 = vpop.f32.mrf.mxu1  ;;  %v17953_v4 = vpop.f32.mrf.mxu0  ;;  %18279 = vmatprep.subr.bf16.mxu1 %v19341_v6 }
 0x35f   :  { %v21914_v32 = vadd.f32 %v5166_v13, %v24983_v14  ;;  %v21916_v25 = vadd.f32 %v17950_v39, %v5253_v1  ;;  %18280 = vmatpush3.bf16.msra.mxu1 %v19341_v6  ;;  %v19342_v1 = vld [vmem:[%s24715_s7 + $0x20] sm:$0xff]   ;;  %v19318_v6 = vld [vmem:[#allocation2 + $0x158] sm:$0xff]  }
 0x360   :  { %v17873_v40 = vpop.f32.mrf.mxu1  ;;  %18160 = vmatmul.mubr.bf16.gmra.mxu1 %v19315_v26  ;;  %v5854_v45 = vpop.f32.mrf.mxu0  ;;  %18281 = vmatprep.subr.bf16.mxu1 %v19342_v1 }
 0x361   :  { %v5256_v10 = vadd.f32 %v17873_v40, %v21679_v2  ;;  %18163 = vmatprep.mubr.bf16.mxu1 %v19316_v8  ;;  %v19317_v40 = vld [vmem:[#allocation2 + $0x150] sm:$0xff]  }
 0x362   :  { %v5179_v44 = vpop.f32.mrf.mxu1  ;;  %v17954_v14 = vpop.f32.mrf.mxu0 }
 0x363   :  { %v5254_v13 = vadd.f32 %v5179_v44, %v21682_v7  ;;  %v21923_v39 = vadd.f32 %v17953_v4, %v5256_v10  ;;  %18282 = vmatpush3.bf16.msra.mxu1 %v19342_v1  ;;  %v19343_v10 = vld [vmem:[%s24715_s7 + $0x18] sm:$0xff]  }
 0x364   :  { %v17874_v0 = vpop.f32.mrf.mxu1  ;;  %v21931_v2 = vpop.f32.mrf.mxu0  ;;  %18283 = vmatprep.subr.bf16.mxu1 %v19343_v10 }
 0x365   :  { %v5257_v26 = vadd.f32 %v17874_v0, %v21685_v38  ;;  %v21929_v18 = vadd.f32 %v5854_v45, %v5254_v13 }
 0x366   :  { %v5182_v8 = vpop.f32.mrf.mxu1  ;;  %v21941_v44 = vpop.f32.mrf.mxu0 }
 0x367   :  { %24984 = vst [vmem:[#allocation86_spill] sm:$0xff] %v21929_v18  ;;  %v21934_v7 = vadd.f32 %v5182_v8, %v21688_v36  ;;  %v21936_v4 = vadd.f32 %v17954_v14, %v5257_v26  ;;  %18284 = vmatpush3.bf16.msra.mxu1 %v19343_v10 }
 0x368   :  { %v17973_v38 = vpop.f32.mrf.mxu1  ;;  %18164 = vmatmul.mubr.bf16.gmra.mxu1 %v19317_v40  ;;  %v21946_v45 = vpop.f32.mrf.mxu0 }
 0x369   :  { %24985 = vst [vmem:[#allocation87_spill] sm:$0xff] %v21936_v4  ;;  %v21944_v0 = vadd.f32 %v17973_v38, %v21691_v30  ;;  %18167 = vmatprep.mubr.bf16.mxu1 %v19318_v6  ;;  %v19319_v30 = vld [vmem:[#allocation2 + $0x160] sm:$0xff]   ;;  %v19320_v38 = vld [vmem:[#allocation2 + $0x170] sm:$0xff]  }
 0x36a   :  { %v6289_v36 = vpop.f32.mrf.mxu1  ;;  %v21951_v1 = vpop.f32.mrf.mxu0 }
 0x36b   :  { %v21949_v13 = vadd.f32 %v6289_v36, %v21694_v59 }
 0x36c   :  { %v17974_v14 = vpop.f32.mrf.mxu1  ;;  %v21956_v8 = vpop.f32.mrf.mxu0 }
 0x36d   :  { %v21954_v26 = vadd.f32 %v17974_v14, %v21697_v63  ;;  %24986 = vst [vmem:[#allocation88_spill] sm:$0xff] %v21956_v8 }
 0x36e   :  { %v6292_v40 = vpop.f32.mrf.mxu1  ;;  %v21961_v4 = vpop.f32.mrf.mxu0 }
 0x36f   :  { %v21959_v6 = vadd.f32 %v6292_v40, %v21700_v46  ;;  %24988 = vst [vmem:[#allocation101_spill] sm:$0xff] %v21961_v4  ;;  %v24991_v46 = vld [vmem:[#allocation90_spill] sm:$0xff] }
 0x370   :  { %v17977_v10 = vpop.f32.mrf.mxu1  ;;  %18168 = vmatmul.mubr.bf16.gmra.mxu1 %v19319_v30  ;;  %v21966_v36 = vpop.f32.mrf.mxu0  ;;  %v19321_v30 = vld [vmem:[#allocation2 + $0x178] sm:$0xff]  }
 0x371   :  { %24987 = vst [vmem:[#allocation89_spill] sm:$0xff] %v21959_v6  ;;  %v21964_v59 = vadd.f32 %v17977_v10, %v21703_v48  ;;  %18171 = vmatprep.mubr.bf16.mxu1 %v19320_v38  ;;  %24989 = vst [vmem:[#allocation102_spill] sm:$0xff] %v21966_v36  ;;  %v19322_v38 = vld [vmem:[#allocation2 + $0x180] sm:$0xff]  }
 0x372   :  { %v6305_v63 = vpop.f32.mrf.mxu1  ;;  %v21971_v18 = vpop.f32.mrf.mxu0 }
 0x373   :  { %v21969_v14 = vadd.f32 %v6305_v63, %v21706_v54  ;;  %24990 = vst [vmem:[#allocation103_spill] sm:$0xff] %v21971_v18 }
 0x374   :  { %v17978_v8 = vpop.f32.mrf.mxu1  ;;  %v21976_v6 = vpop.f32.mrf.mxu0 }
 0x375   :  { %v21974_v40 = vadd.f32 %v17978_v8, %v24991_v46  ;;  %24992 = vst [vmem:[#allocation90_spill] sm:$0xff] %v21976_v6 }
 0x376   :  { %v6308_v4 = vpop.f32.mrf.mxu1  ;;  %v21981_v10 = vpop.f32.mrf.mxu0 }
 0x377   :  { %v21979_v48 = vadd.f32 %v6308_v4, %v21712_v11  ;;  %24993 = vst [vmem:[#allocation104_spill] sm:$0xff] %v21981_v10 }
 0x378   :  { %v17981_v36 = vpop.f32.mrf.mxu1  ;;  %18172 = vmatmul.mubr.bf16.gmra.mxu1 %v19321_v30  ;;  %v21986_v63 = vpop.f32.mrf.mxu0  ;;  %v19324_v30 = vld [vmem:[#allocation2 + $0x188] sm:$0xff]  }
 0x379   :  { %v21984_v54 = vadd.f32 %v17981_v36, %v21715_v43  ;;  %18175 = vmatprep.mubr.bf16.mxu1 %v19322_v38  ;;  %v19344_v43 = vld [vmem:[%s24715_s7 + $0x10] sm:$0xff]   ;;  %v19325_v38 = vld [vmem:[#allocation2 + $0x198] sm:$0xff]  }
 0x37a   :  { %v6321_v8 = vpop.f32.mrf.mxu1  ;;  %v21991_v6 = vpop.f32.mrf.mxu0  ;;  %18285 = vmatprep.subr.bf16.mxu1 %v19344_v43 }
 0x37b   :  { %v21989_v46 = vadd.f32 %v6321_v8, %v21718_v24  ;;  %24994 = vst [vmem:[#allocation105_spill] sm:$0xff] %v21991_v6  ;;  %18286 = vmatpush3.bf16.msra.mxu1 %v19344_v43 }
 0x37c   :  { %v17982_v18 = vpop.f32.mrf.mxu1  ;;  %v21996_v4 = vpop.f32.mrf.mxu0 }
 0x37d   :  { %v21994_v11 = vadd.f32 %v17982_v18, %v21724_v34  ;;  %24995 = vst [vmem:[#allocation106_spill] sm:$0xff] %v21996_v4  ;;  %v19345_v18 = vld [vmem:[%s24715_s7 + $0x40] sm:$0xff]  }
 0x37e   :  { %v6324_v10 = vpop.f32.mrf.mxu1  ;;  %v22004_v24 = vpop.f32.mrf.mxu0  ;;  %18209 = vmatprep.subr.bf16.mxu0 %v19345_v18 }
 0x37f   :  { %v22002_v36 = vadd.f32 %v6324_v10, %v21727_v27  ;;  %24996 = vst [vmem:[#allocation107_spill] sm:$0xff] %v22004_v24  ;;  %v19346_v10 = vld [vmem:[%s24715_s7 + $0x8] sm:$0xff]   ;;  %18210 = vmatpush3.bf16.msra.mxu0 %v19345_v18 }
 0x380   :  { %v17985_v8 = vpop.f32.mrf.mxu1  ;;  %18176 = vmatmul.mubr.bf16.gmra.mxu1 %v19324_v30  ;;  %v22012_v4 = vpop.f32.mrf.mxu0  ;;  %18287 = vmatprep.subr.bf16.mxu1 %v19346_v10 }
 0x381   :  { %v22007_v34 = vadd.f32 %v17985_v8, %v21730_v3  ;;  %18179 = vmatprep.mubr.bf16.mxu1 %v19325_v38  ;;  %24997 = vst [vmem:[#allocation108_spill] sm:$0xff] %v22012_v4  ;;  %v19326_v4 = vld [vmem:[#allocation2 + $0x1a0] sm:$0xff]   ;;  %18288 = vmatpush3.bf16.msra.mxu1 %v19346_v10 }
 0x382   :  { %v6337_v6 = vpop.f32.mrf.mxu1  ;;  %v22020_v30 = vpop.f32.mrf.mxu0 }
 0x383   :  { %v22015_v27 = vadd.f32 %v6337_v6, %v21733_v21  ;;  %24999 = vst [vmem:[#allocation110_spill] sm:$0xff] %v22020_v30  ;;  %v19327_v6 = vld [vmem:[#allocation2 + $0x1a8] sm:$0xff]  }
 0x384   :  { %v17986_v3 = vpop.f32.mrf.mxu1  ;;  %v22025_v43 = vpop.f32.mrf.mxu0 }
 0x385   :  { %24998 = vst [vmem:[#allocation109_spill] sm:$0xff] %v22015_v27  ;;  %v22023_v38 = vadd.f32 %v17986_v3, %v21736_v9  ;;  %25000 = vst [vmem:[#allocation111_spill] sm:$0xff] %v22025_v43 }
 0x386   :  { %v6340_v8 = vpop.f32.mrf.mxu1  ;;  %v22030_v27 = vpop.f32.mrf.mxu0 }
 0x387   :  { %v22028_v21 = vadd.f32 %v6340_v8, %v21739_v5  ;;  %v5886_v8 = vadd.f32 %v21750_v37, %v21753_v57 }
 0x388   :  { %v17989_v24 = vpop.f32.mrf.mxu1  ;;  %18180 = vmatmul.mubr.bf16.gmra.mxu1 %v19326_v4  ;;  %v22035_v9 = vpop.f32.mrf.mxu0  ;;  %v19330_v4 = vld [vmem:[#allocation2 + $0x1c0] sm:$0xff]  }
 0x389   :  { %v22033_v30 = vadd.f32 %v17989_v24, %v21742_v23  ;;  %18183 = vmatprep.mubr.bf16.mxu1 %v19327_v6  ;;  %25001 = vst [vmem:[#allocation112_spill] sm:$0xff] %v22035_v9  ;;  %v19347_v23 = vld [vmem:[%s24715_s7] sm:$0xff]   ;;  %v19329_v9 = vld [vmem:[#allocation2 + $0x1b0] sm:$0xff]  }
 0x38a   :  { %v6353_v18 = vpop.f32.mrf.mxu1  ;;  %v22040_v43 = vpop.f32.mrf.mxu0  ;;  %18289 = vmatprep.subr.bf16.mxu1 %v19347_v23 }
 0x38b   :  { %v22038_v3 = vadd.f32 %v6353_v18, %v21745_v33  ;;  %25002 = vst [vmem:[#allocation113_spill] sm:$0xff] %v22040_v43  ;;  %18290 = vmatpush3.bf16.msra.mxu1 %v19347_v23  ;;  %v19348_v23 = vld [vmem:[#allocation3 + $0x4] sm:$0xff]  }
 0x38c   :  { %v17990_v10 = vpop.f32.mrf.mxu1  ;;  %v22050_v24 = vpop.f32.mrf.mxu0  ;;  %18211 = vmatprep.mubr.bf16.mxu0 %v19348_v23 }
 0x38d   :  { %v22043_v5 = vadd.f32 %v17990_v10, %v21755_v61  ;;  %25003 = vst [vmem:[#allocation114_spill] sm:$0xff] %v22050_v24 }
 0x38e   :  { %v6356_v6 = vpop.f32.mrf.mxu1  ;;  %v22054_v18 = vpop.f32.mrf.mxu0 }
 0x38f   :  { %v22052_v33 = vadd.f32 %v6356_v6, %v5886_v8  ;;  %25005 = vst [vmem:[#allocation116_spill] sm:$0xff] %v22054_v18  ;;  %v19331_v6 = vld [vmem:[#allocation2 + $0x1c8] sm:$0xff]  }
 0x390   :  { %v17993_v43 = vpop.f32.mrf.mxu1  ;;  %18184 = vmatmul.mubr.bf16.gmra.mxu1 %v19329_v9  ;;  %v22059_v37 = vpop.f32.mrf.mxu0  ;;  %v25009_v9 = vld [vmem:[#allocation91_spill] sm:$0xff] }
 0x391   :  { %25004 = vst [vmem:[#allocation115_spill] sm:$0xff] %v22052_v33  ;;  %v22057_v61 = vadd.f32 %v17993_v43, %v21759_v50  ;;  %18187 = vmatprep.mubr.bf16.mxu1 %v19330_v4  ;;  %25007 = vst [vmem:[#allocation118_spill] sm:$0xff] %v22059_v37  ;;  %v5890_v18 = vadd.f32 %v25009_v9, %v21767_v12  ;;  %v19333_v50 = vld [vmem:[#allocation2 + $0x1d0] sm:$0xff]  }
 0x392   :  { %v6369_v57 = vpop.f32.mrf.mxu1  ;;  %v22064_v24 = vpop.f32.mrf.mxu0  ;;  %v19350_v37 = vld [vmem:[#allocation3 + $0xc] sm:$0xff]  }
 0x393   :  { %25006 = vst [vmem:[#allocation117_spill] sm:$0xff] %v22057_v61  ;;  %v22062_v10 = vadd.f32 %v6369_v57, %v21762_v22  ;;  %25008 = vst [vmem:[#allocation119_spill] sm:$0xff] %v22064_v24  ;;  %18212 = vmatmul.mubr.bf16.vlgmr.msra.gmra.mxu0 %v19350_v37 }
 0x394   :  { %v17994_v8 = vpop.f32.mrf.mxu1  ;;  %v22071_v43 = vpop.f32.mrf.mxu0 }
 0x395   :  { %v22067_v33 = vadd.f32 %v17994_v8, %v21769_v19 }
 0x396   :  { %v6372_v4 = vpop.f32.mrf.mxu1  ;;  %v22075_v22 = vpop.f32.mrf.mxu0 }
 0x397   :  { %v22073_v61 = vadd.f32 %v6372_v4, %v5890_v18  ;;  %25010 = vst [vmem:[#allocation91_spill] sm:$0xff] %v22075_v22  ;;  %v19334_v4 = vld [vmem:[#allocation2 + $0x1d8] sm:$0xff]  }
 0x398   :  { %v17997_v57 = vpop.f32.mrf.mxu1  ;;  %18188 = vmatmul.mubr.bf16.gmra.mxu1 %v19331_v6  ;;  %v22080_v19 = vpop.f32.mrf.mxu0  ;;  %v19349_v6 = vld [vmem:[#allocation3] sm:$0xff]  }
 0x399   :  { %v22078_v24 = vadd.f32 %v17997_v57, %v21773_v51  ;;  %18191 = vmatprep.mubr.bf16.mxu1 %v19333_v50 }
 0x39a   :  { %v6385_v12 = vpop.f32.mrf.mxu1  ;;  %v22085_v9 = vpop.f32.mrf.mxu0 }
 0x39b   :  { %v22083_v8 = vadd.f32 %v6385_v12, %v21776_v62  ;;  %25011 = vst [vmem:[#allocation120_spill] sm:$0xff] %v22085_v9  ;;  %v19352_v62 = vld [vmem:[%s24715_s7 + $0xb8] sm:$0xff]   ;;  %v19351_v9 = vld [vmem:[#allocation3 + $0x8] sm:$0xff]  }
 0x39c   :  { %v17998_v18 = vpop.f32.mrf.mxu1  ;;  %v22090_v23 = vpop.f32.mrf.mxu0  ;;  %18355 = vmatprep.subr.bf16.mxu0 %v19352_v62 }
 0x39d   :  { %v22088_v22 = vadd.f32 %v17998_v18, %v21786_v35  ;;  %25013 = vst [vmem:[#allocation122_spill] sm:$0xff] %v22090_v23  ;;  %18356 = vmatpush3.bf16.msra.mxu0 %v19352_v62 }
 0x39e   :  { %v22092_v51 = vpop.f32.mrf.mxu1  ;;  %v22094_v50 = vpop.f32.mrf.mxu0 }
 0x39f   :  { %25012 = vst [vmem:[#allocation121_spill] sm:$0xff] %v22088_v22  ;;  %25014 = vst [vmem:[#allocation123_spill] sm:$0xff] %v22094_v50 }
 0x3a0   :  { %v18001_v37 = vpop.f32.mrf.mxu1  ;;  %18192 = vmatmul.mubr.bf16.gmra.mxu1 %v19334_v4  ;;  %v22102_v12 = vpop.f32.mrf.mxu0 }
 0x3a1   :  { %v22097_v57 = vadd.f32 %v18001_v37, %v21790_v47  ;;  %18291 = vmatprep.mubr.bf16.mxu1 %v19349_v6  ;;  %25016 = vst [vmem:[#allocation125_spill] sm:$0xff] %v22102_v12  ;;  %v19353_v37 = vld [vmem:[#allocation3 + $0x14] sm:$0xff]   ;;  %v19355_v12 = vld [vmem:[#allocation3 + $0x1c] sm:$0xff]  }
 0x3a2   :  { %v6401_v35 = vpop.f32.mrf.mxu1  ;;  %v22107_v23 = vpop.f32.mrf.mxu0  ;;  %18215 = vmatprep.mubr.bf16.mxu0 %v19353_v37 }
 0x3a3   :  { %25015 = vst [vmem:[#allocation124_spill] sm:$0xff] %v22097_v57  ;;  %v22105_v18 = vadd.f32 %v6401_v35, %v21793_v53  ;;  %25018 = vst [vmem:[#allocation127_spill] sm:$0xff] %v22107_v23  ;;  %v19354_v57 = vld [vmem:[#allocation3 + $0x10] sm:$0xff]   ;;  %18216 = vmatmul.mubr.bf16.gmra.mxu0 %v19355_v12 }
 0x3a4   :  { %v18002_v50 = vpop.f32.mrf.mxu1  ;;  %v22112_v4 = vpop.f32.mrf.mxu0 }
 0x3a5   :  { %25017 = vst [vmem:[#allocation126_spill] sm:$0xff] %v22105_v18  ;;  %v22110_v47 = vadd.f32 %v18002_v50, %v21800_v16  ;;  %25020 = vst [vmem:[#allocation129_spill] sm:$0xff] %v22112_v4 }
 0x3a6   :  { %v22114_v6 = vpop.f32.mrf.mxu1  ;;  %v22116_v22 = vpop.f32.mrf.mxu0 }
 0x3a7   :  { %25019 = vst [vmem:[#allocation128_spill] sm:$0xff] %v22110_v47  ;;  %25021 = vst [vmem:[#allocation130_spill] sm:$0xff] %v22116_v22  ;;  %v19356_v47 = vld [vmem:[#allocation3 + $0x18] sm:$0xff]  }
 0x3a8   :  { %v18005_v53 = vpop.f32.mrf.mxu1  ;;  %18292 = vmatmul.mubr.bf16.vlgmr.msra.gmra.mxu1 %v19351_v9  ;;  %v22121_v62 = vpop.f32.mrf.mxu0 }
 0x3a9   :  { %v22119_v35 = vadd.f32 %v18005_v53, %v21804_v60  ;;  %18295 = vmatprep.mubr.bf16.mxu1 %v19354_v57  ;;  %25023 = vst [vmem:[#allocation132_spill] sm:$0xff] %v22121_v62  ;;  %v25082_v62 = vld [vmem:[#allocation72_spill] sm:$0xff] }
 0x3aa   :  { %v6417_v16 = vpop.f32.mrf.mxu1  ;;  %v22126_v4 = vpop.f32.mrf.mxu0 }
 0x3ab   :  { %25022 = vst [vmem:[#allocation131_spill] sm:$0xff] %v22119_v35  ;;  %v22124_v50 = vadd.f32 %v6417_v16, %v21807_v17  ;;  %25025 = vst [vmem:[#allocation134_spill] sm:$0xff] %v22126_v4 }
 0x3ac   :  { %v18006_v23 = vpop.f32.mrf.mxu1  ;;  %v22131_v9 = vpop.f32.mrf.mxu0 }
 0x3ad   :  { %25024 = vst [vmem:[#allocation133_spill] sm:$0xff] %v22124_v50  ;;  %v22129_v22 = vadd.f32 %v18006_v23, %v21817_v31  ;;  %25027 = vst [vmem:[#allocation136_spill] sm:$0xff] %v22131_v9  ;;  %v25083_v50 = vld [vmem:[#allocation98_spill] sm:$0xff] }
 0x3ae   :  { %v22133_v60 = vpop.f32.mrf.mxu1  ;;  %v22135_v37 = vpop.f32.mrf.mxu0  ;;  %v5906_v35 = vadd.f32 %v25083_v50, %v25082_v62  ;;  %v5930_v50 = vadd.f32 %v21931_v2, %v21934_v7 }
 0x3af   :  { %25026 = vst [vmem:[#allocation135_spill] sm:$0xff] %v22129_v22  ;;  %25028 = vst [vmem:[#allocation137_spill] sm:$0xff] %v22135_v37 }
 0x3b0   :  { %v18009_v57 = vpop.f32.mrf.mxu1  ;;  %18296 = vmatmul.mubr.bf16.gmra.mxu1 %v19356_v47  ;;  %v22140_v17 = vpop.f32.mrf.mxu0 }
 0x3b1   :  { %v22138_v12 = vadd.f32 %v18009_v57, %v21821_v49  ;;  %25030 = vst [vmem:[#allocation139_spill] sm:$0xff] %v22140_v17 }
 0x3b2   :  { %v6433_v53 = vpop.f32.mrf.mxu1  ;;  %v22145_v4 = vpop.f32.mrf.mxu0 }
 0x3b3   :  { %25029 = vst [vmem:[#allocation138_spill] sm:$0xff] %v22138_v12  ;;  %v22143_v16 = vadd.f32 %v6433_v53, %v21824_v52  ;;  %25032 = vst [vmem:[#allocation141_spill] sm:$0xff] %v22145_v4  ;;  %v25038_v53 = vld [vmem:[#allocation73_spill] sm:$0xff] }
 0x3b4   :  { %v18010_v31 = vpop.f32.mrf.mxu1  ;;  %v22150_v9 = vpop.f32.mrf.mxu0 }
 0x3b5   :  { %25031 = vst [vmem:[#allocation140_spill] sm:$0xff] %v22143_v16  ;;  %v22148_v23 = vadd.f32 %v18010_v31, %v21831_v42  ;;  %25034 = vst [vmem:[#allocation143_spill] sm:$0xff] %v22150_v9  ;;  %v25041_v31 = vld [vmem:[#allocation76_spill] sm:$0xff] }
 0x3b6   :  { %v22152_v37 = vpop.f32.mrf.mxu1  ;;  %v22154_v47 = vpop.f32.mrf.mxu0 }
 0x3b7   :  { %25033 = vst [vmem:[#allocation142_spill] sm:$0xff] %v22148_v23  ;;  %25035 = vst [vmem:[#allocation144_spill] sm:$0xff] %v22154_v47 }
 0x3b8   :  { %v18013_v49 = vpop.f32.mrf.mxu1  ;;  %v22159_v17 = vpop.f32.mrf.mxu0 }
 0x3b9   :  { %v22157_v57 = vadd.f32 %v18013_v49, %v21835_v56  ;;  %25037 = vst [vmem:[#allocation146_spill] sm:$0xff] %v22159_v17  ;;  %v19360_v56 = vld [vmem:[%s24715_s7 + $0xb0] sm:$0xff]  }
 0x3ba   :  { %v6449_v52 = vpop.f32.mrf.mxu1  ;;  %v22164_v4 = vpop.f32.mrf.mxu0  ;;  %18357 = vmatprep.subr.bf16.mxu0 %v19360_v56 }
 0x3bb   :  { %25036 = vst [vmem:[#allocation145_spill] sm:$0xff] %v22157_v57  ;;  %v22162_v16 = vadd.f32 %v6449_v52, %v25038_v53  ;;  %25040 = vst [vmem:[#allocation147_spill] sm:$0xff] %v22164_v4  ;;  %v25045_v52 = vld [vmem:[#allocation77_spill] sm:$0xff]  ;;  %18358 = vmatpush3.bf16.msra.mxu0 %v19360_v56 }
 0x3bc   :  { %v18014_v42 = vpop.f32.mrf.mxu1  ;;  %v22169_v9 = vpop.f32.mrf.mxu0  ;;  %v25054_v56 = vld [vmem:[#allocation81_spill] sm:$0xff] }
 0x3bd   :  { %25039 = vst [vmem:[#allocation73_spill] sm:$0xff] %v22162_v16  ;;  %v22167_v23 = vadd.f32 %v18014_v42, %v25041_v31  ;;  %25043 = vst [vmem:[#allocation148_spill] sm:$0xff] %v22169_v9  ;;  %v25048_v31 = vld [vmem:[#allocation78_spill] sm:$0xff] }
 0x3be   :  { %v22171_v12 = vpop.f32.mrf.mxu1  ;;  %v22176_v49 = vpop.f32.mrf.mxu0 }
 0x3bf   :  { %25042 = vst [vmem:[#allocation76_spill] sm:$0xff] %v22167_v23  ;;  %25044 = vst [vmem:[#allocation149_spill] sm:$0xff] %v22176_v49 }
 0x3c0   :  { %v18017_v17 = vpop.f32.mrf.mxu1  ;;  %v22181_v4 = vpop.f32.mrf.mxu0 }
 0x3c1   :  { %v22179_v53 = vadd.f32 %v18017_v17, %v25045_v52  ;;  %25047 = vst [vmem:[#allocation150_spill] sm:$0xff] %v22181_v4 }
 0x3c2   :  { %v6465_v42 = vpop.f32.mrf.mxu1  ;;  %v22186_v9 = vpop.f32.mrf.mxu0 }
 0x3c3   :  { %25046 = vst [vmem:[#allocation77_spill] sm:$0xff] %v22179_v53  ;;  %v22184_v23 = vadd.f32 %v6465_v42, %v25048_v31  ;;  %25050 = vst [vmem:[#allocation151_spill] sm:$0xff] %v22186_v9  ;;  %v25057_v31 = vld [vmem:[#allocation82_spill] sm:$0xff] }
 0x3c4   :  { %v18018_v16 = vpop.f32.mrf.mxu1  ;;  %v22191_v57 = vpop.f32.mrf.mxu0 }
 0x3c5   :  { %25049 = vst [vmem:[#allocation78_spill] sm:$0xff] %v22184_v23  ;;  %v22189_v47 = vadd.f32 %v18018_v16, %v21862_v58  ;;  %25052 = vst [vmem:[#allocation153_spill] sm:$0xff] %v22191_v57  ;;  %v25060_v16 = vld [vmem:[#allocation100_spill] sm:$0xff] }
 0x3c6   :  { %v22193_v49 = vpop.f32.mrf.mxu1  ;;  %v22195_v22 = vpop.f32.mrf.mxu0 }
 0x3c7   :  { %25051 = vst [vmem:[#allocation152_spill] sm:$0xff] %v22189_v47  ;;  %25053 = vst [vmem:[#allocation154_spill] sm:$0xff] %v22195_v22 }
 0x3c8   :  { %v18021_v17 = vpop.f32.mrf.mxu1  ;;  %v22200_v4 = vpop.f32.mrf.mxu0 }
 0x3c9   :  { %v22198_v52 = vadd.f32 %v18021_v17, %v25054_v56  ;;  %25056 = vst [vmem:[#allocation155_spill] sm:$0xff] %v22200_v4 }
 0x3ca   :  { %v6481_v42 = vpop.f32.mrf.mxu1  ;;  %v22205_v9 = vpop.f32.mrf.mxu0 }
 0x3cb   :  { %25055 = vst [vmem:[#allocation81_spill] sm:$0xff] %v22198_v52  ;;  %v22203_v23 = vadd.f32 %v6481_v42, %v25057_v31  ;;  %25059 = vst [vmem:[#allocation156_spill] sm:$0xff] %v22205_v9  ;;  %v25080_v52 = vld [vmem:[#allocation97_spill] sm:$0xff] }
 0x3cc   :  { %v18022_v58 = vpop.f32.mrf.mxu1  ;;  %v22210_v57 = vpop.f32.mrf.mxu0 }
 0x3cd   :  { %25058 = vst [vmem:[#allocation82_spill] sm:$0xff] %v22203_v23  ;;  %v22208_v47 = vadd.f32 %v18022_v58, %v25060_v16  ;;  %25062 = vst [vmem:[#allocation157_spill] sm:$0xff] %v22210_v57 }
 0x3ce   :  { %v22212_v53 = vpop.f32.mrf.mxu1  ;;  %v22214_v22 = vpop.f32.mrf.mxu0 }
 0x3cf   :  { %25061 = vst [vmem:[#allocation100_spill] sm:$0xff] %v22208_v47  ;;  %25063 = vst [vmem:[#allocation158_spill] sm:$0xff] %v22214_v22 }
 0x3d0   :  { %v18025_v17 = vpop.f32.mrf.mxu1  ;;  %v22219_v4 = vpop.f32.mrf.mxu0 }
 0x3d1   :  { %v22217_v56 = vadd.f32 %v18025_v17, %v21883_v55  ;;  %25065 = vst [vmem:[#allocation160_spill] sm:$0xff] %v22219_v4 }
 0x3d2   :  { %v6497_v42 = vpop.f32.mrf.mxu1  ;;  %v22224_v9 = vpop.f32.mrf.mxu0 }
 0x3d3   :  { %25064 = vst [vmem:[#allocation159_spill] sm:$0xff] %v22217_v56  ;;  %v22222_v31 = vadd.f32 %v6497_v42, %v21886_v29  ;;  %25067 = vst [vmem:[#allocation162_spill] sm:$0xff] %v22224_v9  ;;  %v25076_v9 = vld [vmem:[#allocation93_spill] sm:$0xff] }
 0x3d4   :  { %v18026_v58 = vpop.f32.mrf.mxu1  ;;  %v22229_v57 = vpop.f32.mrf.mxu0 }
 0x3d5   :  { %25066 = vst [vmem:[#allocation161_spill] sm:$0xff] %v22222_v31  ;;  %v22227_v16 = vadd.f32 %v18026_v58, %v21893_v28  ;;  %25069 = vst [vmem:[#allocation164_spill] sm:$0xff] %v22229_v57  ;;  %v19369_v28 = vld [vmem:[%s24715_s7 + $0xa8] sm:$0xff]   ;;  %v25079_v31 = vld [vmem:[#allocation94_spill] sm:$0xff] }
 0x3d6   :  { %v22231_v47 = vpop.f32.mrf.mxu1  ;;  %v22233_v23 = vpop.f32.mrf.mxu0  ;;  %18359 = vmatprep.subr.bf16.mxu0 %v19369_v28 }
 0x3d7   :  { %25068 = vst [vmem:[#allocation163_spill] sm:$0xff] %v22227_v16  ;;  %25070 = vst [vmem:[#allocation165_spill] sm:$0xff] %v22233_v23  ;;  %v25078_v16 = vld [vmem:[#allocation95_spill] sm:$0xff]  ;;  %18360 = vmatpush3.bf16.msra.mxu0 %v19369_v28  ;;  %v7221_v28 = vadd.f32 %v21941_v44, %v21944_v0  ;;  %v25095_v44 = vld [vmem:[#allocation102_spill] sm:$0xff] }
 0x3d8   :  { %v18029_v22 = vpop.f32.mrf.mxu1  ;;  %v22238_v4 = vpop.f32.mrf.mxu0  ;;  %v5898_v56 = vadd.f32 %v25079_v31, %v25078_v16  ;;  %v25090_v31 = vld [vmem:[#allocation84_spill] sm:$0xff]  ;;  %v22292_v0 = vadd.f32 %v25095_v44, %v21969_v14  ;;  %v22310_v14 = vadd.f32 %v21986_v63, %v21989_v46  ;;  %v25105_v46 = vld [vmem:[#allocation87_spill] sm:$0xff] }
 0x3d9   :  { %v22236_v55 = vadd.f32 %v18029_v22, %v21900_v15  ;;  %25072 = vst [vmem:[#allocation167_spill] sm:$0xff] %v22238_v4  ;;  %v25077_v15 = vld [vmem:[#allocation92_spill] sm:$0xff]  ;;  %v5922_v16 = vadd.f32 %v25090_v31, %v21891_v41  ;;  %v25092_v41 = vld [vmem:[#allocation89_spill] sm:$0xff] }
 0x3da   :  { %v6513_v17 = vpop.f32.mrf.mxu1  ;;  %v22246_v58 = vpop.f32.mrf.mxu0  ;;  %v5894_v22 = vadd.f32 %v25077_v15, %v25076_v9  ;;  %v25088_v9 = vld [vmem:[#allocation99_spill] sm:$0xff] }
 0x3db   :  { %25071 = vst [vmem:[#allocation166_spill] sm:$0xff] %v22236_v55  ;;  %v22241_v29 = vadd.f32 %v6513_v17, %v21906_v20  ;;  %25074 = vst [vmem:[#allocation169_spill] sm:$0xff] %v22246_v58  ;;  %v25081_v20 = vld [vmem:[#allocation96_spill] sm:$0xff]  ;;  %v25084_v58 = vld [vmem:[#allocation75_spill] sm:$0xff] }
 0x3dc   :  { %v18030_v42 = vpop.f32.mrf.mxu1  ;;  %v5902_v17 = vadd.f32 %v25081_v20, %v25080_v52  ;;  %v22259_v4 = vpop.f32.mrf.mxu0  ;;  %v25089_v15 = vld [vmem:[#allocation83_spill] sm:$0xff]  ;;  %v25091_v52 = vld [vmem:[#allocation85_spill] sm:$0xff] }
 0x3dd   :  { %25073 = vst [vmem:[#allocation168_spill] sm:$0xff] %v22241_v29  ;;  %v22249_v57 = vadd.f32 %v18030_v42, %v21916_v25  ;;  %v25085_v25 = vld [vmem:[#allocation74_spill] sm:$0xff]  ;;  %v25087_v29 = vld [vmem:[#allocation79_spill] sm:$0xff]  ;;  %v5918_v55 = vadd.f32 %v25089_v15, %v25088_v9  ;;  %v5926_v20 = vadd.f32 %v25091_v52, %v21914_v32  ;;  %v25093_v9 = vld [vmem:[#allocation88_spill] sm:$0xff] }
 0x3de   :  { %v6516_v18 = vpop.f32.mrf.mxu1  ;;  %v5910_v42 = vadd.f32 %v25085_v25, %v25084_v58  ;;  %v7219_v58 = vadd.f32 %v21946_v45, %v21949_v13  ;;  %v22280_v25 = vadd.f32 %v21951_v1, %v21954_v26  ;;  %v22284_v32 = vadd.f32 %v25093_v9, %v25092_v41  ;;  %v25094_v15 = vld [vmem:[#allocation101_spill] sm:$0xff]  ;;  %v25097_v13 = vld [vmem:[#allocation90_spill] sm:$0xff]  ;;  %v25098_v26 = vld [vmem:[#allocation104_spill] sm:$0xff] }
 0x3df   :  { %25075 = vst [vmem:[#allocation170_spill] sm:$0xff] %v22249_v57  ;;  %v25086_v57 = vld [vmem:[#allocation80_spill] sm:$0xff]  ;;  %v22288_v2 = vadd.f32 %v25094_v15, %v21964_v59  ;;  %v22300_v1 = vadd.f32 %v25097_v13, %v21979_v48  ;;  %v22304_v31 = vadd.f32 %v25098_v26, %v21984_v54  ;;  %v6569_v59 = vadd.f32 %v22092_v51, %v5894_v22  ;;  %v25099_v52 = vld [vmem:[#allocation86_spill] sm:$0xff]  ;;  %v25100_v41 = vld [vmem:[#allocation105_spill] sm:$0xff] }
 0x3e0   :  { %v5914_v23 = vadd.f32 %v25087_v29, %v25086_v57  ;;  %v18033_v62 = vpop.f32.mrf.mxu1  ;;  %v18113_v29 = vpop.f32.mrf.mxu0  ;;  %v6573_v9 = vadd.f32 %v22114_v6, %v5898_v56  ;;  %v25101_v15 = vld [vmem:[#allocation106_spill] sm:$0xff]  ;;  %v25102_v54 = vld [vmem:[#allocation107_spill] sm:$0xff]  ;;  %v25103_v22 = vld [vmem:[#allocation109_spill] sm:$0xff]  ;;  %v22330_v63 = vadd.f32 %v22133_v60, %v5902_v17 }
 0x3e1   :  { %v6606_v57 = vadd.f32 %v18033_v62, %v21923_v39  ;;  %v25096_v39 = vld [vmem:[#allocation103_spill] sm:$0xff]  ;;  %v22319_v44 = vadd.f32 %v25101_v15, %v22002_v36  ;;  %v22323_v51 = vadd.f32 %v25102_v54, %v22007_v34  ;;  %v25106_v6 = vld [vmem:[#allocation110_spill] sm:$0xff]  ;;  %v22342_v34 = vadd.f32 %v22152_v37, %v5906_v35  ;;  %v25109_v60 = vld [vmem:[#allocation112_spill] sm:$0xff] }
 0x3e2   :  { %v6529_v7 = vpop.f32.mrf.mxu1  ;;  %v22296_v45 = vadd.f32 %v25096_v39, %v21974_v40  ;;  %v22314_v40 = vadd.f32 %v25100_v41, %v21994_v11  ;;  %v7204_v13 = vpop.f32.mrf.mxu0  ;;  %v22335_v56 = vadd.f32 %v25106_v6, %v22023_v38  ;;  %v25107_v36 = vld [vmem:[#allocation111_spill] sm:$0xff]  ;;  %v22346_v41 = vadd.f32 %v22030_v27, %v22033_v30  ;;  %v25113_v54 = vld [vmem:[#allocation114_spill] sm:$0xff]  ;;  %v25114_v37 = vld [vmem:[#allocation117_spill] sm:$0xff] }
 0x3e3   :  { %v6604_v62 = vadd.f32 %v6529_v7, %v25099_v52  ;;  %v25104_v7 = vld [vmem:[#allocation108_spill] sm:$0xff]  ;;  %v22339_v26 = vadd.f32 %v25107_v36, %v22028_v21  ;;  %25108 = vst [vmem:[#allocation93_spill] sm:$0xff] %v22342_v34  ;;  %v22350_v17 = vadd.f32 %v25109_v60, %v22038_v3  ;;  %v22357_v15 = vadd.f32 %v22171_v12, %v5910_v42  ;;  %v25112_v21 = vld [vmem:[#allocation115_spill] sm:$0xff]  ;;  %v25116_v27 = vld [vmem:[#allocation118_spill] sm:$0xff] }
 0x3e4   :  { %v18034_v48 = vpop.f32.mrf.mxu1  ;;  %v22327_v39 = vadd.f32 %v25104_v7, %v25103_v22  ;;  %v22361_v35 = vadd.f32 %v25113_v54, %v25112_v21  ;;  %v25115_v22 = vld [vmem:[#allocation116_spill] sm:$0xff]  ;;  %v22369_v30 = vadd.f32 %v25116_v27, %v22062_v10  ;;  %v22372_v3 = vadd.f32 %v22193_v49, %v5914_v23  ;;  %v25119_v6 = vld [vmem:[#allocation119_spill] sm:$0xff]  ;;  %v18114_v60 = vpop.f32.mrf.mxu0  ;;  %v25127_v54 = vld [vmem:[#allocation122_spill] sm:$0xff] }
 0x3e5   :  { %v6607_v11 = vadd.f32 %v18034_v48, %v25105_v46  ;;  %v25110_v48 = vld [vmem:[#allocation113_spill] sm:$0xff]  ;;  %25111 = vst [vmem:[#allocation92_spill] sm:$0xff] %v22357_v15  ;;  %v22365_v7 = vadd.f32 %v25115_v22, %v25114_v37  ;;  %v6601_v12 = vadd.f32 %v6516_v18, %v5926_v20  ;;  %v22380_v46 = vld [vmem:[%s24716_s5] ss:$0 sm:$0xff]  ;;  %v22384_v36 = vadd.f32 %v25119_v6, %v22067_v33  ;;  %v25120_v49 = vld [vmem:[#allocation91_spill] sm:$0xff] }
 0x3e6   :  { %v6532_v52 = vpop.f32.mrf.mxu1  ;;  %v22354_v38 = vadd.f32 %v25110_v48, %v22043_v5  ;;  %25117 = vst [vmem:[#allocation95_spill] sm:$0xff] %v22372_v3  ;;  %v22375_v5 = vadd.f32 %v22212_v53, %v5918_v55  ;;  %v22388_v23 = vadd.f32 %v22071_v43, %v22073_v61  ;;  %v22392_v53 = vadd.f32 %v25120_v49, %v22078_v24  ;;  %v25122_v20 = vld [vmem:[#allocation166_spill] sm:$0xff]  ;;  %v25123_v33 = vld [vmem:[#allocation165_spill] sm:$0xff]  ;;  %v22408_v61 = vld [vmem:[%s24717_s6] ss:$0 sm:$0xff] }
 0x3e7   :  { %v22396_v18 = vadd.f32 %v22080_v19, %v22083_v8  ;;  %v22399_v55 = vadd.f32 %v22231_v47, %v5922_v16  ;;  %v22403_v48 = vadd.f32 %v25123_v33, %v25122_v20  ;;  %v25126_v24 = vld [vmem:[#allocation120_spill] sm:$0xff]  ;;  %v22415_v19 = vadd.f32 %v25127_v54, %v6569_v59  ;;  %v25129_v47 = vld [vmem:[#allocation167_spill] sm:$0xff]  ;;  %v25131_v37 = vld [vmem:[#allocation170_spill] sm:$0xff] }
 0x3e8   :  { %25118 = vst [vmem:[#allocation94_spill] sm:$0xff] %v22375_v5  ;;  %v18133_v42 = vpop.f32.mrf.mxu1  ;;  %v25128_v8 = vld [vmem:[#allocation168_spill] sm:$0xff]  ;;  %v25132_v22 = vld [vmem:[#allocation169_spill] sm:$0xff]  ;;  %v22427_v49 = vadd.f32 %v22259_v4, %v6601_v12  ;;  %v6605_v20 = vadd.f32 %v6532_v52, %v5930_v50  ;;  %v25137_v54 = vld [vmem:[#allocation126_spill] sm:$0xff]  ;;  %v22442_v12 = vadd.f32 %v7204_v13, %v6604_v62  ;;  %v22444_v50 = vadd.f32 %v18114_v60, %v6607_v11 }
 0x3e9   :  { %v7896_v10 = vadd.f32 %v18133_v42, %v7221_v28  ;;  %25121 = vst [vmem:[#allocation97_spill] sm:$0xff] %v22399_v55  ;;  %25124 = vst [vmem:[#allocation96_spill] sm:$0xff] %v22403_v48  ;;  %v25125_v28 = vld [vmem:[#allocation121_spill] sm:$0xff]  ;;  %v22419_v16 = vadd.f32 %v25129_v47, %v25128_v8  ;;  %v22423_v27 = vadd.f32 %v25132_v22, %v25131_v37  ;;  %v7207_v37 = vpop.f32.mrf.mxu0  ;;  %v25147_v11 = vld [vmem:[#allocation131_spill] sm:$0xff] }
 0x3ea   :  { %v7639_v43 = vpop.f32.mrf.mxu1  ;;  %v22412_v21 = vadd.f32 %v25126_v24, %v25125_v28  ;;  %25134 = vst [vmem:[#allocation75_spill] sm:$0xff] %v22427_v49  ;;  %v25135_v28 = vld [vmem:[#allocation124_spill] sm:$0xff]  ;;  %v25136_v24 = vld [vmem:[#allocation123_spill] sm:$0xff]  ;;  %v25138_v48 = vld [vmem:[#allocation125_spill] sm:$0xff]  ;;  %v22437_v47 = vadd.f32 %v18113_v29, %v6606_v57 }
 0x3eb   :  { %25130 = vst [vmem:[#allocation72_spill] sm:$0xff] %v22419_v16  ;;  %25133 = vst [vmem:[#allocation98_spill] sm:$0xff] %v22423_v27  ;;  %v7967_v42 = vmul.f32 %v22380_v46, %v7896_v10  ;;  %v7894_v6 = vadd.f32 %v7639_v43, %v7219_v58  ;;  %v22431_v59 = vadd.f32 %v25136_v24, %v25135_v28  ;;  %v25142_v10 = vld [vmem:[#allocation128_spill] sm:$0xff]  ;;  %v25143_v43 = vld [vmem:[#allocation127_spill] sm:$0xff] }
 0x3ec   :  { %v18134_v33 = vpop.f32.mrf.mxu1  ;;  %v22435_v8 = vadd.f32 %v25138_v48, %v25137_v54  ;;  %25139 = vst [vmem:[#allocation74_spill] sm:$0xff] %v22437_v47  ;;  %25140 = vst [vmem:[#allocation80_spill] sm:$0xff] %v22442_v12  ;;  %v22448_v28 = vadd.f32 %v25143_v43, %v25142_v10  ;;  %v25144_v48 = vld [vmem:[#allocation129_spill] sm:$0xff]  ;;  %v25148_v13 = vld [vmem:[#allocation130_spill] sm:$0xff] }
 0x3ed   :  { %v8038_v22 = vadd.f32 %v22408_v61, %v7967_v42  ;;  %v7965_v58 = vmul.f32 %v22380_v46, %v7894_v6  ;;  %v7897_v4 = vadd.f32 %v18134_v33, %v22280_v25  ;;  %25141 = vst [vmem:[#allocation79_spill] sm:$0xff] %v22444_v50  ;;  %v22451_v24 = vadd.f32 %v25144_v48, %v6573_v9  ;;  %v25150_v33 = vld [vmem:[#allocation133_spill] sm:$0xff]  ;;  %v25151_v54 = vld [vmem:[#allocation132_spill] sm:$0xff]  ;;  %v25153_v9 = vld [vmem:[#allocation135_spill] sm:$0xff] }
 0x3ee   :  { %v7642_v52 = vpop.f32.mrf.mxu1  ;;  %v22456_v25 = vadd.f32 %v7207_v37, %v6605_v20  ;;  %v22460_v60 = vadd.f32 %v25148_v13, %v25147_v11  ;;  %v22464_v10 = vadd.f32 %v25151_v54, %v25150_v33  ;;  %v25154_v43 = vld [vmem:[#allocation134_spill] sm:$0xff]  ;;  %v25159_v33 = vld [vmem:[#allocation137_spill] sm:$0xff]  ;;  %v19458_v15 = vld [vmem:[%s24715_s7 + $0x120] sm:$0xff]  }
 0x3ef   :  { %25145 = vst [vmem:[#allocation99_spill] sm:$0xff] %v22451_v24  ;;  %v8102_v57 = vmax.f32 %v8038_v22, 0.0  ;;  %v8036_v29 = vadd.f32 %v22408_v61, %v7965_v58  ;;  %v7968_v42 = vmul.f32 %v22380_v46, %v7897_v4  ;;  %v7895_v6 = vadd.f32 %v7642_v52, %v22284_v32  ;;  %v25156_v52 = vld [vmem:[#allocation136_spill] sm:$0xff]  ;;  %v25158_v13 = vld [vmem:[#allocation138_spill] sm:$0xff]  ;;  %v25165_v12 = vld [vmem:[#allocation141_spill] sm:$0xff] }
 0x3f0   :  { %25146 = vst [vmem:[#allocation83_spill] sm:$0xff] %v22456_v25  ;;  %v18137_v62 = vpop.f32.mrf.mxu1  ;;  %25149 = vst [vmem:[#allocation84_spill] sm:$0xff] %v22460_v60  ;;  %v22468_v22 = vadd.f32 %v25154_v43, %v25153_v9  ;;  %v22475_v11 = vadd.f32 %v25156_v52, %v22330_v63  ;;  %v22479_v54 = vadd.f32 %v25159_v33, %v25158_v13  ;;  %v25161_v25 = vld [vmem:[#allocation140_spill] sm:$0xff]  ;;  %v25162_v9 = vld [vmem:[#allocation139_spill] sm:$0xff] }
 0x3f1   :  { %25152 = vst [vmem:[#allocation85_spill] sm:$0xff] %v22464_v10  ;;  %v8225_v58 = vpack.c.bf16 %v8102_v57, %v8102_v57  ;;  %v8100_v48 = vmax.f32 %v8036_v29, 0.0  ;;  %v8039_v4 = vadd.f32 %v22408_v61, %v7968_v42  ;;  %v7966_v32 = vmul.f32 %v22380_v46, %v7895_v6  ;;  %v25164_v52 = vld [vmem:[#allocation142_spill] sm:$0xff] }
 0x3f2   :  { %25155 = vst [vmem:[#allocation89_spill] sm:$0xff] %v22468_v22  ;;  %v7900_v20 = vadd.f32 %v18137_v62, %v22288_v2  ;;  %v7655_v37 = vpop.f32.mrf.mxu1  ;;  %25157 = vst [vmem:[#allocation88_spill] sm:$0xff] %v22475_v11  ;;  %v22483_v43 = vadd.f32 %v25162_v9, %v25161_v25  ;;  %v22490_v47 = vadd.f32 %v25165_v12, %v25164_v52 }
 0x3f3   :  { %25160 = vst [vmem:[#allocation101_spill] sm:$0xff] %v22479_v54  ;;  %v8302_v57 = vshrl.u32 %v8225_v58, 16  ;;  %v8305_v29 = vshll.u32 %v8225_v58, 16  ;;  %v8223_v42 = vpack.c.bf16 %v8100_v48, %v8100_v48  ;;  %v8103_v50 = vmax.f32 %v8039_v4, 0.0 }
 0x3f4   :  { %25163 = vst [vmem:[#allocation102_spill] sm:$0xff] %v22483_v43  ;;  %v8037_v6 = vadd.f32 %v22408_v61, %v7966_v32  ;;  %v7971_v2 = vmul.f32 %v22380_v46, %v7900_v20  ;;  %v7898_v62 = vadd.f32 %v7655_v37, %v22292_v0  ;;  %v18138_v63 = vpop.f32.mrf.mxu1  ;;  %25166 = vst [vmem:[#allocation103_spill] sm:$0xff] %v22490_v47  ;;  %v19492_v43 = vld [vmem:[%s24715_s7 + $0x168] sm:$0xff]  }
 0x3f5   :  { %v8304_v13 = vrot.slane %v8302_v57, 7  ;;  %v8867_v33 = vrot.slane %v8305_v29, 1  ;;  %v8288_v49 = vshrl.u32 %v8223_v42, 16  ;;  %v8291_v25 = vshll.u32 %v8223_v42, 16 }
 0x3f6   :  { %v8226_v9 = vpack.c.bf16 %v8103_v50, %v8103_v50  ;;  %v8101_v27 = vmax.f32 %v8037_v6, 0.0  ;;  %v8042_v48 = vadd.f32 %v22408_v61, %v7971_v2  ;;  %v7969_v4 = vmul.f32 %v22380_v46, %v7898_v62  ;;  %v7658_v32 = vpop.f32.mrf.mxu1 }
 0x3f7   :  { %v8307_v16 = vor.u32 %v8305_v29, %v8304_v13  ;;  %v8868_v20 = vor.u32 %v8867_v33, %v8302_v57  ;;  %v8290_v55 = vrot.slane %v8288_v49, 7  ;;  %v8863_v0 = vrot.slane %v8291_v25, 1 }
 0x3f8   :  { %v8309_v37 = vshrl.u32 %v8226_v9, 16  ;;  %v8312_v5 = vshll.u32 %v8226_v9, 16  ;;  %v8224_v3 = vpack.c.bf16 %v8101_v27, %v8101_v27  ;;  %v8106_v12 = vmax.f32 %v8042_v48, 0.0  ;;  %v18141_v52 = vpop.f32.mrf.mxu1  ;;  %v19378_v27 = vld [vmem:[%s24715_s7 + $0xa0] sm:$0xff]   ;;  %v19467_v48 = vld [vmem:[%s24715_s7 + $0x118] sm:$0xff]  }
 0x3f9   :  { %v8801_v34 = vsel %vm20114_vm6, 0, %v8307_v16  ;;  %v9057_v50 = vsel %vm20120_vm7, %v8868_v20, 0  ;;  %v8293_v6 = vor.u32 %v8291_v25, %v8290_v55  ;;  %v8864_v2 = vor.u32 %v8863_v0, %v8288_v49  ;;  %18361 = vmatprep.subr.bf16.mxu0 %v19378_v27 }
 0x3fa   :  { %v9121_v62 = vsel %vm20133_vm8, %v8801_v34, %v8225_v58  ;;  %v8311_v29 = vrot.slane %v8309_v37, 7  ;;  %v8869_v57 = vrot.slane %v8312_v5, 1  ;;  %v8295_v13 = vshrl.u32 %v8224_v3, 16  ;;  %v7671_v33 = vpop.f32.mrf.mxu1  ;;  %18362 = vmatpush3.bf16.msra.mxu0 %v19378_v27 }
 0x3fb   :  { %v9185_v54 = vsel %vm20140_vm9, %v9057_v50, %v9121_v62  ;;  %v8799_v16 = vsel %vm20114_vm6, 0, %v8293_v6  ;;  %v9055_v55 = vsel %vm20120_vm7, %v8864_v2, 0  ;;  %v8298_v49 = vshll.u32 %v8224_v3, 16 }
 0x3fc   :  { %9250 = vst [vmem:[#allocation3 + $0x34] sm:$0xf] %v9185_v54  ;;  %v9119_v34 = vsel %vm20133_vm8, %v8799_v16, %v8223_v42  ;;  %v8314_v58 = vor.u32 %v8312_v5, %v8311_v29  ;;  %v8870_v25 = vor.u32 %v8869_v57, %v8309_v37  ;;  %v8297_v20 = vrot.slane %v8295_v13, 7  ;;  %v22511_v0 = vpop.f32.mrf.mxu1 }
 0x3fd   :  { %v9183_v50 = vsel %vm20140_vm9, %v9055_v55, %v9119_v34  ;;  %v8865_v62 = vrot.slane %v8298_v49, 1  ;;  %v8229_v11 = vpack.c.bf16 %v8106_v12, %v8106_v12  ;;  %v8040_v6 = vadd.f32 %v22408_v61, %v7969_v4 }
 0x3fe   :  { %9248 = vst [vmem:[#allocation3 + $0x2c] sm:$0xf] %v9183_v50  ;;  %v8802_v54 = vsel %vm20114_vm6, 0, %v8314_v58  ;;  %v9058_v5 = vsel %vm20120_vm7, %v8870_v25, 0  ;;  %v8300_v42 = vor.u32 %v8298_v49, %v8297_v20  ;;  %v7901_v37 = vadd.f32 %v18138_v63, %v22296_v45  ;;  %v22521_v2 = vpop.f32.mrf.mxu1 }
 0x3ff   :  { %v9122_v29 = vsel %vm20133_vm8, %v8802_v54, %v8226_v9  ;;  %v8866_v57 = vor.u32 %v8865_v62, %v8295_v13  ;;  %v8330_v12 = vshrl.u32 %v8229_v11, 16  ;;  %v8333_v16 = vshll.u32 %v8229_v11, 16 }
 0x400   :  { %v9186_v4 = vsel %vm20140_vm9, %v9058_v5, %v9122_v29  ;;  %v8800_v27 = vsel %vm20114_vm6, 0, %v8300_v42  ;;  %v8104_v55 = vmax.f32 %v8040_v6, 0.0  ;;  %v7972_v34 = vmul.f32 %v22380_v46, %v7901_v37  ;;  %v22530_v49 = vpop.f32.mrf.mxu1 }
 0x401   :  { %9251 = vst [vmem:[#allocation3 + $0x38] sm:$0xf] %v9186_v4  ;;  %v9056_v45 = vsel %vm20120_vm7, %v8866_v57, 0  ;;  %v9120_v63 = vsel %vm20133_vm8, %v8800_v27, %v8224_v3  ;;  %v8332_v9 = vrot.slane %v8330_v12, 7  ;;  %v8875_v13 = vrot.slane %v8333_v16, 1 }
 0x402   :  { %v9184_v58 = vsel %vm20140_vm9, %v9056_v45, %v9120_v63  ;;  %v8227_v25 = vpack.c.bf16 %v8104_v55, %v8104_v55  ;;  %v8043_v20 = vadd.f32 %v22408_v61, %v7972_v34  ;;  %v7899_v50 = vadd.f32 %v7658_v32, %v22300_v1  ;;  %v22540_v62 = vpop.f32.mrf.mxu1 }
 0x403   :  { %9249 = vst [vmem:[#allocation3 + $0x30] sm:$0xf] %v9184_v58  ;;  %v8335_v6 = vor.u32 %v8333_v16, %v8332_v9  ;;  %v8876_v54 = vor.u32 %v8875_v13, %v8330_v12  ;;  %v7904_v5 = vadd.f32 %v18141_v52, %v22304_v31  ;;  %v7902_v42 = vadd.f32 %v7671_v33, %v22310_v14 }
 0x404   :  { %v8316_v3 = vshrl.u32 %v8227_v25, 16  ;;  %v8319_v37 = vshll.u32 %v8227_v25, 16  ;;  %v8107_v29 = vmax.f32 %v8043_v20, 0.0  ;;  %v7970_v57 = vmul.f32 %v22380_v46, %v7899_v50  ;;  %v22545_v4 = vpop.f32.mrf.mxu1 }
 0x405   :  { %v8805_v27 = vsel %vm20114_vm6, 0, %v8335_v6  ;;  %v9061_v1 = vsel %vm20120_vm7, %v8876_v54, 0  ;;  %v7975_v32 = vmul.f32 %v22380_v46, %v7904_v5  ;;  %v7973_v12 = vmul.f32 %v22380_v46, %v7902_v42  ;;  %v19357_v31 = vld [vmem:[#allocation3 + $0x28] sm:$0xff]  }
 0x406   :  { %v9125_v14 = vsel %vm20133_vm8, %v8805_v27, %v8229_v11  ;;  %v8318_v52 = vrot.slane %v8316_v3, 7  ;;  %v8871_v33 = vrot.slane %v8319_v37, 1  ;;  %v8230_v16 = vpack.c.bf16 %v8107_v29, %v8107_v29  ;;  %v22555_v55 = vpop.f32.mrf.mxu1  ;;  %18299 = vmatprep.mubr.bf16.mxu1 %v19357_v31 }
 0x407   :  { %v9189_v34 = vsel %vm20140_vm9, %v9061_v1, %v9125_v14  ;;  %v8041_v45 = vadd.f32 %v22408_v61, %v7970_v57  ;;  %v8046_v63 = vadd.f32 %v22408_v61, %v7975_v32  ;;  %v8044_v9 = vadd.f32 %v22408_v61, %v7973_v12 }
 0x408   :  { %9254 = vst [vmem:[#allocation3 + $0x44] sm:$0xf] %v9189_v34  ;;  %v8321_v13 = vor.u32 %v8319_v37, %v8318_v52  ;;  %v8872_v58 = vor.u32 %v8871_v33, %v8316_v3  ;;  %v8337_v20 = vshrl.u32 %v8230_v16, 16  ;;  %v8340_v11 = vshll.u32 %v8230_v16, 16  ;;  %v22562_v50 = vpop.f32.mrf.mxu1  ;;  %v19361_v3 = vld [vmem:[#allocation3 + $0x34] sm:$0xff]  }
 0x409   :  { %v8105_v6 = vmax.f32 %v8041_v45, 0.0  ;;  %v8110_v54 = vmax.f32 %v8046_v63, 0.0  ;;  %v8108_v5 = vmax.f32 %v8044_v9, 0.0  ;;  %v7905_v42 = vadd.f32 %v22511_v0, %v22314_v40 }
 0x40a   :  { %v8803_v29 = vsel %vm20114_vm6, 0, %v8321_v13  ;;  %v9059_v57 = vsel %vm20120_vm7, %v8872_v58, 0  ;;  %v8339_v27 = vrot.slane %v8337_v20, 7  ;;  %v8877_v1 = vrot.slane %v8340_v11, 1  ;;  %v22570_v37 = vpop.f32.mrf.mxu1  ;;  %v19358_v52 = vld [vmem:[#allocation3 + $0x2c] sm:$0xff]  }
 0x40b   :  { %v9123_v32 = vsel %vm20133_vm8, %v8803_v29, %v8227_v25  ;;  %v8228_v12 = vpack.c.bf16 %v8105_v6, %v8105_v6  ;;  %v8233_v31 = vpack.c.bf16 %v8110_v54, %v8110_v54  ;;  %v8231_v14 = vpack.c.bf16 %v8108_v5, %v8108_v5  ;;  %v19359_v33 = vld [vmem:[#allocation3 + $0x30] sm:$0xff]   ;;  %18219 = vmatprep.mubr.bf16.mxu0 %v19358_v52 }
 0x40c   :  { %v9187_v40 = vsel %vm20140_vm9, %v9059_v57, %v9123_v32  ;;  %v8342_v0 = vor.u32 %v8340_v11, %v8339_v27  ;;  %v8878_v34 = vor.u32 %v8877_v1, %v8337_v20  ;;  %v7976_v45 = vmul.f32 %v22380_v46, %v7905_v42  ;;  %v22577_v63 = vpop.f32.mrf.mxu1  ;;  %18300 = vmatmul.mubr.bf16.gmra.mxu1 %v19359_v33 }
 0x40d   :  { %9252 = vst [vmem:[#allocation3 + $0x3c] sm:$0xf] %v9187_v40  ;;  %v8323_v9 = vshrl.u32 %v8228_v12, 16  ;;  %v8326_v13 = vshll.u32 %v8228_v12, 16  ;;  %v8358_v58 = vshrl.u32 %v8233_v31, 16  ;;  %v8361_v22 = vshll.u32 %v8233_v31, 16  ;;  %18220 = vmatmul.mubr.bf16.gmra.mxu0 %v19361_v3 }
 0x40e   :  { %v8806_v25 = vsel %vm20114_vm6, 0, %v8342_v0  ;;  %v9062_v6 = vsel %vm20120_vm7, %v8878_v34, 0  ;;  %v8344_v54 = vshrl.u32 %v8231_v14, 16  ;;  %v8347_v11 = vshll.u32 %v8231_v14, 16  ;;  %v22583_v20 = vpop.f32.mrf.mxu1 }
 0x40f   :  { %v9126_v5 = vsel %vm20133_vm8, %v8806_v25, %v8230_v16  ;;  %v8325_v42 = vrot.slane %v8323_v9, 7  ;;  %v8873_v29 = vrot.slane %v8326_v13, 1  ;;  %v8360_v57 = vrot.slane %v8358_v58, 7 }
 0x410   :  { %v9190_v27 = vsel %vm20140_vm9, %v9062_v6, %v9126_v5  ;;  %v8883_v1 = vrot.slane %v8361_v22, 1  ;;  %v8346_v32 = vrot.slane %v8344_v54, 7  ;;  %v8879_v52 = vrot.slane %v8347_v11, 1  ;;  %v22589_v33 = vpop.f32.mrf.mxu1 }
 0x411   :  { %9255 = vst [vmem:[#allocation3 + $0x48] sm:$0xf] %v9190_v27  ;;  %v8328_v40 = vor.u32 %v8326_v13, %v8325_v42  ;;  %v8874_v0 = vor.u32 %v8873_v29, %v8323_v9  ;;  %v8363_v3 = vor.u32 %v8361_v22, %v8360_v57  ;;  %v8047_v34 = vadd.f32 %v22408_v61, %v7976_v45 }
 0x412   :  { %v8884_v10 = vor.u32 %v8883_v1, %v8358_v58  ;;  %v8349_v60 = vor.u32 %v8347_v11, %v8346_v32  ;;  %v8880_v16 = vor.u32 %v8879_v52, %v8344_v54  ;;  %v7903_v25 = vadd.f32 %v22521_v2, %v22319_v44  ;;  %v22594_v24 = vpop.f32.mrf.mxu1 }
 0x413   :  { %v8804_v6 = vsel %vm20114_vm6, 0, %v8328_v40  ;;  %v9060_v5 = vsel %vm20120_vm7, %v8874_v0, 0  ;;  %v8809_v9 = vsel %vm20114_vm6, 0, %v8363_v3  ;;  %v8111_v22 = vmax.f32 %v8047_v34, 0.0 }
 0x414   :  { %v9124_v45 = vsel %vm20133_vm8, %v8804_v6, %v8228_v12  ;;  %v9065_v13 = vsel %vm20120_vm7, %v8884_v10, 0  ;;  %v9129_v44 = vsel %vm20133_vm8, %v8809_v9, %v8233_v31  ;;  %v8807_v2 = vsel %vm20114_vm6, 0, %v8349_v60  ;;  %v19362_v58 = vld [vmem:[#allocation3 + $0x38] sm:$0xff]   ;;  %v22610_v54 = vpop.f32.mrf.mxu1 }
 0x415   :  { %v9188_v11 = vsel %vm20140_vm9, %v9060_v5, %v9124_v45  ;;  %v9193_v42 = vsel %vm20140_vm9, %v9065_v13, %v9129_v44  ;;  %v9063_v12 = vsel %vm20120_vm7, %v8880_v16, 0  ;;  %v9127_v10 = vsel %vm20133_vm8, %v8807_v2, %v8231_v14  ;;  %18303 = vmatprep.mubr.bf16.mxu1 %v19362_v58 }
 0x416   :  { %9253 = vst [vmem:[#allocation3 + $0x40] sm:$0xf] %v9188_v11  ;;  %9258 = vst [vmem:[#allocation3 + $0x5c] sm:$0xf] %v9193_v42  ;;  %v9191_v60 = vsel %vm20140_vm9, %v9063_v12, %v9127_v10  ;;  %v8234_v31 = vpack.c.bf16 %v8111_v22, %v8111_v22  ;;  %v7974_v29 = vmul.f32 %v22380_v46, %v7903_v25  ;;  %v22625_v27 = vpop.f32.mrf.mxu1 }
 0x417   :  { %v7908_v57 = vadd.f32 %v22530_v49, %v22323_v51  ;;  %9256 = vst [vmem:[#allocation3 + $0x54] sm:$0xf] %v9191_v60  ;;  %v7906_v1 = vadd.f32 %v22540_v62, %v22327_v39  ;;  %v7909_v14 = vadd.f32 %v22545_v4, %v22335_v56  ;;  %v7907_v32 = vadd.f32 %v22555_v55, %v22339_v26  ;;  %v19387_v51 = vld [vmem:[%s24715_s7 + $0x98] sm:$0xff]  }
 0x418   :  { %v7912_v52 = vadd.f32 %v22562_v50, %v22346_v41  ;;  %v8365_v49 = vshrl.u32 %v8234_v31, 16  ;;  %v8368_v40 = vshll.u32 %v8234_v31, 16  ;;  %v8045_v0 = vadd.f32 %v22408_v61, %v7974_v29  ;;  %v22640_v39 = vpop.f32.mrf.mxu1  ;;  %18363 = vmatprep.subr.bf16.mxu0 %v19387_v51  ;;  %v19365_v10 = vld [vmem:[#allocation3 + $0x44] sm:$0xff]  }
 0x419   :  { %v7979_v3 = vmul.f32 %v22380_v46, %v7908_v57  ;;  %v7977_v56 = vmul.f32 %v22380_v46, %v7906_v1  ;;  %v7980_v62 = vmul.f32 %v22380_v46, %v7909_v14  ;;  %v7978_v26 = vmul.f32 %v22380_v46, %v7907_v32  ;;  %18364 = vmatpush3.bf16.msra.mxu0 %v19387_v51 }
 0x41a   :  { %v7983_v41 = vmul.f32 %v22380_v46, %v7912_v52  ;;  %v8367_v4 = vrot.slane %v8365_v49, 7  ;;  %v8885_v55 = vrot.slane %v8368_v40, 1  ;;  %v8109_v50 = vmax.f32 %v8045_v0, 0.0  ;;  %v22647_v16 = vpop.f32.mrf.mxu1 }
 0x41b   :  { %v8050_v34 = vadd.f32 %v22408_v61, %v7979_v3  ;;  %v8048_v25 = vadd.f32 %v22408_v61, %v7977_v56  ;;  %v8051_v6 = vadd.f32 %v22408_v61, %v7980_v62  ;;  %v8049_v5 = vadd.f32 %v22408_v61, %v7978_v26 }
 0x41c   :  { %v22653_v9 = vadd.f32 %v22408_v61, %v7983_v41  ;;  %v8370_v22 = vor.u32 %v8368_v40, %v8367_v4  ;;  %v8886_v45 = vor.u32 %v8885_v55, %v8365_v49  ;;  %v8232_v13 = vpack.c.bf16 %v8109_v50, %v8109_v50  ;;  %v22655_v2 = vpop.f32.mrf.mxu1 }
 0x41d   :  { %v8114_v44 = vmax.f32 %v8050_v34, 0.0  ;;  %v8112_v58 = vmax.f32 %v8048_v25, 0.0  ;;  %v8115_v11 = vmax.f32 %v8051_v6, 0.0  ;;  %v8113_v42 = vmax.f32 %v8049_v5, 0.0  ;;  %v19363_v14 = vld [vmem:[#allocation3 + $0x3c] sm:$0xff]  }
 0x41e   :  { %v8118_v12 = vmax.f32 %v22653_v9, 0.0  ;;  %v8810_v60 = vsel %vm20114_vm6, 0, %v8370_v22  ;;  %v9066_v29 = vsel %vm20120_vm7, %v8886_v45, 0  ;;  %v8351_v57 = vshrl.u32 %v8232_v13, 16  ;;  %v19364_v32 = vld [vmem:[#allocation3 + $0x40] sm:$0xff]   ;;  %v19366_v0 = vld [vmem:[#allocation3 + $0x50] sm:$0xff]   ;;  %18223 = vmatprep.mubr.bf16.mxu0 %v19363_v14  ;;  %v22668_v41 = vpop.f32.mrf.mxu1 }
 0x41f   :  { %v8354_v1 = vshll.u32 %v8232_v13, 16  ;;  %v9130_v52 = vsel %vm20133_vm8, %v8810_v60, %v8234_v31  ;;  %v8237_v51 = vpack.c.bf16 %v8114_v44, %v8114_v44  ;;  %v8235_v49 = vpack.c.bf16 %v8112_v58, %v8112_v58  ;;  %18304 = vmatmul.mubr.bf16.gmra.mxu1 %v19364_v32  ;;  %18224 = vmatmul.mubr.bf16.gmra.mxu0 %v19365_v10 }
 0x420   :  { %v8238_v40 = vpack.c.bf16 %v8115_v11, %v8115_v11  ;;  %v9194_v3 = vsel %vm20140_vm9, %v9066_v29, %v9130_v52  ;;  %v8353_v56 = vrot.slane %v8351_v57, 7  ;;  %v22666_v26 = vpack.c.bf16 %v8113_v42, %v8113_v42  ;;  %18307 = vmatprep.mubr.bf16.mxu1 %v19366_v0  ;;  %v22674_v14 = vpop.f32.mrf.mxu1 }
 0x421   :  { %v8881_v62 = vrot.slane %v8354_v1, 1  ;;  %9259 = vst [vmem:[#allocation3 + $0x60] sm:$0xf] %v9194_v3  ;;  %v8386_v4 = vshrl.u32 %v8237_v51, 16  ;;  %v8389_v55 = vshll.u32 %v8237_v51, 16  ;;  %v8372_v50 = vshrl.u32 %v8235_v49, 16 }
 0x422   :  { %v8375_v31 = vshll.u32 %v8235_v49, 16  ;;  %v8356_v34 = vor.u32 %v8354_v1, %v8353_v56  ;;  %v8393_v6 = vshrl.u32 %v8238_v40, 16  ;;  %v8396_v5 = vshll.u32 %v8238_v40, 16 }
 0x423   :  { %v8882_v25 = vor.u32 %v8881_v62, %v8351_v57  ;;  %v8388_v22 = vrot.slane %v8386_v4, 7  ;;  %v8891_v45 = vrot.slane %v8389_v55, 1  ;;  %v8374_v44 = vrot.slane %v8372_v50, 7 }
 0x424   :  { %v8887_v58 = vrot.slane %v8375_v31, 1  ;;  %v8808_v11 = vsel %vm20114_vm6, 0, %v8356_v34  ;;  %v8395_v60 = vrot.slane %v8393_v6, 7  ;;  %v8893_v29 = vrot.slane %v8396_v5, 1 }
 0x425   :  { %v9064_v42 = vsel %vm20120_vm7, %v8882_v25, 0  ;;  %v9128_v10 = vsel %vm20133_vm8, %v8808_v11, %v8232_v13  ;;  %v8391_v57 = vor.u32 %v8389_v55, %v8388_v22  ;;  %v8892_v1 = vor.u32 %v8891_v45, %v8386_v4 }
 0x426   :  { %v8377_v32 = vor.u32 %v8375_v31, %v8374_v44  ;;  %v9192_v52 = vsel %vm20140_vm9, %v9064_v42, %v9128_v10  ;;  %v8888_v0 = vor.u32 %v8887_v58, %v8372_v50  ;;  %v8398_v3 = vor.u32 %v8396_v5, %v8395_v60 }
 0x427   :  { %v8894_v56 = vor.u32 %v8893_v29, %v8393_v6  ;;  %9257 = vst [vmem:[#allocation3 + $0x58] sm:$0xf] %v9192_v52  ;;  %v8813_v62 = vsel %vm20114_vm6, 0, %v8391_v57  ;;  %v9069_v34 = vsel %vm20120_vm7, %v8892_v1, 0  ;;  %v8379_v13 = vshrl.u32 %v22666_v26, 16  ;;  %v22695_v6 = vpop.f32.mrf.mxu1 }
 0x428   :  { %v8811_v25 = vsel %vm20114_vm6, 0, %v8377_v32  ;;  %v9133_v4 = vsel %vm20133_vm8, %v8813_v62, %v8237_v51  ;;  %v9067_v55 = vsel %vm20120_vm7, %v8888_v0, 0  ;;  %v8814_v31 = vsel %vm20114_vm6, 0, %v8398_v3 }
 0x429   :  { %v9131_v50 = vsel %vm20133_vm8, %v8811_v25, %v8235_v49  ;;  %v9197_v5 = vsel %vm20140_vm9, %v9069_v34, %v9133_v4  ;;  %v9070_v51 = vsel %vm20120_vm7, %v8894_v56, 0  ;;  %v9134_v45 = vsel %vm20133_vm8, %v8814_v31, %v8238_v40  ;;  %v22719_v9 = vpop.f32.mrf.mxu1 }
 0x42a   :  { %v9195_v22 = vsel %vm20140_vm9, %v9067_v55, %v9131_v50  ;;  %9262 = vst [vmem:[#allocation3 + $0x6c] sm:$0xf] %v9197_v5  ;;  %v9198_v49 = vsel %vm20140_vm9, %v9070_v51, %v9134_v45  ;;  %v8381_v44 = vrot.slane %v8379_v13, 7  ;;  %v8382_v58 = vshll.u32 %v22666_v26, 16 }
 0x42b   :  { %9260 = vst [vmem:[#allocation3 + $0x64] sm:$0xf] %v9195_v22  ;;  %v8241_v11 = vpack.c.bf16 %v8118_v12, %v8118_v12  ;;  %9263 = vst [vmem:[#allocation3 + $0x70] sm:$0xf] %v9198_v49  ;;  %v7910_v42 = vadd.f32 %v22570_v37, %v22350_v17  ;;  %v7913_v60 = vadd.f32 %v22577_v63, %v22354_v38  ;;  %v19370_v37 = vld [vmem:[#allocation3 + $0x5c] sm:$0xff]   ;;  %v22736_v50 = vpop.f32.mrf.mxu1 }
 0x42c   :  { %v7911_v40 = vadd.f32 %v22583_v20, %v22361_v35  ;;  %v7916_v29 = vadd.f32 %v22589_v33, %v22365_v7  ;;  %v8384_v10 = vor.u32 %v8382_v58, %v8381_v44  ;;  %v8889_v57 = vrot.slane %v8382_v58, 1 }
 0x42d   :  { %v8414_v1 = vshrl.u32 %v8241_v11, 16  ;;  %v8417_v32 = vshll.u32 %v8241_v11, 16  ;;  %v7981_v12 = vmul.f32 %v22380_v46, %v7910_v42  ;;  %v7984_v52 = vmul.f32 %v22380_v46, %v7913_v60 }
 0x42e   :  { %v7982_v17 = vmul.f32 %v22380_v46, %v7911_v40  ;;  %v7987_v38 = vmul.f32 %v22380_v46, %v7916_v29  ;;  %v8812_v35 = vsel %vm20114_vm6, 0, %v8384_v10  ;;  %v8890_v63 = vor.u32 %v8889_v57, %v8379_v13  ;;  %v19367_v33 = vld [vmem:[#allocation3 + $0x54] sm:$0xff]  }
 0x42f   :  { %v8416_v7 = vrot.slane %v8414_v1, 7  ;;  %v8899_v20 = vrot.slane %v8417_v32, 1  ;;  %v9132_v0 = vsel %vm20133_vm8, %v8812_v35, %v22666_v26  ;;  %v8052_v3 = vadd.f32 %v22408_v61, %v7981_v12  ;;  %v19368_v34 = vld [vmem:[#allocation3 + $0x58] sm:$0xff]   ;;  %18227 = vmatprep.mubr.bf16.mxu0 %v19367_v33 }
 0x430   :  { %v8055_v56 = vadd.f32 %v22408_v61, %v7984_v52  ;;  %v8053_v62 = vadd.f32 %v22408_v61, %v7982_v17  ;;  %v9068_v25 = vsel %vm20120_vm7, %v8890_v63, 0  ;;  %v8058_v13 = vadd.f32 %v22408_v61, %v7987_v38  ;;  %18308 = vmatmul.mubr.bf16.gmra.mxu1 %v19368_v34  ;;  %18228 = vmatmul.mubr.bf16.gmra.mxu0 %v19370_v37 }
 0x431   :  { %v8419_v4 = vor.u32 %v8417_v32, %v8416_v7  ;;  %v8900_v55 = vor.u32 %v8899_v20, %v8414_v1  ;;  %v9196_v26 = vsel %vm20140_vm9, %v9068_v25, %v9132_v0  ;;  %v8116_v31 = vmax.f32 %v8052_v3, 0.0  ;;  %v22753_v32 = vpop.f32.mrf.mxu1 }
 0x432   :  { %v8119_v5 = vmax.f32 %v8055_v56, 0.0  ;;  %v8117_v22 = vmax.f32 %v8053_v62, 0.0  ;;  %v19371_v51 = vld [vmem:[#allocation3 + $0x60] sm:$0xff]   ;;  %9261 = vst [vmem:[#allocation3 + $0x68] sm:$0xf] %v9196_v26  ;;  %v8122_v61 = vmax.f32 %v8058_v13, 0.0  ;;  %v7914_v44 = vadd.f32 %v22594_v24, %v22369_v30 }
 0x433   :  { %v8817_v45 = vsel %vm20114_vm6, 0, %v8419_v4  ;;  %v9073_v49 = vsel %vm20120_vm7, %v8900_v55, 0  ;;  %v8239_v42 = vpack.c.bf16 %v8116_v31, %v8116_v31  ;;  %18311 = vmatprep.mubr.bf16.mxu1 %v19371_v51  ;;  %v7917_v1 = vadd.f32 %v22610_v54, %v22384_v36  ;;  %v19374_v36 = vld [vmem:[#allocation3 + $0x6c] sm:$0xff]   ;;  %v22755_v54 = vpop.f32.mrf.mxu1 }
 0x434   :  { %v9137_v58 = vsel %vm20133_vm8, %v8817_v45, %v8241_v11  ;;  %v8242_v60 = vpack.c.bf16 %v8119_v5, %v8119_v5  ;;  %v8240_v40 = vpack.c.bf16 %v8117_v22, %v8117_v22  ;;  %v8245_v10 = vpack.c.bf16 %v8122_v61, %v8122_v61 }
 0x435   :  { %v9201_v29 = vsel %vm20140_vm9, %v9073_v49, %v9137_v58  ;;  %v7985_v57 = vmul.f32 %v22380_v46, %v7914_v44  ;;  %v8400_v30 = vshrl.u32 %v8239_v42, 16  ;;  %v8403_v24 = vshll.u32 %v8239_v42, 16 }
 0x436   :  { %9266 = vst [vmem:[#allocation3 + $0x84] sm:$0xf] %v9201_v29  ;;  %v8421_v12 = vshrl.u32 %v8242_v60, 16  ;;  %v8424_v11 = vshll.u32 %v8242_v60, 16  ;;  %v8407_v52 = vshrl.u32 %v8240_v40, 16  ;;  %v8410_v17 = vshll.u32 %v8240_v40, 16 }
 0x437   :  { %v8442_v38 = vshrl.u32 %v8245_v10, 16  ;;  %v8445_v37 = vshll.u32 %v8245_v10, 16  ;;  %v8402_v35 = vrot.slane %v8400_v30, 7  ;;  %v8895_v63 = vrot.slane %v8403_v24, 1 }
 0x438   :  { %v8423_v7 = vrot.slane %v8421_v12, 7  ;;  %v8901_v20 = vrot.slane %v8424_v11, 1  ;;  %v8409_v33 = vrot.slane %v8407_v52, 7  ;;  %v8897_v46 = vrot.slane %v8410_v17, 1 }
 0x439   :  { %v8444_v0 = vrot.slane %v8442_v38, 7  ;;  %v8907_v3 = vrot.slane %v8445_v37, 1  ;;  %v8405_v56 = vor.u32 %v8403_v24, %v8402_v35  ;;  %v8896_v62 = vor.u32 %v8895_v63, %v8400_v30  ;;  %v19372_v4 = vld [vmem:[#allocation3 + $0x64] sm:$0xff]   ;;  %v22773_v30 = vpop.f32.mrf.mxu1  ;;  %v22803_v63 = vld [vmem:[%s24716_s5] ss:$0 sm:$0xff] }
 0x43a   :  { %v8426_v34 = vor.u32 %v8424_v11, %v8423_v7  ;;  %v8902_v25 = vor.u32 %v8901_v20, %v8421_v12  ;;  %v8412_v55 = vor.u32 %v8410_v17, %v8409_v33  ;;  %v8898_v13 = vor.u32 %v8897_v46, %v8407_v52  ;;  %v19373_v5 = vld [vmem:[#allocation3 + $0x68] sm:$0xff]   ;;  %18231 = vmatprep.mubr.bf16.mxu0 %v19372_v4  ;;  %v19396_v11 = vld [vmem:[%s24715_s7 + $0x90] sm:$0xff]  }
 0x43b   :  { %v8447_v26 = vor.u32 %v8445_v37, %v8444_v0  ;;  %v8908_v31 = vor.u32 %v8907_v3, %v8442_v38  ;;  %v8815_v22 = vsel %vm20114_vm6, 0, %v8405_v56  ;;  %v9071_v51 = vsel %vm20120_vm7, %v8896_v62, 0  ;;  %18312 = vmatmul.mubr.bf16.gmra.mxu1 %v19373_v5  ;;  %18232 = vmatmul.mubr.bf16.gmra.mxu0 %v19374_v36  ;;  %v22816_v3 = vpop.f32.mrf.mxu1 }
 0x43c   :  { %v8818_v45 = vsel %vm20114_vm6, 0, %v8426_v34  ;;  %v9074_v49 = vsel %vm20120_vm7, %v8902_v25, 0  ;;  %v9135_v61 = vsel %vm20133_vm8, %v8815_v22, %v8239_v42  ;;  %v8816_v58 = vsel %vm20114_vm6, 0, %v8412_v55  ;;  %18365 = vmatprep.subr.bf16.mxu0 %v19396_v11 }
 0x43d   :  { %v9138_v44 = vsel %vm20133_vm8, %v8818_v45, %v8242_v60  ;;  %v9072_v29 = vsel %vm20120_vm7, %v8898_v13, 0  ;;  %v9199_v24 = vsel %vm20140_vm9, %v9071_v51, %v9135_v61  ;;  %v9136_v42 = vsel %vm20133_vm8, %v8816_v58, %v8240_v40  ;;  %v22795_v40 = vld [vmem:[%s24717_s6] ss:$0 sm:$0xff]  ;;  %18366 = vmatpush3.bf16.msra.mxu0 %v19396_v11 }
 0x43e   :  { %v9202_v12 = vsel %vm20140_vm9, %v9074_v49, %v9138_v44  ;;  %v8821_v60 = vsel %vm20114_vm6, 0, %v8447_v26  ;;  %9264 = vst [vmem:[#allocation3 + $0x7c] sm:$0xf] %v9199_v24  ;;  %v9200_v52 = vsel %vm20140_vm9, %v9072_v29, %v9136_v42  ;;  %v9077_v17 = vsel %vm20120_vm7, %v8908_v31, 0 }
 0x43f   :  { %9267 = vst [vmem:[#allocation3 + $0x88] sm:$0xf] %v9202_v12  ;;  %v9141_v38 = vsel %vm20133_vm8, %v8821_v60, %v8245_v10  ;;  %v8056_v37 = vadd.f32 %v22795_v40, %v7985_v57  ;;  %9265 = vst [vmem:[#allocation3 + $0x80] sm:$0xf] %v9200_v52  ;;  %v7988_v7 = vmul.f32 %v22803_v63, %v7917_v1 }
 0x440   :  { %v9205_v35 = vsel %vm20140_vm9, %v9077_v17, %v9141_v38  ;;  %v7915_v10 = vadd.f32 %v22625_v27, %v22388_v23  ;;  %v7920_v20 = vadd.f32 %v22640_v39, %v22392_v53  ;;  %v7918_v33 = vadd.f32 %v22647_v16, %v22396_v18 }
 0x441   :  { %9270 = vst [vmem:[#allocation3 + $0x94] sm:$0xf] %v9205_v35  ;;  %v8120_v57 = vmax.f32 %v8056_v37, 0.0  ;;  %v7921_v46 = vadd.f32 %v22655_v2, %v22412_v21  ;;  %v7919_v0 = vadd.f32 %v22668_v41, %v22415_v19  ;;  %v8059_v23 = vadd.f32 %v22795_v40, %v7988_v7 }
 0x442   :  { %v7986_v27 = vmul.f32 %v22803_v63, %v7915_v10  ;;  %v7991_v53 = vmul.f32 %v22803_v63, %v7920_v20  ;;  %v7924_v39 = vadd.f32 %v22674_v14, %v22431_v59  ;;  %v7989_v18 = vmul.f32 %v22803_v63, %v7918_v33  ;;  %v22833_v14 = vpop.f32.mrf.mxu1 }
 0x443   :  { %v8243_v1 = vpack.c.bf16 %v8120_v57, %v8120_v57  ;;  %v7992_v21 = vmul.f32 %v22803_v63, %v7921_v46  ;;  %v7990_v16 = vmul.f32 %v22803_v63, %v7919_v0  ;;  %v8123_v19 = vmax.f32 %v8059_v23, 0.0 }
 0x444   :  { %v8057_v2 = vadd.f32 %v22795_v40, %v7986_v27  ;;  %v8062_v41 = vadd.f32 %v22795_v40, %v7991_v53  ;;  %v22829_v36 = vmul.f32 %v22803_v63, %v7924_v39  ;;  %v8060_v34 = vadd.f32 %v22795_v40, %v7989_v18  ;;  %v22840_v52 = vpop.f32.mrf.mxu1 }
 0x445   :  { %v8428_v56 = vshrl.u32 %v8243_v1, 16  ;;  %v8431_v62 = vshll.u32 %v8243_v1, 16  ;;  %v8063_v59 = vadd.f32 %v22795_v40, %v7992_v21  ;;  %v8246_v25 = vpack.c.bf16 %v8123_v19, %v8123_v19  ;;  %v19375_v26 = vld [vmem:[#allocation3 + $0x78] sm:$0xff]  }
 0x446   :  { %v8121_v4 = vmax.f32 %v8057_v2, 0.0  ;;  %v8126_v55 = vmax.f32 %v8062_v41, 0.0  ;;  %v22836_v13 = vadd.f32 %v22795_v40, %v7990_v16  ;;  %v8124_v22 = vmax.f32 %v8060_v34, 0.0  ;;  %v19379_v45 = vld [vmem:[#allocation3 + $0x84] sm:$0xff]   ;;  %18315 = vmatprep.mubr.bf16.mxu1 %v19375_v26  ;;  %v19376_v29 = vld [vmem:[#allocation3 + $0x7c] sm:$0xff]   ;;  %v22850_v21 = vpop.f32.mrf.mxu1 }
 0x447   :  { %v8430_v31 = vrot.slane %v8428_v56, 7  ;;  %v8903_v5 = vrot.slane %v8431_v62, 1  ;;  %v8127_v51 = vmax.f32 %v8063_v59, 0.0  ;;  %v8449_v49 = vshrl.u32 %v8246_v25, 16  ;;  %v19377_v24 = vld [vmem:[#allocation3 + $0x80] sm:$0xff]   ;;  %18235 = vmatprep.mubr.bf16.mxu0 %v19376_v29 }
 0x448   :  { %v8452_v61 = vshll.u32 %v8246_v25, 16  ;;  %v8244_v44 = vpack.c.bf16 %v8121_v4, %v8121_v4  ;;  %v8249_v58 = vpack.c.bf16 %v8126_v55, %v8126_v55  ;;  %v8247_v60 = vpack.c.bf16 %v8124_v22, %v8124_v22  ;;  %18316 = vmatmul.mubr.bf16.gmra.mxu1 %v19377_v24  ;;  %18236 = vmatmul.mubr.bf16.gmra.mxu0 %v19379_v45 }
 0x449   :  { %v8433_v12 = vor.u32 %v8431_v62, %v8430_v31  ;;  %v8904_v42 = vor.u32 %v8903_v5, %v8428_v56  ;;  %v22838_v11 = vpack.c.bf16 %v8127_v51, %v8127_v51  ;;  %v8451_v17 = vrot.slane %v8449_v49, 7  ;;  %v22870_v51 = vpop.f32.mrf.mxu1 }
 0x44a   :  { %v8909_v38 = vrot.slane %v8452_v61, 1  ;;  %v8435_v37 = vshrl.u32 %v8244_v44, 16  ;;  %v8438_v35 = vshll.u32 %v8244_v44, 16  ;;  %v8470_v20 = vshrl.u32 %v8249_v58, 16 }
 0x44b   :  { %v8819_v7 = vsel %vm20114_vm6, 0, %v8433_v12  ;;  %v9075_v10 = vsel %vm20120_vm7, %v8904_v42, 0  ;;  %v8473_v57 = vshll.u32 %v8249_v58, 16  ;;  %v8454_v46 = vor.u32 %v8452_v61, %v8451_v17 }
 0x44c   :  { %v9139_v33 = vsel %vm20133_vm8, %v8819_v7, %v8243_v1  ;;  %v8910_v0 = vor.u32 %v8909_v38, %v8449_v49  ;;  %v8437_v23 = vrot.slane %v8435_v37, 7  ;;  %v8905_v53 = vrot.slane %v8438_v35, 1 }
 0x44d   :  { %v9203_v27 = vsel %vm20140_vm9, %v9075_v10, %v9139_v33  ;;  %v8472_v39 = vrot.slane %v8470_v20, 7  ;;  %v8915_v18 = vrot.slane %v8473_v57, 1  ;;  %v8822_v16 = vsel %vm20114_vm6, 0, %v8454_v46  ;;  %v22889_v33 = vpop.f32.mrf.mxu1 }
 0x44e   :  { %9268 = vst [vmem:[#allocation3 + $0x8c] sm:$0xf] %v9203_v27  ;;  %v9078_v19 = vsel %vm20120_vm7, %v8910_v0, 0  ;;  %v8440_v2 = vor.u32 %v8438_v35, %v8437_v23  ;;  %v8456_v1 = vshrl.u32 %v8247_v60, 16  ;;  %v9142_v41 = vsel %vm20133_vm8, %v8822_v16, %v8246_v25  ;;  %v19384_v16 = vld [vmem:[#allocation3 + $0xf0] sm:$0xff]  }
 0x44f   :  { %v8906_v56 = vor.u32 %v8905_v53, %v8435_v37  ;;  %v8475_v62 = vor.u32 %v8473_v57, %v8472_v39  ;;  %v8916_v34 = vor.u32 %v8915_v18, %v8470_v20  ;;  %v9206_v59 = vsel %vm20140_vm9, %v9078_v19, %v9142_v41  ;;  %v19385_v19 = vld [vmem:[#allocation3 + $0xf4] sm:$0xff]  }
 0x450   :  { %v8820_v4 = vsel %vm20114_vm6, 0, %v8440_v2  ;;  %v8458_v55 = vrot.slane %v8456_v1, 7  ;;  %v8459_v26 = vshll.u32 %v8247_v60, 16  ;;  %9271 = vst [vmem:[#allocation3 + $0x98] sm:$0xf] %v9206_v59  ;;  %v8477_v24 = vshrl.u32 %v22838_v11, 16  ;;  %v22912_v59 = vpop.f32.mrf.mxu1 }
 0x451   :  { %v9076_v31 = vsel %vm20120_vm7, %v8906_v56, 0  ;;  %v9140_v5 = vsel %vm20133_vm8, %v8820_v4, %v8244_v44  ;;  %v8825_v25 = vsel %vm20114_vm6, 0, %v8475_v62  ;;  %v9081_v22 = vsel %vm20120_vm7, %v8916_v34, 0  ;;  %v25171_v56 = vld [vmem:[#allocation99_spill] sm:$0xff] }
 0x452   :  { %v9204_v45 = vsel %vm20140_vm9, %v9076_v31, %v9140_v5  ;;  %v9145_v49 = vsel %vm20133_vm8, %v8825_v25, %v8249_v58  ;;  %v8461_v61 = vor.u32 %v8459_v26, %v8458_v55  ;;  %v8911_v29 = vrot.slane %v8459_v26, 1 }
 0x453   :  { %9269 = vst [vmem:[#allocation3 + $0x90] sm:$0xf] %v9204_v45  ;;  %v9209_v44 = vsel %vm20140_vm9, %v9081_v22, %v9145_v49  ;;  %v8480_v12 = vshll.u32 %v22838_v11, 16  ;;  %v8125_v42 = vmax.f32 %v22836_v13, 0.0  ;;  %v8066_v58 = vadd.f32 %v22795_v40, %v22829_v36 }
 0x454   :  { %9274 = vst [vmem:[#allocation3 + $0xac] sm:$0xf] %v9209_v44  ;;  %v8823_v17 = vsel %vm20114_vm6, 0, %v8461_v61  ;;  %v8912_v38 = vor.u32 %v8911_v29, %v8456_v1  ;;  %v7922_v37 = vadd.f32 %v22695_v6, %v22435_v8  ;;  %v8479_v7 = vrot.slane %v8477_v24, 7  ;;  %v19405_v8 = vld [vmem:[%s24715_s7 + $0x88] sm:$0xff]   ;;  %v19406_v6 = vld [vmem:[%s24715_s7 + $0xf8] sm:$0xff]  }
 0x455   :  { %v9143_v35 = vsel %vm20133_vm8, %v8823_v17, %v8247_v60  ;;  %v8917_v10 = vrot.slane %v8480_v12, 1  ;;  %v8248_v20 = vpack.c.bf16 %v8125_v42, %v8125_v42  ;;  %v19380_v57 = vld [vmem:[#allocation3 + $0x88] sm:$0xff]   ;;  %v8130_v46 = vmax.f32 %v8066_v58, 0.0  ;;  %18367 = vmatprep.subr.bf16.mxu0 %v19405_v8  ;;  %18435 = vmatprep.subr.bf16.mxu1 %v19406_v6  ;;  %v25172_v17 = vld [vmem:[#allocation84_spill] sm:$0xff]  ;;  %v22925_v58 = vpop.f32.mrf.mxu1 }
 0x456   :  { %v9079_v13 = vsel %vm20120_vm7, %v8912_v38, 0  ;;  %v7993_v0 = vmul.f32 %v22803_v63, %v7922_v37  ;;  %v7925_v36 = vadd.f32 %v22719_v9, %v22448_v28  ;;  %v8482_v23 = vor.u32 %v8480_v12, %v8479_v7  ;;  %18319 = vmatprep.mubr.bf16.mxu1 %v19380_v57  ;;  %18368 = vmatpush3.bf16.msra.mxu0 %v19405_v8 }
 0x457   :  { %v9207_v60 = vsel %vm20140_vm9, %v9079_v13, %v9143_v35  ;;  %v8918_v27 = vor.u32 %v8917_v10, %v8477_v24  ;;  %v8463_v53 = vshrl.u32 %v8248_v20, 16  ;;  %v8466_v39 = vshll.u32 %v8248_v20, 16  ;;  %v19383_v34 = vld [vmem:[#allocation3 + $0x94] sm:$0xff]   ;;  %18436 = vmatpush3.bf16.msra.mxu1 %v19406_v6 }
 0x458   :  { %9272 = vst [vmem:[#allocation3 + $0xa4] sm:$0xf] %v9207_v60  ;;  %v8253_v18 = vpack.c.bf16 %v8130_v46, %v8130_v46  ;;  %v8064_v28 = vadd.f32 %v22795_v40, %v7993_v0  ;;  %v7996_v9 = vmul.f32 %v22803_v63, %v7925_v36  ;;  %v8826_v2 = vsel %vm20114_vm6, 0, %v8482_v23  ;;  %v19386_v0 = vld [vmem:[#allocation3 + $0xf8] sm:$0xff]  }
 0x459   :  { %v9082_v1 = vsel %vm20120_vm7, %v8918_v27, 0  ;;  %v8465_v41 = vrot.slane %v8463_v53, 7  ;;  %v7923_v62 = vadd.f32 %v22736_v50, %v25171_v56  ;;  %v9146_v4 = vsel %vm20133_vm8, %v8826_v2, %v22838_v11  ;;  %v19388_v36 = vld [vmem:[#allocation3 + $0xfc] sm:$0xff]   ;;  %v19409_v56 = vld [vmem:[%s24715_s7 + $0xf0] sm:$0xff]  }
 0x45a   :  { %v8913_v55 = vrot.slane %v8466_v39, 1  ;;  %v8498_v26 = vshrl.u32 %v8253_v18, 16  ;;  %v8501_v31 = vshll.u32 %v8253_v18, 16  ;;  %v19381_v5 = vld [vmem:[#allocation3 + $0x8c] sm:$0xff]   ;;  %v9210_v25 = vsel %vm20140_vm9, %v9082_v1, %v9146_v4  ;;  %18437 = vmatprep.subr.bf16.mxu1 %v19409_v56 }
 0x45b   :  { %v8468_v22 = vor.u32 %v8466_v39, %v8465_v41  ;;  %v8128_v45 = vmax.f32 %v8064_v28, 0.0  ;;  %v8067_v50 = vadd.f32 %v22795_v40, %v7996_v9  ;;  %v19382_v49 = vld [vmem:[#allocation3 + $0x90] sm:$0xff]   ;;  %9275 = vst [vmem:[#allocation3 + $0xb0] sm:$0xf] %v9210_v25  ;;  %v7994_v24 = vmul.f32 %v22803_v63, %v7923_v62  ;;  %18239 = vmatprep.mubr.bf16.mxu0 %v19381_v5  ;;  %v22941_v28 = vpop.f32.mrf.mxu1  ;;  %v19389_v9 = vld [vmem:[#allocation3 + $0x100] sm:$0xff]   ;;  %v25173_v4 = vld [vmem:[#allocation85_spill] sm:$0xff] }
 0x45c   :  { %v8914_v61 = vor.u32 %v8913_v55, %v8463_v53  ;;  %v8500_v29 = vrot.slane %v8498_v26, 7  ;;  %v8923_v44 = vrot.slane %v8501_v31, 1  ;;  %v7928_v38 = vadd.f32 %v22753_v32, %v25172_v17  ;;  %18320 = vmatmul.mubr.bf16.gmra.mxu1 %v19382_v49  ;;  %18240 = vmatmul.mubr.bf16.gmra.mxu0 %v19383_v34  ;;  %v19390_v41 = vld [vmem:[#allocation3 + $0x104] sm:$0xff]  }
 0x45d   :  { %v8824_v11 = vsel %vm20114_vm6, 0, %v8468_v22  ;;  %v8251_v12 = vpack.c.bf16 %v8128_v45, %v8128_v45  ;;  %v8131_v42 = vmax.f32 %v8067_v50, 0.0  ;;  %18323 = vmatprep.mubr.bf16.mxu1 %v19384_v16  ;;  %18243 = vmatprep.mubr.bf16.mxu0 %v19385_v19  ;;  %v7926_v55 = vadd.f32 %v22755_v54, %v25173_v4  ;;  %v25174_v25 = vld [vmem:[#allocation89_spill] sm:$0xff] }
 0x45e   :  { %v9080_v37 = vsel %vm20120_vm7, %v8914_v61, 0  ;;  %v9144_v35 = vsel %vm20133_vm8, %v8824_v11, %v8248_v20  ;;  %v8503_v7 = vor.u32 %v8501_v31, %v8500_v29  ;;  %v8924_v10 = vor.u32 %v8923_v44, %v8498_v26  ;;  %v22958_v29 = vpop.f32.mrf.mxu1  ;;  %18438 = vmatpush3.bf16.msra.mxu1 %v19409_v56 }
 0x45f   :  { %v9208_v57 = vsel %vm20140_vm9, %v9080_v37, %v9144_v35  ;;  %v8484_v13 = vshrl.u32 %v8251_v12, 16  ;;  %v8487_v46 = vshll.u32 %v8251_v12, 16  ;;  %v8254_v32 = vpack.c.bf16 %v8131_v42, %v8131_v42 }
 0x460   :  { %9273 = vst [vmem:[#allocation3 + $0xa8] sm:$0xf] %v9208_v57  ;;  %v8829_v8 = vsel %vm20114_vm6, 0, %v8503_v7  ;;  %v9085_v6 = vsel %vm20120_vm7, %v8924_v10, 0  ;;  %v8065_v20 = vadd.f32 %v22795_v40, %v7994_v24  ;;  %v7999_v60 = vmul.f32 %v22803_v63, %v7928_v38  ;;  %v19391_v10 = vld [vmem:[#allocation3 + $0x108] sm:$0xff]  }
 0x461   :  { %v9149_v23 = vsel %vm20133_vm8, %v8829_v8, %v8253_v18  ;;  %v8486_v27 = vrot.slane %v8484_v13, 7  ;;  %v8919_v53 = vrot.slane %v8487_v46, 1  ;;  %v8505_v39 = vshrl.u32 %v8254_v32, 16  ;;  %v19392_v8 = vld [vmem:[#allocation3 + $0x10c] sm:$0xff]  }
 0x462   :  { %v9213_v16 = vsel %vm20140_vm9, %v9085_v6, %v9149_v23  ;;  %v8508_v19 = vshll.u32 %v8254_v32, 16  ;;  %v8129_v2 = vmax.f32 %v8065_v20, 0.0  ;;  %v8070_v1 = vadd.f32 %v22795_v40, %v7999_v60  ;;  %v19412_v6 = vld [vmem:[%s24715_s7 + $0xe8] sm:$0xff]  }
 0x463   :  { %9278 = vst [vmem:[#allocation3 + $0xbc] sm:$0xf] %v9213_v16  ;;  %v8489_v18 = vor.u32 %v8487_v46, %v8486_v27  ;;  %v8920_v62 = vor.u32 %v8919_v53, %v8484_v13  ;;  %v8507_v34 = vrot.slane %v8505_v39, 7  ;;  %v7929_v22 = vadd.f32 %v22773_v30, %v25174_v25  ;;  %v25175_v27 = vld [vmem:[#allocation88_spill] sm:$0xff]  ;;  %18439 = vmatprep.subr.bf16.mxu1 %v19412_v6 }
 0x464   :  { %v8925_v26 = vrot.slane %v8508_v19, 1  ;;  %v8252_v31 = vpack.c.bf16 %v8129_v2, %v8129_v2  ;;  %v8134_v5 = vmax.f32 %v8070_v1, 0.0  ;;  %v7997_v61 = vmul.f32 %v22803_v63, %v7926_v55  ;;  %18324 = vmatmul.mubr.bf16.gmra.mxu1 %v19386_v0  ;;  %18244 = vmatmul.mubr.bf16.gmra.mxu0 %v19388_v36  ;;  %v22973_v36 = vpop.f32.mrf.mxu1  ;;  %v25176_v2 = vld [vmem:[#allocation101_spill] sm:$0xff] }
 0x465   :  { %v8827_v45 = vsel %vm20114_vm6, 0, %v8489_v18  ;;  %v9083_v50 = vsel %vm20120_vm7, %v8920_v62, 0  ;;  %v8510_v49 = vor.u32 %v8508_v19, %v8507_v34  ;;  %18327 = vmatprep.mubr.bf16.mxu1 %v19389_v9  ;;  %18247 = vmatprep.mubr.bf16.mxu0 %v19390_v41  ;;  %v8000_v23 = vmul.f32 %v22803_v63, %v7929_v22  ;;  %v19431_v41 = vld [vmem:[%s24715_s7 + $0x138] sm:$0xff]  }
 0x466   :  { %v9147_v54 = vsel %vm20133_vm8, %v8827_v45, %v8251_v12  ;;  %v8926_v44 = vor.u32 %v8925_v26, %v8505_v39  ;;  %v8491_v24 = vshrl.u32 %v8252_v31, 16  ;;  %v8494_v30 = vshll.u32 %v8252_v31, 16  ;;  %v19415_v39 = vld [vmem:[%s24715_s7 + $0xe0] sm:$0xff]   ;;  %18440 = vmatpush3.bf16.msra.mxu1 %v19412_v6  ;;  %v23000_v26 = vpop.f32.mrf.mxu1 }
 0x467   :  { %v9211_v11 = vsel %vm20140_vm9, %v9083_v50, %v9147_v54  ;;  %v8830_v42 = vsel %vm20114_vm6, 0, %v8510_v49  ;;  %v8257_v17 = vpack.c.bf16 %v8134_v5, %v8134_v5  ;;  %v8068_v38 = vadd.f32 %v22795_v40, %v7997_v61  ;;  %v19419_v5 = vld [vmem:[%s24715_s7 + $0xd8] sm:$0xff]   ;;  %18441 = vmatprep.subr.bf16.mxu1 %v19415_v39 }
 0x468   :  { %9276 = vst [vmem:[#allocation3 + $0xb4] sm:$0xf] %v9211_v11  ;;  %v9086_v37 = vsel %vm20120_vm7, %v8926_v44, 0  ;;  %v9150_v12 = vsel %vm20133_vm8, %v8830_v42, %v8254_v32  ;;  %v8493_v35 = vrot.slane %v8491_v24, 7  ;;  %v8921_v7 = vrot.slane %v8494_v30, 1  ;;  %v19418_v32 = vld [vmem:[%s24715_s7 + $0x80] sm:$0xff]  }
 0x469   :  { %v9214_v57 = vsel %vm20140_vm9, %v9086_v37, %v9150_v12  ;;  %v8526_v13 = vshrl.u32 %v8257_v17, 16  ;;  %v8529_v46 = vshll.u32 %v8257_v17, 16  ;;  %v8132_v0 = vmax.f32 %v8068_v38, 0.0  ;;  %18369 = vmatprep.subr.bf16.mxu0 %v19418_v32  ;;  %v25177_v12 = vld [vmem:[#allocation102_spill] sm:$0xff] }
 0x46a   :  { %9279 = vst [vmem:[#allocation3 + $0xc0] sm:$0xf] %v9214_v57  ;;  %v8496_v20 = vor.u32 %v8494_v30, %v8493_v35  ;;  %v8922_v60 = vor.u32 %v8921_v7, %v8491_v24  ;;  %v7927_v53 = vadd.f32 %v22816_v3, %v25175_v27  ;;  %v7932_v1 = vadd.f32 %v22833_v14, %v25176_v2  ;;  %v23020_v7 = vpop.f32.mrf.mxu1 }
 0x46b   :  { %v8528_v9 = vrot.slane %v8526_v13, 7  ;;  %v8931_v16 = vrot.slane %v8529_v46, 1  ;;  %v8255_v19 = vpack.c.bf16 %v8132_v0, %v8132_v0  ;;  %v8071_v18 = vadd.f32 %v22795_v40, %v8000_v23  ;;  %18370 = vmatpush3.bf16.msra.mxu0 %v19418_v32  ;;  %18442 = vmatpush3.bf16.msra.mxu1 %v19415_v39  ;;  %v25178_v32 = vld [vmem:[#allocation103_spill] sm:$0xff] }
 0x46c   :  { %v8828_v56 = vsel %vm20114_vm6, 0, %v8496_v20  ;;  %v9084_v3 = vsel %vm20120_vm7, %v8922_v60, 0  ;;  %v7998_v62 = vmul.f32 %v22803_v63, %v7927_v53  ;;  %18328 = vmatmul.mubr.bf16.gmra.mxu1 %v19391_v10  ;;  %18248 = vmatmul.mubr.bf16.gmra.mxu0 %v19392_v8  ;;  %v8003_v54 = vmul.f32 %v22803_v63, %v7932_v1  ;;  %v19425_v53 = vld [vmem:[%s24715_s7 + $0xc8] sm:$0xff]  }
 0x46d   :  { %v9148_v14 = vsel %vm20133_vm8, %v8828_v56, %v8252_v31  ;;  %v8531_v34 = vor.u32 %v8529_v46, %v8528_v9  ;;  %v8932_v4 = vor.u32 %v8931_v16, %v8526_v13  ;;  %v8512_v55 = vshrl.u32 %v8255_v19, 16  ;;  %18515 = vmatprep.subr.bf16.mxu0 %v19431_v41  ;;  %18443 = vmatprep.subr.bf16.mxu1 %v19419_v5 }
 0x46e   :  { %v9212_v25 = vsel %vm20140_vm9, %v9084_v3, %v9148_v14  ;;  %v8515_v22 = vshll.u32 %v8255_v19, 16  ;;  %v8135_v45 = vmax.f32 %v8071_v18, 0.0  ;;  %v8069_v50 = vadd.f32 %v22795_v40, %v7998_v62 }
 0x46f   :  { %9277 = vst [vmem:[#allocation3 + $0xb8] sm:$0xf] %v9212_v25  ;;  %v8833_v31 = vsel %vm20114_vm6, 0, %v8531_v34  ;;  %v9089_v49 = vsel %vm20120_vm7, %v8932_v4, 0  ;;  %v8514_v61 = vrot.slane %v8512_v55, 7  ;;  %v8074_v37 = vadd.f32 %v22795_v40, %v8003_v54  ;;  %18444 = vmatpush3.bf16.msra.mxu1 %v19419_v5 }
 0x470   :  { %v9153_v44 = vsel %vm20133_vm8, %v8833_v31, %v8257_v17  ;;  %v8927_v24 = vrot.slane %v8515_v22, 1  ;;  %v8258_v30 = vpack.c.bf16 %v8135_v45, %v8135_v45  ;;  %v8133_v11 = vmax.f32 %v8069_v50, 0.0  ;;  %v19422_v17 = vld [vmem:[%s24715_s7 + $0xd0] sm:$0xff]  }
 0x471   :  { %v9217_v42 = vsel %vm20140_vm9, %v9089_v49, %v9153_v44  ;;  %v8517_v38 = vor.u32 %v8515_v22, %v8514_v61  ;;  %v7930_v35 = vadd.f32 %v22840_v52, %v25177_v12  ;;  %v8138_v8 = vmax.f32 %v8074_v37, 0.0  ;;  %18445 = vmatprep.subr.bf16.mxu1 %v19422_v17  ;;  %v19428_v49 = vld [vmem:[%s24715_s7 + $0xc0] sm:$0xff]   ;;  %v25180_v37 = vld [vmem:[#allocation143_spill] sm:$0xff] }
 0x472   :  { %9282 = vst [vmem:[#allocation3 + $0x124] sm:$0xf] %v9217_v42  ;;  %v8928_v10 = vor.u32 %v8927_v24, %v8512_v55  ;;  %v8533_v57 = vshrl.u32 %v8258_v30, 16  ;;  %v8536_v13 = vshll.u32 %v8258_v30, 16  ;;  %v8256_v46 = vpack.c.bf16 %v8133_v11, %v8133_v11 }
 0x473   :  { %v8831_v0 = vsel %vm20114_vm6, 0, %v8517_v38  ;;  %v8001_v6 = vmul.f32 %v22803_v63, %v7930_v35  ;;  %v7933_v52 = vadd.f32 %v22850_v21, %v25178_v32  ;;  %v8261_v2 = vpack.c.bf16 %v8138_v8, %v8138_v8  ;;  %v23039_v21 = vpop.f32.mrf.mxu1  ;;  %18446 = vmatpush3.bf16.msra.mxu1 %v19422_v17  ;;  %v25179_v38 = vld [vmem:[#allocation93_spill] sm:$0xff] }
 0x474   :  { %v9087_v20 = vsel %vm20120_vm7, %v8928_v10, 0  ;;  %v9151_v60 = vsel %vm20133_vm8, %v8831_v0, %v8255_v19  ;;  %v8535_v23 = vrot.slane %v8533_v57, 7  ;;  %v8933_v27 = vrot.slane %v8536_v13, 1  ;;  %18447 = vmatprep.subr.bf16.mxu1 %v19425_v53 }
 0x475   :  { %v9215_v39 = vsel %vm20140_vm9, %v9087_v20, %v9151_v60  ;;  %v8519_v9 = vshrl.u32 %v8256_v46, 16  ;;  %v8522_v16 = vshll.u32 %v8256_v46, 16  ;;  %v8072_v19 = vadd.f32 %v22795_v40, %v8001_v6  ;;  %v23050_v31 = vpop.f32.mrf.mxu1 }
 0x476   :  { %9280 = vst [vmem:[#allocation3 + $0x11c] sm:$0xf] %v9215_v39  ;;  %v8538_v1 = vor.u32 %v8536_v13, %v8535_v23  ;;  %v8934_v41 = vor.u32 %v8933_v27, %v8533_v57  ;;  %v8004_v56 = vmul.f32 %v22803_v63, %v7933_v52  ;;  %v8554_v62 = vshrl.u32 %v8261_v2, 16 }
 0x477   :  { %v8521_v3 = vrot.slane %v8519_v9, 7  ;;  %v8929_v18 = vrot.slane %v8522_v16, 1  ;;  %v8557_v14 = vshll.u32 %v8261_v2, 16  ;;  %v8136_v55 = vmax.f32 %v8072_v19, 0.0  ;;  %18448 = vmatpush3.bf16.msra.mxu1 %v19425_v53  ;;  %v23070_v52 = vpop.f32.mrf.mxu1 }
 0x478   :  { %v8834_v34 = vsel %vm20114_vm6, 0, %v8538_v1  ;;  %v9090_v4 = vsel %vm20120_vm7, %v8934_v41, 0  ;;  %v8075_v5 = vadd.f32 %v22795_v40, %v8004_v56  ;;  %v8556_v50 = vrot.slane %v8554_v62, 7  ;;  %18449 = vmatprep.subr.bf16.mxu1 %v19428_v49  ;;  %v25181_v1 = vld [vmem:[#allocation145_spill] sm:$0xff]  ;;  %v25182_v41 = vld [vmem:[#allocation144_spill] sm:$0xff] }
 0x479   :  { %v9154_v25 = vsel %vm20133_vm8, %v8834_v34, %v8258_v30  ;;  %v8524_v22 = vor.u32 %v8522_v16, %v8521_v3  ;;  %v8930_v45 = vor.u32 %v8929_v18, %v8519_v9  ;;  %v8939_v54 = vrot.slane %v8557_v14, 1  ;;  %v25183_v56 = vld [vmem:[#allocation73_spill] sm:$0xff]  ;;  %v25184_v3 = vld [vmem:[#allocation146_spill] sm:$0xff]  ;;  %v25185_v34 = vld [vmem:[#allocation76_spill] sm:$0xff] }
 0x47a   :  { %v9218_v61 = vsel %vm20140_vm9, %v9090_v4, %v9154_v25  ;;  %v8259_v44 = vpack.c.bf16 %v8136_v55, %v8136_v55  ;;  %v8139_v24 = vmax.f32 %v8075_v5, 0.0  ;;  %v8559_v42 = vor.u32 %v8557_v14, %v8556_v50  ;;  %v25186_v4 = vld [vmem:[#allocation147_spill] sm:$0xff]  ;;  %v23086_v5 = vpop.f32.mrf.mxu1 }
 0x47b   :  { %9283 = vst [vmem:[#allocation3 + $0x128] sm:$0xf] %v9218_v61  ;;  %v8832_v30 = vsel %vm20114_vm6, 0, %v8524_v22  ;;  %v9088_v11 = vsel %vm20120_vm7, %v8930_v45, 0  ;;  %v7256_v12 = vadd.f32 %v25180_v37, %v25179_v38  ;;  %v8940_v17 = vor.u32 %v8939_v54, %v8554_v62  ;;  %18450 = vmatpush3.bf16.msra.mxu1 %v19428_v49 }
 0x47c   :  { %v9152_v35 = vsel %vm20133_vm8, %v8832_v30, %v8256_v46  ;;  %v8540_v10 = vshrl.u32 %v8259_v44, 16  ;;  %v8543_v57 = vshll.u32 %v8259_v44, 16  ;;  %v8837_v0 = vsel %vm20114_vm6, 0, %v8559_v42 }
 0x47d   :  { %v9216_v13 = vsel %vm20140_vm9, %v9088_v11, %v9152_v35  ;;  %v8262_v8 = vpack.c.bf16 %v8139_v24, %v8139_v24  ;;  %v7931_v6 = vadd.f32 %v22870_v51, %v7256_v12  ;;  %v19393_v32 = vld [vmem:[#allocation3 + $0x118] sm:$0xff]   ;;  %v9093_v46 = vsel %vm20120_vm7, %v8940_v17, 0  ;;  %v25187_v12 = vld [vmem:[#allocation92_spill] sm:$0xff] }
 0x47e   :  { %9281 = vst [vmem:[#allocation3 + $0x120] sm:$0xf] %v9216_v13  ;;  %v9157_v20 = vsel %vm20133_vm8, %v8837_v0, %v8261_v2  ;;  %v8542_v60 = vrot.slane %v8540_v10, 7  ;;  %v8935_v23 = vrot.slane %v8543_v57, 1  ;;  %18331 = vmatprep.mubr.bf16.mxu1 %v19393_v32  ;;  %v7261_v19 = vadd.f32 %v25182_v41, %v25181_v1  ;;  %v25188_v35 = vld [vmem:[#allocation148_spill] sm:$0xff]  ;;  %v23107_v13 = vpop.f32.mrf.mxu1 }
 0x47f   :  { %v9221_v27 = vsel %vm20140_vm9, %v9093_v46, %v9157_v20  ;;  %v8561_v53 = vshrl.u32 %v8262_v8, 16  ;;  %v8564_v39 = vshll.u32 %v8262_v8, 16  ;;  %v8002_v51 = vmul.f32 %v22803_v63, %v7931_v6 }
 0x480   :  { %9286 = vst [vmem:[#allocation3 + $0x134] sm:$0xf] %v9221_v27  ;;  %v8545_v9 = vor.u32 %v8543_v57, %v8542_v60  ;;  %v8936_v16 = vor.u32 %v8935_v23, %v8540_v10  ;;  %v7259_v18 = vadd.f32 %v25184_v3, %v25183_v56  ;;  %v7262_v55 = vadd.f32 %v25186_v4, %v25185_v34  ;;  %v25192_v56 = vld [vmem:[#allocation150_spill] sm:$0xff]  ;;  %v23129_v4 = vld [vmem:[%s24717_s6] ss:$0 sm:$0xff] }
 0x481   :  { %v8563_v2 = vrot.slane %v8561_v53, 7  ;;  %v8941_v62 = vrot.slane %v8564_v39, 1  ;;  %v8073_v14 = vadd.f32 %v22795_v40, %v8002_v51  ;;  %v7936_v45 = vadd.f32 %v22889_v33, %v7261_v19  ;;  %v25190_v51 = vld [vmem:[#allocation149_spill] sm:$0xff]  ;;  %v25191_v19 = vld [vmem:[#allocation78_spill] sm:$0xff] }
 0x482   :  { %v8835_v25 = vsel %vm20114_vm6, 0, %v8545_v9  ;;  %v9091_v22 = vsel %vm20120_vm7, %v8936_v16, 0  ;;  %v7934_v50 = vadd.f32 %v22912_v59, %v7259_v18  ;;  %v7937_v38 = vadd.f32 %v22925_v58, %v7262_v55  ;;  %v19397_v37 = vld [vmem:[#allocation3 + $0x124] sm:$0xff]   ;;  %v23123_v18 = vpop.f32.mrf.mxu1 }
 0x483   :  { %v9155_v49 = vsel %vm20133_vm8, %v8835_v25, %v8259_v44  ;;  %v8566_v61 = vor.u32 %v8564_v39, %v8563_v2  ;;  %v8942_v54 = vor.u32 %v8941_v62, %v8561_v53  ;;  %v8137_v24 = vmax.f32 %v8073_v14, 0.0  ;;  %v25189_v39 = vld [vmem:[#allocation77_spill] sm:$0xff] }
 0x484   :  { %v9219_v30 = vsel %vm20140_vm9, %v9091_v22, %v9155_v49  ;;  %v8007_v11 = vmul.f32 %v22803_v63, %v7936_v45  ;;  %v8005_v42 = vmul.f32 %v22803_v63, %v7934_v50  ;;  %v7260_v17 = vadd.f32 %v25188_v35, %v25187_v12 }
 0x485   :  { %9284 = vst [vmem:[#allocation3 + $0x12c] sm:$0xf] %v9219_v30  ;;  %v8838_v33 = vsel %vm20114_vm6, 0, %v8566_v61  ;;  %v9094_v59 = vsel %vm20120_vm7, %v8942_v54, 0  ;;  %v8260_v44 = vpack.c.bf16 %v8137_v24, %v8137_v24  ;;  %v19394_v10 = vld [vmem:[#allocation3 + $0x11c] sm:$0xff]   ;;  %v8008_v32 = vmul.f32 %v22803_v63, %v7937_v38  ;;  %v23137_v30 = vpop.f32.mrf.mxu1 }
 0x486   :  { %v19395_v57 = vld [vmem:[#allocation3 + $0x120] sm:$0xff]   ;;  %v9158_v0 = vsel %vm20133_vm8, %v8838_v33, %v8262_v8  ;;  %v8078_v58 = vadd.f32 %v22795_v40, %v8007_v11  ;;  %v8076_v6 = vadd.f32 %v22795_v40, %v8005_v42  ;;  %v7935_v23 = vadd.f32 %v22941_v28, %v7260_v17  ;;  %18251 = vmatprep.mubr.bf16.mxu0 %v19394_v10 }
 0x487   :  { %v9222_v46 = vsel %vm20140_vm9, %v9094_v59, %v9158_v0  ;;  %v8547_v20 = vshrl.u32 %v8260_v44, 16  ;;  %v8550_v60 = vshll.u32 %v8260_v44, 16  ;;  %18332 = vmatmul.mubr.bf16.gmra.mxu1 %v19395_v57  ;;  %v8079_v8 = vadd.f32 %v22795_v40, %v8008_v32  ;;  %18252 = vmatmul.mubr.bf16.gmra.mxu0 %v19397_v37 }
 0x488   :  { %9287 = vst [vmem:[#allocation3 + $0x138] sm:$0xf] %v9222_v46  ;;  %v8142_v27 = vmax.f32 %v8078_v58, 0.0  ;;  %v8140_v53 = vmax.f32 %v8076_v6, 0.0  ;;  %v7265_v9 = vadd.f32 %v25190_v51, %v25189_v39  ;;  %v8006_v41 = vmul.f32 %v22803_v63, %v7935_v23  ;;  %v23149_v46 = vpop.f32.mrf.mxu1 }
 0x489   :  { %v8549_v16 = vrot.slane %v8547_v20, 7  ;;  %v8937_v1 = vrot.slane %v8550_v60, 1  ;;  %v7263_v3 = vadd.f32 %v25192_v56, %v25191_v19  ;;  %v8143_v62 = vmax.f32 %v8079_v8, 0.0 }
 0x48a   :  { %v8265_v28 = vpack.c.bf16 %v8142_v27, %v8142_v27  ;;  %v8263_v2 = vpack.c.bf16 %v8140_v53, %v8140_v53  ;;  %v7940_v14 = vadd.f32 %v22958_v29, %v7265_v9  ;;  %v8077_v55 = vadd.f32 %v23129_v4, %v8006_v41 }
 0x48b   :  { %v8552_v34 = vor.u32 %v8550_v60, %v8549_v16  ;;  %v8938_v40 = vor.u32 %v8937_v1, %v8547_v20  ;;  %v7938_v63 = vadd.f32 %v22973_v36, %v7263_v3  ;;  %v8266_v61 = vpack.c.bf16 %v8143_v62, %v8143_v62 }
 0x48c   :  { %v8582_v25 = vshrl.u32 %v8265_v28, 16  ;;  %v8585_v22 = vshll.u32 %v8265_v28, 16  ;;  %v8568_v45 = vshrl.u32 %v8263_v2, 16  ;;  %v8571_v50 = vshll.u32 %v8263_v2, 16  ;;  %v19398_v24 = vld [vmem:[#allocation3 + $0x128] sm:$0xff]  }
 0x48d   :  { %v8836_v49 = vsel %vm20114_vm6, 0, %v8552_v34  ;;  %v9092_v29 = vsel %vm20120_vm7, %v8938_v40, 0  ;;  %v8141_v54 = vmax.f32 %v8077_v55, 0.0  ;;  %v8589_v59 = vshrl.u32 %v8266_v61, 16  ;;  %18335 = vmatprep.mubr.bf16.mxu1 %v19398_v24  ;;  %v25193_v34 = vld [vmem:[#allocation152_spill] sm:$0xff]  ;;  %v25194_v40 = vld [vmem:[#allocation151_spill] sm:$0xff] }
 0x48e   :  { %v9156_v11 = vsel %vm20133_vm8, %v8836_v49, %v8260_v44  ;;  %v8584_v42 = vrot.slane %v8582_v25, 7  ;;  %v8947_v36 = vrot.slane %v8585_v22, 1  ;;  %v8570_v38 = vrot.slane %v8568_v45, 7  ;;  %v23146_v44 = vld [vmem:[%s24716_s5] ss:$0 sm:$0xff] }
 0x48f   :  { %v9220_v37 = vsel %vm20140_vm9, %v9092_v29, %v9156_v11  ;;  %v8943_v33 = vrot.slane %v8571_v50, 1  ;;  %v8592_v12 = vshll.u32 %v8266_v61, 16  ;;  %v8264_v57 = vpack.c.bf16 %v8141_v54, %v8141_v54 }
 0x490   :  { %9285 = vst [vmem:[#allocation3 + $0x130] sm:$0xf] %v9220_v37  ;;  %v8587_v35 = vor.u32 %v8585_v22, %v8584_v42  ;;  %v8948_v17 = vor.u32 %v8947_v36, %v8582_v25  ;;  %v8573_v10 = vor.u32 %v8571_v50, %v8570_v38  ;;  %v8591_v58 = vrot.slane %v8589_v59, 7  ;;  %v25195_v25 = vld [vmem:[#allocation95_spill] sm:$0xff]  ;;  %v25196_v22 = vld [vmem:[#allocation153_spill] sm:$0xff]  ;;  %v25198_v37 = vld [vmem:[#allocation154_spill] sm:$0xff] }
 0x491   :  { %v8944_v0 = vor.u32 %v8943_v33, %v8568_v45  ;;  %v8949_v6 = vrot.slane %v8592_v12, 1  ;;  %v8011_v32 = vmul.f32 %v23146_v44, %v7940_v14  ;;  %v8575_v27 = vshrl.u32 %v8264_v57, 16  ;;  %v19401_v50 = vld [vmem:[#allocation3 + $0x134] sm:$0xff]   ;;  %v25197_v38 = vld [vmem:[#allocation81_spill] sm:$0xff] }
 0x492   :  { %v8841_v20 = vsel %vm20114_vm6, 0, %v8587_v35  ;;  %v9097_v60 = vsel %vm20120_vm7, %v8948_v17, 0  ;;  %v8839_v23 = vsel %vm20114_vm6, 0, %v8573_v10  ;;  %v8594_v51 = vor.u32 %v8592_v12, %v8591_v58  ;;  %v25199_v17 = vld [vmem:[#allocation82_spill] sm:$0xff]  ;;  %v25200_v10 = vld [vmem:[#allocation155_spill] sm:$0xff] }
 0x493   :  { %v9161_v53 = vsel %vm20133_vm8, %v8841_v20, %v8265_v28  ;;  %v9095_v8 = vsel %vm20120_vm7, %v8944_v0, 0  ;;  %v9159_v39 = vsel %vm20133_vm8, %v8839_v23, %v8263_v2  ;;  %v8950_v1 = vor.u32 %v8949_v6, %v8589_v59  ;;  %v23171_v2 = vpop.f32.mrf.mxu1 }
 0x494   :  { %v9225_v9 = vsel %vm20140_vm9, %v9097_v60, %v9161_v53  ;;  %v9223_v16 = vsel %vm20140_vm9, %v9095_v8, %v9159_v39  ;;  %v8577_v41 = vrot.slane %v8575_v27, 7  ;;  %v8842_v19 = vsel %vm20114_vm6, 0, %v8594_v51 }
 0x495   :  { %9290 = vst [vmem:[#allocation3 + $0x14c] sm:$0xf] %v9225_v9  ;;  %9288 = vst [vmem:[#allocation3 + $0x144] sm:$0xf] %v9223_v16  ;;  %v8578_v56 = vshll.u32 %v8264_v57, 16  ;;  %v8082_v3 = vadd.f32 %v23129_v4, %v8011_v32  ;;  %v8009_v28 = vmul.f32 %v23146_v44, %v7938_v63  ;;  %v9098_v62 = vsel %vm20120_vm7, %v8950_v1, 0  ;;  %v23192_v58 = vpop.f32.mrf.mxu1 }
 0x496   :  { %v9162_v14 = vsel %vm20133_vm8, %v8842_v19, %v8266_v61  ;;  %v7266_v55 = vadd.f32 %v25194_v40, %v25193_v34  ;;  %v7264_v45 = vadd.f32 %v25196_v22, %v25195_v25  ;;  %v7269_v33 = vadd.f32 %v25198_v37, %v25197_v38 }
 0x497   :  { %v9226_v49 = vsel %vm20140_vm9, %v9098_v62, %v9162_v14  ;;  %v8580_v29 = vor.u32 %v8578_v56, %v8577_v41  ;;  %v8945_v63 = vrot.slane %v8578_v56, 1  ;;  %v8146_v54 = vmax.f32 %v8082_v3, 0.0  ;;  %v19399_v24 = vld [vmem:[#allocation3 + $0x12c] sm:$0xff]   ;;  %v23207_v19 = vpop.f32.mrf.mxu1 }
 0x498   :  { %v19400_v11 = vld [vmem:[#allocation3 + $0x130] sm:$0xff]   ;;  %9291 = vst [vmem:[#allocation3 + $0x150] sm:$0xf] %v9226_v49  ;;  %v8080_v42 = vadd.f32 %v23129_v4, %v8009_v28  ;;  %v7941_v61 = vadd.f32 %v23000_v26, %v7266_v55  ;;  %v7939_v36 = vadd.f32 %v23020_v7, %v7264_v45  ;;  %v7267_v0 = vadd.f32 %v25200_v10, %v25199_v17 }
 0x499   :  { %v8840_v59 = vsel %vm20114_vm6, 0, %v8580_v29  ;;  %v8946_v12 = vor.u32 %v8945_v63, %v8575_v27  ;;  %v8269_v35 = vpack.c.bf16 %v8146_v54, %v8146_v54  ;;  %18255 = vmatprep.mubr.bf16.mxu0 %v19399_v24  ;;  %18336 = vmatmul.mubr.bf16.gmra.mxu1 %v19400_v11  ;;  %v7944_v27 = vadd.f32 %v23039_v21, %v7269_v33  ;;  %v23216_v63 = vpop.f32.mrf.mxu1 }
 0x49a   :  { %v9160_v26 = vsel %vm20133_vm8, %v8840_v59, %v8264_v57  ;;  %v8144_v6 = vmax.f32 %v8080_v42, 0.0  ;;  %v8012_v7 = vmul.f32 %v23146_v44, %v7941_v61  ;;  %v8010_v32 = vmul.f32 %v23146_v44, %v7939_v36  ;;  %18256 = vmatmul.mubr.bf16.gmra.mxu0 %v19401_v50 }
 0x49b   :  { %v9096_v20 = vsel %vm20120_vm7, %v8946_v12, 0  ;;  %v8610_v60 = vshrl.u32 %v8269_v35, 16  ;;  %v8613_v23 = vshll.u32 %v8269_v35, 16  ;;  %v8015_v1 = vmul.f32 %v23146_v44, %v7944_v27 }
 0x49c   :  { %v9224_v53 = vsel %vm20140_vm9, %v9096_v20, %v9160_v26  ;;  %v8267_v8 = vpack.c.bf16 %v8144_v6, %v8144_v6  ;;  %v8083_v39 = vadd.f32 %v23129_v4, %v8012_v7  ;;  %v8081_v57 = vadd.f32 %v23129_v4, %v8010_v32  ;;  %v19402_v51 = vld [vmem:[#allocation3 + $0x140] sm:$0xff]   ;;  %v23228_v20 = vpop.f32.mrf.mxu1 }
 0x49d   :  { %9289 = vst [vmem:[#allocation3 + $0x148] sm:$0xf] %v9224_v53  ;;  %v8612_v9 = vrot.slane %v8610_v60, 7  ;;  %v8955_v16 = vrot.slane %v8613_v23, 1  ;;  %v7942_v41 = vadd.f32 %v23050_v31, %v7267_v0  ;;  %18339 = vmatprep.mubr.bf16.mxu1 %v19402_v51  ;;  %v8086_v34 = vadd.f32 %v23129_v4, %v8015_v1 }
 0x49e   :  { %v8596_v56 = vshrl.u32 %v8267_v8, 16  ;;  %v8599_v21 = vshll.u32 %v8267_v8, 16  ;;  %v8147_v3 = vmax.f32 %v8083_v39, 0.0  ;;  %v8145_v28 = vmax.f32 %v8081_v57, 0.0 }
 0x49f   :  { %v8615_v62 = vor.u32 %v8613_v23, %v8612_v9  ;;  %v8956_v14 = vor.u32 %v8955_v16, %v8610_v60  ;;  %v8013_v40 = vmul.f32 %v23146_v44, %v7942_v41  ;;  %v8150_v49 = vmax.f32 %v8086_v34, 0.0  ;;  %v19407_v33 = vld [vmem:[#allocation3 + $0x14c] sm:$0xff]   ;;  %v25201_v41 = vld [vmem:[#allocation100_spill] sm:$0xff]  ;;  %v23244_v34 = vpop.f32.mrf.mxu1 }
 0x4a0   :  { %v8598_v55 = vrot.slane %v8596_v56, 7  ;;  %v8951_v25 = vrot.slane %v8599_v21, 1  ;;  %v8270_v22 = vpack.c.bf16 %v8147_v3, %v8147_v3  ;;  %v8268_v45 = vpack.c.bf16 %v8145_v28, %v8145_v28 }
 0x4a1   :  { %v8845_v31 = vsel %vm20114_vm6, 0, %v8615_v62  ;;  %v9101_v50 = vsel %vm20120_vm7, %v8956_v14, 0  ;;  %v8084_v29 = vadd.f32 %v23129_v4, %v8013_v40  ;;  %v8273_v10 = vpack.c.bf16 %v8150_v49, %v8150_v49 }
 0x4a2   :  { %v9165_v54 = vsel %vm20133_vm8, %v8845_v31, %v8269_v35  ;;  %v8601_v24 = vor.u32 %v8599_v21, %v8598_v55  ;;  %v8952_v11 = vor.u32 %v8951_v25, %v8596_v56  ;;  %v8617_v42 = vshrl.u32 %v8270_v22, 16  ;;  %v25202_v56 = vld [vmem:[#allocation156_spill] sm:$0xff] }
 0x4a3   :  { %v9229_v61 = vsel %vm20140_vm9, %v9101_v50, %v9165_v54  ;;  %v8620_v36 = vshll.u32 %v8270_v22, 16  ;;  %v8603_v38 = vshrl.u32 %v8268_v45, 16  ;;  %v8606_v37 = vshll.u32 %v8268_v45, 16  ;;  %v25204_v54 = vld [vmem:[#allocation157_spill] sm:$0xff] }
 0x4a4   :  { %9294 = vst [vmem:[#allocation3 + $0x15c] sm:$0xf] %v9229_v61  ;;  %v8843_v59 = vsel %vm20114_vm6, 0, %v8601_v24  ;;  %v9099_v12 = vsel %vm20120_vm7, %v8952_v11, 0  ;;  %v8619_v17 = vrot.slane %v8617_v42, 7  ;;  %v19403_v35 = vld [vmem:[#allocation3 + $0x144] sm:$0xff]   ;;  %v7270_v21 = vadd.f32 %v25202_v56, %v25201_v41 }
 0x4a5   :  { %v9163_v0 = vsel %vm20133_vm8, %v8843_v59, %v8267_v8  ;;  %v8957_v26 = vrot.slane %v8620_v36, 1  ;;  %v8605_v6 = vrot.slane %v8603_v38, 7  ;;  %v8953_v7 = vrot.slane %v8606_v37, 1  ;;  %v19404_v32 = vld [vmem:[#allocation3 + $0x148] sm:$0xff]   ;;  %18259 = vmatprep.mubr.bf16.mxu0 %v19403_v35  ;;  %v25206_v61 = vld [vmem:[#allocation158_spill] sm:$0xff]  ;;  %v23266_v35 = vpop.f32.mrf.mxu1 }
 0x4a6   :  { %v9227_v60 = vsel %vm20140_vm9, %v9099_v12, %v9163_v0  ;;  %v8622_v23 = vor.u32 %v8620_v36, %v8619_v17  ;;  %v8638_v27 = vshrl.u32 %v8273_v10, 16  ;;  %v8641_v53 = vshll.u32 %v8273_v10, 16  ;;  %18340 = vmatmul.mubr.bf16.gmra.mxu1 %v19404_v32  ;;  %18260 = vmatmul.mubr.bf16.gmra.mxu0 %v19407_v33 }
 0x4a7   :  { %9292 = vst [vmem:[#allocation3 + $0x154] sm:$0xf] %v9227_v60  ;;  %v8958_v39 = vor.u32 %v8957_v26, %v8617_v42  ;;  %v8608_v57 = vor.u32 %v8606_v37, %v8605_v6  ;;  %v8954_v51 = vor.u32 %v8953_v7, %v8603_v38  ;;  %v8148_v9 = vmax.f32 %v8084_v29, 0.0  ;;  %v25203_v29 = vld [vmem:[#allocation94_spill] sm:$0xff]  ;;  %v25207_v38 = vld [vmem:[#allocation161_spill] sm:$0xff]  ;;  %v25208_v37 = vld [vmem:[#allocation160_spill] sm:$0xff]  ;;  %v23282_v56 = vpop.f32.mrf.mxu1 }
 0x4a8   :  { %v8846_v8 = vsel %vm20114_vm6, 0, %v8622_v23  ;;  %v8640_v16 = vrot.slane %v8638_v27, 7  ;;  %v8963_v1 = vrot.slane %v8641_v53, 1  ;;  %v7945_v49 = vadd.f32 %v23070_v52, %v7270_v21 }
 0x4a9   :  { %v9102_v3 = vsel %vm20120_vm7, %v8958_v39, 0  ;;  %v9166_v28 = vsel %vm20133_vm8, %v8846_v8, %v8270_v22  ;;  %v8844_v62 = vsel %vm20114_vm6, 0, %v8608_v57  ;;  %v9100_v14 = vsel %vm20120_vm7, %v8954_v51, 0  ;;  %v25212_v8 = vld [vmem:[#allocation164_spill] sm:$0xff] }
 0x4aa   :  { %v9230_v40 = vsel %vm20140_vm9, %v9102_v3, %v9166_v28  ;;  %v9164_v55 = vsel %vm20133_vm8, %v8844_v62, %v8268_v45  ;;  %v8643_v25 = vor.u32 %v8641_v53, %v8640_v16  ;;  %v8964_v31 = vor.u32 %v8963_v1, %v8638_v27  ;;  %v25205_v45 = vld [vmem:[#allocation159_spill] sm:$0xff]  ;;  %v25210_v53 = vld [vmem:[#allocation162_spill] sm:$0xff] }
 0x4ab   :  { %9295 = vst [vmem:[#allocation3 + $0x160] sm:$0xf] %v9230_v40  ;;  %v9228_v22 = vsel %vm20140_vm9, %v9100_v14, %v9164_v55  ;;  %v8271_v50 = vpack.c.bf16 %v8148_v9, %v8148_v9  ;;  %v7268_v24 = vadd.f32 %v25204_v54, %v25203_v29  ;;  %v7273_v36 = vadd.f32 %v25206_v61, %v25205_v45  ;;  %v25209_v27 = vld [vmem:[#allocation163_spill] sm:$0xff] }
 0x4ac   :  { %9293 = vst [vmem:[#allocation3 + $0x158] sm:$0xf] %v9228_v22  ;;  %v8849_v11 = vsel %vm20114_vm6, 0, %v8643_v25  ;;  %v9105_v42 = vsel %vm20120_vm7, %v8964_v31, 0  ;;  %v7271_v33 = vadd.f32 %v25208_v37, %v25207_v38  ;;  %v8016_v17 = vmul.f32 %v23146_v44, %v7945_v49  ;;  %v23293_v22 = vpop.f32.mrf.mxu1 }
 0x4ad   :  { %v9169_v59 = vsel %vm20133_vm8, %v8849_v11, %v8273_v10  ;;  %v8624_v52 = vshrl.u32 %v8271_v50, 16  ;;  %v8627_v12 = vshll.u32 %v8271_v50, 16  ;;  %v7943_v26 = vadd.f32 %v23086_v5, %v7268_v24  ;;  %v25211_v5 = vld [vmem:[#allocation97_spill] sm:$0xff]  ;;  %v23297_v11 = vpop.f32.mrf.mxu0 }
 0x4ae   :  { %v9233_v0 = vsel %vm20140_vm9, %v9105_v42, %v9169_v59  ;;  %v7948_v6 = vadd.f32 %v23107_v13, %v7273_v36  ;;  %v7946_v7 = vadd.f32 %v23123_v18, %v7271_v33  ;;  %v19408_v32 = vld [vmem:[#allocation3 + $0x150] sm:$0xff]   ;;  %v8087_v10 = vadd.f32 %v23129_v4, %v8016_v17  ;;  %v25213_v17 = vld [vmem:[#allocation96_spill] sm:$0xff] }
 0x4af   :  { %9298 = vst [vmem:[#allocation3 + $0x174] sm:$0xf] %v9233_v0  ;;  %v8626_v60 = vrot.slane %v8624_v52, 7  ;;  %v8959_v23 = vrot.slane %v8627_v12, 1  ;;  %v7274_v39 = vadd.f32 %v25210_v53, %v25209_v27  ;;  %v8014_v57 = vmul.f32 %v23146_v44, %v7943_v26  ;;  %18343 = vmatprep.mubr.bf16.mxu1 %v19408_v32  ;;  %v23305_v26 = vpop.f32.mrf.mxu1 }
 0x4b0   :  { %v8019_v51 = vmul.f32 %v23146_v44, %v7948_v6  ;;  %v8017_v9 = vmul.f32 %v23146_v44, %v7946_v7  ;;  %v7272_v13 = vadd.f32 %v25212_v8, %v25211_v5  ;;  %v8151_v1 = vmax.f32 %v8087_v10, 0.0 }
 0x4b1   :  { %v8629_v18 = vor.u32 %v8627_v12, %v8626_v60  ;;  %v8960_v16 = vor.u32 %v8959_v23, %v8624_v52  ;;  %v7949_v41 = vadd.f32 %v23137_v30, %v7274_v39  ;;  %v8085_v21 = vadd.f32 %v23129_v4, %v8014_v57  ;;  %v23307_v23 = vpop.f32.mrf.mxu0 }
 0x4b2   :  { %v8090_v3 = vadd.f32 %v23129_v4, %v8019_v51  ;;  %v8088_v28 = vadd.f32 %v23129_v4, %v8017_v9  ;;  %v7947_v62 = vadd.f32 %v23149_v46, %v7272_v13  ;;  %v8274_v55 = vpack.c.bf16 %v8151_v1, %v8151_v1  ;;  %v19413_v46 = vld [vmem:[#allocation3 + $0x15c] sm:$0xff]  }
 0x4b3   :  { %v8847_v14 = vsel %vm20114_vm6, 0, %v8629_v18  ;;  %v9103_v40 = vsel %vm20120_vm7, %v8960_v16, 0  ;;  %v8020_v25 = vmul.f32 %v23146_v44, %v7949_v41  ;;  %v19410_v30 = vld [vmem:[#allocation3 + $0x154] sm:$0xff]   ;;  %v8149_v29 = vmax.f32 %v8085_v21, 0.0  ;;  %v23313_v16 = vpop.f32.mrf.mxu1 }
 0x4b4   :  { %v19411_v31 = vld [vmem:[#allocation3 + $0x158] sm:$0xff]   ;;  %v9167_v49 = vsel %vm20133_vm8, %v8847_v14, %v8271_v50  ;;  %v8154_v54 = vmax.f32 %v8090_v3, 0.0  ;;  %v8152_v24 = vmax.f32 %v8088_v28, 0.0  ;;  %v8645_v45 = vshrl.u32 %v8274_v55, 16  ;;  %18263 = vmatprep.mubr.bf16.mxu0 %v19410_v30  ;;  %v23317_v28 = vpop.f32.mrf.mxu0 }
 0x4b5   :  { %v9231_v42 = vsel %vm20140_vm9, %v9103_v40, %v9167_v49  ;;  %v8648_v61 = vshll.u32 %v8274_v55, 16  ;;  %v8091_v36 = vadd.f32 %v23129_v4, %v8020_v25  ;;  %18344 = vmatmul.mubr.bf16.gmra.mxu1 %v19411_v31  ;;  %v8272_v38 = vpack.c.bf16 %v8149_v29, %v8149_v29  ;;  %18264 = vmatmul.mubr.bf16.gmra.mxu0 %v19413_v46 }
 0x4b6   :  { %9296 = vst [vmem:[#allocation3 + $0x16c] sm:$0xf] %v9231_v42  ;;  %v8277_v37 = vpack.c.bf16 %v8154_v54, %v8154_v54  ;;  %v8275_v33 = vpack.c.bf16 %v8152_v24, %v8152_v24  ;;  %v8018_v50 = vmul.f32 %v23146_v44, %v7947_v62  ;;  %v8647_v59 = vrot.slane %v8645_v45, 7 }
 0x4b7   :  { %v8965_v52 = vrot.slane %v8648_v61, 1  ;;  %v8155_v12 = vmax.f32 %v8091_v36, 0.0  ;;  %v7952_v0 = vadd.f32 %v23171_v2, %v25213_v17  ;;  %v8631_v6 = vshrl.u32 %v8272_v38, 16 }
 0x4b8   :  { %v8634_v7 = vshll.u32 %v8272_v38, 16  ;;  %v8666_v32 = vshrl.u32 %v8277_v37, 16  ;;  %v8669_v60 = vshll.u32 %v8277_v37, 16  ;;  %v8650_v10 = vor.u32 %v8648_v61, %v8647_v59 }
 0x4b9   :  { %v8966_v27 = vor.u32 %v8965_v52, %v8645_v45  ;;  %v8652_v53 = vshrl.u32 %v8275_v33, 16  ;;  %v8655_v39 = vshll.u32 %v8275_v33, 16  ;;  %v8633_v57 = vrot.slane %v8631_v6, 7  ;;  %v23335_v45 = vpop.f32.mrf.mxu1  ;;  %v23345_v52 = vpop.f32.mrf.mxu0 }
 0x4ba   :  { %v8961_v51 = vrot.slane %v8634_v7, 1  ;;  %v8668_v9 = vrot.slane %v8666_v32, 7  ;;  %v8971_v5 = vrot.slane %v8669_v60, 1  ;;  %v8850_v8 = vsel %vm20114_vm6, 0, %v8650_v10  ;;  %v25215_v10 = vld [vmem:[#allocation98_spill] sm:$0xff] }
 0x4bb   :  { %v9106_v2 = vsel %vm20120_vm7, %v8966_v27, 0  ;;  %v8654_v13 = vrot.slane %v8652_v53, 7  ;;  %v8967_v18 = vrot.slane %v8655_v39, 1  ;;  %v9170_v1 = vsel %vm20133_vm8, %v8850_v8, %v8274_v55  ;;  %v25216_v27 = vld [vmem:[#allocation75_spill] sm:$0xff] }
 0x4bc   :  { %v8636_v41 = vor.u32 %v8634_v7, %v8633_v57  ;;  %v8962_v21 = vor.u32 %v8961_v51, %v8631_v6  ;;  %v8671_v3 = vor.u32 %v8669_v60, %v8668_v9  ;;  %v9234_v62 = vsel %vm20140_vm9, %v9106_v2, %v9170_v1  ;;  %v25217_v9 = vld [vmem:[#allocation74_spill] sm:$0xff]  ;;  %v23370_v2 = vpop.f32.mrf.mxu0 }
 0x4bd   :  { %v8972_v14 = vor.u32 %v8971_v5, %v8666_v32  ;;  %v8657_v40 = vor.u32 %v8655_v39, %v8654_v13  ;;  %v8968_v25 = vor.u32 %v8967_v18, %v8652_v53  ;;  %v19414_v30 = vld [vmem:[#allocation3 + $0x168] sm:$0xff]   ;;  %9299 = vst [vmem:[#allocation3 + $0x178] sm:$0xf] %v9234_v62  ;;  %v8278_v29 = vpack.c.bf16 %v8155_v12, %v8155_v12  ;;  %v25214_v32 = vld [vmem:[#allocation72_spill] sm:$0xff]  ;;  %v23360_v39 = vld [vmem:[%s24715_s7 + $0x178] sm:$0xff]   ;;  %v23364_v5 = vpop.f32.mrf.mxu1 }
 0x4be   :  { %v8848_v31 = vsel %vm20114_vm6, 0, %v8636_v41  ;;  %v9104_v49 = vsel %vm20120_vm7, %v8962_v21, 0  ;;  %v8853_v55 = vsel %vm20114_vm6, 0, %v8671_v3  ;;  %18347 = vmatprep.mubr.bf16.mxu1 %v19414_v30  ;;  %v8089_v6 = vadd.f32 %v23129_v4, %v8018_v50  ;;  %18595 = vmatprep.subr.bf16.mxu1 %v23360_v39 }
 0x4bf   :  { %v9168_v54 = vsel %vm20133_vm8, %v8848_v31, %v8272_v38  ;;  %v9109_v24 = vsel %vm20120_vm7, %v8972_v14, 0  ;;  %v9173_v46 = vsel %vm20133_vm8, %v8853_v55, %v8277_v37  ;;  %v8851_v42 = vsel %vm20114_vm6, 0, %v8657_v40 }
 0x4c0   :  { %v9232_v61 = vsel %vm20140_vm9, %v9104_v49, %v9168_v54  ;;  %v9237_v36 = vsel %vm20140_vm9, %v9109_v24, %v9173_v46  ;;  %v9107_v38 = vsel %vm20120_vm7, %v8968_v25, 0  ;;  %v9171_v59 = vsel %vm20133_vm8, %v8851_v42, %v8275_v33  ;;  %v23381_v49 = vpop.f32.mrf.mxu1 }
 0x4c1   :  { %9297 = vst [vmem:[#allocation3 + $0x170] sm:$0xf] %v9232_v61  ;;  %9302 = vst [vmem:[#allocation3 + $0x184] sm:$0xf] %v9237_v36  ;;  %v9235_v37 = vsel %vm20140_vm9, %v9107_v38, %v9171_v59  ;;  %v8673_v12 = vshrl.u32 %v8278_v29, 16  ;;  %v8676_v17 = vshll.u32 %v8278_v29, 16  ;;  %v8023_v7 = vmul.f32 %v23146_v44, %v7952_v0  ;;  %v23385_v36 = vpop.f32.mrf.mxu0 }
 0x4c2   :  { %9300 = vst [vmem:[#allocation3 + $0x17c] sm:$0xf] %v9235_v37  ;;  %v7950_v60 = vadd.f32 %v23192_v58, %v25214_v32  ;;  %v7953_v33 = vadd.f32 %v23207_v19, %v25215_v10  ;;  %v7951_v53 = vadd.f32 %v23216_v63, %v25216_v27  ;;  %v8153_v50 = vmax.f32 %v8089_v6, 0.0 }
 0x4c3   :  { %v8675_v57 = vrot.slane %v8673_v12, 7  ;;  %v8973_v51 = vrot.slane %v8676_v17, 1  ;;  %v7956_v0 = vadd.f32 %v23228_v20, %v25217_v9  ;;  %v8094_v58 = vadd.f32 %v23129_v4, %v8023_v7 }
 0x4c4   :  { %v8021_v19 = vmul.f32 %v23146_v44, %v7950_v60  ;;  %v8024_v8 = vmul.f32 %v23146_v44, %v7953_v33  ;;  %v8022_v63 = vmul.f32 %v23146_v44, %v7951_v53  ;;  %v8276_v1 = vpack.c.bf16 %v8153_v50, %v8153_v50  ;;  %v19420_v31 = vld [vmem:[#allocation3 + $0x174] sm:$0xff]   ;;  %v23390_v53 = vpop.f32.mrf.mxu1 }
 0x4c5   :  { %v8678_v13 = vor.u32 %v8676_v17, %v8675_v57  ;;  %v8974_v18 = vor.u32 %v8973_v51, %v8673_v12  ;;  %v8027_v41 = vmul.f32 %v23146_v44, %v7956_v0  ;;  %v8158_v20 = vmax.f32 %v8094_v58, 0.0  ;;  %v23392_v0 = vpop.f32.mrf.mxu0 }
 0x4c6   :  { %v8092_v21 = vadd.f32 %v23129_v4, %v8021_v19  ;;  %v8095_v3 = vadd.f32 %v23129_v4, %v8024_v8  ;;  %v8093_v62 = vadd.f32 %v23129_v4, %v8022_v63  ;;  %v8659_v25 = vshrl.u32 %v8276_v1, 16 }
 0x4c7   :  { %v8854_v14 = vsel %vm20114_vm6, 0, %v8678_v13  ;;  %v9110_v40 = vsel %vm20120_vm7, %v8974_v18, 0  ;;  %v8662_v30 = vshll.u32 %v8276_v1, 16  ;;  %v8281_v54 = vpack.c.bf16 %v8158_v20, %v8158_v20 }
 0x4c8   :  { %v9174_v55 = vsel %vm20133_vm8, %v8854_v14, %v8278_v29  ;;  %v8156_v24 = vmax.f32 %v8092_v21, 0.0  ;;  %v8159_v46 = vmax.f32 %v8095_v3, 0.0  ;;  %v19416_v42 = vld [vmem:[#allocation3 + $0x16c] sm:$0xff]   ;;  %v8661_v59 = vrot.slane %v8659_v25, 7 }
 0x4c9   :  { %v19417_v61 = vld [vmem:[#allocation3 + $0x170] sm:$0xff]   ;;  %v9238_v38 = vsel %vm20140_vm9, %v9110_v40, %v9174_v55  ;;  %v8969_v37 = vrot.slane %v8662_v30, 1  ;;  %v8157_v12 = vmax.f32 %v8093_v62, 0.0  ;;  %v19421_v17 = vld [vmem:[#allocation3 + $0x178] sm:$0xff]   ;;  %v8694_v6 = vshrl.u32 %v8281_v54, 16  ;;  %18267 = vmatprep.mubr.bf16.mxu0 %v19416_v42  ;;  %v23402_v40 = vpop.f32.mrf.mxu1  ;;  %v23408_v55 = vpop.f32.mrf.mxu0 }
 0x4ca   :  { %9303 = vst [vmem:[#allocation3 + $0x188] sm:$0xf] %v9238_v38  ;;  %v8697_v7 = vshll.u32 %v8281_v54, 16  ;;  %v8279_v32 = vpack.c.bf16 %v8156_v24, %v8156_v24  ;;  %v8282_v60 = vpack.c.bf16 %v8159_v46, %v8159_v46  ;;  %18348 = vmatmul.mubr.bf16.gmra.mxu1 %v19417_v61  ;;  %v8664_v29 = vor.u32 %v8662_v30, %v8661_v59 }
 0x4cb   :  { %v8970_v10 = vor.u32 %v8969_v37, %v8659_v25  ;;  %v8280_v33 = vpack.c.bf16 %v8157_v12, %v8157_v12  ;;  %v8098_v27 = vadd.f32 %v23129_v4, %v8027_v41  ;;  %18268 = vmatmul.mubr.bf16.gmra.mxu0 %v19420_v31  ;;  %v8696_v57 = vrot.slane %v8694_v6, 7  ;;  %18351 = vmatprep.mubr.bf16.mxu1 %v19421_v17 }
 0x4cc   :  { %v8979_v51 = vrot.slane %v8697_v7, 1  ;;  %v8680_v50 = vshrl.u32 %v8279_v32, 16  ;;  %v8683_v9 = vshll.u32 %v8279_v32, 16  ;;  %v8852_v58 = vsel %vm20114_vm6, 0, %v8664_v29  ;;  %v23412_v38 = vpop.f32.mrf.mxu1 }
 0x4cd   :  { %v9108_v19 = vsel %vm20120_vm7, %v8970_v10, 0  ;;  %v8701_v8 = vshrl.u32 %v8282_v60, 16  ;;  %v8704_v63 = vshll.u32 %v8282_v60, 16  ;;  %v9172_v13 = vsel %vm20133_vm8, %v8852_v58, %v8276_v1 }
 0x4ce   :  { %v8699_v18 = vor.u32 %v8697_v7, %v8696_v57  ;;  %v8980_v41 = vor.u32 %v8979_v51, %v8694_v6  ;;  %v8682_v20 = vrot.slane %v8680_v50, 7  ;;  %v9236_v21 = vsel %vm20140_vm9, %v9108_v19, %v9172_v13  ;;  %v23418_v6 = vpop.f32.mrf.mxu0 }
 0x4cf   :  { %v8975_v3 = vrot.slane %v8683_v9, 1  ;;  %v8703_v62 = vrot.slane %v8701_v8, 7  ;;  %v8981_v14 = vrot.slane %v8704_v63, 1  ;;  %9301 = vst [vmem:[#allocation3 + $0x180] sm:$0xf] %v9236_v21  ;;  %v8687_v1 = vshrl.u32 %v8280_v33, 16 }
 0x4d0   :  { %v8857_v25 = vsel %vm20114_vm6, 0, %v8699_v18  ;;  %v9113_v30 = vsel %vm20120_vm7, %v8980_v41, 0  ;;  %v8685_v31 = vor.u32 %v8683_v9, %v8682_v20  ;;  %v8690_v17 = vshll.u32 %v8280_v33, 16  ;;  %v10309_v18 = vpop.f32.mrf.mxu1 }
 0x4d1   :  { %v9177_v24 = vsel %vm20133_vm8, %v8857_v25, %v8281_v54  ;;  %v8976_v46 = vor.u32 %v8975_v3, %v8680_v50  ;;  %v8706_v42 = vor.u32 %v8704_v63, %v8703_v62  ;;  %v8982_v61 = vor.u32 %v8981_v14, %v8701_v8  ;;  %v25219_v63 = vld [vmem:[#allocation79_spill] sm:$0xff]  ;;  %v19429_v3 = vld [vmem:[#allocation3 + $0x8] sm:$0xff]  }
 0x4d2   :  { %v9241_v59 = vsel %vm20140_vm9, %v9113_v30, %v9177_v24  ;;  %v8855_v37 = vsel %vm20114_vm6, 0, %v8685_v31  ;;  %v8689_v12 = vrot.slane %v8687_v1, 7  ;;  %v8977_v9 = vrot.slane %v8690_v17, 1  ;;  %v19426_v24 = vld [vmem:[#allocation3 + $0x184] sm:$0xff]  }
 0x4d3   :  { %9306 = vst [vmem:[#allocation3 + $0x19c] sm:$0xf] %v9241_v59  ;;  %v9111_v7 = vsel %vm20120_vm7, %v8976_v46, 0  ;;  %v9175_v54 = vsel %vm20133_vm8, %v8855_v37, %v8279_v32  ;;  %v8858_v29 = vsel %vm20114_vm6, 0, %v8706_v42  ;;  %v9114_v10 = vsel %vm20120_vm7, %v8982_v61, 0  ;;  %v25218_v32 = vld [vmem:[#allocation80_spill] sm:$0xff] }
 0x4d4   :  { %v9239_v57 = vsel %vm20140_vm9, %v9111_v7, %v9175_v54  ;;  %v9178_v51 = vsel %vm20133_vm8, %v8858_v29, %v8282_v60  ;;  %v8692_v50 = vor.u32 %v8690_v17, %v8689_v12  ;;  %v8162_v19 = vmax.f32 %v8098_v27, 0.0  ;;  %v25220_v60 = vld [vmem:[#allocation83_spill] sm:$0xff]  ;;  %v9780_v27 = vpop.f32.mrf.mxu0  ;;  %v19427_v59 = vld [vmem:[#allocation3 + $0x28] sm:$0xff]   ;;  %v19432_v29 = vld [vmem:[#allocation3 + $0x10] sm:$0xff]  }
 0x4d5   :  { %9304 = vst [vmem:[#allocation3 + $0x194] sm:$0xf] %v9239_v57  ;;  %v9242_v58 = vsel %vm20140_vm9, %v9114_v10, %v9178_v51  ;;  %v7954_v8 = vadd.f32 %v23244_v34, %v25218_v32  ;;  %v7957_v13 = vadd.f32 %v23266_v35, %v25219_v63  ;;  %v8978_v20 = vor.u32 %v8977_v9, %v8687_v1 }
 0x4d6   :  { %9307 = vst [vmem:[#allocation3 + $0x1a0] sm:$0xf] %v9242_v58  ;;  %v8856_v41 = vsel %vm20114_vm6, 0, %v8692_v50  ;;  %v7955_v21 = vadd.f32 %v23282_v56, %v25220_v60  ;;  %v23444_v62 = vadd.f32 %v23293_v22, %v23297_v11  ;;  %v8285_v14 = vpack.c.bf16 %v8162_v19, %v8162_v19  ;;  %v19423_v30 = vld [vmem:[#allocation3 + $0x17c] sm:$0xff]  }
 0x4d7   :  { %v9176_v34 = vsel %vm20133_vm8, %v8856_v41, %v8280_v33  ;;  %v8025_v35 = vmul.f32 %v23146_v44, %v7954_v8  ;;  %v8028_v25 = vmul.f32 %v23146_v44, %v7957_v13  ;;  %v9112_v31 = vsel %vm20120_vm7, %v8978_v20, 0  ;;  %v19424_v1 = vld [vmem:[#allocation3 + $0x180] sm:$0xff]   ;;  %18271 = vmatprep.mubr.bf16.mxu0 %v19423_v30 }
 0x4d8   :  { %v8026_v56 = vmul.f32 %v23146_v44, %v7955_v21  ;;  %v23455_v22 = vadd.f32 %v23305_v26, %v23307_v23  ;;  %v23459_v11 = vadd.f32 %v23313_v16, %v23317_v28  ;;  %v9240_v33 = vsel %vm20140_vm9, %v9112_v31, %v9176_v34  ;;  %v18302_v44 = vpop.f32.mrf.mxu1  ;;  %18352 = vmatmul.mubr.bf16.gmra.mxu1 %v19424_v1  ;;  %v18222_v23 = vpop.f32.mrf.mxu0 }
 0x4d9   :  { %v8722_v46 = vshrl.u32 %v8285_v14, 16  ;;  %v8725_v42 = vshll.u32 %v8285_v14, 16  ;;  %v8096_v61 = vadd.f32 %v23129_v4, %v8025_v35  ;;  %9305 = vst [vmem:[#allocation3 + $0x198] sm:$0xf] %v9240_v33  ;;  %v8099_v37 = vadd.f32 %v23129_v4, %v8028_v25  ;;  %18272 = vmatmul.mubr.bf16.gmra.mxu0 %v19426_v24  ;;  %18451 = vmatprep.mubr.bf16.mxu1 %v19427_v59 }
 0x4da   :  { %v8097_v26 = vadd.f32 %v23129_v4, %v8026_v56  ;;  %18371 = vmatprep.mubr.bf16.mxu0 %v19429_v3  ;;  %v23468_v17 = vadd.f32 %v23364_v5, %v23370_v2  ;;  %v23472_v10 = vadd.f32 %v23381_v49, %v23385_v36  ;;  %v23476_v4 = vadd.f32 %v23390_v53, %v23392_v0  ;;  %v23478_v9 = vpop.f32.mrf.mxu1  ;;  %v19430_v5 = vld [vmem:[#allocation3 + $0x30] sm:$0xff]   ;;  %v19434_v2 = vld [vmem:[#allocation3 + $0x18] sm:$0xff]   ;;  %v23486_v49 = vpop.f32.mrf.mxu0 }
 0x4db   :  { %v8724_v16 = vrot.slane %v8722_v46, 7  ;;  %v8987_v28 = vrot.slane %v8725_v42, 1  ;;  %v8160_v12 = vmax.f32 %v8096_v61, 0.0  ;;  %v8163_v7 = vmax.f32 %v8099_v37, 0.0  ;;  %v19490_v56 = vld [vmem:[%s24715_s7 + $0x170] sm:$0xff]  }
 0x4dc   :  { %v8161_v54 = vmax.f32 %v8097_v26, 0.0  ;;  %v23482_v32 = vadd.f32 %v23412_v38, %v23418_v6  ;;  %v23484_v8 = vadd.f32 %v10309_v18, %v9780_v27  ;;  %v19440_v38 = vld [vmem:[%s24715_s7 + $0x130] sm:$0xff]   ;;  %v19433_v27 = vld [vmem:[#allocation3 + $0x38] sm:$0xff]  }
 0x4dd   :  { %v8727_v57 = vor.u32 %v8725_v42, %v8724_v16  ;;  %v8988_v51 = vor.u32 %v8987_v28, %v8722_v46  ;;  %v8283_v50 = vpack.c.bf16 %v8160_v12, %v8160_v12  ;;  %v8286_v58 = vpack.c.bf16 %v8163_v7, %v8163_v7  ;;  %v19701_v46 = vld [vmem:[%s24715_s7 + $0x138] sm:$0xff]  }
 0x4de   :  { %v8284_v19 = vpack.c.bf16 %v8161_v54, %v8161_v54 }
 0x4df   :  { %v8861_v36 = vsel %vm20114_vm6, 0, %v8727_v57  ;;  %v9117_v53 = vsel %vm20120_vm7, %v8988_v51, 0  ;;  %v8708_v0 = vshrl.u32 %v8283_v50, 16  ;;  %v8711_v63 = vshll.u32 %v8283_v50, 16  ;;  %v18305_v34 = vpop.f32.mrf.mxu1  ;;  %v18225_v31 = vpop.f32.mrf.mxu0 }
 0x4e0   :  { %v9181_v13 = vsel %vm20133_vm8, %v8861_v36, %v8285_v14  ;;  %v8729_v41 = vshrl.u32 %v8286_v58, 16  ;;  %v8732_v20 = vshll.u32 %v8286_v58, 16  ;;  %v8715_v60 = vshrl.u32 %v8284_v19, 16  ;;  %18452 = vmatmul.mubr.bf16.vlgmr.msra.gmra.mxu1 %v19430_v5  ;;  %v19435_v5 = vld [vmem:[#allocation3 + $0x40] sm:$0xff]  }
 0x4e1   :  { %v9245_v6 = vsel %vm20140_vm9, %v9117_v53, %v9181_v13  ;;  %v8710_v18 = vrot.slane %v8708_v0, 7  ;;  %v8983_v21 = vrot.slane %v8711_v63, 1  ;;  %v8718_v3 = vshll.u32 %v8284_v19, 16  ;;  %18372 = vmatmul.mubr.bf16.vlgmr.msra.gmra.mxu0 %v19432_v29  ;;  %18455 = vmatprep.mubr.bf16.mxu1 %v19433_v27  ;;  %v10325_v42 = vpop.f32.mrf.mxu1  ;;  %v9796_v26 = vpop.f32.mrf.mxu0  ;;  %v19438_v13 = vld [vmem:[#allocation3 + $0x30] sm:$0xff]   ;;  %v19499_v27 = vld [vmem:[%s24715_s7 + $0x158] sm:$0xff]  }
 0x4e2   :  { %9310 = vst [vmem:[#allocation3 + $0x1ac] sm:$0xf] %v9245_v6  ;;  %v8731_v35 = vrot.slane %v8729_v41, 7  ;;  %v8989_v25 = vrot.slane %v8732_v20, 1  ;;  %v8717_v30 = vrot.slane %v8715_v60, 7  ;;  %v23499_v14 = vadd.f32 %v18302_v44, %v18222_v23  ;;  %18516 = vmatpush3.bf16.msra.mxu0 %v19701_v46  ;;  %18375 = vmatprep.mubr.bf16.mxu0 %v19434_v2  ;;  %v19449_v44 = vld [vmem:[%s24715_s7 + $0x128] sm:$0xff]  }
 0x4e3   :  { %v8713_v1 = vor.u32 %v8711_v63, %v8710_v18  ;;  %v8984_v24 = vor.u32 %v8983_v21, %v8708_v0  ;;  %v8985_v33 = vrot.slane %v8718_v3, 1  ;;  %18517 = vmatprep.subr.bf16.mxu0 %v19440_v38  ;;  %v23514_v12 = vadd.f32 %v18305_v34, %v18225_v31  ;;  %v18306_v7 = vpop.f32.mrf.mxu1  ;;  %18596 = vmatpush3.bf16.msra.mxu1 %v23360_v39  ;;  %v19436_v2 = vld [vmem:[#allocation3 + $0x20] sm:$0xff]   ;;  %v18226_v36 = vpop.f32.mrf.mxu0  ;;  %v19437_v63 = vld [vmem:[#allocation3 + $0x50] sm:$0xff]   ;;  %v19444_v46 = vld [vmem:[#allocation3 + $0x68] sm:$0xff]  }
 0x4e4   :  { %v8734_v61 = vor.u32 %v8732_v20, %v8731_v35  ;;  %v8990_v59 = vor.u32 %v8989_v25, %v8729_v41  ;;  %v8720_v37 = vor.u32 %v8718_v3, %v8717_v30  ;;  %18597 = vmatprep.subr.bf16.mxu1 %v19490_v56  ;;  %v23540_v47 = vadd.f32 %v10325_v42, %v9796_v26  ;;  %v19443_v21 = vld [vmem:[#allocation3 + $0x40] sm:$0xff]   ;;  %v19476_v34 = vld [vmem:[%s24715_s7 + $0x110] sm:$0xff]   ;;  %v19445_v42 = vld [vmem:[#allocation3 + $0x48] sm:$0xff]  }
 0x4e5   :  { %v8859_v23 = vsel %vm20114_vm6, 0, %v8713_v1  ;;  %v9115_v16 = vsel %vm20120_vm7, %v8984_v24, 0  ;;  %v8986_v28 = vor.u32 %v8985_v33, %v8715_v60  ;;  %v23542_v20 = vadd.f32 %v18306_v7, %v18226_v36  ;;  %v19439_v60 = vld [vmem:[#allocation3 + $0x58] sm:$0xff]   ;;  %v23553_v6 = vpop.f32.mrf.mxu1  ;;  %v23555_v18 = vpop.f32.mrf.mxu0  ;;  %v19442_v3 = vld [vmem:[#allocation3 + $0x60] sm:$0xff]   ;;  %v19503_v30 = vld [vmem:[%s24715_s7 + $0x150] sm:$0xff]  }
 0x4e6   :  { %v9179_v54 = vsel %vm20133_vm8, %v8859_v23, %v8283_v50  ;;  %v8862_v29 = vsel %vm20114_vm6, 0, %v8734_v61  ;;  %v9118_v57 = vsel %vm20120_vm7, %v8990_v59, 0  ;;  %v8860_v51 = vsel %vm20114_vm6, 0, %v8720_v37  ;;  %18518 = vmatpush3.bf16.msra.mxu0 %v19440_v38  ;;  %v19441_v38 = vld [vmem:[#allocation3 + $0x38] sm:$0xff]   ;;  %v19485_v24 = vld [vmem:[%s24715_s7 + $0x108] sm:$0xff]   ;;  %v19498_v7 = vld [vmem:[%s24715_s7 + $0x100] sm:$0xff]  }
 0x4e7   :  { %v9243_v53 = vsel %vm20140_vm9, %v9115_v16, %v9179_v54  ;;  %v9182_v39 = vsel %vm20133_vm8, %v8862_v29, %v8286_v58  ;;  %v9116_v50 = vsel %vm20120_vm7, %v8986_v28, 0  ;;  %v9180_v0 = vsel %vm20133_vm8, %v8860_v51, %v8284_v19  ;;  %18519 = vmatprep.subr.bf16.mxu0 %v19449_v44  ;;  %18598 = vmatpush3.bf16.msra.mxu1 %v19490_v56  ;;  %v19496_v19 = vld [vmem:[%s24715_s7 + $0x160] sm:$0xff]   ;;  %v19446_v37 = vld [vmem:[#allocation3 + $0x78] sm:$0xff]   ;;  %v19505_v23 = vld [vmem:[%s24715_s7 + $0x148] sm:$0xff]  }
 0x4e8   :  { %9308 = vst [vmem:[#allocation3 + $0x1a4] sm:$0xf] %v9243_v53  ;;  %v9246_v41 = vsel %vm20140_vm9, %v9118_v57, %v9182_v39  ;;  %v9244_v58 = vsel %vm20140_vm9, %v9116_v50, %v9180_v0  ;;  %18456 = vmatmul.mubr.bf16.gmra.mxu1 %v19435_v5  ;;  %18599 = vmatprep.subr.bf16.mxu1 %v19492_v43  ;;  %v19509_v54 = vld [vmem:[%s24715_s7 + $0x140] sm:$0xff]   ;;  %v23591_v51 = vld [vmem:[%s24715_s7 + $0x1b8] sm:$0xff]   ;;  %v19452_v50 = vld [vmem:[#allocation3 + $0x68] sm:$0xff]  }
 0x4e9   :  { %9311 = vst [vmem:[#allocation3 + $0x1b0] sm:$0xf] %v9246_v41  ;;  %9309 = vst [vmem:[#allocation3 + $0x1a8] sm:$0xf] %v9244_v58  ;;  %18376 = vmatmul.mubr.bf16.gmra.mxu0 %v19436_v2  ;;  %18459 = vmatprep.mubr.bf16.mxu1 %v19437_v63  ;;  %v19450_v5 = vld [vmem:[#allocation3 + $0x60] sm:$0xff]   ;;  %v19451_v63 = vld [vmem:[#allocation3 + $0x88] sm:$0xff]  }
 0x4ea   :  { %18379 = vmatprep.mubr.bf16.mxu0 %v19438_v13  ;;  %18520 = vmatpush3.bf16.msra.mxu0 %v19449_v44  ;;  %v19447_v44 = vld [vmem:[#allocation3 + $0x58] sm:$0xff]   ;;  %v19448_v36 = vld [vmem:[#allocation3 + $0x80] sm:$0xff]   ;;  %v19454_v58 = vld [vmem:[#allocation3 + $0x70] sm:$0xff]  }
 0x4eb   :  { %18521 = vmatprep.subr.bf16.mxu0 %v19458_v15  ;;  %18600 = vmatpush3.bf16.msra.mxu1 %v19492_v43 }
 0x4ec   :  { %18601 = vmatprep.subr.bf16.mxu1 %v19496_v19 }
 0x4ee   :  { %18522 = vmatpush3.bf16.msra.mxu0 %v19458_v15 }
 0x4ef   :  { %18523 = vmatprep.subr.bf16.mxu0 %v19467_v48  ;;  %18602 = vmatpush3.bf16.msra.mxu1 %v19496_v19  ;;  %v19453_v19 = vld [vmem:[#allocation3 + $0x90] sm:$0xff]  }
 0x4f0   :  { %18460 = vmatmul.mubr.bf16.gmra.mxu1 %v19439_v60  ;;  %v18309_v35 = vpop.f32.mrf.mxu1  ;;  %v18229_v25 = vpop.f32.mrf.mxu0  ;;  %18603 = vmatprep.subr.bf16.mxu1 %v19499_v27  ;;  %v19456_v60 = vld [vmem:[#allocation3 + $0x80] sm:$0xff]  }
 0x4f1   :  { %18380 = vmatmul.mubr.bf16.gmra.mxu0 %v19441_v38  ;;  %18463 = vmatprep.mubr.bf16.mxu1 %v19442_v3  ;;  %v23566_v31 = vadd.f32 %v18309_v35, %v18229_v25  ;;  %v19455_v38 = vld [vmem:[#allocation3 + $0xa0] sm:$0xff]   ;;  %v19459_v25 = vld [vmem:[#allocation3 + $0x88] sm:$0xff]  }
 0x4f2   :  { %18383 = vmatprep.mubr.bf16.mxu0 %v19443_v21  ;;  %18524 = vmatpush3.bf16.msra.mxu0 %v19467_v48  ;;  %v10341_v56 = vpop.f32.mrf.mxu1  ;;  %v9812_v1 = vpop.f32.mrf.mxu0 }
 0x4f3   :  { %18525 = vmatprep.subr.bf16.mxu0 %v19476_v34  ;;  %v23571_v33 = vadd.f32 %v10341_v56, %v9812_v1  ;;  %18604 = vmatpush3.bf16.msra.mxu1 %v19499_v27  ;;  %v19457_v1 = vld [vmem:[#allocation3 + $0xa8] sm:$0xff]  }
 0x4f4   :  { %v18310_v61 = vpop.f32.mrf.mxu1  ;;  %v18230_v59 = vpop.f32.mrf.mxu0  ;;  %18605 = vmatprep.subr.bf16.mxu1 %v19503_v30 }
 0x4f5   :  { %v23573_v26 = vadd.f32 %v18310_v61, %v18230_v59  ;;  %v19460_v61 = vld [vmem:[#allocation3 + $0xb0] sm:$0xff]   ;;  %v19463_v59 = vld [vmem:[#allocation3 + $0x98] sm:$0xff]  }
 0x4f6   :  { %18526 = vmatpush3.bf16.msra.mxu0 %v19476_v34  ;;  %v23578_v16 = vpop.f32.mrf.mxu1  ;;  %v23580_v28 = vpop.f32.mrf.mxu0 }
 0x4f7   :  { %18527 = vmatprep.subr.bf16.mxu0 %v19485_v24  ;;  %18606 = vmatpush3.bf16.msra.mxu1 %v19503_v30 }
 0x4f8   :  { %18464 = vmatmul.mubr.bf16.gmra.mxu1 %v19444_v46  ;;  %18607 = vmatprep.subr.bf16.mxu1 %v19505_v23  ;;  %v19461_v46 = vld [vmem:[#allocation3 + $0x90] sm:$0xff]  }
 0x4f9   :  { %18384 = vmatmul.mubr.bf16.gmra.mxu0 %v19445_v42  ;;  %18467 = vmatprep.mubr.bf16.mxu1 %v19446_v37  ;;  %v19465_v37 = vld [vmem:[#allocation3 + $0xf8] sm:$0xff]  }
 0x4fa   :  { %18387 = vmatprep.mubr.bf16.mxu0 %v19447_v44  ;;  %18528 = vmatpush3.bf16.msra.mxu0 %v19485_v24  ;;  %v19462_v44 = vld [vmem:[#allocation3 + $0xb8] sm:$0xff]  }
 0x4fb   :  { %v18313_v29 = vpop.f32.mrf.mxu1  ;;  %v18233_v57 = vpop.f32.mrf.mxu0  ;;  %18529 = vmatprep.subr.bf16.mxu0 %v19498_v7  ;;  %18608 = vmatpush3.bf16.msra.mxu1 %v19505_v23  ;;  %v19464_v23 = vld [vmem:[#allocation3 + $0x118] sm:$0xff]  }
 0x4fc   :  { %v23593_v2 = vadd.f32 %v18313_v29, %v18233_v57  ;;  %18609 = vmatprep.subr.bf16.mxu1 %v19509_v54 }
 0x4fd   :  { %v10357_v53 = vpop.f32.mrf.mxu1  ;;  %v9828_v39 = vpop.f32.mrf.mxu0 }
 0x4fe   :  { %v23595_v0 = vadd.f32 %v10357_v53, %v9828_v39  ;;  %18530 = vmatpush3.bf16.msra.mxu0 %v19498_v7  ;;  %v19470_v53 = vld [vmem:[#allocation3 + $0x108] sm:$0xff]  }
 0x4ff   :  { %v18314_v13 = vpop.f32.mrf.mxu1  ;;  %v18234_v15 = vpop.f32.mrf.mxu0  ;;  %18610 = vmatpush3.bf16.msra.mxu1 %v19509_v54  ;;  %18675 = vmatprep.subr.bf16.mxu0 %v23591_v51 }
 0x500   :  { %18468 = vmatmul.mubr.bf16.gmra.mxu1 %v19448_v36  ;;  %v23598_v41 = vadd.f32 %v18314_v13, %v18234_v15  ;;  %v19469_v15 = vld [vmem:[#allocation3 + $0x128] sm:$0xff]  }
 0x501   :  { %18388 = vmatmul.mubr.bf16.gmra.mxu0 %v19450_v5  ;;  %18471 = vmatprep.mubr.bf16.mxu1 %v19451_v63  ;;  %v23600_v43 = vpop.f32.mrf.mxu1  ;;  %v23602_v48 = vpop.f32.mrf.mxu0  ;;  %v19468_v5 = vld [vmem:[#allocation3 + $0x100] sm:$0xff]  }
 0x502   :  { %18391 = vmatprep.mubr.bf16.mxu0 %v19452_v50  ;;  %v19466_v63 = vld [vmem:[#allocation3 + $0x120] sm:$0xff]  }
 0x508   :  { %18472 = vmatmul.mubr.bf16.gmra.mxu1 %v19453_v19  ;;  %v18317_v21 = vpop.f32.mrf.mxu1  ;;  %v18237_v3 = vpop.f32.mrf.mxu0 }
 0x509   :  { %18392 = vmatmul.mubr.bf16.gmra.mxu0 %v19454_v58  ;;  %18475 = vmatprep.mubr.bf16.mxu1 %v19455_v38  ;;  %v23604_v27 = vadd.f32 %v18317_v21, %v18237_v3 }
 0x50a   :  { %18395 = vmatprep.mubr.bf16.mxu0 %v19456_v60  ;;  %v10373_v34 = vpop.f32.mrf.mxu1  ;;  %v9844_v35 = vpop.f32.mrf.mxu0 }
 0x50b   :  { %v23606_v30 = vadd.f32 %v10373_v34, %v9844_v35  ;;  %v19472_v35 = vld [vmem:[#allocation3 + $0x110] sm:$0xff]  }
 0x50c   :  { %v18318_v56 = vpop.f32.mrf.mxu1  ;;  %v18238_v24 = vpop.f32.mrf.mxu0 }
 0x50d   :  { %v23608_v42 = vadd.f32 %v18318_v56, %v18238_v24  ;;  %v19471_v24 = vld [vmem:[#allocation3 + $0x130] sm:$0xff]  }
 0x50e   :  { %v23610_v7 = vpop.f32.mrf.mxu1  ;;  %v23612_v54 = vpop.f32.mrf.mxu0 }
 0x510   :  { %18476 = vmatmul.mubr.bf16.gmra.mxu1 %v19457_v1 }
 0x511   :  { %18396 = vmatmul.mubr.bf16.gmra.mxu0 %v19459_v25  ;;  %18479 = vmatprep.mubr.bf16.mxu1 %v19460_v61  ;;  %v19473_v61 = vld [vmem:[#allocation3 + $0x140] sm:$0xff]  }
 0x512   :  { %18399 = vmatprep.mubr.bf16.mxu0 %v19461_v46 }
 0x518   :  { %18480 = vmatmul.mubr.bf16.gmra.mxu1 %v19462_v44 }
 0x519   :  { %18400 = vmatmul.mubr.bf16.gmra.mxu0 %v19463_v59  ;;  %18483 = vmatprep.mubr.bf16.mxu1 %v19464_v23  ;;  %v19474_v59 = vld [vmem:[#allocation3 + $0x120] sm:$0xff]  }
 0x51a   :  { %18403 = vmatprep.mubr.bf16.mxu0 %v19465_v37 }
 0x51c   :  { %v18321_v29 = vpop.f32.mrf.mxu1  ;;  %v18241_v57 = vpop.f32.mrf.mxu0 }
 0x51d   :  { %v23614_v36 = vadd.f32 %v18321_v29, %v18241_v57 }
 0x51e   :  { %v10389_v39 = vpop.f32.mrf.mxu1  ;;  %v9860_v50 = vpop.f32.mrf.mxu0 }
 0x51f   :  { %v23616_v13 = vadd.f32 %v10389_v39, %v9860_v50 }
 0x520   :  { %v18322_v58 = vpop.f32.mrf.mxu1  ;;  %v18242_v19 = vpop.f32.mrf.mxu0  ;;  %18484 = vmatmul.mubr.bf16.gmra.mxu1 %v19466_v63 }
 0x521   :  { %18404 = vmatmul.mubr.bf16.gmra.mxu0 %v19468_v5  ;;  %v23618_v60 = vadd.f32 %v18322_v58, %v18242_v19  ;;  %18487 = vmatprep.mubr.bf16.mxu1 %v19469_v15  ;;  %v19475_v15 = vld [vmem:[#allocation3 + $0x148] sm:$0xff]  }
 0x522   :  { %18407 = vmatprep.mubr.bf16.mxu0 %v19470_v53  ;;  %v23620_v38 = vpop.f32.mrf.mxu1  ;;  %v23622_v21 = vpop.f32.mrf.mxu0  ;;  %v19477_v58 = vld [vmem:[#allocation3 + $0x128] sm:$0xff]  }
 0x524   :  { %v18325_v3 = vpop.f32.mrf.mxu1  ;;  %v18245_v34 = vpop.f32.mrf.mxu0 }
 0x525   :  { %v23624_v25 = vadd.f32 %v18325_v3, %v18245_v34  ;;  %v19478_v3 = vld [vmem:[#allocation3 + $0x150] sm:$0xff]  }
 0x526   :  { %v10405_v56 = vpop.f32.mrf.mxu1  ;;  %v9876_v1 = vpop.f32.mrf.mxu0  ;;  %v19479_v34 = vld [vmem:[#allocation3 + $0x130] sm:$0xff]  }
 0x527   :  { %v23626_v46 = vadd.f32 %v10405_v56, %v9876_v1 }
 0x528   :  { %v18326_v37 = vpop.f32.mrf.mxu1  ;;  %v18246_v44 = vpop.f32.mrf.mxu0  ;;  %18488 = vmatmul.mubr.bf16.gmra.mxu1 %v19471_v24  ;;  %v19480_v24 = vld [vmem:[#allocation3 + $0x158] sm:$0xff]  }
 0x529   :  { %18408 = vmatmul.mubr.bf16.gmra.mxu0 %v19472_v35  ;;  %v23628_v23 = vadd.f32 %v18326_v37, %v18246_v44  ;;  %18491 = vmatprep.mubr.bf16.mxu1 %v19473_v61  ;;  %v19481_v61 = vld [vmem:[#allocation3 + $0x138] sm:$0xff]   ;;  %v19483_v37 = vld [vmem:[#allocation3 + $0x148] sm:$0xff]   ;;  %v19484_v44 = vld [vmem:[#allocation3 + $0x170] sm:$0xff]  }
 0x52a   :  { %18411 = vmatprep.mubr.bf16.mxu0 %v19474_v59  ;;  %v23630_v29 = vpop.f32.mrf.mxu1  ;;  %v23632_v57 = vpop.f32.mrf.mxu0  ;;  %v19482_v59 = vld [vmem:[#allocation3 + $0x168] sm:$0xff]  }
 0x52c   :  { %v18329_v5 = vpop.f32.mrf.mxu1  ;;  %v18249_v53 = vpop.f32.mrf.mxu0 }
 0x52d   :  { %v23634_v39 = vadd.f32 %v18329_v5, %v18249_v53  ;;  %v19487_v5 = vld [vmem:[#allocation3 + $0x150] sm:$0xff]   ;;  %v19488_v53 = vld [vmem:[#allocation3 + $0x178] sm:$0xff]  }
 0x52e   :  { %v10421_v50 = vpop.f32.mrf.mxu1  ;;  %v9892_v63 = vpop.f32.mrf.mxu0 }
 0x52f   :  { %25221 = vst [vmem:[#allocation90_spill] sm:$0xff] %v23634_v39  ;;  %v23636_v19 = vadd.f32 %v10421_v50, %v9892_v63  ;;  %v19489_v50 = vld [vmem:[#allocation3 + $0x158] sm:$0xff]   ;;  %v19502_v39 = vld [vmem:[#allocation3 + $0x180] sm:$0xff]  }
 0x530   :  { %v18330_v35 = vpop.f32.mrf.mxu1  ;;  %v18250_v56 = vpop.f32.mrf.mxu0  ;;  %18492 = vmatmul.mubr.bf16.gmra.mxu1 %v19475_v15  ;;  %v23643_v63 = vld [vmem:[%s24715_s7 + $0x1f8] sm:$0xff]  }
 0x531   :  { %25222 = vst [vmem:[#allocation104_spill] sm:$0xff] %v23636_v19  ;;  %18412 = vmatmul.mubr.bf16.gmra.mxu0 %v19477_v58  ;;  %v23638_v1 = vadd.f32 %v18330_v35, %v18250_v56  ;;  %18495 = vmatprep.mubr.bf16.mxu1 %v19478_v3  ;;  %v19493_v35 = vld [vmem:[#allocation3 + $0x160] sm:$0xff]  }
 0x532   :  { %18415 = vmatprep.mubr.bf16.mxu0 %v19479_v34  ;;  %v23645_v15 = vpop.f32.mrf.mxu1  ;;  %v23647_v58 = vpop.f32.mrf.mxu0  ;;  %18755 = vmatprep.subr.bf16.mxu1 %v23643_v63  ;;  %v19491_v34 = vld [vmem:[#allocation3 + $0x180] sm:$0xff]  }
 0x533   :  { %25223 = vst [vmem:[#allocation86_spill] sm:$0xff] %v23638_v1  ;;  %25224 = vst [vmem:[#allocation105_spill] sm:$0xff] %v23645_v15  ;;  %v19497_v15 = vld [vmem:[#allocation3 + $0x198] sm:$0xff]   ;;  %v19501_v19 = vld [vmem:[#allocation3 + $0x1a0] sm:$0xff]  }
 0x534   :  { %25225 = vst [vmem:[#allocation106_spill] sm:$0xff] %v23647_v58  ;;  %v19500_v58 = vld [vmem:[#allocation3 + $0x178] sm:$0xff]  }
 0x538   :  { %18496 = vmatmul.mubr.bf16.gmra.mxu1 %v19480_v24  ;;  %v19494_v24 = vld [vmem:[#allocation3 + $0x190] sm:$0xff]  }
 0x539   :  { %18416 = vmatmul.mubr.bf16.gmra.mxu0 %v19481_v61  ;;  %18499 = vmatprep.mubr.bf16.mxu1 %v19482_v59  ;;  %v19495_v61 = vld [vmem:[#allocation3 + $0x170] sm:$0xff]  }
 0x53a   :  { %18419 = vmatprep.mubr.bf16.mxu0 %v19483_v37 }
 0x540   :  { %18500 = vmatmul.mubr.bf16.gmra.mxu1 %v19484_v44 }
 0x541   :  { %18420 = vmatmul.mubr.bf16.gmra.mxu0 %v19487_v5  ;;  %18503 = vmatprep.mubr.bf16.mxu1 %v19488_v53 }
 0x542   :  { %18423 = vmatprep.mubr.bf16.mxu0 %v19489_v50 }
 0x547   :  { %v18333_v3 = vpop.f32.mrf.mxu1  ;;  %v18253_v56 = vpop.f32.mrf.mxu0 }
 0x548   :  { %v23650_v59 = vadd.f32 %v18333_v3, %v18253_v56  ;;  %18504 = vmatmul.mubr.bf16.gmra.mxu1 %v19491_v34  ;;  %v19506_v56 = vld [vmem:[#allocation3 + $0x188] sm:$0xff]  }
 0x549   :  { %v10437_v37 = vpop.f32.mrf.mxu1  ;;  %18424 = vmatmul.mubr.bf16.gmra.mxu0 %v19493_v35  ;;  %v9908_v44 = vpop.f32.mrf.mxu0  ;;  %18507 = vmatprep.mubr.bf16.mxu1 %v19494_v24  ;;  %v19504_v35 = vld [vmem:[#allocation3 + $0x1a8] sm:$0xff]   ;;  %v19507_v24 = vld [vmem:[#allocation3 + $0x30] sm:$0xff]  }
 0x54a   :  { %25226 = vst [vmem:[#allocation107_spill] sm:$0xff] %v23650_v59  ;;  %18427 = vmatprep.mubr.bf16.mxu0 %v19495_v61  ;;  %v23652_v5 = vadd.f32 %v10437_v37, %v9908_v44  ;;  %v19508_v61 = vld [vmem:[#allocation3 + $0x2c] sm:$0xff]  }
 0x54b   :  { %v18334_v53 = vpop.f32.mrf.mxu1  ;;  %v18254_v50 = vpop.f32.mrf.mxu0 }
 0x54c   :  { %25227 = vst [vmem:[#allocation109_spill] sm:$0xff] %v23652_v5  ;;  %v23654_v1 = vadd.f32 %v18334_v53, %v18254_v50  ;;  %v19512_v5 = vld [vmem:[#allocation3 + $0x34] sm:$0xff]  }
 0x54d   :  { %v23656_v3 = vpop.f32.mrf.mxu1  ;;  %v23658_v34 = vpop.f32.mrf.mxu0 }
 0x54e   :  { %25228 = vst [vmem:[#allocation108_spill] sm:$0xff] %v23654_v1  ;;  %25229 = vst [vmem:[#allocation87_spill] sm:$0xff] %v23656_v3 }
 0x54f   :  { %25230 = vst [vmem:[#allocation110_spill] sm:$0xff] %v23658_v34  ;;  %v19510_v34 = vld [vmem:[#allocation3 + $0x38] sm:$0xff]  }
 0x550   :  { %18508 = vmatmul.mubr.bf16.gmra.mxu1 %v19497_v15 }
 0x551   :  { %18428 = vmatmul.mubr.bf16.gmra.mxu0 %v19500_v58  ;;  %18511 = vmatprep.mubr.bf16.mxu1 %v19501_v19 }
 0x552   :  { %18431 = vmatprep.mubr.bf16.mxu0 %v19502_v39 }
 0x558   :  { %18512 = vmatmul.mubr.bf16.gmra.mxu1 %v19504_v35  ;;  %v19520_v35 = vld [vmem:[%s24715_s7 + $0x1b0] sm:$0xff]  }
 0x559   :  { %v18337_v37 = vpop.f32.mrf.mxu1  ;;  %18432 = vmatmul.mubr.bf16.gmra.mxu0 %v19506_v56  ;;  %18611 = vmatprep.mubr.bf16.mxu1 %v19507_v24  ;;  %v19513_v24 = vld [vmem:[#allocation3 + $0x40] sm:$0xff]  }
 0x55a   :  { %v18257_v44 = vpop.f32.mrf.mxu0  ;;  %18531 = vmatprep.mubr.bf16.mxu0 %v19508_v61 }
 0x55b   :  { %v23660_v53 = vadd.f32 %v18337_v37, %v18257_v44  ;;  %v10453_v15 = vpop.f32.mrf.mxu1  ;;  %v19514_v37 = vld [vmem:[#allocation3 + $0x3c] sm:$0xff]   ;;  %v19570_v44 = vld [vmem:[%s24715_s7 + $0x1f0] sm:$0xff]  }
 0x55c   :  { %v9924_v58 = vpop.f32.mrf.mxu0 }
 0x55d   :  { %25231 = vst [vmem:[#allocation111_spill] sm:$0xff] %v23660_v53  ;;  %v23662_v19 = vadd.f32 %v10453_v15, %v9924_v58  ;;  %v18338_v39 = vpop.f32.mrf.mxu1  ;;  %v19529_v15 = vld [vmem:[%s24715_s7 + $0x1a8] sm:$0xff]   ;;  %v19540_v53 = vld [vmem:[#allocation3 + $0xb8] sm:$0xff]  }
 0x55e   :  { %v18258_v50 = vpop.f32.mrf.mxu0  ;;  %v19516_v58 = vld [vmem:[#allocation3 + $0x44] sm:$0xff]  }
 0x55f   :  { %25232 = vst [vmem:[#allocation112_spill] sm:$0xff] %v23662_v19  ;;  %v23664_v1 = vadd.f32 %v18338_v39, %v18258_v50  ;;  %v10456_v3 = vpop.f32.mrf.mxu1  ;;  %v19517_v50 = vld [vmem:[#allocation3 + $0x58] sm:$0xff]  }
 0x560   :  { %v9927_v56 = vpop.f32.mrf.mxu0  ;;  %18612 = vmatmul.mubr.bf16.vlgmr.msra.gmra.mxu1 %v19510_v34  ;;  %v19515_v34 = vld [vmem:[#allocation3 + $0x48] sm:$0xff]  }
 0x561   :  { %25233 = vst [vmem:[#allocation113_spill] sm:$0xff] %v23664_v1  ;;  %v23669_v61 = vadd.f32 %v10456_v3, %v9927_v56  ;;  %18532 = vmatmul.mubr.bf16.vlgmr.msra.gmra.mxu0 %v19512_v5  ;;  %18615 = vmatprep.mubr.bf16.mxu1 %v19513_v24  ;;  %v19518_v56 = vld [vmem:[#allocation3 + $0x54] sm:$0xff]  }
 0x562   :  { %18676 = vmatpush3.bf16.msra.mxu0 %v23591_v51  ;;  %18535 = vmatprep.mubr.bf16.mxu0 %v19514_v37  ;;  %v19572_v51 = vld [vmem:[%s24715_s7 + $0x1e8] sm:$0xff]  }
 0x563   :  { %25234 = vst [vmem:[#allocation115_spill] sm:$0xff] %v23669_v61  ;;  %18677 = vmatprep.subr.bf16.mxu0 %v19520_v35  ;;  %18756 = vmatpush3.bf16.msra.mxu1 %v23643_v63  ;;  %v19538_v63 = vld [vmem:[%s24715_s7 + $0x1a0] sm:$0xff]  }
 0x564   :  { %18757 = vmatprep.subr.bf16.mxu1 %v19570_v44 }
 0x566   :  { %18678 = vmatpush3.bf16.msra.mxu0 %v19520_v35  ;;  %v18341_v3 = vpop.f32.mrf.mxu1  ;;  %v18261_v5 = vpop.f32.mrf.mxu0 }
 0x567   :  { %18679 = vmatprep.subr.bf16.mxu0 %v19529_v15  ;;  %v23679_v39 = vadd.f32 %v18341_v3, %v18261_v5  ;;  %18758 = vmatpush3.bf16.msra.mxu1 %v19570_v44  ;;  %v19576_v3 = vld [vmem:[%s24715_s7 + $0x1e0] sm:$0xff]   ;;  %v19547_v44 = vld [vmem:[%s24715_s7 + $0x198] sm:$0xff]  }
 0x568   :  { %v10469_v24 = vpop.f32.mrf.mxu1  ;;  %v9940_v37 = vpop.f32.mrf.mxu0  ;;  %18616 = vmatmul.mubr.bf16.gmra.mxu1 %v19515_v34  ;;  %18759 = vmatprep.subr.bf16.mxu1 %v19572_v51 }
 0x569   :  { %25235 = vst [vmem:[#allocation114_spill] sm:$0xff] %v23679_v39  ;;  %18536 = vmatmul.mubr.bf16.gmra.mxu0 %v19516_v58  ;;  %v23687_v35 = vadd.f32 %v10469_v24, %v9940_v37  ;;  %18619 = vmatprep.mubr.bf16.mxu1 %v19517_v50  ;;  %v19519_v58 = vld [vmem:[#allocation3 + $0x60] sm:$0xff]   ;;  %v19556_v24 = vld [vmem:[%s24715_s7 + $0x190] sm:$0xff]  }
 0x56a   :  { %18539 = vmatprep.mubr.bf16.mxu0 %v19518_v56  ;;  %v18342_v5 = vpop.f32.mrf.mxu1  ;;  %v18262_v39 = vpop.f32.mrf.mxu0  ;;  %18680 = vmatpush3.bf16.msra.mxu0 %v19529_v15  ;;  %v19521_v50 = vld [vmem:[#allocation3 + $0x5c] sm:$0xff]   ;;  %v19523_v56 = vld [vmem:[#allocation3 + $0x64] sm:$0xff]  }
 0x56b   :  { %25236 = vst [vmem:[#allocation117_spill] sm:$0xff] %v23687_v35  ;;  %v23692_v61 = vadd.f32 %v18342_v5, %v18262_v39  ;;  %18681 = vmatprep.subr.bf16.mxu0 %v19538_v63  ;;  %18760 = vmatpush3.bf16.msra.mxu1 %v19572_v51  ;;  %v19579_v15 = vld [vmem:[%s24715_s7 + $0x1d8] sm:$0xff]   ;;  %v19522_v39 = vld [vmem:[#allocation3 + $0x68] sm:$0xff]   ;;  %v19524_v5 = vld [vmem:[#allocation3 + $0x70] sm:$0xff]  }
 0x56c   :  { %v10472_v1 = vpop.f32.mrf.mxu1  ;;  %v9943_v19 = vpop.f32.mrf.mxu0  ;;  %18761 = vmatprep.subr.bf16.mxu1 %v19576_v3  ;;  %v19565_v51 = vld [vmem:[%s24715_s7 + $0x188] sm:$0xff]  }
 0x56d   :  { %25237 = vst [vmem:[#allocation116_spill] sm:$0xff] %v23692_v61  ;;  %v23697_v34 = vadd.f32 %v10472_v1, %v9943_v19  ;;  %v19583_v1 = vld [vmem:[%s24715_s7 + $0x1d0] sm:$0xff]  }
 0x56e   :  { %18682 = vmatpush3.bf16.msra.mxu0 %v19538_v63 }
 0x56f   :  { %25238 = vst [vmem:[#allocation118_spill] sm:$0xff] %v23697_v34  ;;  %18683 = vmatprep.subr.bf16.mxu0 %v19547_v44  ;;  %18762 = vmatpush3.bf16.msra.mxu1 %v19576_v3 }
 0x570   :  { %18620 = vmatmul.mubr.bf16.gmra.mxu1 %v19519_v58  ;;  %18763 = vmatprep.subr.bf16.mxu1 %v19579_v15  ;;  %v19525_v58 = vld [vmem:[#allocation3 + $0x6c] sm:$0xff]  }
 0x571   :  { %18540 = vmatmul.mubr.bf16.gmra.mxu0 %v19521_v50  ;;  %18623 = vmatprep.mubr.bf16.mxu1 %v19522_v39  ;;  %v19526_v39 = vld [vmem:[#allocation3 + $0x80] sm:$0xff]  }
 0x572   :  { %18543 = vmatprep.mubr.bf16.mxu0 %v19523_v56  ;;  %18684 = vmatpush3.bf16.msra.mxu0 %v19547_v44  ;;  %v19585_v44 = vld [vmem:[%s24715_s7 + $0x1c8] sm:$0xff]   ;;  %v19527_v56 = vld [vmem:[#allocation3 + $0x7c] sm:$0xff]  }
 0x573   :  { %18685 = vmatprep.subr.bf16.mxu0 %v19556_v24  ;;  %18764 = vmatpush3.bf16.msra.mxu1 %v19579_v15  ;;  %v19578_v15 = vld [vmem:[%s24715_s7 + $0x180] sm:$0xff]  }
 0x574   :  { %18765 = vmatprep.subr.bf16.mxu1 %v19583_v1 }
 0x575   :  { %v18345_v19 = vpop.f32.mrf.mxu1  ;;  %v18265_v37 = vpop.f32.mrf.mxu0 }
 0x576   :  { %v23711_v63 = vadd.f32 %v18345_v19, %v18265_v37  ;;  %18686 = vmatpush3.bf16.msra.mxu0 %v19556_v24  ;;  %v19589_v24 = vld [vmem:[%s24715_s7 + $0x1c0] sm:$0xff]  }
 0x577   :  { %v10485_v3 = vpop.f32.mrf.mxu1  ;;  %v9956_v50 = vpop.f32.mrf.mxu0  ;;  %18687 = vmatprep.subr.bf16.mxu0 %v19565_v51  ;;  %18766 = vmatpush3.bf16.msra.mxu1 %v19583_v1  ;;  %v23731_v1 = vld [vmem:[%s24715_s7 + $0x238] sm:$0xff]  }
 0x578   :  { %25239 = vst [vmem:[#allocation119_spill] sm:$0xff] %v23711_v63  ;;  %v23716_v34 = vadd.f32 %v10485_v3, %v9956_v50  ;;  %18624 = vmatmul.mubr.bf16.gmra.mxu1 %v19524_v5  ;;  %18767 = vmatprep.subr.bf16.mxu1 %v19585_v44  ;;  %v19528_v5 = vld [vmem:[#allocation3 + $0x88] sm:$0xff]  }
 0x579   :  { %v18346_v61 = vpop.f32.mrf.mxu1  ;;  %18544 = vmatmul.mubr.bf16.gmra.mxu0 %v19525_v58  ;;  %v18266_v19 = vpop.f32.mrf.mxu0  ;;  %18627 = vmatprep.mubr.bf16.mxu1 %v19526_v39  ;;  %v19530_v58 = vld [vmem:[#allocation3 + $0x84] sm:$0xff]   ;;  %v19531_v39 = vld [vmem:[#allocation3 + $0x90] sm:$0xff]  }
 0x57a   :  { %25240 = vst [vmem:[#allocation91_spill] sm:$0xff] %v23716_v34  ;;  %18547 = vmatprep.mubr.bf16.mxu0 %v19527_v56  ;;  %v23724_v37 = vadd.f32 %v18346_v61, %v18266_v19  ;;  %18688 = vmatpush3.bf16.msra.mxu0 %v19565_v51  ;;  %v19532_v61 = vld [vmem:[#allocation3 + $0x8c] sm:$0xff]   ;;  %v19533_v51 = vld [vmem:[#allocation3 + $0x98] sm:$0xff]   ;;  %v19536_v19 = vld [vmem:[#allocation3 + $0xa4] sm:$0xff]  }
 0x57b   :  { %v10488_v3 = vpop.f32.mrf.mxu1  ;;  %v9959_v50 = vpop.f32.mrf.mxu0  ;;  %18689 = vmatprep.subr.bf16.mxu0 %v19578_v15  ;;  %18768 = vmatpush3.bf16.msra.mxu1 %v19585_v44  ;;  %v19534_v44 = vld [vmem:[#allocation3 + $0x94] sm:$0xff]   ;;  %v19535_v56 = vld [vmem:[#allocation3 + $0xa8] sm:$0xff]  }
 0x57c   :  { %25241 = vst [vmem:[#allocation166_spill] sm:$0xff] %v23724_v37  ;;  %v23726_v34 = vadd.f32 %v10488_v3, %v9959_v50  ;;  %18769 = vmatprep.subr.bf16.mxu1 %v19589_v24 }
 0x57e   :  { %25242 = vst [vmem:[#allocation165_spill] sm:$0xff] %v23726_v34  ;;  %18690 = vmatpush3.bf16.msra.mxu0 %v19578_v15 }
 0x57f   :  { %18770 = vmatpush3.bf16.msra.mxu1 %v19589_v24  ;;  %18835 = vmatprep.subr.bf16.mxu0 %v23731_v1 }
 0x580   :  { %18628 = vmatmul.mubr.bf16.gmra.mxu1 %v19528_v5 }
 0x581   :  { %18548 = vmatmul.mubr.bf16.gmra.mxu0 %v19530_v58  ;;  %18631 = vmatprep.mubr.bf16.mxu1 %v19531_v39  ;;  %v19537_v39 = vld [vmem:[#allocation3 + $0xb0] sm:$0xff]  }
 0x582   :  { %18551 = vmatprep.mubr.bf16.mxu0 %v19532_v61  ;;  %v19539_v61 = vld [vmem:[#allocation3 + $0xac] sm:$0xff]  }
 0x588   :  { %18632 = vmatmul.mubr.bf16.gmra.mxu1 %v19533_v51  ;;  %v19541_v51 = vld [vmem:[#allocation3 + $0xb4] sm:$0xff]  }
 0x589   :  { %18552 = vmatmul.mubr.bf16.gmra.mxu0 %v19534_v44  ;;  %18635 = vmatprep.mubr.bf16.mxu1 %v19535_v56 }
 0x58a   :  { %v18349_v3 = vpop.f32.mrf.mxu1  ;;  %18555 = vmatprep.mubr.bf16.mxu0 %v19536_v19  ;;  %v19542_v19 = vld [vmem:[#allocation3 + $0xc0] sm:$0xff]  }
 0x58b   :  { %v18269_v50 = vpop.f32.mrf.mxu0 }
 0x58c   :  { %v23734_v15 = vadd.f32 %v18349_v3, %v18269_v50  ;;  %v10501_v34 = vpop.f32.mrf.mxu1  ;;  %v19543_v3 = vld [vmem:[#allocation3 + $0xbc] sm:$0xff]  }
 0x58d   :  { %v9972_v24 = vpop.f32.mrf.mxu0  ;;  %v19545_v50 = vld [vmem:[#allocation3 + $0x11c] sm:$0xff]  }
 0x58e   :  { %25243 = vst [vmem:[#allocation121_spill] sm:$0xff] %v23734_v15  ;;  %v23736_v37 = vadd.f32 %v10501_v34, %v9972_v24  ;;  %v18350_v5 = vpop.f32.mrf.mxu1  ;;  %v19544_v34 = vld [vmem:[#allocation3 + $0x120] sm:$0xff]  }
 0x58f   :  { %v18270_v58 = vpop.f32.mrf.mxu0  ;;  %v19548_v15 = vld [vmem:[#allocation3 + $0x124] sm:$0xff]  }
 0x590   :  { %25244 = vst [vmem:[#allocation120_spill] sm:$0xff] %v23736_v37  ;;  %v23738_v63 = vadd.f32 %v18350_v5, %v18270_v58  ;;  %v10504_v35 = vpop.f32.mrf.mxu1  ;;  %18636 = vmatmul.mubr.bf16.gmra.mxu1 %v19537_v39 }
 0x591   :  { %v9975_v44 = vpop.f32.mrf.mxu0  ;;  %18556 = vmatmul.mubr.bf16.gmra.mxu0 %v19539_v61  ;;  %18639 = vmatprep.mubr.bf16.mxu1 %v19540_v53 }
 0x592   :  { %25245 = vst [vmem:[#allocation122_spill] sm:$0xff] %v23738_v63  ;;  %v23740_v56 = vadd.f32 %v10504_v35, %v9975_v44  ;;  %18559 = vmatprep.mubr.bf16.mxu0 %v19541_v51 }
 0x594   :  { %25246 = vst [vmem:[#allocation168_spill] sm:$0xff] %v23740_v56  ;;  %v19546_v56 = vld [vmem:[#allocation3 + $0x128] sm:$0xff]  }
 0x598   :  { %v18353_v24 = vpop.f32.mrf.mxu1  ;;  %18640 = vmatmul.mubr.bf16.gmra.mxu1 %v19542_v19  ;;  %v19549_v19 = vld [vmem:[#allocation3 + $0x130] sm:$0xff]  }
 0x599   :  { %v18273_v37 = vpop.f32.mrf.mxu0  ;;  %18560 = vmatmul.mubr.bf16.gmra.mxu0 %v19543_v3  ;;  %18643 = vmatprep.mubr.bf16.mxu1 %v19544_v34  ;;  %v19550_v3 = vld [vmem:[#allocation3 + $0x12c] sm:$0xff]  }
 0x59a   :  { %v23742_v5 = vadd.f32 %v18353_v24, %v18273_v37  ;;  %18563 = vmatprep.mubr.bf16.mxu0 %v19545_v50  ;;  %v10517_v58 = vpop.f32.mrf.mxu1 }
 0x59b   :  { %v9988_v63 = vpop.f32.mrf.mxu0 }
 0x59c   :  { %25247 = vst [vmem:[#allocation167_spill] sm:$0xff] %v23742_v5  ;;  %v23744_v39 = vadd.f32 %v10517_v58, %v9988_v63  ;;  %v18354_v35 = vpop.f32.mrf.mxu1 }
 0x59d   :  { %v18274_v61 = vpop.f32.mrf.mxu0 }
 0x59e   :  { %25248 = vst [vmem:[#allocation170_spill] sm:$0xff] %v23744_v39  ;;  %v23746_v53 = vadd.f32 %v18354_v35, %v18274_v61  ;;  %v10520_v51 = vpop.f32.mrf.mxu1  ;;  %v19554_v39 = vld [vmem:[#allocation3 + $0x144] sm:$0xff]  }
 0x59f   :  { %v9991_v44 = vpop.f32.mrf.mxu0 }
 0x5a0   :  { %25249 = vst [vmem:[#allocation169_spill] sm:$0xff] %v23746_v53  ;;  %v23748_v59 = vadd.f32 %v10520_v51, %v9991_v44  ;;  %v18453_v37 = vpop.f32.mrf.mxu1  ;;  %18644 = vmatmul.mubr.bf16.gmra.mxu1 %v19546_v56  ;;  %v10281_v51 = vadd.f32 %v23335_v45, %v23345_v52 }
 0x5a1   :  { %v18373_v34 = vpop.f32.mrf.mxu0  ;;  %18564 = vmatmul.mubr.bf16.gmra.mxu0 %v19548_v15  ;;  %18647 = vmatprep.mubr.bf16.mxu1 %v19549_v19  ;;  %v19552_v19 = vld [vmem:[#allocation3 + $0x134] sm:$0xff]  }
 0x5a2   :  { %25250 = vst [vmem:[#allocation124_spill] sm:$0xff] %v23748_v59  ;;  %v11145_v50 = vadd.f32 %v18373_v34, %v23444_v62  ;;  %18567 = vmatprep.mubr.bf16.mxu0 %v19550_v3  ;;  %v11562_v63 = vpop.f32.mrf.mxu1  ;;  %v19551_v62 = vld [vmem:[#allocation3 + $0x138] sm:$0xff]   ;;  %v19553_v34 = vld [vmem:[#allocation3 + $0x148] sm:$0xff]  }
 0x5a3   :  { %v10888_v24 = vpop.f32.mrf.mxu0 }
 0x5a4   :  { %v11143_v58 = vadd.f32 %v10888_v24, %v23455_v22  ;;  %v23752_v35 = vadd.f32 %v18453_v37, %v11145_v50  ;;  %v18454_v61 = vpop.f32.mrf.mxu1 }
 0x5a5   :  { %v18374_v53 = vpop.f32.mrf.mxu0 }
 0x5a6   :  { %v11146_v44 = vadd.f32 %v18374_v53, %v23459_v11  ;;  %v23757_v56 = vadd.f32 %v11562_v63, %v11143_v58  ;;  %v11565_v15 = vpop.f32.mrf.mxu1  ;;  %v10297_v58 = vadd.f32 %v23402_v40, %v23408_v55 }
 0x5a7   :  { %v10891_v59 = vpop.f32.mrf.mxu0 }
 0x5a8   :  { %v11144_v3 = vadd.f32 %v10891_v59, %v10281_v51  ;;  %v23759_v5 = vadd.f32 %v18454_v61, %v11146_v44  ;;  %v18457_v22 = vpop.f32.mrf.mxu1  ;;  %18648 = vmatmul.mubr.bf16.gmra.mxu1 %v19551_v62 }
 0x5a9   :  { %v18377_v37 = vpop.f32.mrf.mxu0  ;;  %18568 = vmatmul.mubr.bf16.gmra.mxu0 %v19552_v19  ;;  %18651 = vmatprep.mubr.bf16.mxu1 %v19553_v34  ;;  %v19558_v19 = vld [vmem:[#allocation3 + $0x158] sm:$0xff]  }
 0x5aa   :  { %v11149_v50 = vadd.f32 %v18377_v37, %v23468_v17  ;;  %18571 = vmatprep.mubr.bf16.mxu0 %v19554_v39  ;;  %v23762_v45 = vadd.f32 %v11565_v15, %v11144_v3  ;;  %v11578_v52 = vpop.f32.mrf.mxu1  ;;  %v19555_v39 = vld [vmem:[#allocation3 + $0x150] sm:$0xff]  }
 0x5ab   :  { %v10904_v11 = vpop.f32.mrf.mxu0  ;;  %v19557_v15 = vld [vmem:[#allocation3 + $0x14c] sm:$0xff]   ;;  %v19559_v3 = vld [vmem:[#allocation3 + $0x154] sm:$0xff]  }
 0x5ac   :  { %v11147_v53 = vadd.f32 %v10904_v11, %v23472_v10  ;;  %v23765_v63 = vadd.f32 %v18457_v22, %v11149_v50  ;;  %v18458_v59 = vpop.f32.mrf.mxu1 }
 0x5ad   :  { %v18378_v24 = vpop.f32.mrf.mxu0 }
 0x5ae   :  { %v11150_v61 = vadd.f32 %v18378_v24, %v23476_v4  ;;  %v23770_v51 = vadd.f32 %v11578_v52, %v11147_v53  ;;  %v11581_v17 = vpop.f32.mrf.mxu1 }
 0x5af   :  { %v10907_v44 = vpop.f32.mrf.mxu0 }
 0x5b0   :  { %v11148_v62 = vadd.f32 %v10907_v44, %v10297_v58  ;;  %v23772_v34 = vadd.f32 %v18458_v59, %v11150_v61  ;;  %v18461_v10 = vpop.f32.mrf.mxu1  ;;  %18652 = vmatmul.mubr.bf16.gmra.mxu1 %v19555_v39  ;;  %v10313_v59 = vadd.f32 %v23478_v9, %v23486_v49  ;;  %v19560_v44 = vld [vmem:[#allocation3 + $0x160] sm:$0xff]  }
 0x5b1   :  { %v18381_v22 = vpop.f32.mrf.mxu0  ;;  %18572 = vmatmul.mubr.bf16.gmra.mxu0 %v19557_v15  ;;  %18655 = vmatprep.mubr.bf16.mxu1 %v19558_v19  ;;  %v19562_v15 = vld [vmem:[#allocation3 + $0x170] sm:$0xff]  }
 0x5b2   :  { %v11153_v37 = vadd.f32 %v18381_v22, %v23482_v32  ;;  %18575 = vmatprep.mubr.bf16.mxu0 %v19559_v3  ;;  %v23775_v40 = vadd.f32 %v11581_v17, %v11148_v62  ;;  %v11594_v55 = vpop.f32.mrf.mxu1  ;;  %v19561_v17 = vld [vmem:[#allocation3 + $0x15c] sm:$0xff]   ;;  %v19563_v62 = vld [vmem:[#allocation3 + $0x16c] sm:$0xff]  }
 0x5b3   :  { %v10920_v4 = vpop.f32.mrf.mxu0 }
 0x5b4   :  { %v11151_v50 = vadd.f32 %v10920_v4, %v23484_v8  ;;  %v23778_v52 = vadd.f32 %v18461_v10, %v11153_v37  ;;  %v18462_v11 = vpop.f32.mrf.mxu1 }
 0x5b5   :  { %v18382_v53 = vpop.f32.mrf.mxu0 }
 0x5b6   :  { %v11154_v24 = vadd.f32 %v18382_v53, %v23499_v14  ;;  %v23783_v58 = vadd.f32 %v11594_v55, %v11151_v50  ;;  %v11597_v32 = vpop.f32.mrf.mxu1  ;;  %v10329_v50 = vadd.f32 %v23553_v6, %v23555_v18 }
 0x5b7   :  { %v10923_v61 = vpop.f32.mrf.mxu0 }
 0x5b8   :  { %v11152_v39 = vadd.f32 %v10923_v61, %v10313_v59  ;;  %v23785_v19 = vadd.f32 %v18462_v11, %v11154_v24  ;;  %v18465_v8 = vpop.f32.mrf.mxu1  ;;  %18656 = vmatmul.mubr.bf16.gmra.mxu1 %v19560_v44  ;;  %v19564_v24 = vld [vmem:[#allocation3 + $0x178] sm:$0xff]   ;;  %v19568_v44 = vld [vmem:[#allocation3 + $0x180] sm:$0xff]  }
 0x5b9   :  { %v18385_v3 = vpop.f32.mrf.mxu0  ;;  %18576 = vmatmul.mubr.bf16.gmra.mxu0 %v19561_v17  ;;  %18659 = vmatprep.mubr.bf16.mxu1 %v19562_v15  ;;  %v19569_v17 = vld [vmem:[#allocation3 + $0x17c] sm:$0xff]  }
 0x5ba   :  { %v11157_v10 = vadd.f32 %v18385_v3, %v23514_v12  ;;  %18579 = vmatprep.mubr.bf16.mxu0 %v19563_v62  ;;  %v23788_v9 = vadd.f32 %v11597_v32, %v11152_v39  ;;  %v11610_v49 = vpop.f32.mrf.mxu1  ;;  %v19567_v32 = vld [vmem:[#allocation3 + $0x174] sm:$0xff]  }
 0x5bb   :  { %v10936_v14 = vpop.f32.mrf.mxu0 }
 0x5bc   :  { %v11155_v22 = vadd.f32 %v10936_v14, %v23540_v47  ;;  %v23791_v37 = vadd.f32 %v18465_v8, %v11157_v10  ;;  %v18466_v55 = vpop.f32.mrf.mxu1  ;;  %v10345_v14 = vadd.f32 %v23578_v16, %v23580_v28 }
 0x5bd   :  { %v18386_v4 = vpop.f32.mrf.mxu0 }
 0x5be   :  { %v11158_v11 = vadd.f32 %v18386_v4, %v23542_v20  ;;  %v23796_v53 = vadd.f32 %v11610_v49, %v11155_v22  ;;  %v11613_v12 = vpop.f32.mrf.mxu1 }
 0x5bf   :  { %v10939_v59 = vpop.f32.mrf.mxu0 }
 0x5c0   :  { %v11156_v61 = vadd.f32 %v10939_v59, %v10329_v50  ;;  %v23798_v39 = vadd.f32 %v18466_v55, %v11158_v11  ;;  %v18469_v47 = vpop.f32.mrf.mxu1  ;;  %18660 = vmatmul.mubr.bf16.gmra.mxu1 %v19564_v24  ;;  %v19571_v50 = vld [vmem:[#allocation3 + $0x188] sm:$0xff]   ;;  %v19574_v59 = vld [vmem:[#allocation3 + $0x198] sm:$0xff]  }
 0x5c1   :  { %v18389_v15 = vpop.f32.mrf.mxu0  ;;  %18580 = vmatmul.mubr.bf16.gmra.mxu0 %v19567_v32  ;;  %18663 = vmatprep.mubr.bf16.mxu1 %v19568_v44  ;;  %v19573_v11 = vld [vmem:[#allocation3 + $0x184] sm:$0xff]   ;;  %v19575_v24 = vld [vmem:[#allocation3 + $0x194] sm:$0xff]  }
 0x5c2   :  { %v11161_v62 = vadd.f32 %v18389_v15, %v23566_v31  ;;  %18583 = vmatprep.mubr.bf16.mxu0 %v19569_v17  ;;  %v23801_v20 = vadd.f32 %v11613_v12, %v11156_v61  ;;  %v11626_v6 = vpop.f32.mrf.mxu1 }
 0x5c3   :  { %v10952_v18 = vpop.f32.mrf.mxu0 }
 0x5c4   :  { %v11159_v8 = vadd.f32 %v10952_v18, %v23571_v33  ;;  %v23804_v3 = vadd.f32 %v18469_v47, %v11161_v62  ;;  %v18470_v10 = vpop.f32.mrf.mxu1 }
 0x5c5   :  { %v18390_v49 = vpop.f32.mrf.mxu0 }
 0x5c6   :  { %v11162_v22 = vadd.f32 %v18390_v49, %v23573_v26  ;;  %v23809_v55 = vadd.f32 %v11626_v6, %v11159_v8  ;;  %v11629_v31 = vpop.f32.mrf.mxu1  ;;  %v10361_v6 = vadd.f32 %v23600_v43, %v23602_v48  ;;  %v19577_v49 = vld [vmem:[#allocation3 + $0x1a0] sm:$0xff]  }
 0x5c7   :  { %v10955_v4 = vpop.f32.mrf.mxu0 }
 0x5c8   :  { %v11160_v12 = vadd.f32 %v10955_v4, %v10345_v14  ;;  %v23811_v32 = vadd.f32 %v18470_v10, %v11162_v22  ;;  %v18473_v33 = vpop.f32.mrf.mxu1  ;;  %18664 = vmatmul.mubr.bf16.gmra.mxu1 %v19571_v50  ;;  %v19580_v14 = vld [vmem:[#allocation3 + $0x19c] sm:$0xff]   ;;  %v19582_v4 = vld [vmem:[#allocation3 + $0x1a4] sm:$0xff]  }
 0x5c9   :  { %v18393_v61 = vpop.f32.mrf.mxu0  ;;  %18584 = vmatmul.mubr.bf16.gmra.mxu0 %v19573_v11  ;;  %18667 = vmatprep.mubr.bf16.mxu1 %v19574_v59 }
 0x5ca   :  { %v11165_v44 = vadd.f32 %v18393_v61, %v23593_v2  ;;  %18587 = vmatprep.mubr.bf16.mxu0 %v19575_v24  ;;  %v23814_v26 = vadd.f32 %v11629_v31, %v11160_v12  ;;  %v11642_v16 = vpop.f32.mrf.mxu1  ;;  %v19581_v31 = vld [vmem:[#allocation3 + $0x1a8] sm:$0xff]  }
 0x5cb   :  { %v10968_v28 = vpop.f32.mrf.mxu0 }
 0x5cc   :  { %v11163_v17 = vadd.f32 %v10968_v28, %v23595_v0  ;;  %v23817_v47 = vadd.f32 %v18473_v33, %v11165_v44  ;;  %v18474_v15 = vpop.f32.mrf.mxu1  ;;  %v10377_v44 = vadd.f32 %v23610_v7, %v23612_v54 }
 0x5cd   :  { %v18394_v62 = vpop.f32.mrf.mxu0 }
 0x5ce   :  { %v11166_v18 = vadd.f32 %v18394_v62, %v23598_v41  ;;  %v23822_v8 = vadd.f32 %v11642_v16, %v11163_v17  ;;  %v11645_v2 = vpop.f32.mrf.mxu1  ;;  %v19586_v62 = vld [vmem:[#allocation3 + $0x1ac] sm:$0xff]  }
 0x5cf   :  { %v10971_v10 = vpop.f32.mrf.mxu0 }
 0x5d0   :  { %v11164_v22 = vadd.f32 %v10971_v10, %v10361_v6  ;;  %v23824_v50 = vadd.f32 %v18474_v15, %v11166_v18  ;;  %v18477_v0 = vpop.f32.mrf.mxu1  ;;  %18668 = vmatmul.mubr.bf16.gmra.mxu1 %v19577_v49  ;;  %v19584_v15 = vld [vmem:[#allocation3 + $0x1b0] sm:$0xff]  }
 0x5d1   :  { %v18397_v11 = vpop.f32.mrf.mxu0  ;;  %18588 = vmatmul.mubr.bf16.gmra.mxu0 %v19580_v14  ;;  %18671 = vmatprep.mubr.bf16.mxu1 %v19581_v31  ;;  %v19587_v18 = vld [vmem:[#allocation3 + $0x54] sm:$0xff]  }
 0x5d2   :  { %v11169_v12 = vadd.f32 %v18397_v11, %v23604_v27  ;;  %18591 = vmatprep.mubr.bf16.mxu0 %v19582_v4  ;;  %v23827_v41 = vadd.f32 %v11645_v2, %v11164_v22  ;;  %v11658_v43 = vpop.f32.mrf.mxu1  ;;  %v19588_v2 = vld [vmem:[#allocation3 + $0x50] sm:$0xff]   ;;  %v10393_v11 = vadd.f32 %v23620_v38, %v23622_v21  ;;  %v19594_v38 = vld [vmem:[#allocation3 + $0x60] sm:$0xff]  }
 0x5d3   :  { %v10984_v48 = vpop.f32.mrf.mxu0 }
 0x5d4   :  { %v11167_v59 = vadd.f32 %v10984_v48, %v23606_v30  ;;  %v23830_v24 = vadd.f32 %v18477_v0, %v11169_v12  ;;  %v18478_v33 = vpop.f32.mrf.mxu1 }
 0x5d5   :  { %v18398_v61 = vpop.f32.mrf.mxu0 }
 0x5d6   :  { %v11170_v16 = vadd.f32 %v18398_v61, %v23608_v42  ;;  %v23835_v28 = vadd.f32 %v11658_v43, %v11167_v59  ;;  %v11661_v27 = vpop.f32.mrf.mxu1  ;;  %v19590_v59 = vld [vmem:[#allocation3 + $0x5c] sm:$0xff]   ;;  %v19600_v61 = vld [vmem:[%s24715_s7 + $0x230] sm:$0xff]  }
 0x5d7   :  { %v10987_v17 = vpop.f32.mrf.mxu0 }
 0x5d8   :  { %v11168_v6 = vadd.f32 %v10987_v17, %v10377_v44  ;;  %v23837_v10 = vadd.f32 %v18478_v33, %v11170_v16  ;;  %v18481_v30 = vpop.f32.mrf.mxu1  ;;  %18672 = vmatmul.mubr.bf16.gmra.mxu1 %v19584_v15  ;;  %v19592_v33 = vld [vmem:[#allocation3 + $0x58] sm:$0xff]   ;;  %v19593_v44 = vld [vmem:[#allocation3 + $0x64] sm:$0xff]  }
 0x5d9   :  { %v18401_v49 = vpop.f32.mrf.mxu0  ;;  %18592 = vmatmul.mubr.bf16.gmra.mxu0 %v19586_v62  ;;  %18771 = vmatprep.mubr.bf16.mxu1 %v19587_v18 }
 0x5da   :  { %v11173_v14 = vadd.f32 %v18401_v49, %v23614_v36  ;;  %18691 = vmatprep.mubr.bf16.mxu0 %v19588_v2  ;;  %v23840_v42 = vadd.f32 %v11661_v27, %v11168_v6  ;;  %v11674_v7 = vpop.f32.mrf.mxu1  ;;  %v19609_v6 = vld [vmem:[%s24715_s7 + $0x228] sm:$0xff]  }
 0x5db   :  { %v11000_v54 = vpop.f32.mrf.mxu0 }
 0x5dc   :  { %v11171_v22 = vadd.f32 %v11000_v54, %v23616_v13  ;;  %v23843_v31 = vadd.f32 %v18481_v30, %v11173_v14  ;;  %v18482_v4 = vpop.f32.mrf.mxu1 }
 0x5dd   :  { %v18402_v0 = vpop.f32.mrf.mxu0 }
 0x5de   :  { %v11174_v12 = vadd.f32 %v18402_v0, %v23618_v60  ;;  %v23848_v43 = vadd.f32 %v11674_v7, %v11171_v22  ;;  %v11677_v36 = vpop.f32.mrf.mxu1  ;;  %v19595_v22 = vld [vmem:[#allocation3 + $0x6c] sm:$0xff]  }
 0x5df   :  { %v11003_v48 = vpop.f32.mrf.mxu0 }
 0x5e0   :  { %v11172_v13 = vadd.f32 %v11003_v48, %v10393_v11  ;;  %v23853_v16 = vadd.f32 %v18482_v4, %v11174_v12  ;;  %v18485_v27 = vpop.f32.mrf.mxu1  ;;  %18772 = vmatmul.mubr.bf16.vlgmr.msra.gmra.mxu1 %v19590_v59  ;;  %v19596_v4 = vld [vmem:[#allocation3 + $0x68] sm:$0xff]   ;;  %v19597_v11 = vld [vmem:[#allocation3 + $0x7c] sm:$0xff]  }
 0x5e1   :  { %v18405_v17 = vpop.f32.mrf.mxu0  ;;  %18692 = vmatmul.mubr.bf16.vlgmr.msra.gmra.mxu0 %v19592_v33  ;;  %18775 = vmatprep.mubr.bf16.mxu1 %v19593_v44  ;;  %v19618_v12 = vld [vmem:[%s24715_s7 + $0x220] sm:$0xff]  }
 0x5e2   :  { %v11177_v60 = vadd.f32 %v18405_v17, %v23624_v25  ;;  %18836 = vmatpush3.bf16.msra.mxu0 %v23731_v1  ;;  %v23857_v21 = vadd.f32 %v11677_v36, %v11172_v13  ;;  %v11690_v15 = vpop.f32.mrf.mxu1  ;;  %18695 = vmatprep.mubr.bf16.mxu0 %v19594_v38  ;;  %v10409_v25 = vadd.f32 %v23630_v29, %v23632_v57  ;;  %v25251_v57 = vld [vmem:[#allocation90_spill] sm:$0xff]  ;;  %v25252_v13 = vld [vmem:[#allocation104_spill] sm:$0xff] }
 0x5e3   :  { %v11016_v62 = vpop.f32.mrf.mxu0  ;;  %18837 = vmatprep.subr.bf16.mxu0 %v19600_v61 }
 0x5e4   :  { %v11175_v18 = vadd.f32 %v11016_v62, %v23626_v46  ;;  %v23863_v2 = vadd.f32 %v18485_v27, %v11177_v60  ;;  %v18486_v30 = vpop.f32.mrf.mxu1  ;;  %v19598_v46 = vld [vmem:[#allocation3 + $0x78] sm:$0xff]   ;;  %v25254_v62 = vld [vmem:[#allocation105_spill] sm:$0xff] }
 0x5e5   :  { %v18406_v49 = vpop.f32.mrf.mxu0  ;;  %v19627_v27 = vld [vmem:[%s24715_s7 + $0x218] sm:$0xff]  }
 0x5e6   :  { %v11178_v1 = vadd.f32 %v18406_v49, %v23628_v23  ;;  %18838 = vmatpush3.bf16.msra.mxu0 %v19600_v61  ;;  %v23868_v14 = vadd.f32 %v11690_v15, %v11175_v18  ;;  %v11693_v7 = vpop.f32.mrf.mxu1  ;;  %v25253_v15 = vld [vmem:[#allocation106_spill] sm:$0xff] }
 0x5e7   :  { %v11019_v54 = vpop.f32.mrf.mxu0  ;;  %18839 = vmatprep.subr.bf16.mxu0 %v19609_v6  ;;  %v10425_v18 = vadd.f32 %v25254_v62, %v25253_v15 }
 0x5e8   :  { %v11176_v0 = vadd.f32 %v11019_v54, %v10409_v25  ;;  %v23873_v36 = vadd.f32 %v18486_v30, %v11178_v1  ;;  %v18489_v29 = vpop.f32.mrf.mxu1  ;;  %18776 = vmatmul.mubr.bf16.gmra.mxu1 %v19595_v22  ;;  %v25255_v30 = vld [vmem:[#allocation86_spill] sm:$0xff]  ;;  %v19601_v54 = vld [vmem:[#allocation3 + $0x80] sm:$0xff]  }
 0x5e9   :  { %v18409_v23 = vpop.f32.mrf.mxu0  ;;  %18696 = vmatmul.mubr.bf16.gmra.mxu0 %v19596_v4  ;;  %18779 = vmatprep.mubr.bf16.mxu1 %v19597_v11  ;;  %v19602_v4 = vld [vmem:[#allocation3 + $0x8c] sm:$0xff]  }
 0x5ea   :  { %v11181_v48 = vadd.f32 %v18409_v23, %v25251_v57  ;;  %18699 = vmatprep.mubr.bf16.mxu0 %v19598_v46  ;;  %v23876_v59 = vadd.f32 %v11693_v7, %v11176_v0  ;;  %v11706_v33 = vpop.f32.mrf.mxu1  ;;  %18840 = vmatpush3.bf16.msra.mxu0 %v19609_v6  ;;  %v19599_v7 = vld [vmem:[#allocation3 + $0x84] sm:$0xff]   ;;  %v19636_v11 = vld [vmem:[%s24715_s7 + $0x210] sm:$0xff]   ;;  %v25256_v57 = vld [vmem:[#allocation107_spill] sm:$0xff] }
 0x5eb   :  { %v11032_v61 = vpop.f32.mrf.mxu0  ;;  %18841 = vmatprep.subr.bf16.mxu0 %v19618_v12  ;;  %v19603_v0 = vld [vmem:[#allocation3 + $0x88] sm:$0xff]  }
 0x5ec   :  { %v11179_v44 = vadd.f32 %v11032_v61, %v25252_v13  ;;  %v23882_v17 = vadd.f32 %v18489_v29, %v11181_v48  ;;  %v18490_v38 = vpop.f32.mrf.mxu1  ;;  %v25257_v13 = vld [vmem:[#allocation109_spill] sm:$0xff] }
 0x5ed   :  { %v18410_v60 = vpop.f32.mrf.mxu0 }
 0x5ee   :  { %v11182_v49 = vadd.f32 %v18410_v60, %v25255_v30  ;;  %v23887_v25 = vadd.f32 %v11706_v33, %v11179_v44  ;;  %v11709_v1 = vpop.f32.mrf.mxu1  ;;  %18842 = vmatpush3.bf16.msra.mxu0 %v19618_v12  ;;  %v25259_v30 = vld [vmem:[#allocation87_spill] sm:$0xff] }
 0x5ef   :  { %v11035_v6 = vpop.f32.mrf.mxu0  ;;  %18843 = vmatprep.subr.bf16.mxu0 %v19627_v27 }
 0x5f0   :  { %v11180_v22 = vadd.f32 %v11035_v6, %v10425_v18  ;;  %v23892_v46 = vadd.f32 %v18490_v38, %v11182_v49  ;;  %v18493_v29 = vpop.f32.mrf.mxu1  ;;  %18780 = vmatmul.mubr.bf16.gmra.mxu1 %v19599_v7  ;;  %v19645_v38 = vld [vmem:[%s24715_s7 + $0x208] sm:$0xff]   ;;  %v25258_v18 = vld [vmem:[#allocation110_spill] sm:$0xff]  ;;  %v25260_v6 = vld [vmem:[#allocation108_spill] sm:$0xff] }
 0x5f1   :  { %v18413_v23 = vpop.f32.mrf.mxu0  ;;  %18700 = vmatmul.mubr.bf16.gmra.mxu0 %v19601_v54  ;;  %18783 = vmatprep.mubr.bf16.mxu1 %v19602_v4  ;;  %v10441_v49 = vadd.f32 %v25259_v30, %v25258_v18  ;;  %v19605_v4 = vld [vmem:[#allocation3 + $0x90] sm:$0xff]   ;;  %v25265_v30 = vld [vmem:[#allocation112_spill] sm:$0xff] }
 0x5f2   :  { %v11185_v48 = vadd.f32 %v18413_v23, %v25256_v57  ;;  %18703 = vmatprep.mubr.bf16.mxu0 %v19603_v0  ;;  %v23895_v33 = vadd.f32 %v11709_v1, %v11180_v22  ;;  %v11722_v12 = vpop.f32.mrf.mxu1  ;;  %18844 = vmatpush3.bf16.msra.mxu0 %v19627_v27  ;;  %v19604_v22 = vld [vmem:[#allocation3 + $0x94] sm:$0xff]   ;;  %v19606_v23 = vld [vmem:[#allocation3 + $0xa4] sm:$0xff]  }
 0x5f3   :  { %v11048_v61 = vpop.f32.mrf.mxu0  ;;  %18845 = vmatprep.subr.bf16.mxu0 %v19636_v11  ;;  %v19607_v57 = vld [vmem:[#allocation3 + $0xa0] sm:$0xff]  }
 0x5f4   :  { %v11183_v44 = vadd.f32 %v11048_v61, %v25257_v13  ;;  %v23901_v60 = vadd.f32 %v18493_v29, %v11185_v48  ;;  %v18494_v15 = vpop.f32.mrf.mxu1  ;;  %v19652_v29 = vld [vmem:[%s24715_s7 + $0x200] sm:$0xff]  }
 0x5f5   :  { %v18414_v62 = vpop.f32.mrf.mxu0 }
 0x5f6   :  { %v11186_v1 = vadd.f32 %v18414_v62, %v25260_v6  ;;  %v23906_v7 = vadd.f32 %v11722_v12, %v11183_v44  ;;  %v11725_v54 = vpop.f32.mrf.mxu1  ;;  %18846 = vmatpush3.bf16.msra.mxu0 %v19636_v11  ;;  %v25263_v12 = vld [vmem:[#allocation111_spill] sm:$0xff] }
 0x5f7   :  { %v11051_v27 = vpop.f32.mrf.mxu0  ;;  %18847 = vmatprep.subr.bf16.mxu0 %v19645_v38 }
 0x5f8   :  { %25261 = vst [vmem:[#allocation123_spill] sm:$0xff] %v23906_v7  ;;  %v11184_v0 = vadd.f32 %v11051_v27, %v10441_v49  ;;  %v23911_v48 = vadd.f32 %v18494_v15, %v11186_v1  ;;  %v18497_v61 = vpop.f32.mrf.mxu1  ;;  %18784 = vmatmul.mubr.bf16.gmra.mxu1 %v19604_v22  ;;  %v25267_v27 = vld [vmem:[#allocation113_spill] sm:$0xff] }
 0x5f9   :  { %v18417_v13 = vpop.f32.mrf.mxu0  ;;  %18704 = vmatmul.mubr.bf16.gmra.mxu0 %v19605_v4  ;;  %18787 = vmatprep.mubr.bf16.mxu1 %v19606_v23  ;;  %v19608_v23 = vld [vmem:[#allocation3 + $0xac] sm:$0xff]  }
 0x5fa   :  { %25262 = vst [vmem:[#allocation126_spill] sm:$0xff] %v23911_v48  ;;  %v11189_v44 = vadd.f32 %v18417_v13, %v25263_v12  ;;  %18707 = vmatprep.mubr.bf16.mxu0 %v19607_v57  ;;  %v23914_v62 = vadd.f32 %v11725_v54, %v11184_v0  ;;  %v11738_v11 = vpop.f32.mrf.mxu1  ;;  %18848 = vmatpush3.bf16.msra.mxu0 %v19645_v38  ;;  %v19610_v57 = vld [vmem:[#allocation3 + $0xa8] sm:$0xff]   ;;  %v25269_v54 = vld [vmem:[#allocation115_spill] sm:$0xff]  ;;  %v19612_v38 = vld [vmem:[#allocation3 + $0xb0] sm:$0xff]  }
 0x5fb   :  { %v11064_v18 = vpop.f32.mrf.mxu0  ;;  %18849 = vmatprep.subr.bf16.mxu0 %v19652_v29  ;;  %v19611_v12 = vld [vmem:[#allocation3 + $0xb4] sm:$0xff]  }
 0x5fc   :  { %25264 = vst [vmem:[#allocation125_spill] sm:$0xff] %v23914_v62  ;;  %v11187_v49 = vadd.f32 %v11064_v18, %v25265_v30  ;;  %v23917_v6 = vadd.f32 %v18497_v61, %v11189_v44  ;;  %v18498_v15 = vpop.f32.mrf.mxu1  ;;  %v25271_v44 = vld [vmem:[#allocation114_spill] sm:$0xff] }
 0x5fd   :  { %v18418_v1 = vpop.f32.mrf.mxu0 }
 0x5fe   :  { %25266 = vst [vmem:[#allocation128_spill] sm:$0xff] %v23917_v6  ;;  %v11190_v22 = vadd.f32 %v18418_v1, %v25267_v27  ;;  %v23920_v48 = vadd.f32 %v11738_v11, %v11187_v49  ;;  %v11741_v4 = vpop.f32.mrf.mxu1  ;;  %18850 = vmatpush3.bf16.msra.mxu0 %v19652_v29  ;;  %v25273_v27 = vld [vmem:[#allocation117_spill] sm:$0xff] }
 0x5ff   :  { %v11067_v13 = vpop.f32.mrf.mxu0 }
 0x600   :  { %25268 = vst [vmem:[#allocation127_spill] sm:$0xff] %v23920_v48  ;;  %v11188_v0 = vadd.f32 %v11067_v13, %v25269_v54  ;;  %v23923_v62 = vadd.f32 %v18498_v15, %v11190_v22  ;;  %v18501_v18 = vpop.f32.mrf.mxu1  ;;  %18788 = vmatmul.mubr.bf16.gmra.mxu1 %v19608_v23  ;;  %v25275_v15 = vld [vmem:[#allocation116_spill] sm:$0xff]  ;;  %v19616_v23 = vld [vmem:[#allocation3 + $0xc8] sm:$0xff]  }
 0x601   :  { %v18421_v61 = vpop.f32.mrf.mxu0  ;;  %18708 = vmatmul.mubr.bf16.gmra.mxu0 %v19610_v57  ;;  %18791 = vmatprep.mubr.bf16.mxu1 %v19611_v12  ;;  %v19613_v12 = vld [vmem:[#allocation3 + $0xbc] sm:$0xff]  }
 0x602   :  { %25270 = vst [vmem:[#allocation129_spill] sm:$0xff] %v23923_v62  ;;  %v11193_v30 = vadd.f32 %v18421_v61, %v25271_v44  ;;  %18711 = vmatprep.mubr.bf16.mxu0 %v19612_v38  ;;  %v23926_v11 = vadd.f32 %v11741_v4, %v11188_v0  ;;  %v11754_v49 = vpop.f32.mrf.mxu1  ;;  %v19615_v62 = vld [vmem:[#allocation3 + $0xcc] sm:$0xff]   ;;  %v19614_v38 = vld [vmem:[#allocation3 + $0xb8] sm:$0xff]  }
 0x603   :  { %v11080_v1 = vpop.f32.mrf.mxu0  ;;  %v25277_v4 = vld [vmem:[#allocation118_spill] sm:$0xff] }
 0x604   :  { %25272 = vst [vmem:[#allocation131_spill] sm:$0xff] %v23926_v11  ;;  %v11191_v29 = vadd.f32 %v11080_v1, %v25273_v27  ;;  %v23929_v48 = vadd.f32 %v18501_v18, %v11193_v30  ;;  %v18502_v13 = vpop.f32.mrf.mxu1  ;;  %v25279_v30 = vld [vmem:[#allocation119_spill] sm:$0xff] }
 0x605   :  { %v18422_v54 = vpop.f32.mrf.mxu0 }
 0x606   :  { %25274 = vst [vmem:[#allocation130_spill] sm:$0xff] %v23929_v48  ;;  %v11194_v22 = vadd.f32 %v18422_v54, %v25275_v15  ;;  %v23932_v6 = vadd.f32 %v11754_v49, %v11191_v29  ;;  %v11757_v57 = vpop.f32.mrf.mxu1  ;;  %v25280_v54 = vld [vmem:[#allocation91_spill] sm:$0xff] }
 0x607   :  { %v11083_v61 = vpop.f32.mrf.mxu0 }
 0x608   :  { %25276 = vst [vmem:[#allocation133_spill] sm:$0xff] %v23932_v6  ;;  %v11192_v0 = vadd.f32 %v11083_v61, %v25277_v4  ;;  %v23935_v44 = vadd.f32 %v18502_v13, %v11194_v22  ;;  %v18505_v11 = vpop.f32.mrf.mxu1  ;;  %18792 = vmatmul.mubr.bf16.gmra.mxu1 %v19613_v12  ;;  %v19617_v13 = vld [vmem:[#allocation3 + $0xd4] sm:$0xff]  }
 0x609   :  { %v18425_v18 = vpop.f32.mrf.mxu0  ;;  %18712 = vmatmul.mubr.bf16.gmra.mxu0 %v19614_v38  ;;  %18795 = vmatprep.mubr.bf16.mxu1 %v19615_v62  ;;  %v19619_v22 = vld [vmem:[#allocation3 + $0xd0] sm:$0xff]   ;;  %v19621_v38 = vld [vmem:[#allocation3 + $0xd8] sm:$0xff]  }
 0x60a   :  { %25278 = vst [vmem:[#allocation132_spill] sm:$0xff] %v23935_v44  ;;  %v11197_v1 = vadd.f32 %v18425_v18, %v25279_v30  ;;  %18715 = vmatprep.mubr.bf16.mxu0 %v19616_v23  ;;  %v23938_v27 = vadd.f32 %v11757_v57, %v11192_v0  ;;  %v11770_v49 = vpop.f32.mrf.mxu1  ;;  %v25282_v4 = vld [vmem:[#allocation166_spill] sm:$0xff]  ;;  %v19620_v44 = vld [vmem:[#allocation3 + $0xdc] sm:$0xff]   ;;  %v25284_v57 = vld [vmem:[#allocation165_spill] sm:$0xff] }
 0x60b   :  { %v11096_v29 = vpop.f32.mrf.mxu0 }
 0x60c   :  { %v11195_v15 = vadd.f32 %v11096_v29, %v25280_v54  ;;  %v23941_v6 = vadd.f32 %v18505_v11, %v11197_v1  ;;  %v18506_v48 = vpop.f32.mrf.mxu1  ;;  %v25286_v1 = vld [vmem:[#allocation121_spill] sm:$0xff] }
 0x60d   :  { %v18426_v61 = vpop.f32.mrf.mxu0 }
 0x60e   :  { %25281 = vst [vmem:[#allocation135_spill] sm:$0xff] %v23941_v6  ;;  %v11198_v12 = vadd.f32 %v18426_v61, %v25282_v4  ;;  %v23944_v7 = vadd.f32 %v11770_v49, %v11195_v15  ;;  %v11773_v62 = vpop.f32.mrf.mxu1  ;;  %v25288_v49 = vld [vmem:[#allocation120_spill] sm:$0xff] }
 0x60f   :  { %v11099_v23 = vpop.f32.mrf.mxu0 }
 0x610   :  { %25283 = vst [vmem:[#allocation134_spill] sm:$0xff] %v23944_v7  ;;  %v11196_v0 = vadd.f32 %v11099_v23, %v25284_v57  ;;  %v23947_v18 = vadd.f32 %v18506_v48, %v11198_v12  ;;  %v18509_v30 = vpop.f32.mrf.mxu1  ;;  %18796 = vmatmul.mubr.bf16.gmra.mxu1 %v19617_v13  ;;  %v19622_v48 = vld [vmem:[#allocation3 + $0xe4] sm:$0xff]   ;;  %v25290_v57 = vld [vmem:[#allocation122_spill] sm:$0xff] }
 0x611   :  { %v18429_v11 = vpop.f32.mrf.mxu0  ;;  %18716 = vmatmul.mubr.bf16.gmra.mxu0 %v19619_v22  ;;  %18799 = vmatprep.mubr.bf16.mxu1 %v19620_v44  ;;  %v19623_v12 = vld [vmem:[#allocation3 + $0xe0] sm:$0xff]  }
 0x612   :  { %25285 = vst [vmem:[#allocation136_spill] sm:$0xff] %v23947_v18  ;;  %v11201_v29 = vadd.f32 %v18429_v11, %v25286_v1  ;;  %18719 = vmatprep.mubr.bf16.mxu0 %v19621_v38  ;;  %v23950_v54 = vadd.f32 %v11773_v62, %v11196_v0  ;;  %v11786_v61 = vpop.f32.mrf.mxu1  ;;  %v25292_v44 = vld [vmem:[#allocation168_spill] sm:$0xff] }
 0x613   :  { %v11112_v4 = vpop.f32.mrf.mxu0  ;;  %v19624_v62 = vld [vmem:[#allocation3 + $0x144] sm:$0xff]  }
 0x614   :  { %25287 = vst [vmem:[#allocation138_spill] sm:$0xff] %v23950_v54  ;;  %v11199_v15 = vadd.f32 %v11112_v4, %v25288_v49  ;;  %v23953_v7 = vadd.f32 %v18509_v30, %v11201_v29  ;;  %v18510_v6 = vpop.f32.mrf.mxu1  ;;  %v19625_v0 = vld [vmem:[#allocation3 + $0x140] sm:$0xff]   ;;  %v25294_v29 = vld [vmem:[#allocation167_spill] sm:$0xff] }
 0x615   :  { %v18430_v23 = vpop.f32.mrf.mxu0 }
 0x616   :  { %25289 = vst [vmem:[#allocation137_spill] sm:$0xff] %v23953_v7  ;;  %v11202_v13 = vadd.f32 %v18430_v23, %v25290_v57  ;;  %v23956_v18 = vadd.f32 %v11786_v61, %v11199_v15  ;;  %v11789_v22 = vpop.f32.mrf.mxu1  ;;  %v25296_v23 = vld [vmem:[#allocation170_spill] sm:$0xff] }
 0x617   :  { %v11115_v11 = vpop.f32.mrf.mxu0  ;;  %v19626_v7 = vld [vmem:[#allocation3 + $0x14c] sm:$0xff]  }
 0x618   :  { %25291 = vst [vmem:[#allocation140_spill] sm:$0xff] %v23956_v18  ;;  %v11200_v38 = vadd.f32 %v11115_v11, %v25292_v44  ;;  %v23959_v1 = vadd.f32 %v18510_v6, %v11202_v13  ;;  %v18513_v54 = vpop.f32.mrf.mxu1  ;;  %18800 = vmatmul.mubr.bf16.gmra.mxu1 %v19622_v48  ;;  %v25297_v6 = vld [vmem:[#allocation169_spill] sm:$0xff] }
 0x619   :  { %v18433_v30 = vpop.f32.mrf.mxu0  ;;  %18720 = vmatmul.mubr.bf16.gmra.mxu0 %v19623_v12  ;;  %18803 = vmatprep.mubr.bf16.mxu1 %v19624_v62  ;;  %v25298_v62 = vld [vmem:[#allocation124_spill] sm:$0xff] }
 0x61a   :  { %25293 = vst [vmem:[#allocation139_spill] sm:$0xff] %v23959_v1  ;;  %v11205_v4 = vadd.f32 %v18433_v30, %v25294_v29  ;;  %18723 = vmatprep.mubr.bf16.mxu0 %v19625_v0  ;;  %v23962_v49 = vadd.f32 %v11789_v22, %v11200_v38  ;;  %v11802_v61 = vpop.f32.mrf.mxu1  ;;  %v19628_v30 = vld [vmem:[#allocation3 + $0x148] sm:$0xff]   ;;  %v19629_v22 = vld [vmem:[#allocation3 + $0x154] sm:$0xff]  }
 0x61b   :  { %v11128_v15 = vpop.f32.mrf.mxu0  ;;  %v19630_v38 = vld [vmem:[#allocation3 + $0x150] sm:$0xff]  }
 0x61c   :  { %25295 = vst [vmem:[#allocation142_spill] sm:$0xff] %v23962_v49  ;;  %v11203_v57 = vadd.f32 %v11128_v15, %v25296_v23  ;;  %v23965_v18 = vadd.f32 %v18513_v54, %v11205_v4  ;;  %v18514_v11 = vpop.f32.mrf.mxu1 }
 0x61d   :  { %v18434_v44 = vpop.f32.mrf.mxu0 }
 0x61e   :  { %v11206_v13 = vadd.f32 %v18434_v44, %v25297_v6  ;;  %v23968_v1 = vadd.f32 %v11802_v61, %v11203_v57  ;;  %v11805_v48 = vpop.f32.mrf.mxu1 }
 0x61f   :  { %v11131_v12 = vpop.f32.mrf.mxu0 }
 0x620   :  { %v11204_v0 = vadd.f32 %v11131_v12, %v25298_v62  ;;  %v23971_v29 = vadd.f32 %v18514_v11, %v11206_v13  ;;  %v18613_v49 = vpop.f32.mrf.mxu1  ;;  %18804 = vmatmul.mubr.bf16.gmra.mxu1 %v19626_v7  ;;  %v19631_v62 = vld [vmem:[#allocation3 + $0x15c] sm:$0xff]  }
 0x621   :  { %v18533_v54 = vpop.f32.mrf.mxu0  ;;  %18724 = vmatmul.mubr.bf16.gmra.mxu0 %v19628_v30  ;;  %18807 = vmatprep.mubr.bf16.mxu1 %v19629_v22 }
 0x622   :  { %v12493_v4 = vadd.f32 %v18533_v54, %v23752_v35  ;;  %18727 = vmatprep.mubr.bf16.mxu0 %v19630_v38  ;;  %v23974_v61 = vadd.f32 %v11805_v48, %v11204_v0  ;;  %v12911_v15 = vpop.f32.mrf.mxu1  ;;  %v19632_v35 = vld [vmem:[#allocation3 + $0x158] sm:$0xff]   ;;  %v19633_v48 = vld [vmem:[#allocation3 + $0x16c] sm:$0xff]  }
 0x623   :  { %v12236_v23 = vpop.f32.mrf.mxu0  ;;  %v19634_v0 = vld [vmem:[#allocation3 + $0x168] sm:$0xff]  }
 0x624   :  { %v12491_v57 = vadd.f32 %v12236_v23, %v23757_v56  ;;  %v23977_v44 = vadd.f32 %v18613_v49, %v12493_v4  ;;  %v18614_v6 = vpop.f32.mrf.mxu1 }
 0x625   :  { %v18534_v12 = vpop.f32.mrf.mxu0 }
 0x626   :  { %v12494_v11 = vadd.f32 %v18534_v12, %v23759_v5  ;;  %v23980_v13 = vadd.f32 %v12911_v15, %v12491_v57  ;;  %v12914_v7 = vpop.f32.mrf.mxu1 }
 0x627   :  { %v12239_v30 = vpop.f32.mrf.mxu0 }
 0x628   :  { %v12492_v22 = vadd.f32 %v12239_v30, %v23762_v45  ;;  %v23983_v38 = vadd.f32 %v18614_v6, %v12494_v11  ;;  %v18617_v54 = vpop.f32.mrf.mxu1  ;;  %18808 = vmatmul.mubr.bf16.gmra.mxu1 %v19631_v62 }
 0x629   :  { %v18537_v56 = vpop.f32.mrf.mxu0  ;;  %18728 = vmatmul.mubr.bf16.gmra.mxu0 %v19632_v35  ;;  %18811 = vmatprep.mubr.bf16.mxu1 %v19633_v48  ;;  %v19635_v35 = vld [vmem:[#allocation3 + $0x174] sm:$0xff]  }
 0x62a   :  { %v12497_v49 = vadd.f32 %v18537_v56, %v23765_v63  ;;  %18731 = vmatprep.mubr.bf16.mxu0 %v19634_v0  ;;  %v23986_v5 = vadd.f32 %v12914_v7, %v12492_v22  ;;  %v12927_v4 = vpop.f32.mrf.mxu1  ;;  %v19637_v63 = vld [vmem:[#allocation3 + $0x170] sm:$0xff]   ;;  %v19638_v7 = vld [vmem:[#allocation3 + $0x17c] sm:$0xff]  }
 0x62b   :  { %v12252_v15 = vpop.f32.mrf.mxu0  ;;  %v19639_v22 = vld [vmem:[#allocation3 + $0x178] sm:$0xff]  }
 0x62c   :  { %v12495_v23 = vadd.f32 %v12252_v15, %v23770_v51  ;;  %v23989_v57 = vadd.f32 %v18617_v54, %v12497_v49  ;;  %v18618_v45 = vpop.f32.mrf.mxu1 }
 0x62d   :  { %v18538_v12 = vpop.f32.mrf.mxu0 }
 0x62e   :  { %v12498_v6 = vadd.f32 %v18538_v12, %v23772_v34  ;;  %v23992_v11 = vadd.f32 %v12927_v4, %v12495_v23  ;;  %v12930_v30 = vpop.f32.mrf.mxu1 }
 0x62f   :  { %v12255_v62 = vpop.f32.mrf.mxu0 }
 0x630   :  { %v12496_v48 = vadd.f32 %v12255_v62, %v23775_v40  ;;  %v23995_v0 = vadd.f32 %v18618_v45, %v12498_v6  ;;  %v18621_v56 = vpop.f32.mrf.mxu1  ;;  %18812 = vmatmul.mubr.bf16.gmra.mxu1 %v19635_v35 }
 0x631   :  { %v18541_v51 = vpop.f32.mrf.mxu0  ;;  %18732 = vmatmul.mubr.bf16.gmra.mxu0 %v19637_v63  ;;  %18815 = vmatprep.mubr.bf16.mxu1 %v19638_v7  ;;  %v19640_v63 = vld [vmem:[#allocation3 + $0x184] sm:$0xff]  }
 0x632   :  { %v12501_v54 = vadd.f32 %v18541_v51, %v23778_v52  ;;  %18735 = vmatprep.mubr.bf16.mxu0 %v19639_v22  ;;  %v23998_v34 = vadd.f32 %v12930_v30, %v12496_v48  ;;  %v12943_v49 = vpop.f32.mrf.mxu1  ;;  %v19641_v52 = vld [vmem:[#allocation3 + $0x180] sm:$0xff]   ;;  %v19642_v30 = vld [vmem:[#allocation3 + $0x194] sm:$0xff]  }
 0x633   :  { %v12268_v4 = vpop.f32.mrf.mxu0  ;;  %v19643_v48 = vld [vmem:[#allocation3 + $0x190] sm:$0xff]  }
 0x634   :  { %v12499_v15 = vadd.f32 %v12268_v4, %v23783_v58  ;;  %v24001_v23 = vadd.f32 %v18621_v56, %v12501_v54  ;;  %v18622_v40 = vpop.f32.mrf.mxu1 }
 0x635   :  { %v18542_v12 = vpop.f32.mrf.mxu0 }
 0x636   :  { %v12502_v45 = vadd.f32 %v18542_v12, %v23785_v19  ;;  %v24004_v6 = vadd.f32 %v12943_v49, %v12499_v15  ;;  %v12946_v62 = vpop.f32.mrf.mxu1 }
 0x637   :  { %v12271_v35 = vpop.f32.mrf.mxu0 }
 0x638   :  { %v12500_v7 = vadd.f32 %v12271_v35, %v23788_v9  ;;  %v24007_v22 = vadd.f32 %v18622_v40, %v12502_v45  ;;  %v18625_v51 = vpop.f32.mrf.mxu1  ;;  %18816 = vmatmul.mubr.bf16.gmra.mxu1 %v19640_v63 }
 0x639   :  { %v18545_v58 = vpop.f32.mrf.mxu0  ;;  %18736 = vmatmul.mubr.bf16.gmra.mxu0 %v19641_v52  ;;  %18819 = vmatprep.mubr.bf16.mxu1 %v19642_v30  ;;  %v19644_v52 = vld [vmem:[#allocation3 + $0x19c] sm:$0xff]  }
 0x63a   :  { %v12505_v56 = vadd.f32 %v18545_v58, %v23791_v37  ;;  %18739 = vmatprep.mubr.bf16.mxu0 %v19643_v48  ;;  %v24010_v19 = vadd.f32 %v12946_v62, %v12500_v7  ;;  %v12959_v54 = vpop.f32.mrf.mxu1  ;;  %v19646_v37 = vld [vmem:[#allocation3 + $0x198] sm:$0xff]   ;;  %v19647_v62 = vld [vmem:[#allocation3 + $0x1a4] sm:$0xff]  }
 0x63b   :  { %v12284_v49 = vpop.f32.mrf.mxu0  ;;  %v19648_v7 = vld [vmem:[#allocation3 + $0x1a0] sm:$0xff]  }
 0x63c   :  { %v12503_v4 = vadd.f32 %v12284_v49, %v23796_v53  ;;  %v24013_v15 = vadd.f32 %v18625_v51, %v12505_v56  ;;  %v18626_v9 = vpop.f32.mrf.mxu1 }
 0x63d   :  { %v18546_v12 = vpop.f32.mrf.mxu0 }
 0x63e   :  { %v12506_v40 = vadd.f32 %v18546_v12, %v23798_v39  ;;  %v24016_v45 = vadd.f32 %v12959_v54, %v12503_v4  ;;  %v12962_v35 = vpop.f32.mrf.mxu1 }
 0x63f   :  { %v12287_v63 = vpop.f32.mrf.mxu0 }
 0x640   :  { %v12504_v30 = vadd.f32 %v12287_v63, %v23801_v20  ;;  %v24019_v48 = vadd.f32 %v18626_v9, %v12506_v40  ;;  %v18629_v58 = vpop.f32.mrf.mxu1  ;;  %18820 = vmatmul.mubr.bf16.gmra.mxu1 %v19644_v52  ;;  %v19651_v40 = vld [vmem:[#allocation3 + $0x1b8] sm:$0xff]  }
 0x641   :  { %v18549_v53 = vpop.f32.mrf.mxu0  ;;  %18740 = vmatmul.mubr.bf16.gmra.mxu0 %v19646_v37  ;;  %18823 = vmatprep.mubr.bf16.mxu1 %v19647_v62  ;;  %v19654_v63 = vld [vmem:[#allocation3 + $0x1bc] sm:$0xff]   ;;  %v19649_v62 = vld [vmem:[#allocation3 + $0x1ac] sm:$0xff]  }
 0x642   :  { %v12509_v51 = vadd.f32 %v18549_v53, %v23804_v3  ;;  %18743 = vmatprep.mubr.bf16.mxu0 %v19648_v7  ;;  %v24022_v39 = vadd.f32 %v12962_v35, %v12504_v30  ;;  %v12975_v56 = vpop.f32.mrf.mxu1  ;;  %v19650_v7 = vld [vmem:[#allocation3 + $0x1a8] sm:$0xff]  }
 0x643   :  { %v12300_v54 = vpop.f32.mrf.mxu0 }
 0x644   :  { %v12507_v49 = vadd.f32 %v12300_v54, %v23809_v55  ;;  %v24025_v4 = vadd.f32 %v18629_v58, %v12509_v51  ;;  %v18630_v20 = vpop.f32.mrf.mxu1 }
 0x645   :  { %v18550_v12 = vpop.f32.mrf.mxu0 }
 0x646   :  { %v12510_v9 = vadd.f32 %v18550_v12, %v23811_v32  ;;  %v24028_v52 = vadd.f32 %v12975_v56, %v12507_v49  ;;  %v12978_v37 = vpop.f32.mrf.mxu1 }
 0x647   :  { %v12303_v3 = vpop.f32.mrf.mxu0 }
 0x648   :  { %v12508_v35 = vadd.f32 %v12303_v3, %v23814_v26  ;;  %v24031_v30 = vadd.f32 %v18630_v20, %v12510_v9  ;;  %v18633_v53 = vpop.f32.mrf.mxu1  ;;  %18824 = vmatmul.mubr.bf16.gmra.mxu1 %v19649_v62  ;;  %v19653_v20 = vld [vmem:[#allocation3 + $0x1c0] sm:$0xff]   ;;  %v19656_v62 = vld [vmem:[#allocation3 + $0x1c8] sm:$0xff]  }
 0x649   :  { %v18553_v55 = vpop.f32.mrf.mxu0  ;;  %18744 = vmatmul.mubr.bf16.gmra.mxu0 %v19650_v7  ;;  %18827 = vmatprep.mubr.bf16.mxu1 %v19654_v63  ;;  %v19655_v9 = vld [vmem:[#allocation3 + $0x1c4] sm:$0xff]   ;;  %v19658_v7 = vld [vmem:[#allocation3 + $0x1cc] sm:$0xff]  }
 0x64a   :  { %25299 = vst [vmem:[#allocation141_spill] sm:$0xff] %v24031_v30  ;;  %v12513_v58 = vadd.f32 %v18553_v55, %v23817_v47  ;;  %18747 = vmatprep.mubr.bf16.mxu0 %v19651_v40  ;;  %v24034_v32 = vadd.f32 %v12978_v37, %v12508_v35  ;;  %v12991_v51 = vpop.f32.mrf.mxu1 }
 0x64b   :  { %v12316_v56 = vpop.f32.mrf.mxu0 }
 0x64c   :  { %v12511_v54 = vadd.f32 %v12316_v56, %v23822_v8  ;;  %v24037_v49 = vadd.f32 %v18633_v53, %v12513_v58  ;;  %v18634_v12 = vpop.f32.mrf.mxu1 }
 0x64d   :  { %v18554_v26 = vpop.f32.mrf.mxu0 }
 0x64e   :  { %v12514_v3 = vadd.f32 %v18554_v26, %v23824_v50  ;;  %v24040_v30 = vadd.f32 %v12991_v51, %v12511_v54  ;;  %v12994_v47 = vpop.f32.mrf.mxu1  ;;  %v19660_v26 = vld [vmem:[#allocation3 + $0x1d4] sm:$0xff]  }
 0x64f   :  { %v12319_v40 = vpop.f32.mrf.mxu0 }
 0x650   :  { %v12512_v63 = vadd.f32 %v12319_v40, %v23827_v41  ;;  %v24043_v37 = vadd.f32 %v18634_v12, %v12514_v3  ;;  %v18637_v35 = vpop.f32.mrf.mxu1  ;;  %18828 = vmatmul.mubr.bf16.gmra.mxu1 %v19655_v9  ;;  %v19657_v12 = vld [vmem:[#allocation3 + $0x1d0] sm:$0xff]  }
 0x651   :  { %v18557_v8 = vpop.f32.mrf.mxu0  ;;  %18748 = vmatmul.mubr.bf16.gmra.mxu0 %v19653_v20  ;;  %18831 = vmatprep.mubr.bf16.mxu1 %v19658_v7  ;;  %v19659_v7 = vld [vmem:[#allocation3 + $0x58] sm:$0xff]  }
 0x652   :  { %v12517_v53 = vadd.f32 %v18557_v8, %v23830_v24  ;;  %18751 = vmatprep.mubr.bf16.mxu0 %v19656_v62  ;;  %v24046_v55 = vadd.f32 %v12994_v47, %v12512_v63  ;;  %v13007_v50 = vpop.f32.mrf.mxu1 }
 0x653   :  { %v12332_v58 = vpop.f32.mrf.mxu0 }
 0x654   :  { %v12515_v51 = vadd.f32 %v12332_v58, %v23835_v28  ;;  %v24049_v56 = vadd.f32 %v18637_v35, %v12517_v53  ;;  %v18638_v54 = vpop.f32.mrf.mxu1 }
 0x655   :  { %v18558_v41 = vpop.f32.mrf.mxu0 }
 0x656   :  { %v12518_v3 = vadd.f32 %v18558_v41, %v23837_v10  ;;  %v24052_v20 = vadd.f32 %v13007_v50, %v12515_v51  ;;  %v13010_v9 = vpop.f32.mrf.mxu1 }
 0x657   :  { %v12335_v24 = vpop.f32.mrf.mxu0 }
 0x658   :  { %v12516_v62 = vadd.f32 %v12335_v24, %v23840_v42  ;;  %v24055_v47 = vadd.f32 %v18638_v54, %v12518_v3  ;;  %v18641_v40 = vpop.f32.mrf.mxu1  ;;  %18832 = vmatmul.mubr.bf16.gmra.mxu1 %v19660_v26  ;;  %v19661_v26 = vld [vmem:[#allocation3 + $0x60] sm:$0xff]   ;;  %v19662_v3 = vld [vmem:[#allocation3 + $0x68] sm:$0xff]  }
 0x659   :  { %v18561_v63 = vpop.f32.mrf.mxu0  ;;  %18752 = vmatmul.mubr.bf16.gmra.mxu0 %v19657_v12 }
 0x65a   :  { %v12521_v28 = vadd.f32 %v18561_v63, %v23843_v31  ;;  %18851 = vmatprep.mubr.bf16.mxu0 %v19659_v7  ;;  %v24058_v35 = vadd.f32 %v13010_v9, %v12516_v62  ;;  %v13023_v8 = vpop.f32.mrf.mxu1 }
 0x65b   :  { %v12348_v10 = vpop.f32.mrf.mxu0 }
 0x65c   :  { %v12519_v53 = vadd.f32 %v12348_v10, %v23848_v43  ;;  %v24061_v50 = vadd.f32 %v18641_v40, %v12521_v28  ;;  %v18642_v58 = vpop.f32.mrf.mxu1 }
 0x65d   :  { %v18562_v42 = vpop.f32.mrf.mxu0 }
 0x65e   :  { %v12522_v51 = vadd.f32 %v18562_v42, %v23853_v16  ;;  %v24064_v54 = vadd.f32 %v13023_v8, %v12519_v53  ;;  %v13026_v41 = vpop.f32.mrf.mxu1 }
 0x65f   :  { %v12351_v12 = vpop.f32.mrf.mxu0 }
 0x660   :  { %v12520_v31 = vadd.f32 %v12351_v12, %v23857_v21  ;;  %v24067_v9 = vadd.f32 %v18642_v58, %v12522_v51  ;;  %v18645_v24 = vpop.f32.mrf.mxu1  ;;  %v19663_v51 = vld [vmem:[#allocation3 + $0x70] sm:$0xff]   ;;  %v19664_v12 = vld [vmem:[#allocation3 + $0x80] sm:$0xff]  }
 0x661   :  { %v18565_v62 = vpop.f32.mrf.mxu0  ;;  %18852 = vmatmul.mubr.bf16.vlgmr.msra.gmra.mxu0 %v19661_v26 }
 0x662   :  { %v12525_v43 = vadd.f32 %v18565_v62, %v23863_v2  ;;  %18855 = vmatprep.mubr.bf16.mxu0 %v19662_v3  ;;  %v24070_v7 = vadd.f32 %v13026_v41, %v12520_v31  ;;  %v13039_v40 = vpop.f32.mrf.mxu1 }
 0x663   :  { %v12364_v16 = vpop.f32.mrf.mxu0 }
 0x664   :  { %v12523_v63 = vadd.f32 %v12364_v16, %v23868_v14  ;;  %v24073_v28 = vadd.f32 %v18645_v24, %v12525_v43  ;;  %v18646_v8 = vpop.f32.mrf.mxu1 }
 0x665   :  { %v18566_v10 = vpop.f32.mrf.mxu0 }
 0x666   :  { %v12526_v21 = vadd.f32 %v18566_v10, %v23873_v36  ;;  %v24076_v53 = vadd.f32 %v13039_v40, %v12523_v63  ;;  %v13042_v58 = vpop.f32.mrf.mxu1 }
 0x667   :  { %v12367_v42 = vpop.f32.mrf.mxu0 }
 0x668   :  { %v12524_v2 = vadd.f32 %v12367_v42, %v23876_v59  ;;  %v24079_v41 = vadd.f32 %v18646_v8, %v12526_v21  ;;  %v18649_v26 = vpop.f32.mrf.mxu1  ;;  %v19665_v21 = vld [vmem:[#allocation3 + $0x88] sm:$0xff]   ;;  %v19666_v42 = vld [vmem:[#allocation3 + $0x90] sm:$0xff]  }
 0x669   :  { %v18569_v31 = vpop.f32.mrf.mxu0  ;;  %18856 = vmatmul.mubr.bf16.gmra.mxu0 %v19663_v51 }
 0x66a   :  { %v12529_v14 = vadd.f32 %v18569_v31, %v23882_v17  ;;  %18859 = vmatprep.mubr.bf16.mxu0 %v19664_v12  ;;  %v24082_v3 = vadd.f32 %v13042_v58, %v12524_v2  ;;  %v13055_v24 = vpop.f32.mrf.mxu1  ;;  %v25302_v31 = vld [vmem:[#allocation123_spill] sm:$0xff] }
 0x66b   :  { %v12380_v36 = vpop.f32.mrf.mxu0 }
 0x66c   :  { %v12527_v62 = vadd.f32 %v12380_v36, %v23887_v25  ;;  %v24085_v43 = vadd.f32 %v18649_v26, %v12529_v14  ;;  %v18650_v40 = vpop.f32.mrf.mxu1 }
 0x66d   :  { %v18570_v16 = vpop.f32.mrf.mxu0 }
 0x66e   :  { %v12530_v59 = vadd.f32 %v18570_v16, %v23892_v46  ;;  %v24088_v63 = vadd.f32 %v13055_v24, %v12527_v62  ;;  %v13058_v8 = vpop.f32.mrf.mxu1 }
 0x66f   :  { %v12383_v10 = vpop.f32.mrf.mxu0 }
 0x670   :  { %v12528_v17 = vadd.f32 %v12383_v10, %v23895_v33  ;;  %v24091_v58 = vadd.f32 %v18650_v40, %v12530_v59  ;;  %v18653_v51 = vpop.f32.mrf.mxu1  ;;  %v25304_v33 = vld [vmem:[#allocation126_spill] sm:$0xff] }
 0x671   :  { %v18573_v2 = vpop.f32.mrf.mxu0  ;;  %18860 = vmatmul.mubr.bf16.gmra.mxu0 %v19665_v21  ;;  %v19667_v21 = vld [vmem:[#allocation3 + $0x98] sm:$0xff]  }
 0x672   :  { %25300 = vst [vmem:[#allocation9_spill] sm:$0xff] %v24091_v58  ;;  %v12533_v25 = vadd.f32 %v18573_v2, %v23901_v60  ;;  %18863 = vmatprep.mubr.bf16.mxu0 %v19666_v42  ;;  %v24094_v12 = vadd.f32 %v13058_v8, %v12528_v17  ;;  %v13071_v26 = vpop.f32.mrf.mxu1  ;;  %v25306_v58 = vld [vmem:[#allocation125_spill] sm:$0xff] }
 0x673   :  { %v12396_v46 = vpop.f32.mrf.mxu0  ;;  %v19668_v42 = vld [vmem:[#allocation3 + $0xa8] sm:$0xff]  }
 0x674   :  { %25301 = vst [vmem:[#allocation10_spill] sm:$0xff] %v24094_v12  ;;  %v12531_v14 = vadd.f32 %v12396_v46, %v25302_v31  ;;  %v24097_v24 = vadd.f32 %v18653_v51, %v12533_v25  ;;  %v18654_v36 = vpop.f32.mrf.mxu1  ;;  %v25308_v46 = vld [vmem:[#allocation128_spill] sm:$0xff]  ;;  %v25314_v12 = vld [vmem:[#allocation131_spill] sm:$0xff] }
 0x675   :  { %v18574_v62 = vpop.f32.mrf.mxu0 }
 0x676   :  { %25303 = vst [vmem:[#allocation12_spill] sm:$0xff] %v24097_v24  ;;  %v12534_v16 = vadd.f32 %v18574_v62, %v25304_v33  ;;  %v24100_v40 = vadd.f32 %v13071_v26, %v12531_v14  ;;  %v13074_v59 = vpop.f32.mrf.mxu1  ;;  %v25310_v26 = vld [vmem:[#allocation127_spill] sm:$0xff] }
 0x677   :  { %v12399_v10 = vpop.f32.mrf.mxu0 }
 0x678   :  { %25305 = vst [vmem:[#allocation13_spill] sm:$0xff] %v24100_v40  ;;  %v12532_v60 = vadd.f32 %v12399_v10, %v25306_v58  ;;  %v24103_v8 = vadd.f32 %v18654_v36, %v12534_v16  ;;  %v18657_v17 = vpop.f32.mrf.mxu1  ;;  %v25312_v58 = vld [vmem:[#allocation129_spill] sm:$0xff] }
 0x679   :  { %v18577_v2 = vpop.f32.mrf.mxu0  ;;  %18864 = vmatmul.mubr.bf16.gmra.mxu0 %v19667_v21  ;;  %v19669_v21 = vld [vmem:[#allocation3 + $0xb0] sm:$0xff]  }
 0x67a   :  { %25307 = vst [vmem:[#allocation99_spill] sm:$0xff] %v24103_v8  ;;  %v12537_v51 = vadd.f32 %v18577_v2, %v25308_v46  ;;  %18867 = vmatprep.mubr.bf16.mxu0 %v19668_v42  ;;  %v24106_v25 = vadd.f32 %v13074_v59, %v12532_v60  ;;  %v13087_v31 = vpop.f32.mrf.mxu1  ;;  %v19670_v42 = vld [vmem:[#allocation3 + $0xb8] sm:$0xff]  }
 0x67b   :  { %v12412_v62 = vpop.f32.mrf.mxu0 }
 0x67c   :  { %25309 = vst [vmem:[#allocation84_spill] sm:$0xff] %v24106_v25  ;;  %v12535_v14 = vadd.f32 %v12412_v62, %v25310_v26  ;;  %v24109_v33 = vadd.f32 %v18657_v17, %v12537_v51  ;;  %v18658_v40 = vpop.f32.mrf.mxu1  ;;  %v25316_v62 = vld [vmem:[#allocation130_spill] sm:$0xff]  ;;  %v19671_v25 = vld [vmem:[#allocation3 + $0xc0] sm:$0xff]  }
 0x67d   :  { %v18578_v24 = vpop.f32.mrf.mxu0 }
 0x67e   :  { %25311 = vst [vmem:[#allocation85_spill] sm:$0xff] %v24109_v33  ;;  %v12538_v10 = vadd.f32 %v18578_v24, %v25312_v58  ;;  %v24112_v36 = vadd.f32 %v13087_v31, %v12535_v14  ;;  %v13090_v16 = vpop.f32.mrf.mxu1  ;;  %v25317_v31 = vld [vmem:[#allocation133_spill] sm:$0xff] }
 0x67f   :  { %v12415_v8 = vpop.f32.mrf.mxu0 }
 0x680   :  { %25313 = vst [vmem:[#allocation89_spill] sm:$0xff] %v24112_v36  ;;  %v12536_v2 = vadd.f32 %v12415_v8, %v25314_v12  ;;  %v24115_v59 = vadd.f32 %v18658_v40, %v12538_v10  ;;  %v18661_v60 = vpop.f32.mrf.mxu1  ;;  %v25319_v12 = vld [vmem:[#allocation132_spill] sm:$0xff]  ;;  %v19672_v40 = vld [vmem:[#allocation3 + $0xd0] sm:$0xff]  }
 0x681   :  { %v18581_v46 = vpop.f32.mrf.mxu0  ;;  %18868 = vmatmul.mubr.bf16.gmra.mxu0 %v19669_v21 }
 0x682   :  { %25315 = vst [vmem:[#allocation88_spill] sm:$0xff] %v24115_v59  ;;  %v12541_v17 = vadd.f32 %v18581_v46, %v25316_v62  ;;  %18871 = vmatprep.mubr.bf16.mxu0 %v19670_v42  ;;  %v24118_v51 = vadd.f32 %v13090_v16, %v12536_v2  ;;  %v13103_v26 = vpop.f32.mrf.mxu1  ;;  %v25322_v62 = vld [vmem:[#allocation135_spill] sm:$0xff] }
 0x683   :  { %v12428_v24 = vpop.f32.mrf.mxu0 }
 0x684   :  { %v12539_v14 = vadd.f32 %v12428_v24, %v25317_v31  ;;  %v24121_v58 = vadd.f32 %v18661_v60, %v12541_v17  ;;  %v18662_v36 = vpop.f32.mrf.mxu1  ;;  %v25324_v31 = vld [vmem:[#allocation134_spill] sm:$0xff] }
 0x685   :  { %v18582_v33 = vpop.f32.mrf.mxu0 }
 0x686   :  { %25318 = vst [vmem:[#allocation101_spill] sm:$0xff] %v24121_v58  ;;  %v12542_v8 = vadd.f32 %v18582_v33, %v25319_v12  ;;  %v24124_v10 = vadd.f32 %v13103_v26, %v12539_v14  ;;  %v13106_v59 = vpop.f32.mrf.mxu1  ;;  %v19673_v58 = vld [vmem:[#allocation3 + $0xd8] sm:$0xff]  }
 0x687   :  { %v12431_v21 = vpop.f32.mrf.mxu0 }
 0x688   :  { %25320 = vst [vmem:[#allocation102_spill] sm:$0xff] %v24124_v10  ;;  %v12540_v42 = vadd.f32 %v12431_v21, %v23938_v27  ;;  %v24127_v16 = vadd.f32 %v18662_v36, %v12542_v8  ;;  %v18665_v2 = vpop.f32.mrf.mxu1  ;;  %v25326_v27 = vld [vmem:[#allocation136_spill] sm:$0xff] }
 0x689   :  { %v18585_v46 = vpop.f32.mrf.mxu0  ;;  %18872 = vmatmul.mubr.bf16.gmra.mxu0 %v19671_v25  ;;  %v19674_v8 = vld [vmem:[#allocation3 + $0xe0] sm:$0xff]  }
 0x68a   :  { %25321 = vst [vmem:[#allocation103_spill] sm:$0xff] %v24127_v16  ;;  %v12545_v60 = vadd.f32 %v18585_v46, %v25322_v62  ;;  %18875 = vmatprep.mubr.bf16.mxu0 %v19672_v40  ;;  %v24130_v17 = vadd.f32 %v13106_v59, %v12540_v42  ;;  %v13119_v24 = vpop.f32.mrf.mxu1  ;;  %v25328_v46 = vld [vmem:[#allocation138_spill] sm:$0xff] }
 0x68b   :  { %v12444_v33 = vpop.f32.mrf.mxu0 }
 0x68c   :  { %25323 = vst [vmem:[#allocation93_spill] sm:$0xff] %v24130_v17  ;;  %v12543_v26 = vadd.f32 %v12444_v33, %v25324_v31  ;;  %v24133_v14 = vadd.f32 %v18665_v2, %v12545_v60  ;;  %v18666_v12 = vpop.f32.mrf.mxu1  ;;  %v25330_v33 = vld [vmem:[#allocation137_spill] sm:$0xff] }
 0x68d   :  { %v18586_v10 = vpop.f32.mrf.mxu0  ;;  %v19675_v17 = vld [vmem:[#allocation3 + $0xe8] sm:$0xff]  }
 0x68e   :  { %25325 = vst [vmem:[#allocation143_spill] sm:$0xff] %v24133_v14  ;;  %v12546_v36 = vadd.f32 %v18586_v10, %v25326_v27  ;;  %v24136_v21 = vadd.f32 %v13119_v24, %v12543_v26  ;;  %v13122_v25 = vpop.f32.mrf.mxu1  ;;  %v25331_v10 = vld [vmem:[#allocation140_spill] sm:$0xff] }
 0x68f   :  { %v12447_v16 = vpop.f32.mrf.mxu0 }
 0x690   :  { %25327 = vst [vmem:[#allocation145_spill] sm:$0xff] %v24136_v21  ;;  %v12544_v40 = vadd.f32 %v12447_v16, %v25328_v46  ;;  %v24139_v59 = vadd.f32 %v18666_v12, %v12546_v36  ;;  %v18669_v42 = vpop.f32.mrf.mxu1  ;;  %v25332_v16 = vld [vmem:[#allocation139_spill] sm:$0xff] }
 0x691   :  { %v18589_v62 = vpop.f32.mrf.mxu0  ;;  %18876 = vmatmul.mubr.bf16.gmra.mxu0 %v19673_v58 }
 0x692   :  { %25329 = vst [vmem:[#allocation144_spill] sm:$0xff] %v24139_v59  ;;  %v12549_v2 = vadd.f32 %v18589_v62, %v25330_v33  ;;  %18879 = vmatprep.mubr.bf16.mxu0 %v19674_v8  ;;  %v24142_v60 = vadd.f32 %v13122_v25, %v12544_v40  ;;  %v13135_v31 = vpop.f32.mrf.mxu1  ;;  %v25333_v59 = vld [vmem:[#allocation142_spill] sm:$0xff]  ;;  %v19676_v8 = vld [vmem:[#allocation3 + $0x148] sm:$0xff]  }
 0x693   :  { %v12460_v14 = vpop.f32.mrf.mxu0 }
 0x694   :  { %v12547_v27 = vadd.f32 %v12460_v14, %v25331_v10  ;;  %v24145_v24 = vadd.f32 %v18669_v42, %v12549_v2  ;;  %v18670_v26 = vpop.f32.mrf.mxu1 }
 0x695   :  { %v18590_v21 = vpop.f32.mrf.mxu0 }
 0x696   :  { %v12550_v12 = vadd.f32 %v18590_v21, %v25332_v16  ;;  %v24148_v36 = vadd.f32 %v13135_v31, %v12547_v27  ;;  %v13138_v46 = vpop.f32.mrf.mxu1 }
 0x697   :  { %v12463_v58 = vpop.f32.mrf.mxu0 }
 0x698   :  { %v12548_v62 = vadd.f32 %v12463_v58, %v25333_v59  ;;  %v24151_v25 = vadd.f32 %v18670_v26, %v12550_v12  ;;  %v18673_v40 = vpop.f32.mrf.mxu1 }
 0x699   :  { %v18593_v33 = vpop.f32.mrf.mxu0  ;;  %18880 = vmatmul.mubr.bf16.gmra.mxu0 %v19675_v17  ;;  %v19677_v17 = vld [vmem:[#allocation3 + $0x150] sm:$0xff]  }
 0x69a   :  { %v12553_v14 = vadd.f32 %v18593_v33, %v23965_v18  ;;  %18883 = vmatprep.mubr.bf16.mxu0 %v19676_v8  ;;  %v24154_v42 = vadd.f32 %v13138_v46, %v12548_v62  ;;  %v13151_v2 = vpop.f32.mrf.mxu1  ;;  %v19678_v8 = vld [vmem:[#allocation3 + $0x158] sm:$0xff]  }
 0x69b   :  { %v12476_v10 = vpop.f32.mrf.mxu0 }
 0x69c   :  { %v12551_v21 = vadd.f32 %v12476_v10, %v23968_v1  ;;  %v24157_v31 = vadd.f32 %v18673_v40, %v12553_v14  ;;  %v18674_v27 = vpop.f32.mrf.mxu1 }
 0x69d   :  { %v18594_v16 = vpop.f32.mrf.mxu0 }
 0x69e   :  { %v12554_v59 = vadd.f32 %v18594_v16, %v23971_v29  ;;  %v24160_v26 = vadd.f32 %v13151_v2, %v12551_v21  ;;  %v13154_v12 = vpop.f32.mrf.mxu1 }
 0x69f   :  { %v12479_v58 = vpop.f32.mrf.mxu0 }
 0x6a0   :  { %v12552_v18 = vadd.f32 %v12479_v58, %v23974_v61  ;;  %v24163_v46 = vadd.f32 %v18674_v27, %v12554_v59  ;;  %v18773_v62 = vpop.f32.mrf.mxu1  ;;  %v19679_v58 = vld [vmem:[#allocation3 + $0x160] sm:$0xff]  }
 0x6a1   :  { %v18693_v33 = vpop.f32.mrf.mxu0  ;;  %18884 = vmatmul.mubr.bf16.gmra.mxu0 %v19677_v17 }
 0x6a2   :  { %25334 = vst [vmem:[#allocation73_spill] sm:$0xff] %v24163_v46  ;;  %v13843_v1 = vadd.f32 %v18693_v33, %v23977_v44  ;;  %18887 = vmatprep.mubr.bf16.mxu0 %v19678_v8  ;;  %v24166_v40 = vadd.f32 %v13154_v12, %v12552_v18  ;;  %v14261_v14 = vpop.f32.mrf.mxu1  ;;  %v19680_v46 = vld [vmem:[#allocation3 + $0x170] sm:$0xff]  }
 0x6a3   :  { %v13586_v29 = vpop.f32.mrf.mxu0 }
 0x6a4   :  { %v13841_v2 = vadd.f32 %v13586_v29, %v23980_v13  ;;  %v24169_v10 = vadd.f32 %v18773_v62, %v13843_v1  ;;  %v18774_v21 = vpop.f32.mrf.mxu1 }
 0x6a5   :  { %v18694_v16 = vpop.f32.mrf.mxu0 }
 0x6a6   :  { %25335 = vst [vmem:[#allocation146_spill] sm:$0xff] %v24169_v10  ;;  %v13844_v61 = vadd.f32 %v18694_v16, %v23983_v38  ;;  %v14264_v27 = vpop.f32.mrf.mxu1  ;;  %v24174_v18 = vadd.f32 %v14261_v14, %v13841_v2 }
 0x6a7   :  { %v13589_v59 = vpop.f32.mrf.mxu0 }
 0x6a8   :  { %v13842_v17 = vadd.f32 %v13589_v59, %v23986_v5  ;;  %v18777_v44 = vpop.f32.mrf.mxu1  ;;  %v24177_v1 = vadd.f32 %v18774_v21, %v13844_v61 }
 0x6a9   :  { %v18697_v8 = vpop.f32.mrf.mxu0  ;;  %18888 = vmatmul.mubr.bf16.gmra.mxu0 %v19679_v58  ;;  %v19681_v58 = vld [vmem:[#allocation3 + $0x178] sm:$0xff]  }
 0x6aa   :  { %v13847_v12 = vadd.f32 %v18697_v8, %v23989_v57  ;;  %18891 = vmatprep.mubr.bf16.mxu0 %v19680_v46  ;;  %v14277_v13 = vpop.f32.mrf.mxu1  ;;  %25336 = vst [vmem:[#allocation76_spill] sm:$0xff] %v24177_v1  ;;  %v24180_v5 = vadd.f32 %v14264_v27, %v13842_v17  ;;  %v19682_v46 = vld [vmem:[#allocation3 + $0x180] sm:$0xff]   ;;  %v19684_v1 = vld [vmem:[#allocation3 + $0x198] sm:$0xff]  }
 0x6ab   :  { %v13602_v62 = vpop.f32.mrf.mxu0 }
 0x6ac   :  { %v13845_v33 = vadd.f32 %v13602_v62, %v23992_v11  ;;  %v18778_v38 = vpop.f32.mrf.mxu1  ;;  %25337 = vst [vmem:[#allocation147_spill] sm:$0xff] %v24180_v5  ;;  %v24185_v62 = vadd.f32 %v18777_v44, %v13847_v12  ;;  %v19683_v5 = vld [vmem:[#allocation3 + $0x188] sm:$0xff]  }
 0x6ad   :  { %v18698_v29 = vpop.f32.mrf.mxu0 }
 0x6ae   :  { %v13848_v16 = vadd.f32 %v18698_v29, %v23995_v0  ;;  %v14280_v59 = vpop.f32.mrf.mxu1  ;;  %v24187_v0 = vadd.f32 %v14277_v13, %v13845_v33 }
 0x6af   :  { %v13605_v10 = vpop.f32.mrf.mxu0 }
 0x6b0   :  { %v13846_v57 = vadd.f32 %v13605_v10, %v23998_v34  ;;  %v18781_v14 = vpop.f32.mrf.mxu1 }
 0x6b1   :  { %v18701_v2 = vpop.f32.mrf.mxu0  ;;  %18892 = vmatmul.mubr.bf16.gmra.mxu0 %v19681_v58 }
 0x6b2   :  { %v13851_v8 = vadd.f32 %v18701_v2, %v24001_v23  ;;  %18895 = vmatprep.mubr.bf16.mxu0 %v19682_v46  ;;  %v14293_v11 = vpop.f32.mrf.mxu1  ;;  %v24191_v23 = vadd.f32 %v18778_v38, %v13848_v16  ;;  %v24193_v46 = vadd.f32 %v14280_v59, %v13846_v57  ;;  %v19685_v57 = vld [vmem:[#allocation3 + $0x1a0] sm:$0xff]  }
 0x6b3   :  { %v13618_v21 = vpop.f32.mrf.mxu0 }
 0x6b4   :  { %v13849_v61 = vadd.f32 %v13618_v21, %v24004_v6  ;;  %v18782_v27 = vpop.f32.mrf.mxu1  ;;  %v24197_v33 = vadd.f32 %v18781_v14, %v13851_v8 }
 0x6b5   :  { %v18702_v17 = vpop.f32.mrf.mxu0 }
 0x6b6   :  { %v13852_v29 = vadd.f32 %v18702_v17, %v24007_v22  ;;  %v14296_v34 = vpop.f32.mrf.mxu1  ;;  %v24199_v21 = vadd.f32 %v14293_v11, %v13849_v61 }
 0x6b7   :  { %v13621_v10 = vpop.f32.mrf.mxu0 }
 0x6b8   :  { %v13850_v58 = vadd.f32 %v13621_v10, %v24010_v19  ;;  %v18785_v2 = vpop.f32.mrf.mxu1  ;;  %v19686_v10 = vld [vmem:[#allocation3 + $0x1a8] sm:$0xff]  }
 0x6b9   :  { %v18705_v6 = vpop.f32.mrf.mxu0  ;;  %18896 = vmatmul.mubr.bf16.gmra.mxu0 %v19683_v5 }
 0x6ba   :  { %v13855_v44 = vadd.f32 %v18705_v6, %v24013_v15  ;;  %18899 = vmatprep.mubr.bf16.mxu0 %v19684_v1  ;;  %v14309_v12 = vpop.f32.mrf.mxu1  ;;  %v24203_v15 = vadd.f32 %v18782_v27, %v13852_v29  ;;  %v24205_v1 = vadd.f32 %v14296_v34, %v13850_v58  ;;  %v25339_v27 = vld [vmem:[#allocation141_spill] sm:$0xff]  ;;  %v19688_v34 = vld [vmem:[#allocation3 + $0x1c0] sm:$0xff]  }
 0x6bb   :  { %v13634_v13 = vpop.f32.mrf.mxu0 }
 0x6bc   :  { %v13853_v22 = vadd.f32 %v13634_v13, %v24016_v45  ;;  %v18786_v19 = vpop.f32.mrf.mxu1  ;;  %25338 = vst [vmem:[#allocation92_spill] sm:$0xff] %v24205_v1  ;;  %v24209_v61 = vadd.f32 %v18785_v2, %v13855_v44  ;;  %v19687_v1 = vld [vmem:[#allocation3 + $0x1b0] sm:$0xff]  }
 0x6bd   :  { %v18706_v17 = vpop.f32.mrf.mxu0 }
 0x6be   :  { %v13856_v38 = vadd.f32 %v18706_v17, %v24019_v48  ;;  %v14312_v16 = vpop.f32.mrf.mxu1  ;;  %v24211_v13 = vadd.f32 %v14309_v12, %v13853_v22 }
 0x6bf   :  { %v13637_v59 = vpop.f32.mrf.mxu0 }
 0x6c0   :  { %v13854_v5 = vadd.f32 %v13637_v59, %v24022_v39  ;;  %v18789_v6 = vpop.f32.mrf.mxu1 }
 0x6c1   :  { %v18709_v45 = vpop.f32.mrf.mxu0  ;;  %18900 = vmatmul.mubr.bf16.gmra.mxu0 %v19685_v57 }
 0x6c2   :  { %v13859_v14 = vadd.f32 %v18709_v45, %v24025_v4  ;;  %18903 = vmatprep.mubr.bf16.mxu0 %v19686_v10  ;;  %v14325_v8 = vpop.f32.mrf.mxu1  ;;  %v24215_v4 = vadd.f32 %v18786_v19, %v13856_v38  ;;  %v24217_v10 = vadd.f32 %v14312_v16, %v13854_v5  ;;  %v19689_v19 = vld [vmem:[#allocation3 + $0x1c8] sm:$0xff]   ;;  %v19690_v16 = vld [vmem:[#allocation3 + $0x1d0] sm:$0xff]  }
 0x6c3   :  { %v13650_v11 = vpop.f32.mrf.mxu0 }
 0x6c4   :  { %v13857_v48 = vadd.f32 %v13650_v11, %v24028_v52  ;;  %v18790_v39 = vpop.f32.mrf.mxu1  ;;  %v24221_v11 = vadd.f32 %v18789_v6, %v13859_v14 }
 0x6c5   :  { %v18710_v17 = vpop.f32.mrf.mxu0 }
 0x6c6   :  { %v13860_v29 = vadd.f32 %v18710_v17, %v25339_v27  ;;  %v14328_v58 = vpop.f32.mrf.mxu1  ;;  %v24223_v17 = vadd.f32 %v14325_v8, %v13857_v48 }
 0x6c7   :  { %v13653_v59 = vpop.f32.mrf.mxu0 }
 0x6c8   :  { %v13858_v57 = vadd.f32 %v13653_v59, %v24034_v32  ;;  %v18793_v45 = vpop.f32.mrf.mxu1  ;;  %25340 = vst [vmem:[#allocation148_spill] sm:$0xff] %v24223_v17 }
 0x6c9   :  { %v18713_v52 = vpop.f32.mrf.mxu0  ;;  %18904 = vmatmul.mubr.bf16.gmra.mxu0 %v19687_v1 }
 0x6ca   :  { %v13863_v2 = vadd.f32 %v18713_v52, %v24037_v49  ;;  %18907 = vmatprep.mubr.bf16.mxu0 %v19688_v34  ;;  %v14341_v44 = vpop.f32.mrf.mxu1  ;;  %v24227_v49 = vadd.f32 %v18790_v39, %v13860_v29  ;;  %v24229_v34 = vadd.f32 %v14328_v58, %v13858_v57 }
 0x6cb   :  { %v13666_v12 = vpop.f32.mrf.mxu0 }
 0x6cc   :  { %v13861_v22 = vadd.f32 %v13666_v12, %v24040_v30  ;;  %v18794_v27 = vpop.f32.mrf.mxu1  ;;  %v24233_v17 = vadd.f32 %v18793_v45, %v13863_v2 }
 0x6cd   :  { %v18714_v32 = vpop.f32.mrf.mxu0 }
 0x6ce   :  { %v13864_v38 = vadd.f32 %v18714_v32, %v24043_v37  ;;  %v14344_v5 = vpop.f32.mrf.mxu1  ;;  %v19691_v32 = vld [vmem:[#allocation3 + $0x1d8] sm:$0xff]  }
 0x6cf   :  { %v13669_v59 = vpop.f32.mrf.mxu0 }
 0x6d0   :  { %v13862_v1 = vadd.f32 %v13669_v59, %v24046_v55  ;;  %v18797_v52 = vpop.f32.mrf.mxu1  ;;  %v24235_v55 = vadd.f32 %v14341_v44, %v13861_v22 }
 0x6d1   :  { %v18717_v30 = vpop.f32.mrf.mxu0  ;;  %18908 = vmatmul.mubr.bf16.gmra.mxu0 %v19689_v19 }
 0x6d2   :  { %v13867_v6 = vadd.f32 %v18717_v30, %v24049_v56  ;;  %18911 = vmatprep.mubr.bf16.mxu0 %v19690_v16  ;;  %v14357_v14 = vpop.f32.mrf.mxu1  ;;  %v24239_v56 = vadd.f32 %v18794_v27, %v13864_v38  ;;  %v24241_v16 = vadd.f32 %v14344_v5, %v13862_v1 }
 0x6d3   :  { %v13682_v8 = vpop.f32.mrf.mxu0 }
 0x6d4   :  { %v13865_v48 = vadd.f32 %v13682_v8, %v24052_v20  ;;  %v18798_v37 = vpop.f32.mrf.mxu1  ;;  %v24245_v44 = vadd.f32 %v18797_v52, %v13867_v6 }
 0x6d5   :  { %v18718_v12 = vpop.f32.mrf.mxu0 }
 0x6d6   :  { %v13868_v39 = vadd.f32 %v18718_v12, %v24055_v47  ;;  %v14360_v58 = vpop.f32.mrf.mxu1  ;;  %v24247_v47 = vadd.f32 %v14357_v14, %v13865_v48 }
 0x6d7   :  { %v13685_v29 = vpop.f32.mrf.mxu0 }
 0x6d8   :  { %v13866_v57 = vadd.f32 %v13685_v29, %v24058_v35  ;;  %v18801_v30 = vpop.f32.mrf.mxu1  ;;  %v24251_v5 = vadd.f32 %v18798_v37, %v13868_v39 }
 0x6d9   :  { %v18721_v19 = vpop.f32.mrf.mxu0  ;;  %18912 = vmatmul.mubr.bf16.gmra.mxu0 %v19691_v32 }
 0x6da   :  { %v13871_v20 = vadd.f32 %v18721_v19, %v24061_v50  ;;  %v14373_v8 = vpop.f32.mrf.mxu1  ;;  %v24253_v1 = vadd.f32 %v14360_v58, %v13866_v57 }
 0x6db   :  { %v13698_v59 = vpop.f32.mrf.mxu0 }
 0x6dc   :  { %v13869_v45 = vadd.f32 %v13698_v59, %v24064_v54  ;;  %v18802_v12 = vpop.f32.mrf.mxu1  ;;  %v24261_v14 = vadd.f32 %v18801_v30, %v13871_v20  ;;  %v25342_v30 = vld [vmem:[#allocation10_spill] sm:$0xff] }
 0x6dd   :  { %v18722_v2 = vpop.f32.mrf.mxu0 }
 0x6de   :  { %v13872_v22 = vadd.f32 %v18722_v2, %v24067_v9  ;;  %v24263_v9 = vadd.f32 %v14373_v8, %v13869_v45  ;;  %v14376_v37 = vpop.f32.mrf.mxu1  ;;  %v25343_v2 = vld [vmem:[#allocation12_spill] sm:$0xff]  ;;  %v25344_v8 = vld [vmem:[#allocation13_spill] sm:$0xff] }
 0x6df   :  { %v13701_v35 = vpop.f32.mrf.mxu0 }
 0x6e0   :  { %v13870_v27 = vadd.f32 %v13701_v35, %v24070_v7  ;;  %v24271_v39 = vadd.f32 %v18802_v12, %v13872_v22  ;;  %v25346_v12 = vld [vmem:[#allocation84_spill] sm:$0xff] }
 0x6e1   :  { %v18725_v38 = vpop.f32.mrf.mxu0 }
 0x6e2   :  { %v24256_v50 = vadd.f32 %v18725_v38, %v24073_v28  ;;  %v24273_v29 = vadd.f32 %v14376_v37, %v13870_v27  ;;  %v25345_v38 = vld [vmem:[#allocation99_spill] sm:$0xff]  ;;  %v25348_v37 = vld [vmem:[#allocation85_spill] sm:$0xff] }
 0x6e3   :  { %v13714_v54 = vpop.f32.mrf.mxu0 }
 0x6e4   :  { %v24259_v52 = vadd.f32 %v13714_v54, %v24076_v53 }
 0x6e5   :  { %v18726_v6 = vpop.f32.mrf.mxu0 }
 0x6e6   :  { %v24266_v7 = vadd.f32 %v18726_v6, %v24079_v41  ;;  %v25341_v41 = vld [vmem:[#allocation9_spill] sm:$0xff] }
 0x6e7   :  { %v13717_v48 = vpop.f32.mrf.mxu0 }
 0x6e8   :  { %v24269_v32 = vadd.f32 %v13717_v48, %v24082_v3 }
 0x6e9   :  { %v18729_v28 = vpop.f32.mrf.mxu0 }
 0x6ea   :  { %v24276_v53 = vadd.f32 %v18729_v28, %v24085_v43 }
 0x6eb   :  { %v13730_v58 = vpop.f32.mrf.mxu0 }
 0x6ec   :  { %v24279_v57 = vadd.f32 %v13730_v58, %v24088_v63 }
 0x6ed   :  { %v18730_v19 = vpop.f32.mrf.mxu0 }
 0x6ee   :  { %v24282_v20 = vadd.f32 %v18730_v19, %v25341_v41  ;;  %v25350_v19 = vld [vmem:[#allocation89_spill] sm:$0xff] }
 0x6ef   :  { %v13733_v59 = vpop.f32.mrf.mxu0 }
 0x6f0   :  { %v24285_v3 = vadd.f32 %v13733_v59, %v25342_v30  ;;  %v25352_v30 = vld [vmem:[#allocation88_spill] sm:$0xff] }
 0x6f1   :  { %v18733_v45 = vpop.f32.mrf.mxu0 }
 0x6f2   :  { %v24288_v22 = vadd.f32 %v18733_v45, %v25343_v2 }
 0x6f3   :  { %v13746_v35 = vpop.f32.mrf.mxu0 }
 0x6f4   :  { %v24291_v43 = vadd.f32 %v13746_v35, %v25344_v8 }
 0x6f5   :  { %v18734_v27 = vpop.f32.mrf.mxu0 }
 0x6f6   :  { %v24294_v63 = vadd.f32 %v18734_v27, %v25345_v38  ;;  %v25355_v27 = vld [vmem:[#allocation101_spill] sm:$0xff] }
 0x6f7   :  { %v13749_v54 = vpop.f32.mrf.mxu0 }
 0x6f8   :  { %v24297_v6 = vadd.f32 %v13749_v54, %v25346_v12  ;;  %v25357_v12 = vld [vmem:[#allocation102_spill] sm:$0xff] }
 0x6f9   :  { %v18737_v48 = vpop.f32.mrf.mxu0 }
 0x6fa   :  { %25347 = vst [vmem:[#allocation77_spill] sm:$0xff] %v24297_v6  ;;  %v24300_v28 = vadd.f32 %v18737_v48, %v25348_v37 }
 0x6fb   :  { %v13762_v58 = vpop.f32.mrf.mxu0 }
 0x6fc   :  { %25349 = vst [vmem:[#allocation149_spill] sm:$0xff] %v24300_v28  ;;  %v24303_v41 = vadd.f32 %v13762_v58, %v25350_v19  ;;  %v25359_v28 = vld [vmem:[#allocation103_spill] sm:$0xff] }
 0x6fd   :  { %v18738_v59 = vpop.f32.mrf.mxu0 }
 0x6fe   :  { %25351 = vst [vmem:[#allocation78_spill] sm:$0xff] %v24303_v41  ;;  %v24306_v45 = vadd.f32 %v18738_v59, %v25352_v30  ;;  %v25361_v41 = vld [vmem:[#allocation93_spill] sm:$0xff] }
 0x6ff   :  { %v13765_v2 = vpop.f32.mrf.mxu0 }
 0x700   :  { %25353 = vst [vmem:[#allocation150_spill] sm:$0xff] %v24306_v45  ;;  %v24309_v35 = vadd.f32 %v13765_v2, %v24118_v51  ;;  %v25363_v45 = vld [vmem:[#allocation143_spill] sm:$0xff] }
 0x701   :  { %v18741_v8 = vpop.f32.mrf.mxu0 }
 0x702   :  { %25354 = vst [vmem:[#allocation152_spill] sm:$0xff] %v24309_v35  ;;  %v24312_v38 = vadd.f32 %v18741_v8, %v25355_v27  ;;  %v25365_v35 = vld [vmem:[#allocation145_spill] sm:$0xff] }
 0x703   :  { %v13778_v54 = vpop.f32.mrf.mxu0 }
 0x704   :  { %25356 = vst [vmem:[#allocation151_spill] sm:$0xff] %v24312_v38  ;;  %v24315_v48 = vadd.f32 %v13778_v54, %v25357_v12  ;;  %v25367_v38 = vld [vmem:[#allocation144_spill] sm:$0xff] }
 0x705   :  { %v18742_v37 = vpop.f32.mrf.mxu0 }
 0x706   :  { %25358 = vst [vmem:[#allocation95_spill] sm:$0xff] %v24315_v48  ;;  %v24318_v58 = vadd.f32 %v18742_v37, %v25359_v28 }
 0x707   :  { %v13781_v19 = vpop.f32.mrf.mxu0 }
 0x708   :  { %25360 = vst [vmem:[#allocation153_spill] sm:$0xff] %v24318_v58  ;;  %v24321_v59 = vadd.f32 %v13781_v19, %v25361_v41 }
 0x709   :  { %v18745_v30 = vpop.f32.mrf.mxu0 }
 0x70a   :  { %25362 = vst [vmem:[#allocation81_spill] sm:$0xff] %v24321_v59  ;;  %v24324_v51 = vadd.f32 %v18745_v30, %v25363_v45  ;;  %v25384_v59 = vld [vmem:[#allocation11_spill] sm:$0xff] }
 0x70b   :  { %v13794_v2 = vpop.f32.mrf.mxu0 }
 0x70c   :  { %25364 = vst [vmem:[#allocation154_spill] sm:$0xff] %v24324_v51  ;;  %v24327_v8 = vadd.f32 %v13794_v2, %v25365_v35  ;;  %v25383_v51 = vld [vmem:[#allocation4_spill] sm:$0xff] }
 0x70d   :  { %v18746_v27 = vpop.f32.mrf.mxu0 }
 0x70e   :  { %25366 = vst [vmem:[#allocation82_spill] sm:$0xff] %v24327_v8  ;;  %v24330_v54 = vadd.f32 %v18746_v27, %v25367_v38 }
 0x70f   :  { %v13797_v12 = vpop.f32.mrf.mxu0 }
 0x710   :  { %25368 = vst [vmem:[#allocation155_spill] sm:$0xff] %v24330_v54  ;;  %v24333_v28 = vadd.f32 %v13797_v12, %v24142_v60 }
 0x711   :  { %v18749_v37 = vpop.f32.mrf.mxu0 }
 0x712   :  { %25369 = vst [vmem:[#allocation100_spill] sm:$0xff] %v24333_v28  ;;  %v24336_v41 = vadd.f32 %v18749_v37, %v24145_v24 }
 0x713   :  { %v13810_v19 = vpop.f32.mrf.mxu0 }
 0x714   :  { %25370 = vst [vmem:[#allocation156_spill] sm:$0xff] %v24336_v41  ;;  %v24339_v45 = vadd.f32 %v13810_v19, %v24148_v36  ;;  %v25376_v41 = vld [vmem:[#allocation73_spill] sm:$0xff] }
 0x715   :  { %v18750_v30 = vpop.f32.mrf.mxu0 }
 0x716   :  { %25371 = vst [vmem:[#allocation94_spill] sm:$0xff] %v24339_v45  ;;  %v24342_v35 = vadd.f32 %v18750_v30, %v24151_v25  ;;  %v24359_v30 = vpop.f32.mrf.mxu1 }
 0x717   :  { %v13813_v2 = vpop.f32.mrf.mxu0 }
 0x718   :  { %25372 = vst [vmem:[#allocation157_spill] sm:$0xff] %v24342_v35  ;;  %v24345_v38 = vadd.f32 %v13813_v2, %v24154_v42  ;;  %v25379_v2 = vld [vmem:[#allocation146_spill] sm:$0xff] }
 0x719   :  { %v18753_v27 = vpop.f32.mrf.mxu0 }
 0x71a   :  { %25373 = vst [vmem:[#allocation159_spill] sm:$0xff] %v24345_v38  ;;  %v24348_v60 = vadd.f32 %v18753_v27, %v24157_v31  ;;  %v24365_v31 = vld [vmem:[%s24718_s8] ss:$0 sm:$0xff] }
 0x71b   :  { %v13826_v12 = vpop.f32.mrf.mxu0 }
 0x71c   :  { %25374 = vst [vmem:[#allocation158_spill] sm:$0xff] %v24348_v60  ;;  %v24351_v24 = vadd.f32 %v13826_v12, %v24160_v26  ;;  %v24368_v12 = vpop.f32.mrf.mxu1 }
 0x71d   :  { %v18754_v37 = vpop.f32.mrf.mxu0 }
 0x71e   :  { %25375 = vst [vmem:[#allocation161_spill] sm:$0xff] %v24351_v24  ;;  %v24354_v36 = vadd.f32 %v18754_v37, %v25376_v41  ;;  %v24381_v60 = vpop.f32.mrf.mxu1 }
 0x71f   :  { %v13829_v19 = vpop.f32.mrf.mxu0 }
 0x720   :  { %25377 = vst [vmem:[#allocation160_spill] sm:$0xff] %v24354_v36  ;;  %v24357_v25 = vadd.f32 %v13829_v19, %v24166_v40  ;;  %v25380_v19 = vld [vmem:[#allocation76_spill] sm:$0xff]  ;;  %v24390_v8 = vpop.f32.mrf.mxu1 }
 0x721   :  { %v18853_v42 = vpop.f32.mrf.mxu0 }
 0x722   :  { %25378 = vst [vmem:[#allocation163_spill] sm:$0xff] %v24357_v25  ;;  %v15193_v38 = vadd.f32 %v18853_v42, %v25379_v2  ;;  %v24376_v42 = vld [vmem:[%s24719_s9] ss:$0 sm:$0xff]  ;;  %v24401_v48 = vpop.f32.mrf.mxu1 }
 0x723   :  { %v14936_v26 = vpop.f32.mrf.mxu0 }
 0x724   :  { %v15191_v27 = vadd.f32 %v14936_v26, %v24174_v18  ;;  %v15264_v37 = vmul.f32 %v24365_v31, %v15193_v38  ;;  %v25381_v18 = vld [vmem:[#allocation147_spill] sm:$0xff] }
 0x725   :  { %v18854_v41 = vpop.f32.mrf.mxu0 }
 0x726   :  { %v15262_v40 = vmul.f32 %v24365_v31, %v15191_v27  ;;  %v15194_v25 = vadd.f32 %v18854_v41, %v25380_v19  ;;  %v15335_v38 = vadd.f32 %v24376_v42, %v15264_v37  ;;  %v25382_v41 = vld [vmem:[#allocation6_spill] sm:$0xff] }
 0x727   :  { %v14939_v2 = vpop.f32.mrf.mxu0 }
 0x728   :  { %v15333_v36 = vadd.f32 %v24376_v42, %v15262_v40  ;;  %v15265_v24 = vmul.f32 %v24365_v31, %v15194_v25  ;;  %v15192_v26 = vadd.f32 %v14939_v2, %v25381_v18  ;;  %v15399_v37 = vadd.f32 %v15335_v38, %v25383_v51 }
 0x729   :  { %v18857_v35 = vpop.f32.mrf.mxu0 }
 0x72a   :  { %v15263_v27 = vmul.f32 %v24365_v31, %v15192_v26  ;;  %v15397_v19 = vadd.f32 %v15333_v36, %v25382_v41  ;;  %v15336_v45 = vadd.f32 %v24376_v42, %v15265_v24  ;;  %v15197_v28 = vadd.f32 %v18857_v35, %v24185_v62  ;;  %v25385_v62 = vld [vmem:[#allocation8_spill] sm:$0xff] }
 0x72b   :  { %v14952_v54 = vpop.f32.mrf.mxu0  ;;  %v15463_v38 = vmax.f32 %v15399_v37, 0.0 }
 0x72c   :  { %v15334_v40 = vadd.f32 %v24376_v42, %v15263_v27  ;;  %v15195_v25 = vadd.f32 %v14952_v54, %v24187_v0  ;;  %v15268_v2 = vmul.f32 %v24365_v31, %v15197_v28  ;;  %v15461_v41 = vmax.f32 %v15397_v19, 0.0 }
 0x72d   :  { %v18858_v18 = vpop.f32.mrf.mxu0  ;;  %v15400_v35 = vadd.f32 %v15336_v45, %v25385_v62  ;;  %v25387_v62 = vld [vmem:[#allocation14_spill] sm:$0xff] }
 0x72e   :  { %v15398_v26 = vadd.f32 %v15334_v40, %v25384_v59  ;;  %v15266_v36 = vmul.f32 %v24365_v31, %v15195_v25  ;;  %v15198_v24 = vadd.f32 %v18858_v18, %v24191_v23  ;;  %v15339_v51 = vadd.f32 %v24376_v42, %v15268_v2  ;;  %v25386_v25 = vld [vmem:[#allocation15_spill] sm:$0xff] }
 0x72f   :  { %v14955_v58 = vpop.f32.mrf.mxu0 }
 0x730   :  { %v15462_v27 = vmax.f32 %v15398_v26, 0.0  ;;  %v15337_v0 = vadd.f32 %v24376_v42, %v15266_v36  ;;  %v15269_v54 = vmul.f32 %v24365_v31, %v15198_v24  ;;  %v15196_v28 = vadd.f32 %v14955_v58, %v24193_v46  ;;  %v24409_v58 = vpop.f32.mrf.mxu1 }
 0x731   :  { %v18861_v59 = vpop.f32.mrf.mxu0  ;;  %v15464_v36 = vmax.f32 %v15400_v35, 0.0  ;;  %v15403_v2 = vadd.f32 %v15339_v51, %v25387_v62 }
 0x732   :  { %v15525_v40 = vadd.f32 %v15462_v27, %v15461_v41  ;;  %v15401_v23 = vadd.f32 %v15337_v0, %v25386_v25  ;;  %v15267_v19 = vmul.f32 %v24365_v31, %v15196_v28  ;;  %v15340_v45 = vadd.f32 %v24376_v42, %v15269_v54  ;;  %v25388_v0 = vld [vmem:[#allocation17_spill] sm:$0xff] }
 0x733   :  { %v15201_v18 = vadd.f32 %v18861_v59, %v24197_v33  ;;  %v14968_v26 = vpop.f32.mrf.mxu0  ;;  %v25389_v59 = vld [vmem:[#allocation16_spill] sm:$0xff] }
 0x734   :  { %v15526_v24 = vadd.f32 %v15525_v40, %v15463_v38  ;;  %v15338_v46 = vadd.f32 %v24376_v42, %v15267_v19  ;;  %v15465_v6 = vmax.f32 %v15401_v23, 0.0  ;;  %v15199_v37 = vadd.f32 %v14968_v26, %v24199_v21  ;;  %v25390_v23 = vld [vmem:[#allocation92_spill] sm:$0xff]  ;;  %v24420_v21 = vpop.f32.mrf.mxu1 }
 0x735   :  { %v18862_v41 = vpop.f32.mrf.mxu0  ;;  %v15272_v54 = vmul.f32 %v24365_v31, %v15201_v18  ;;  %v15404_v35 = vadd.f32 %v15340_v45, %v25389_v59  ;;  %v15467_v26 = vmax.f32 %v15403_v2, 0.0 }
 0x736   :  { %v15527_v27 = vadd.f32 %v15526_v24, %v15464_v36  ;;  %v15402_v28 = vadd.f32 %v15338_v46, %v25388_v0  ;;  %v15202_v33 = vadd.f32 %v18862_v41, %v24203_v15  ;;  %v15270_v38 = vmul.f32 %v24365_v31, %v15199_v37  ;;  %v25391_v37 = vld [vmem:[#allocation19_spill] sm:$0xff]  ;;  %v24429_v2 = vpop.f32.mrf.mxu1 }
 0x737   :  { %v14971_v40 = vpop.f32.mrf.mxu0  ;;  %v15343_v15 = vadd.f32 %v24376_v42, %v15272_v54  ;;  %v15468_v0 = vmax.f32 %v15404_v35, 0.0 }
 0x738   :  { %v15528_v25 = vadd.f32 %v15527_v27, %v15465_v6  ;;  %v15466_v19 = vmax.f32 %v15402_v28, 0.0  ;;  %v15273_v51 = vmul.f32 %v24365_v31, %v15202_v33  ;;  %v15200_v62 = vadd.f32 %v14971_v40, %v25390_v23  ;;  %v25392_v40 = vld [vmem:[#allocation18_spill] sm:$0xff]  ;;  %v25393_v23 = vld [vmem:[#allocation21_spill] sm:$0xff] }
 0x739   :  { %v15341_v36 = vadd.f32 %v24376_v42, %v15270_v38  ;;  %v18865_v24 = vpop.f32.mrf.mxu0 }
 0x73a   :  { %v15529_v18 = vadd.f32 %v15528_v25, %v15466_v19  ;;  %v15271_v45 = vmul.f32 %v24365_v31, %v15200_v62  ;;  %v15205_v46 = vadd.f32 %v18865_v24, %v24209_v61  ;;  %v15344_v41 = vadd.f32 %v24376_v42, %v15273_v51 }
 0x73b   :  { %v15405_v6 = vadd.f32 %v15341_v36, %v25391_v37  ;;  %v14984_v27 = vpop.f32.mrf.mxu0  ;;  %v15407_v25 = vadd.f32 %v15343_v15, %v25392_v40  ;;  %v25394_v36 = vld [vmem:[#allocation20_spill] sm:$0xff]  ;;  %v24439_v37 = vpop.f32.mrf.mxu1 }
 0x73c   :  { %v15530_v28 = vadd.f32 %v15529_v18, %v15467_v26  ;;  %v15342_v33 = vadd.f32 %v24376_v42, %v15271_v45  ;;  %v15276_v59 = vmul.f32 %v24365_v31, %v15205_v46  ;;  %v15203_v38 = vadd.f32 %v14984_v27, %v24211_v13 }
 0x73d   :  { %v18866_v54 = vpop.f32.mrf.mxu0  ;;  %v15469_v19 = vmax.f32 %v15405_v6, 0.0  ;;  %v15408_v51 = vadd.f32 %v15344_v41, %v25394_v36  ;;  %v25397_v36 = vld [vmem:[#allocation22_spill] sm:$0xff] }
 0x73e   :  { %v15531_v61 = vadd.f32 %v15530_v28, %v15468_v0  ;;  %v15406_v62 = vadd.f32 %v15342_v33, %v25393_v23  ;;  %v15274_v35 = vmul.f32 %v24365_v31, %v15203_v38  ;;  %v15206_v26 = vadd.f32 %v18866_v54, %v24215_v4  ;;  %v25395_v38 = vld [vmem:[#allocation23_spill] sm:$0xff] }
 0x73f   :  { %v14987_v24 = vpop.f32.mrf.mxu0  ;;  %v15347_v13 = vadd.f32 %v24376_v42, %v15276_v59  ;;  %v15471_v0 = vmax.f32 %v15407_v25, 0.0  ;;  %v15472_v33 = vmax.f32 %v15408_v51, 0.0 }
 0x740   :  { %v15532_v18 = vadd.f32 %v15531_v61, %v15469_v19  ;;  %v15470_v45 = vmax.f32 %v15406_v62, 0.0  ;;  %v15204_v46 = vadd.f32 %v14987_v24, %v24217_v10  ;;  %v15345_v15 = vadd.f32 %v24376_v42, %v15274_v35  ;;  %v25396_v61 = vld [vmem:[#allocation148_spill] sm:$0xff]  ;;  %v24450_v62 = vpop.f32.mrf.mxu1 }
 0x741   :  { %v15277_v6 = vmul.f32 %v24365_v31, %v15206_v26  ;;  %v18869_v27 = vpop.f32.mrf.mxu0  ;;  %v15411_v25 = vadd.f32 %v15347_v13, %v25397_v36 }
 0x742   :  { %v15533_v41 = vadd.f32 %v15532_v18, %v15470_v45  ;;  %v15275_v28 = vmul.f32 %v24365_v31, %v15204_v46  ;;  %v15209_v4 = vadd.f32 %v18869_v27, %v24221_v11  ;;  %v15409_v54 = vadd.f32 %v15345_v15, %v25395_v38  ;;  %v25398_v18 = vld [vmem:[#allocation25_spill] sm:$0xff]  ;;  %v25399_v27 = vld [vmem:[#allocation24_spill] sm:$0xff]  ;;  %v24459_v38 = vpop.f32.mrf.mxu1 }
 0x743   :  { %v15000_v40 = vpop.f32.mrf.mxu0  ;;  %v15348_v19 = vadd.f32 %v24376_v42, %v15277_v6 }
 0x744   :  { %v15534_v10 = vadd.f32 %v15533_v41, %v15471_v0  ;;  %v15346_v59 = vadd.f32 %v24376_v42, %v15275_v28  ;;  %v15207_v23 = vadd.f32 %v15000_v40, %v25396_v61  ;;  %v15473_v26 = vmax.f32 %v15409_v54, 0.0 }
 0x745   :  { %v18870_v35 = vpop.f32.mrf.mxu0  ;;  %v15280_v45 = vmul.f32 %v24365_v31, %v15209_v4  ;;  %v15412_v0 = vadd.f32 %v15348_v19, %v25399_v27  ;;  %v15475_v40 = vmax.f32 %v15411_v25, 0.0  ;;  %v25402_v27 = vld [vmem:[#allocation29_spill] sm:$0xff] }
 0x746   :  { %v15535_v24 = vadd.f32 %v15534_v10, %v15472_v33  ;;  %v15410_v11 = vadd.f32 %v15346_v59, %v25398_v18  ;;  %v15278_v51 = vmul.f32 %v24365_v31, %v15207_v23  ;;  %v15210_v46 = vadd.f32 %v18870_v35, %v24227_v49  ;;  %v25400_v59 = vld [vmem:[#allocation27_spill] sm:$0xff] }
 0x747   :  { %v15003_v15 = vpop.f32.mrf.mxu0  ;;  %v15351_v61 = vadd.f32 %v24376_v42, %v15280_v45  ;;  %v15476_v36 = vmax.f32 %v15412_v0, 0.0 }
 0x748   :  { %v15536_v6 = vadd.f32 %v15535_v24, %v15473_v26  ;;  %v15474_v41 = vmax.f32 %v15410_v11, 0.0  ;;  %v15349_v28 = vadd.f32 %v24376_v42, %v15278_v51  ;;  %v15281_v13 = vmul.f32 %v24365_v31, %v15210_v46  ;;  %v24468_v24 = vpop.f32.mrf.mxu1 }
 0x749   :  { %v15208_v33 = vadd.f32 %v15003_v15, %v24229_v34  ;;  %v18873_v54 = vpop.f32.mrf.mxu0  ;;  %v25401_v15 = vld [vmem:[#allocation26_spill] sm:$0xff] }
 0x74a   :  { %v15537_v10 = vadd.f32 %v15536_v6, %v15474_v41  ;;  %v15413_v4 = vadd.f32 %v15349_v28, %v25400_v59  ;;  %v15213_v49 = vadd.f32 %v18873_v54, %v24233_v17  ;;  %v15352_v34 = vadd.f32 %v24376_v42, %v15281_v13  ;;  %v25403_v13 = vld [vmem:[#allocation28_spill] sm:$0xff] }
 0x74b   :  { %v15279_v19 = vmul.f32 %v24365_v31, %v15208_v33  ;;  %v15016_v23 = vpop.f32.mrf.mxu0  ;;  %v15415_v6 = vadd.f32 %v15351_v61, %v25401_v15  ;;  %v24478_v33 = vpop.f32.mrf.mxu1 }
 0x74c   :  { %v15538_v35 = vadd.f32 %v15537_v10, %v15475_v40  ;;  %v15211_v26 = vadd.f32 %v15016_v23, %v24235_v55  ;;  %v15477_v18 = vmax.f32 %v15413_v4, 0.0  ;;  %v15284_v17 = vmul.f32 %v24365_v31, %v15213_v49  ;;  %v25404_v23 = vld [vmem:[#allocation31_spill] sm:$0xff] }
 0x74d   :  { %v15350_v25 = vadd.f32 %v24376_v42, %v15279_v19  ;;  %v18874_v11 = vpop.f32.mrf.mxu0  ;;  %v15416_v54 = vadd.f32 %v15352_v34, %v25403_v13  ;;  %v15479_v61 = vmax.f32 %v15415_v6, 0.0  ;;  %v24488_v34 = vpop.f32.mrf.mxu1 }
 0x74e   :  { %v15539_v51 = vadd.f32 %v15538_v35, %v15476_v36  ;;  %v15282_v45 = vmul.f32 %v24365_v31, %v15211_v26  ;;  %v15214_v46 = vadd.f32 %v18874_v11, %v24239_v56  ;;  %v15355_v56 = vadd.f32 %v24376_v42, %v15284_v17 }
 0x74f   :  { %v15414_v0 = vadd.f32 %v15350_v25, %v25402_v27  ;;  %v15019_v55 = vpop.f32.mrf.mxu0  ;;  %v15480_v25 = vmax.f32 %v15416_v54, 0.0  ;;  %v24499_v54 = vpop.f32.mrf.mxu1 }
 0x750   :  { %v15540_v41 = vadd.f32 %v15539_v51, %v15477_v18  ;;  %v15353_v28 = vadd.f32 %v24376_v42, %v15282_v45  ;;  %v15285_v10 = vmul.f32 %v24365_v31, %v15214_v46  ;;  %v15212_v59 = vadd.f32 %v15019_v55, %v24241_v16  ;;  %v25405_v45 = vld [vmem:[#allocation30_spill] sm:$0xff] }
 0x751   :  { %v15478_v40 = vmax.f32 %v15414_v0, 0.0  ;;  %v18877_v4 = vpop.f32.mrf.mxu0  ;;  %v25406_v0 = vld [vmem:[#allocation33_spill] sm:$0xff] }
 0x752   :  { %v15217_v49 = vadd.f32 %v18877_v4, %v24245_v44  ;;  %v15417_v36 = vadd.f32 %v15353_v28, %v25404_v23  ;;  %v15283_v35 = vmul.f32 %v24365_v31, %v15212_v59  ;;  %v15356_v16 = vadd.f32 %v24376_v42, %v15285_v10  ;;  %v25407_v10 = vld [vmem:[#allocation32_spill] sm:$0xff] }
 0x753   :  { %v15541_v19 = vadd.f32 %v15540_v41, %v15478_v40  ;;  %v15032_v26 = vpop.f32.mrf.mxu0  ;;  %v15419_v44 = vadd.f32 %v15355_v56, %v25405_v45 }
 0x754   :  { %v15215_v18 = vadd.f32 %v15032_v26, %v24247_v47  ;;  %v15354_v51 = vadd.f32 %v24376_v42, %v15283_v35  ;;  %v15481_v6 = vmax.f32 %v15417_v36, 0.0  ;;  %v15288_v47 = vmul.f32 %v24365_v31, %v15217_v49  ;;  %v25408_v36 = vld [vmem:[#allocation57_spill] sm:$0xff] }
 0x755   :  { %v15542_v11 = vadd.f32 %v15541_v19, %v15479_v61  ;;  %v18878_v17 = vpop.f32.mrf.mxu0  ;;  %v15420_v59 = vadd.f32 %v15356_v16, %v25407_v10  ;;  %v15483_v61 = vmax.f32 %v15419_v44, 0.0  ;;  %v25409_v44 = vld [vmem:[#allocation59_spill] sm:$0xff] }
 0x756   :  { %v15286_v46 = vmul.f32 %v24365_v31, %v15215_v18  ;;  %v15218_v15 = vadd.f32 %v18878_v17, %v24251_v5  ;;  %v15418_v55 = vadd.f32 %v15354_v51, %v25406_v0  ;;  %v15359_v49 = vadd.f32 %v24376_v42, %v15288_v47 }
 0x757   :  { %v15543_v27 = vadd.f32 %v15542_v11, %v15480_v25  ;;  %v15035_v41 = vpop.f32.mrf.mxu0  ;;  %v24509_v11 = vpop.f32.mrf.mxu1  ;;  %v15484_v16 = vmax.f32 %v15420_v59, 0.0 }
 0x758   :  { %v15357_v28 = vadd.f32 %v24376_v42, %v15286_v46  ;;  %v15216_v13 = vadd.f32 %v15035_v41, %v24253_v1  ;;  %v15482_v4 = vmax.f32 %v15418_v55, 0.0  ;;  %v15289_v56 = vmul.f32 %v24365_v31, %v15218_v15 }
 0x759   :  { %v15544_v40 = vadd.f32 %v15543_v27, %v15481_v6  ;;  %v18881_v5 = vpop.f32.mrf.mxu0  ;;  %v25410_v27 = vld [vmem:[#allocation56_spill] sm:$0xff]  ;;  %v24521_v10 = vpop.f32.mrf.mxu1 }
 0x75a   :  { %v15287_v19 = vmul.f32 %v24365_v31, %v15216_v13  ;;  %v15421_v35 = vadd.f32 %v15357_v28, %v25408_v36  ;;  %v15221_v26 = vadd.f32 %v18881_v5, %v24261_v14  ;;  %v15360_v17 = vadd.f32 %v24376_v42, %v15289_v56 }
 0x75b   :  { %v15545_v23 = vadd.f32 %v15544_v40, %v15482_v4  ;;  %v15048_v1 = vpop.f32.mrf.mxu0  ;;  %v15423_v14 = vadd.f32 %v15359_v49, %v25410_v27  ;;  %v14550_v40 = vadd.f32 %v24359_v30, %v24256_v50  ;;  %v25411_v4 = vld [vmem:[#allocation58_spill] sm:$0xff] }
 0x75c   :  { %v15358_v18 = vadd.f32 %v24376_v42, %v15287_v19  ;;  %v15219_v25 = vadd.f32 %v15048_v1, %v24263_v9  ;;  %v15485_v0 = vmax.f32 %v15421_v35, 0.0  ;;  %v15292_v47 = vmul.f32 %v24365_v31, %v15221_v26  ;;  %v25412_v35 = vld [vmem:[#allocation61_spill] sm:$0xff] }
 0x75d   :  { %v15546_v51 = vadd.f32 %v15545_v23, %v15483_v61  ;;  %v18882_v45 = vpop.f32.mrf.mxu0  ;;  %v14548_v23 = vadd.f32 %v24368_v12, %v24259_v52  ;;  %v15487_v49 = vmax.f32 %v15423_v14, 0.0  ;;  %v14551_v1 = vadd.f32 %v24381_v60, %v24266_v7  ;;  %v25413_v12 = vld [vmem:[#allocation63_spill] sm:$0xff] }
 0x75e   :  { %v15422_v46 = vadd.f32 %v15358_v18, %v25409_v44  ;;  %v15290_v15 = vmul.f32 %v24365_v31, %v15219_v25  ;;  %v15222_v6 = vadd.f32 %v18882_v45, %v24271_v39  ;;  %v15424_v39 = vadd.f32 %v15360_v17, %v25411_v4  ;;  %v24533_v18 = vpop.f32.mrf.mxu1 }
 0x75f   :  { %v15547_v55 = vadd.f32 %v15546_v51, %v15484_v16  ;;  %v15051_v9 = vpop.f32.mrf.mxu0 }
 0x760   :  { %v15486_v41 = vmax.f32 %v15422_v46, 0.0  ;;  %v15361_v28 = vadd.f32 %v24376_v42, %v15290_v15  ;;  %v15220_v13 = vadd.f32 %v15051_v9, %v24273_v29  ;;  %v15293_v56 = vmul.f32 %v24365_v31, %v15222_v6  ;;  %v25414_v6 = vld [vmem:[#allocation60_spill] sm:$0xff] }
 0x761   :  { %v15548_v59 = vadd.f32 %v15547_v55, %v15485_v0  ;;  %v18885_v5 = vpop.f32.mrf.mxu0  ;;  %v15363_v29 = vadd.f32 %v24376_v42, %v15292_v47  ;;  %v15488_v25 = vmax.f32 %v15424_v39, 0.0  ;;  %v14549_v15 = vadd.f32 %v24390_v8, %v24269_v32 }
 0x762   :  { %v15291_v61 = vmul.f32 %v24365_v31, %v15220_v13  ;;  %v15225_v19 = vadd.f32 %v18885_v5, %v14550_v40  ;;  %v15425_v50 = vadd.f32 %v15361_v28, %v25412_v35  ;;  %v15364_v51 = vadd.f32 %v24376_v42, %v15293_v56  ;;  %v24545_v28 = vpop.f32.mrf.mxu1  ;;  %v25415_v40 = vld [vmem:[#allocation62_spill] sm:$0xff] }
 0x763   :  { %v15549_v36 = vadd.f32 %v15548_v59, %v15486_v41  ;;  %v15064_v30 = vpop.f32.mrf.mxu0  ;;  %v15427_v27 = vadd.f32 %v15363_v29, %v25414_v6  ;;  %v14554_v41 = vadd.f32 %v24401_v48, %v24276_v53  ;;  %v14552_v5 = vadd.f32 %v24409_v58, %v24279_v57  ;;  %v25417_v58 = vld [vmem:[#allocation5_spill] sm:$0xff] }
 0x764   :  { %v15362_v26 = vadd.f32 %v24376_v42, %v15291_v61  ;;  %v15223_v17 = vadd.f32 %v15064_v30, %v14548_v23  ;;  %v15296_v44 = vmul.f32 %v24365_v31, %v15225_v19  ;;  %v15489_v14 = vmax.f32 %v15425_v50, 0.0  ;;  %v25416_v23 = vld [vmem:[#allocation7_spill] sm:$0xff]  ;;  %v24556_v35 = vpop.f32.mrf.mxu1 }
 0x765   :  { %v15550_v16 = vadd.f32 %v15549_v36, %v15487_v49  ;;  %v18886_v52 = vpop.f32.mrf.mxu0  ;;  %v15428_v59 = vadd.f32 %v15364_v51, %v25415_v40  ;;  %v15491_v61 = vmax.f32 %v15427_v27, 0.0 }
 0x766   :  { %v15426_v45 = vadd.f32 %v15362_v26, %v25413_v12  ;;  %v15226_v46 = vadd.f32 %v18886_v52, %v14551_v1  ;;  %v15294_v60 = vmul.f32 %v24365_v31, %v15223_v17  ;;  %v15367_v4 = vadd.f32 %v24376_v42, %v15296_v44 }
 0x767   :  { %v15551_v7 = vadd.f32 %v15550_v16, %v15488_v25  ;;  %v15067_v0 = vpop.f32.mrf.mxu0  ;;  %v15492_v50 = vmax.f32 %v15428_v59, 0.0  ;;  %v14555_v1 = vadd.f32 %v24420_v21, %v24282_v20  ;;  %v25418_v16 = vld [vmem:[#allocation35_spill] sm:$0xff]  ;;  %v14553_v52 = vadd.f32 %v24429_v2, %v24285_v3 }
 0x768   :  { %v15490_v55 = vmax.f32 %v15426_v45, 0.0  ;;  %v15297_v47 = vmul.f32 %v24365_v31, %v15226_v46  ;;  %v15224_v9 = vadd.f32 %v15067_v0, %v14549_v15  ;;  %v15365_v32 = vadd.f32 %v24376_v42, %v15294_v60  ;;  %v25419_v45 = vld [vmem:[#allocation34_spill] sm:$0xff] }
 0x769   :  { %v15552_v13 = vadd.f32 %v15551_v7, %v15489_v14  ;;  %v18889_v8 = vpop.f32.mrf.mxu0  ;;  %v15431_v25 = vadd.f32 %v15367_v4, %v25417_v58  ;;  %v24570_v14 = vpop.f32.mrf.mxu1  ;;  %v14558_v3 = vadd.f32 %v24439_v37, %v24288_v22  ;;  %v14556_v0 = vadd.f32 %v24450_v62, %v24291_v43  ;;  %v25421_v43 = vld [vmem:[#allocation36_spill] sm:$0xff] }
 0x76a   :  { %v15295_v39 = vmul.f32 %v24365_v31, %v15224_v9  ;;  %v15229_v56 = vadd.f32 %v18889_v8, %v14554_v41  ;;  %v15368_v53 = vadd.f32 %v24376_v42, %v15297_v47  ;;  %v15429_v49 = vadd.f32 %v15365_v32, %v25416_v23  ;;  %v25420_v9 = vld [vmem:[#allocation37_spill] sm:$0xff] }
 0x76b   :  { %v15553_v19 = vadd.f32 %v15552_v13, %v15490_v55  ;;  %v15080_v48 = vpop.f32.mrf.mxu0  ;;  %v15495_v55 = vmax.f32 %v15431_v25, 0.0  ;;  %v14559_v8 = vadd.f32 %v24459_v38, %v24294_v63  ;;  %v25423_v38 = vld [vmem:[#allocation77_spill] sm:$0xff] }
 0x76c   :  { %v15366_v36 = vadd.f32 %v24376_v42, %v15295_v39  ;;  %v15227_v29 = vadd.f32 %v15080_v48, %v14552_v5  ;;  %v15300_v26 = vmul.f32 %v24365_v31, %v15229_v56  ;;  %v15432_v44 = vadd.f32 %v15368_v53, %v25419_v45  ;;  %v24584_v56 = vpop.f32.mrf.mxu1  ;;  %v25422_v53 = vld [vmem:[#allocation39_spill] sm:$0xff] }
 0x76d   :  { %v15554_v30 = vadd.f32 %v15553_v19, %v15491_v61  ;;  %v18890_v57 = vpop.f32.mrf.mxu0  ;;  %v15493_v6 = vmax.f32 %v15429_v49, 0.0 }
 0x76e   :  { %v15430_v51 = vadd.f32 %v15366_v36, %v25418_v16  ;;  %v15298_v17 = vmul.f32 %v24365_v31, %v15227_v29  ;;  %v15230_v46 = vadd.f32 %v18890_v57, %v14555_v1  ;;  %v15371_v7 = vadd.f32 %v24376_v42, %v15300_v26  ;;  %v24594_v58 = vpop.f32.mrf.mxu1 }
 0x76f   :  { %v24566_v12 = vadd.f32 %v15554_v30, %v15492_v50  ;;  %v15083_v15 = vpop.f32.mrf.mxu0  ;;  %v15496_v40 = vmax.f32 %v15432_v44, 0.0  ;;  %v14557_v36 = vadd.f32 %v24468_v24, %v25423_v38  ;;  %v25424_v30 = vld [vmem:[#allocation38_spill] sm:$0xff] }
 0x770   :  { %v15494_v27 = vmax.f32 %v15430_v51, 0.0  ;;  %v15369_v20 = vadd.f32 %v24376_v42, %v15298_v17  ;;  %v15228_v21 = vadd.f32 %v15083_v15, %v14553_v52  ;;  %v15301_v60 = vmul.f32 %v24365_v31, %v15230_v46  ;;  %v25425_v51 = vld [vmem:[#allocation149_spill] sm:$0xff] }
 0x771   :  { %v18893_v2 = vpop.f32.mrf.mxu0  ;;  %v15435_v62 = vadd.f32 %v15371_v7, %v25421_v43  ;;  %v14562_v17 = vadd.f32 %v24478_v33, %v25425_v51  ;;  %v25426_v46 = vld [vmem:[#allocation41_spill] sm:$0xff]  ;;  %v24606_v33 = vpop.f32.mrf.mxu1 }
 0x772   :  { %v15562_v47 = vadd.f32 %v15494_v27, %v15493_v6  ;;  %v15433_v41 = vadd.f32 %v15369_v20, %v25420_v9  ;;  %v15299_v13 = vmul.f32 %v24365_v31, %v15228_v21  ;;  %v15233_v59 = vadd.f32 %v18893_v2, %v14558_v3  ;;  %v25427_v20 = vld [vmem:[#allocation78_spill] sm:$0xff] }
 0x773   :  { %v15096_v32 = vpop.f32.mrf.mxu0  ;;  %v15372_v39 = vadd.f32 %v24376_v42, %v15301_v60  ;;  %v15499_v45 = vmax.f32 %v15435_v62, 0.0  ;;  %v14560_v21 = vadd.f32 %v24488_v34, %v25427_v20  ;;  %v25428_v2 = vld [vmem:[#allocation150_spill] sm:$0xff] }
 0x774   :  { %v15563_v4 = vadd.f32 %v15562_v47, %v15495_v55  ;;  %v15370_v22 = vadd.f32 %v24376_v42, %v15299_v13  ;;  %v15231_v37 = vadd.f32 %v15096_v32, %v14556_v0  ;;  %v15497_v5 = vmax.f32 %v15433_v41, 0.0  ;;  %v25429_v32 = vld [vmem:[#allocation152_spill] sm:$0xff] }
 0x775   :  { %v18894_v61 = vpop.f32.mrf.mxu0  ;;  %v15304_v63 = vmul.f32 %v24365_v31, %v15233_v59  ;;  %v15436_v26 = vadd.f32 %v15372_v39, %v25424_v30  ;;  %v14563_v0 = vadd.f32 %v24499_v54, %v25428_v2  ;;  %v14561_v34 = vadd.f32 %v24509_v11, %v25429_v32  ;;  %v25439_v2 = vld [vmem:[#allocation44_spill] sm:$0xff] }
 0x776   :  { %v15564_v19 = vadd.f32 %v15563_v4, %v15496_v40  ;;  %v15434_v48 = vadd.f32 %v15370_v22, %v25422_v53  ;;  %v15302_v23 = vmul.f32 %v24365_v31, %v15231_v37  ;;  %v15234_v49 = vadd.f32 %v18894_v61, %v14559_v8  ;;  %v24612_v8 = vpop.f32.mrf.mxu1  ;;  %v25430_v4 = vld [vmem:[#allocation40_spill] sm:$0xff]  ;;  %v25431_v22 = vld [vmem:[#allocation43_spill] sm:$0xff] }
 0x777   :  { %v15099_v29 = vpop.f32.mrf.mxu0  ;;  %v15375_v15 = vadd.f32 %v24376_v42, %v15304_v63  ;;  %v15500_v60 = vmax.f32 %v15436_v26, 0.0 }
 0x778   :  { %v15565_v50 = vadd.f32 %v15564_v19, %v15497_v5  ;;  %v15498_v1 = vmax.f32 %v15434_v48, 0.0  ;;  %v15373_v57 = vadd.f32 %v24376_v42, %v15302_v23  ;;  %v15305_v25 = vmul.f32 %v24365_v31, %v15234_v49  ;;  %v25432_v19 = vld [vmem:[#allocation151_spill] sm:$0xff]  ;;  %v25433_v48 = vld [vmem:[#allocation42_spill] sm:$0xff]  ;;  %v24626_v26 = vpop.f32.mrf.mxu1 }
 0x779   :  { %v15232_v16 = vadd.f32 %v15099_v29, %v14557_v36  ;;  %v18897_v52 = vpop.f32.mrf.mxu0  ;;  %v15439_v39 = vadd.f32 %v15375_v15, %v25430_v4  ;;  %v14566_v53 = vadd.f32 %v24521_v10, %v25432_v19  ;;  %v25441_v4 = vld [vmem:[#allocation46_spill] sm:$0xff] }
 0x77a   :  { %v15566_v44 = vadd.f32 %v15565_v50, %v15498_v1  ;;  %v15437_v24 = vadd.f32 %v15373_v57, %v25426_v46  ;;  %v15237_v27 = vadd.f32 %v18897_v52, %v14562_v17  ;;  %v15376_v55 = vadd.f32 %v24376_v42, %v15305_v25  ;;  %v25434_v50 = vld [vmem:[#allocation95_spill] sm:$0xff]  ;;  %v25435_v25 = vld [vmem:[#allocation45_spill] sm:$0xff] }
 0x77b   :  { %v15303_v6 = vmul.f32 %v24365_v31, %v15232_v16  ;;  %v15112_v7 = vpop.f32.mrf.mxu0  ;;  %v14564_v30 = vadd.f32 %v24533_v18, %v25434_v50  ;;  %v15503_v1 = vmax.f32 %v15439_v39, 0.0  ;;  %v25445_v50 = vld [vmem:[#allocation48_spill] sm:$0xff] }
 0x77c   :  { %v15567_v3 = vadd.f32 %v15566_v44, %v15499_v45  ;;  %v15235_v9 = vadd.f32 %v15112_v7, %v14560_v21  ;;  %v15501_v13 = vmax.f32 %v15437_v24, 0.0  ;;  %v15308_v37 = vmul.f32 %v24365_v31, %v15237_v27  ;;  %v25436_v45 = vld [vmem:[#allocation153_spill] sm:$0xff]  ;;  %v25437_v27 = vld [vmem:[#allocation47_spill] sm:$0xff] }
 0x77d   :  { %v15374_v47 = vadd.f32 %v24376_v42, %v15303_v6  ;;  %v18898_v41 = vpop.f32.mrf.mxu0  ;;  %v15440_v23 = vadd.f32 %v15376_v55, %v25433_v48  ;;  %v14567_v44 = vadd.f32 %v24545_v28, %v25436_v45  ;;  %v25438_v7 = vld [vmem:[#allocation81_spill] sm:$0xff] }
 0x77e   :  { %v15568_v40 = vadd.f32 %v15567_v3, %v15500_v60  ;;  %v15238_v59 = vadd.f32 %v18898_v41, %v14563_v0  ;;  %v15306_v43 = vmul.f32 %v24365_v31, %v15235_v9  ;;  %v15379_v10 = vadd.f32 %v24376_v42, %v15308_v37  ;;  %v18830_v3 = vpop.f32.mrf.mxu1  ;;  %v25443_v48 = vld [vmem:[#allocation49_spill] sm:$0xff] }
 0x77f   :  { %v15438_v54 = vadd.f32 %v15374_v47, %v25431_v22  ;;  %v15115_v62 = vpop.f32.mrf.mxu0  ;;  %v15504_v46 = vmax.f32 %v15440_v23, 0.0  ;;  %v14565_v60 = vadd.f32 %v24556_v35, %v25438_v7 }
 0x780   :  { %v15569_v5 = vadd.f32 %v15568_v40, %v15501_v13  ;;  %v15236_v61 = vadd.f32 %v15115_v62, %v14561_v34  ;;  %v15377_v11 = vadd.f32 %v24376_v42, %v15306_v43  ;;  %v15309_v63 = vmul.f32 %v24365_v31, %v15238_v59  ;;  %v25440_v59 = vld [vmem:[#allocation154_spill] sm:$0xff] }
 0x781   :  { %v15502_v49 = vmax.f32 %v15438_v54, 0.0  ;;  %v18901_v38 = vpop.f32.mrf.mxu0  ;;  %v15443_v0 = vadd.f32 %v15379_v10, %v25439_v2  ;;  %v14570_v32 = vadd.f32 %v24570_v14, %v25440_v59  ;;  %v25442_v62 = vld [vmem:[#allocation82_spill] sm:$0xff] }
 0x782   :  { %v15307_v36 = vmul.f32 %v24365_v31, %v15236_v61  ;;  %v15241_v29 = vadd.f32 %v18901_v38, %v14566_v53  ;;  %v15441_v16 = vadd.f32 %v15377_v11, %v25435_v25  ;;  %v15380_v15 = vadd.f32 %v24376_v42, %v15309_v63  ;;  %v14488_v61 = vpop.f32.mrf.mxu1  ;;  %v25444_v63 = vld [vmem:[#allocation155_spill] sm:$0xff] }
 0x783   :  { %v15570_v57 = vadd.f32 %v15569_v5, %v15502_v49  ;;  %v15128_v51 = vpop.f32.mrf.mxu0  ;;  %v14568_v5 = vadd.f32 %v24584_v56, %v25442_v62  ;;  %v15507_v19 = vmax.f32 %v15443_v0, 0.0  ;;  %v14571_v38 = vadd.f32 %v24594_v58, %v25444_v63  ;;  %v25446_v56 = vld [vmem:[#allocation51_spill] sm:$0xff]  ;;  %v25450_v0 = vld [vmem:[#allocation94_spill] sm:$0xff]  ;;  %v25454_v62 = vld [vmem:[#allocation52_spill] sm:$0xff] }
 0x784   :  { %v15378_v17 = vadd.f32 %v24376_v42, %v15307_v36  ;;  %v15239_v52 = vadd.f32 %v15128_v51, %v14564_v30  ;;  %v15312_v18 = vmul.f32 %v24365_v31, %v15241_v29  ;;  %v15505_v55 = vmax.f32 %v15441_v16, 0.0 }
 0x785   :  { %v15571_v24 = vadd.f32 %v15570_v57, %v15503_v1  ;;  %v18902_v6 = vpop.f32.mrf.mxu0  ;;  %v15444_v39 = vadd.f32 %v15380_v15, %v25441_v4 }
 0x786   :  { %v15442_v20 = vadd.f32 %v15378_v17, %v25437_v27  ;;  %v15310_v21 = vmul.f32 %v24365_v31, %v15239_v52  ;;  %v15242_v28 = vadd.f32 %v18902_v6, %v14567_v44  ;;  %v15383_v22 = vadd.f32 %v24376_v42, %v15312_v18  ;;  %v18833_v17 = vpop.f32.mrf.mxu1  ;;  %v25447_v44 = vld [vmem:[#allocation100_spill] sm:$0xff] }
 0x787   :  { %v15572_v47 = vadd.f32 %v15571_v24, %v15504_v46  ;;  %v15131_v9 = vpop.f32.mrf.mxu0  ;;  %v15508_v36 = vmax.f32 %v15444_v39, 0.0  ;;  %v14569_v58 = vadd.f32 %v24606_v33, %v25447_v44  ;;  %v25448_v24 = vld [vmem:[#allocation156_spill] sm:$0xff] }
 0x788   :  { %v15506_v41 = vmax.f32 %v15442_v20, 0.0  ;;  %v15381_v13 = vadd.f32 %v24376_v42, %v15310_v21  ;;  %v15240_v40 = vadd.f32 %v15131_v9, %v14565_v60  ;;  %v15313_v35 = vmul.f32 %v24365_v31, %v15242_v28  ;;  %v25449_v20 = vld [vmem:[#allocation50_spill] sm:$0xff]  ;;  %v14501_v28 = vpop.f32.mrf.mxu1 }
 0x789   :  { %v15573_v34 = vadd.f32 %v15572_v47, %v15505_v55  ;;  %v18905_v54 = vpop.f32.mrf.mxu0  ;;  %v15447_v30 = vadd.f32 %v15383_v22, %v25445_v50  ;;  %v14574_v15 = vadd.f32 %v24612_v8, %v25448_v24  ;;  %v14572_v55 = vadd.f32 %v24626_v26, %v25450_v0  ;;  %v25461_v0 = vld [vmem:[#allocation163_spill] sm:$0xff] }
 0x78a   :  { %v15311_v37 = vmul.f32 %v24365_v31, %v15240_v40  ;;  %v15245_v43 = vadd.f32 %v18905_v54, %v14570_v32  ;;  %v15445_v23 = vadd.f32 %v15381_v13, %v25443_v48  ;;  %v15384_v1 = vadd.f32 %v24376_v42, %v15313_v35  ;;  %v25452_v32 = vld [vmem:[#allocation157_spill] sm:$0xff]  ;;  %v18834_v48 = vpop.f32.mrf.mxu1 }
 0x78b   :  { %v15574_v53 = vadd.f32 %v15573_v34, %v15506_v41  ;;  %v15144_v14 = vpop.f32.mrf.mxu0  ;;  %v15511_v47 = vmax.f32 %v15447_v30, 0.0  ;;  %v25451_v41 = vld [vmem:[#allocation53_spill] sm:$0xff]  ;;  %v14575_v34 = vadd.f32 %v18830_v3, %v25452_v32 }
 0x78c   :  { %v15382_v49 = vadd.f32 %v24376_v42, %v15311_v37  ;;  %v15243_v11 = vadd.f32 %v15144_v14, %v14568_v5  ;;  %v15316_v25 = vmul.f32 %v24365_v31, %v15245_v43  ;;  %v15509_v52 = vmax.f32 %v15445_v23, 0.0  ;;  %v25453_v37 = vld [vmem:[#allocation159_spill] sm:$0xff] }
 0x78d   :  { %v15575_v29 = vadd.f32 %v15574_v53, %v15507_v19  ;;  %v18906_v57 = vpop.f32.mrf.mxu0  ;;  %v15448_v21 = vadd.f32 %v15384_v1, %v25449_v20  ;;  %v14573_v43 = vadd.f32 %v14488_v61, %v25453_v37  ;;  %v25457_v61 = vld [vmem:[#allocation54_spill] sm:$0xff] }
 0x78e   :  { %v15446_v10 = vadd.f32 %v15382_v49, %v25446_v56  ;;  %v15314_v16 = vmul.f32 %v24365_v31, %v15243_v11  ;;  %v15246_v51 = vadd.f32 %v18906_v57, %v14571_v38  ;;  %v15387_v33 = vadd.f32 %v24376_v42, %v15316_v25  ;;  %v25455_v49 = vld [vmem:[#allocation55_spill] sm:$0xff]  ;;  %v25456_v38 = vld [vmem:[#allocation158_spill] sm:$0xff]  ;;  %v25458_v25 = vld [vmem:[#allocation161_spill] sm:$0xff] }
 0x78f   :  { %v15576_v45 = vadd.f32 %v15575_v29, %v15508_v36  ;;  %v15147_v46 = vpop.f32.mrf.mxu0  ;;  %v15512_v39 = vmax.f32 %v15448_v21, 0.0  ;;  %v14578_v36 = vadd.f32 %v18833_v17, %v25456_v38  ;;  %v25459_v17 = vld [vmem:[#allocation65_spill] sm:$0xff]  ;;  %v25467_v38 = vld [vmem:[#allocation68_spill] sm:$0xff] }
 0x790   :  { %v15510_v18 = vmax.f32 %v15446_v10, 0.0  ;;  %v15385_v6 = vadd.f32 %v24376_v42, %v15314_v16  ;;  %v15317_v7 = vmul.f32 %v24365_v31, %v15246_v51  ;;  %v15244_v60 = vadd.f32 %v15147_v46, %v14569_v58 }
 0x791   :  { %v15577_v27 = vadd.f32 %v15576_v45, %v15509_v52  ;;  %v18909_v2 = vpop.f32.mrf.mxu0  ;;  %v15451_v5 = vadd.f32 %v15387_v33, %v25454_v62  ;;  %v14576_v16 = vadd.f32 %v14501_v28, %v25458_v25  ;;  %v14504_v45 = vpop.f32.mrf.mxu1 }
 0x792   :  { %v15449_v8 = vadd.f32 %v15385_v6, %v25451_v41  ;;  %v15315_v13 = vmul.f32 %v24365_v31, %v15244_v60  ;;  %v15249_v40 = vadd.f32 %v18909_v2, %v14574_v15  ;;  %v15388_v35 = vadd.f32 %v24376_v42, %v15317_v7  ;;  %v25463_v41 = vld [vmem:[#allocation64_spill] sm:$0xff] }
 0x793   :  { %v15578_v9 = vadd.f32 %v15577_v27, %v15510_v18  ;;  %v15160_v59 = vpop.f32.mrf.mxu0  ;;  %v15515_v51 = vmax.f32 %v15451_v5, 0.0  ;;  %v25460_v18 = vld [vmem:[#allocation160_spill] sm:$0xff] }
 0x794   :  { %v15247_v4 = vadd.f32 %v15160_v59, %v14572_v55  ;;  %v15386_v26 = vadd.f32 %v24376_v42, %v15315_v13  ;;  %v15513_v23 = vmax.f32 %v15449_v8, 0.0  ;;  %v15320_v11 = vmul.f32 %v24365_v31, %v15249_v40 }
 0x795   :  { %v15579_v22 = vadd.f32 %v15578_v9, %v15511_v47  ;;  %v18910_v54 = vpop.f32.mrf.mxu0  ;;  %v15452_v1 = vadd.f32 %v15388_v35, %v25457_v61  ;;  %v14579_v6 = vadd.f32 %v18834_v48, %v25460_v18  ;;  %v14577_v55 = vadd.f32 %v14504_v45, %v25461_v0  ;;  %v25462_v47 = vld [vmem:[#allocation67_spill] sm:$0xff]  ;;  %v25464_v35 = vld [vmem:[#allocation66_spill] sm:$0xff] }
 0x796   :  { %v15318_v19 = vmul.f32 %v24365_v31, %v15247_v4  ;;  %v15250_v53 = vadd.f32 %v18910_v54, %v14575_v34  ;;  %v15450_v3 = vadd.f32 %v15386_v26, %v25455_v49  ;;  %v15391_v58 = vadd.f32 %v24376_v42, %v15320_v11  ;;  %v25466_v11 = vld [vmem:[#allocation71_spill] sm:$0xff] }
 0x797   :  { %v15580_v14 = vadd.f32 %v15579_v22, %v15512_v39  ;;  %v15163_v63 = vpop.f32.mrf.mxu0  ;;  %v15516_v21 = vmax.f32 %v15452_v1, 0.0  ;;  %v25468_v1 = vld [vmem:[#allocation70_spill] sm:$0xff] }
 0x798   :  { %v15389_v29 = vadd.f32 %v24376_v42, %v15318_v19  ;;  %v15248_v50 = vadd.f32 %v15163_v63, %v14573_v43  ;;  %v15514_v57 = vmax.f32 %v15450_v3, 0.0  ;;  %v15321_v56 = vmul.f32 %v24365_v31, %v15250_v53  ;;  %v25465_v19 = vld [vmem:[#allocation69_spill] sm:$0xff] }
 0x799   :  { %v15581_v30 = vadd.f32 %v15580_v14, %v15513_v23  ;;  %v18913_v10 = vpop.f32.mrf.mxu0  ;;  %v15455_v8 = vadd.f32 %v15391_v58, %v25463_v41  ;;  %v15556_v23 = vrot.slane %v24566_v12, 4 }
 0x79a   :  { %v15319_v52 = vmul.f32 %v24365_v31, %v15248_v50  ;;  %v15453_v46 = vadd.f32 %v15389_v29, %v25459_v17  ;;  %v15253_v24 = vadd.f32 %v18913_v10, %v14578_v36  ;;  %v15392_v60 = vadd.f32 %v24376_v42, %v15321_v56 }
 0x79b   :  { %v15582_v44 = vadd.f32 %v15581_v30, %v15514_v57  ;;  %v15176_v15 = vpop.f32.mrf.mxu0  ;;  %v15519_v43 = vmax.f32 %v15455_v8, 0.0  ;;  %v15557_v30 = vadd.f32 %v15556_v23, %v24566_v12 }
 0x79c   :  { %v15390_v27 = vadd.f32 %v24376_v42, %v15319_v52  ;;  %v15251_v20 = vadd.f32 %v15176_v15, %v14576_v16  ;;  %v15517_v13 = vmax.f32 %v15453_v46, 0.0  ;;  %v15324_v59 = vmul.f32 %v24365_v31, %v15253_v24 }
 0x79d   :  { %v15583_v7 = vadd.f32 %v15582_v44, %v15515_v51  ;;  %v18914_v2 = vpop.f32.mrf.mxu0  ;;  %v15456_v26 = vadd.f32 %v15392_v60, %v25464_v35  ;;  %v15558_v25 = vrot.slane %v15557_v30, 2 }
 0x79e   :  { %v15454_v33 = vadd.f32 %v15390_v27, %v25462_v47  ;;  %v15322_v28 = vmul.f32 %v24365_v31, %v15251_v20  ;;  %v15254_v9 = vadd.f32 %v18914_v2, %v14579_v6  ;;  %v15395_v5 = vadd.f32 %v24376_v42, %v15324_v59 }
 0x79f   :  { %v15584_v40 = vadd.f32 %v15583_v7, %v15516_v21  ;;  %v15179_v32 = vpop.f32.mrf.mxu0  ;;  %v15520_v14 = vmax.f32 %v15456_v26, 0.0  ;;  %v15559_v45 = vadd.f32 %v15558_v25, %v15557_v30 }
 0x7a0   :  { %v15518_v34 = vmax.f32 %v15454_v33, 0.0  ;;  %v15393_v4 = vadd.f32 %v24376_v42, %v15322_v28  ;;  %v15252_v39 = vadd.f32 %v15179_v32, %v14577_v55  ;;  %v15325_v54 = vmul.f32 %v24365_v31, %v15254_v9 }
 0x7a1   :  { %v15585_v22 = vadd.f32 %v15584_v40, %v15517_v13  ;;  %v15459_v36 = vadd.f32 %v15395_v5, %v25467_v38  ;;  %v15560_v58 = vrot.slane %v15559_v45, 1 }
 0x7a2   :  { %v15323_v37 = vmul.f32 %v24365_v31, %v15252_v39  ;;  %v15457_v53 = vadd.f32 %v15393_v4, %v25465_v19  ;;  %v15396_v3 = vadd.f32 %v24376_v42, %v15325_v54 }
 0x7a3   :  { %v15586_v62 = vadd.f32 %v15585_v22, %v15518_v34  ;;  %v15523_v56 = vmax.f32 %v15459_v36, 0.0  ;;  %v15561_v24 = vadd.f32 %v15560_v58, %v15559_v45 }
 0x7a4   :  { %v15394_v48 = vadd.f32 %v24376_v42, %v15323_v37  ;;  %v15521_v29 = vmax.f32 %v15457_v53, 0.0  ;;  %v15460_v57 = vadd.f32 %v15396_v3, %v25468_v1 }
 0x7a5   :  { %v15587_v49 = vadd.f32 %v15586_v62, %v15519_v43  ;;  %v15599_v12 = vmul.f32 0.00390625, %v15561_v24 }
 0x7a6   :  { %v15458_v63 = vadd.f32 %v15394_v48, %v25466_v11  ;;  %v15524_v16 = vmax.f32 %v15460_v57, 0.0 }
 0x7a7   :  { %v15588_v31 = vadd.f32 %v15587_v49, %v15520_v14 }
 0x7a8   :  { %v15522_v50 = vmax.f32 %v15458_v63, 0.0 }
 0x7a9   :  { %v15589_v61 = vadd.f32 %v15588_v31, %v15521_v29 }
 0x7ab   :  { %v15590_v10 = vadd.f32 %v15589_v61, %v15522_v50 }
 0x7ad   :  { %v15591_v51 = vadd.f32 %v15590_v10, %v15523_v56 }
 0x7af   :  { %v15592_v52 = vadd.f32 %v15591_v51, %v15524_v16 }
 0x7b1   :  { %v15593_v42 = vrot.slane %v15592_v52, 4 }
 0x7b3   :  { %v15594_v44 = vadd.f32 %v15593_v42, %v15592_v52 }
 0x7b5   :  { %v15595_v17 = vrot.slane %v15594_v44, 2 }
 0x7b7   :  { %v15596_v46 = vadd.f32 %v15595_v17, %v15594_v44 }
 0x7b9   :  { %v15597_v15 = vrot.slane %v15596_v46, 1 }
 0x7bb   :  { %v15598_v18 = vadd.f32 %v15597_v15, %v15596_v46 }
 0x7bd   :  { %v15600_v6 = vmul.f32 0.00390625, %v15598_v18 }
 0x7bf   :  { %v15604_v27 = vsel %vm15603_vm10, %v15600_v6, %v15599_v12 }
 0x7c0   :  { %v15607_v20 = vsel %vm15606_vm11, %v15604_v27, 0.0 }
 0x7c1   :  { %15608 = vst [vmem:[%s24720_s10] sm:$0xff] %v15607_v20 }

</bundles_post_ra>
